<compile_context>
chip_gen: v7x
topology: tpu7x:2x2x1
jax: 0.10.0
libtpu: 0.0.40
codegen_flags: <defaults>
</compile_context>

<pallas_src>
import functools

import jax
import jax.numpy as jnp
import numpy as np
from jax.experimental import pallas as pl
from jax.experimental.pallas import tpu as pltpu


_KS = (3, 5, 3, 5, 3)   # kernel sizes of the 5 convs in disp_estimator
_PAD = 2                # halo width of the shared activation buffer (max K//2)
_CMID = 64              # hidden channels


def _round_up(x, m):
    return ((x + m - 1) // m) * m


def _vmem_limit_bytes():
    """Per-generation scoped-VMEM budget (~48 MiB v7x, ~96 MiB v5e/v6e)."""
    try:
        cap = pltpu.get_tpu_info().vmem_capacity_bytes
        return int(min(cap * 3 // 4, 96 * 1024 * 1024))
    except Exception:
        return 32 * 1024 * 1024


# ---------------------------------------------------------------------------
# Fused Pallas kernel: conv1..conv5 (+ReLU) + dis (1x1), one batch element.
#
# Flat activation layout: flat row  lead + Y*wp + X  holds padded-image
# position (Y, X); the image interior pixel (oy, ox) lives at
#   o0 + oy*wp + ox,   o0 = lead + _PAD*wp + _PAD   (o0 % 8 == 0 by design).
# Each conv computes `nrows = h*wp` consecutive output rows starting at o0;
# a tap (dy, dx) of a KxK conv reads the contiguous slab starting at
#   o0 + (dy - K//2)*wp + (dx - K//2).
# Rows whose column lands outside the interior are garbage; they are masked
# to zero before being stored back so the halo ring stays zero.
# ---------------------------------------------------------------------------
def _estimator_kernel(x_ref,
                      w1, b1, w2, b2, w3, b3, w4, b4, w5, b5, wd, bd,
                      o_ref, pad_ref, *, h, w, wp, lead):
    # x_ref  : (1, Nflat, an2) bf16   input views, flat zero-haloed layout
    # w*     : (K*K, Cin, Cout) bf16  per-tap conv weights
    # b*     : (1, Cout)        f32   conv biases
    # wd     : (an2, 64)        bf16  dis 1x1 weights, channel-major
    # bd     : (an2, 1)         f32   dis bias, channel-major
    # o_ref  : (1, an2, h*wp)   f32   lane-dense, channels-major output
    # pad_ref: (Nflat, 64)      bf16  shared flat activation buffer
    nrows = h * wp
    o0 = lead + _PAD * wp + _PAD            # interior origin, multiple of 8
    nflat = pad_ref.shape[0]
    an2 = x_ref.shape[-1]

    # Zero only the never-written lead/top-halo and bottom-halo/tail rows.
    pad_ref[0:o0, :] = jnp.zeros((o0, _CMID), jnp.bfloat16)
    pad_ref[o0 + nrows:nflat, :] = jnp.zeros(
        (nflat - o0 - nrows, _CMID), jnp.bfloat16)

    # Valid-pixel mask over the extended output rows: row r is a real pixel
    # iff (r % wp) < w; wrap rows get zeroed so they keep acting as halo.
    r = jax.lax.broadcasted_iota(jnp.int32, (nrows, 1), 0)
    valid = (r % wp) < w

    def conv(src_slab, w_ref, b_ref, K):
        """Shift-and-accumulate conv: K*K matmuls over contiguous slabs."""
        p = K // 2
        acc = None
        for dy in range(K):
            for dx in range(K):
                off = (dy - p) * wp + (dx - p)
                tap = jnp.dot(src_slab(off), w_ref[dy * K + dx],
                              preferred_element_type=jnp.float32)
                acc = tap if acc is None else acc + tap
        return jnp.maximum(acc + b_ref[...], 0.0)        # (nrows, Cout) f32

    def in_slab(off):                                    # conv1 source
        return x_ref[0, o0 + off:o0 + off + nrows, :]    # (nrows, an2) bf16

    def pad_slab(off):                                   # conv2..5 source
        return pad_ref[o0 + off:o0 + off + nrows, :]     # (nrows, 64) bf16

    # conv1 straight from the flat-padded input block.
    feat = conv(in_slab, w1, b1, _KS[0])
    # conv2..conv5 through the shared buffer; conv5's output is not stored
    # back (it only feeds the 1x1 dis epilogue).
    for w_ref, b_ref, K in ((w2, b2, _KS[1]), (w3, b3, _KS[2]),
                            (w4, b4, _KS[3]), (w5, b5, _KS[4])):
        pad_ref[o0:o0 + nrows, :] = (
            jnp.where(valid, feat, 0.0).astype(jnp.bfloat16))
        feat = conv(pad_slab, w_ref, b_ref, K)

    # dis (1x1, 64 -> an2), channel-major so the HBM store is lane-dense.
    out_cm = jax.lax.dot_general(
        wd[...], feat.astype(jnp.bfloat16),
        dimension_numbers=(((1,), (1,)), ((), ())),      # contract channel dims
        preferred_element_type=jnp.float32) + bd[...]    # (an2, nrows)
    o_ref[...] = out_cm.reshape(1, an2, nrows)


# ---------------------------------------------------------------------------
# Glue that mirrors the PyTorch module (plain JAX)
# ---------------------------------------------------------------------------
def lf_split(x, ang_res):
    """LFsplit: x (b, c, H, W) -> (b, ang_res**2, c, h, w)."""
    b, c, H, W = x.shape
    h, w = H // ang_res, W // ang_res
    views = []
    for u in range(ang_res):
        for v in range(ang_res):
            views.append(x[:, :, u * h:(u + 1) * h, v * w:(v + 1) * w])
    return jnp.stack(views, axis=1)


def ind_cal(angout, angin):
    ind_all = np.arange(angout * angout).reshape(angout, angout)
    delt = (angout - 1) // (angin - 1)
    ind_source = ind_all[0:angout:delt, 0:angout:delt]
    return jnp.asarray(ind_source.reshape(-1))


def init_params(ang_res, key):
    """Deterministic synthetic weights matching the module's shapes (HWIO)."""
    an2 = ang_res * ang_res
    layer_defs = [
        (an2, 64, 3),   # conv1
        (64, 64, 5),    # conv2
        (64, 64, 3),    # conv3
        (64, 64, 5),    # conv4
        (64, 64, 3),    # conv5
        (64, an2, 1),   # dis
    ]
    params = []
    for i, (cin, cout, k) in enumerate(layer_defs):
        kw, kb = jax.random.split(jax.random.fold_in(key, i))
        scale = 1.0 / np.sqrt(cin * k * k)
        wgt = jax.random.uniform(kw, (k, k, cin, cout), jnp.float32, -scale, scale)
        b = jax.random.uniform(kb, (cout,), jnp.float32, -scale, scale)
        params.append((wgt, b))
    return params


def estimator_forward(x, params, ang_res):
    """x: (b, 1, H, W) NCHW.  Returns disp_target: (b, an2, h, w) NCHW."""
    an2 = ang_res * ang_res
    x_sv = lf_split(x, ang_res)                      # (b, an2, 1, h, w)
    b, n, c, h, w = x_sv.shape
    estimatein = x_sv.reshape(b, n, h, w)            # (b, an2, h, w)  (c == 1)
    feat = jnp.transpose(estimatein, (0, 2, 3, 1))   # NHWC: (b, h, w, an2)

    # Flat zero-haloed layout geometry (shared by the input and the scratch).
    wp = _round_up(w + 2 * _PAD, 8)                  # padded row stride
    hp = h + 2 * _PAD
    lead = (-(_PAD * wp + _PAD)) % 8                 # aligns the interior origin
    o0 = lead + _PAD * wp + _PAD
    nrows = h * wp
    nflat = _round_up(o0 + nrows + _PAD * wp + _PAD, 8)

    # Build the flat padded input once in the wrapper (tiny, an2 channels).
    padded = jnp.pad(feat, ((0, 0), (_PAD, _PAD), (_PAD, wp - w - _PAD), (0, 0)))
    flat = padded.reshape(b, hp * wp, an2)
    flat = jnp.pad(flat, ((0, 0), (lead, nflat - lead - hp * wp), (0, 0)))
    x_in = flat.astype(jnp.bfloat16)                 # (b, nflat, an2)

    # Per-tap conv weights (K*K, Cin, Cout) bf16, biases (1, Cout) f32;
    # dis weights channel-major (an2, 64) bf16 with (an2, 1) f32 bias.
    flat_params = []
    for (wgt, bias) in params[:5]:
        K, _, cin, cout = wgt.shape
        flat_params.append(wgt.reshape(K * K, cin, cout).astype(jnp.bfloat16))
        flat_params.append(bias.reshape(1, cout).astype(jnp.float32))
    wd, bd = params[5]
    flat_params.append(wd.reshape(_CMID, an2).T.astype(jnp.bfloat16))
    flat_params.append(bd.reshape(an2, 1).astype(jnp.float32))

    in_specs = [pl.BlockSpec((1, nflat, an2), lambda i: (i, 0, 0))]
    in_specs += [pl.BlockSpec(a.shape, lambda i, _nd=a.ndim: (0,) * _nd)
                 for a in flat_params]

    out = pl.pallas_call(
        functools.partial(_estimator_kernel, h=h, w=w, wp=wp, lead=lead),
        out_shape=jax.ShapeDtypeStruct((b, an2, nrows), jnp.float32),
        grid_spec=pltpu.PrefetchScalarGridSpec(
            num_scalar_prefetch=0,
            grid=(b,),
            in_specs=in_specs,
            out_specs=pl.BlockSpec((1, an2, nrows), lambda i: (i, 0, 0)),
            scratch_shapes=[pltpu.VMEM((nflat, _CMID), jnp.bfloat16)],
        ),
        compiler_params=pltpu.CompilerParams(
            dimension_semantics=("parallel",),       # shard batch across TCs
            vmem_limit_bytes=_vmem_limit_bytes(),
        ),
    )(x_in, *flat_params)

    _ = ind_cal(ang_res, ang_res)   # computed by the reference module; unused

    # Channels-major already; just drop the wrap columns (cheap crop, no
    # transpose needed any more).
    out = out.reshape(b, an2, h, wp)[:, :, :, :w]
    return out                                        # NCHW (b, an2, h, w)


# ---------------------------------------------------------------------------
# Reference (XLA) with matched bf16-input / f32-accumulate quantization
# ---------------------------------------------------------------------------
def _conv_ref(x_nhwc, wgt, b, relu):
    out = jax.lax.conv_general_dilated(
        x_nhwc.astype(jnp.bfloat16), wgt.astype(jnp.bfloat16),
        window_strides=(1, 1), padding="SAME",
        dimension_numbers=("NHWC", "HWIO", "NHWC"),
        preferred_element_type=jnp.float32,
    ) + b.reshape(1, 1, 1, -1)
    return jnp.maximum(out, 0.0) if relu else out


def estimator_ref(x, params, ang_res):
    x_sv = lf_split(x, ang_res)
    b, n, c, h, w = x_sv.shape
    feat = jnp.transpose(x_sv.reshape(b, n, h, w), (0, 2, 3, 1))
    for (wgt, bias) in params[:5]:
        feat = _conv_ref(feat, wgt, bias, True)
    wgt, bias = params[5]
    feat = _conv_ref(feat, wgt, bias, False)
    return jnp.transpose(feat, (0, 3, 1, 2))


if __name__ == "__main__":
    ang_res = 2
    b = 2
    H = W = 16  # -> sub-view h = w = 8, an2 = 4

    key = jax.random.PRNGKey(0)
    kx, kp = jax.random.split(key)
    x = jax.random.normal(kx, (b, 1, H, W), jnp.float32)
    params = init_params(ang_res, kp)

    fwd = jax.jit(estimator_forward, static_argnums=2)
    disp = jax.block_until_ready(fwd(x, params, ang_res))
    assert disp.shape == (b, ang_res * ang_res, H // ang_res, W // ang_res)

    ref = jax.block_until_ready(estimator_ref(x, params, ang_res))
    np.testing.assert_allclose(np.asarray(disp), np.asarray(ref),
                               rtol=1e-2, atol=1e-2)

    print("KERNEL_OK")
</pallas_src>

<mosaic_0001>
module attributes {stable_mosaic.version = 11 : i64} {
  func.func @_estimator_kernel(%arg0: i32, %arg1: memref<1x208x4xbf16, #tpu.memory_space<vmem>>, %arg2: memref<9x4x64xbf16, #tpu.memory_space<vmem>>, %arg3: memref<1x64xf32, #tpu.memory_space<vmem>>, %arg4: memref<25x64x64xbf16, #tpu.memory_space<vmem>>, %arg5: memref<1x64xf32, #tpu.memory_space<vmem>>, %arg6: memref<9x64x64xbf16, #tpu.memory_space<vmem>>, %arg7: memref<1x64xf32, #tpu.memory_space<vmem>>, %arg8: memref<25x64x64xbf16, #tpu.memory_space<vmem>>, %arg9: memref<1x64xf32, #tpu.memory_space<vmem>>, %arg10: memref<9x64x64xbf16, #tpu.memory_space<vmem>>, %arg11: memref<1x64xf32, #tpu.memory_space<vmem>>, %arg12: memref<4x64xbf16, #tpu.memory_space<vmem>>, %arg13: memref<4x1xf32, #tpu.memory_space<vmem>>, %arg14: memref<1x4x128xf32, #tpu.memory_space<vmem>>, %arg15: memref<208x64xbf16, #tpu.memory_space<vmem>>) attributes {dimension_semantics = [#tpu.dimension_semantics<parallel>], iteration_bounds = array<i64: 2>, scalar_prefetch = 0 : i64, scratch_operands = 1 : i64, tpu.core_type = #tpu.core_type<tc>, window_params = [{transform_indices = @transform_0, window_bounds = array<i64: 1, 208, 4>}, {pipeline_mode = #tpu.pipeline_mode<synchronous>, transform_indices = @transform_1, window_bounds = array<i64: 9, 4, 64>}, {pipeline_mode = #tpu.pipeline_mode<synchronous>, transform_indices = @transform_2, window_bounds = array<i64: 1, 64>}, {pipeline_mode = #tpu.pipeline_mode<synchronous>, transform_indices = @transform_3, window_bounds = array<i64: 25, 64, 64>}, {pipeline_mode = #tpu.pipeline_mode<synchronous>, transform_indices = @transform_4, window_bounds = array<i64: 1, 64>}, {pipeline_mode = #tpu.pipeline_mode<synchronous>, transform_indices = @transform_5, window_bounds = array<i64: 9, 64, 64>}, {pipeline_mode = #tpu.pipeline_mode<synchronous>, transform_indices = @transform_6, window_bounds = array<i64: 1, 64>}, {pipeline_mode = #tpu.pipeline_mode<synchronous>, transform_indices = @transform_7, window_bounds = array<i64: 25, 64, 64>}, {pipeline_mode = #tpu.pipeline_mode<synchronous>, transform_indices = @transform_8, window_bounds = array<i64: 1, 64>}, {pipeline_mode = #tpu.pipeline_mode<synchronous>, transform_indices = @transform_9, window_bounds = array<i64: 9, 64, 64>}, {pipeline_mode = #tpu.pipeline_mode<synchronous>, transform_indices = @transform_10, window_bounds = array<i64: 1, 64>}, {pipeline_mode = #tpu.pipeline_mode<synchronous>, transform_indices = @transform_11, window_bounds = array<i64: 4, 64>}, {pipeline_mode = #tpu.pipeline_mode<synchronous>, transform_indices = @transform_12, window_bounds = array<i64: 4, 1>}, {transform_indices = @transform_13, window_bounds = array<i64: 1, 4, 128>}]} {
    %cst = arith.constant 0.000000e+00 : bf16
    %0 = vector.broadcast %cst : bf16 to vector<40x64xbf16>
    %c0 = arith.constant 0 : index
    %c0_0 = arith.constant 0 : index
    %1 = vector.load %arg15[%c0, %c0_0] : memref<208x64xbf16, #tpu.memory_space<vmem>>, vector<40x64xbf16>
    tpu.vector_store %arg15[%c0, %c0_0], %0 {strides = array<i32>} : memref<208x64xbf16, #tpu.memory_space<vmem>>, vector<40x64xbf16>,
    %cst_1 = arith.constant 0.000000e+00 : bf16
    %2 = vector.broadcast %cst_1 : bf16 to vector<40x64xbf16>
    %c168 = arith.constant 168 : index
    %c0_2 = arith.constant 0 : index
    %3 = vector.load %arg15[%c168, %c0_2] : memref<208x64xbf16, #tpu.memory_space<vmem>>, vector<40x64xbf16>
    tpu.vector_store %arg15[%c168, %c0_2], %2 {strides = array<i32>} : memref<208x64xbf16, #tpu.memory_space<vmem>>, vector<40x64xbf16>,
    %4 = tpu.iota {dimensions = array<i32: 0>} : vector<128x1xi32>
    %c16_i32 = arith.constant 16 : i32
    %c0_i32 = arith.constant 0 : i32
    %5 = arith.cmpi eq, %c16_i32, %c0_i32 : i32
    %c1_i32 = arith.constant 1 : i32
    %6 = arith.select %5, %c1_i32, %c16_i32 : i32
    %7 = vector.broadcast %6 : i32 to vector<128x1xi32>
    %8 = arith.remsi %4, %7 : vector<128x1xi32>
    %c0_i32_3 = arith.constant 0 : i32
    %9 = vector.broadcast %c0_i32_3 : i32 to vector<128x1xi32>
    %10 = arith.cmpi ne, %8, %9 : vector<128x1xi32>
    %c0_i32_4 = arith.constant 0 : i32
    %11 = vector.broadcast %c0_i32_4 : i32 to vector<128x1xi32>
    %12 = arith.cmpi slt, %8, %11 : vector<128x1xi32>
    %c0_i32_5 = arith.constant 0 : i32
    %13 = arith.cmpi slt, %6, %c0_i32_5 : i32
    %14 = vector.broadcast %13 : i1 to vector<128x1xi1>
    %15 = vector.broadcast %14 : vector<128x1xi1> to vector<128x1xi1>
    %16 = arith.xori %12, %15 : vector<128x1xi1>
    %17 = arith.andi %16, %10 : vector<128x1xi1>
    %18 = vector.broadcast %6 : i32 to vector<128x1xi32>
    %19 = arith.addi %8, %18 : vector<128x1xi32>
    %20 = arith.select %17, %19, %8 : vector<128x1xi1>, vector<128x1xi32>
    %c8_i32 = arith.constant 8 : i32
    %21 = vector.broadcast %c8_i32 : i32 to vector<128x1xi32>
    %22 = arith.cmpi slt, %20, %21 : vector<128x1xi32>
    %c0_6 = arith.constant 0 : index
    %c23 = arith.constant 23 : index
    %c0_7 = arith.constant 0 : index
    %23 = vector.load %arg1[%c0_6, %c23, %c0_7] : memref<1x208x4xbf16, #tpu.memory_space<vmem>>, vector<1x128x4xbf16>
    %24 = vector.shape_cast %23 : vector<1x128x4xbf16> to vector<128x4xbf16>
    %c0_8 = arith.constant 0 : index
    %c0_9 = arith.constant 0 : index
    %c0_10 = arith.constant 0 : index
    %25 = vector.load %arg2[%c0_8, %c0_9, %c0_10] : memref<9x4x64xbf16, #tpu.memory_space<vmem>>, vector<1x4x64xbf16>
    %26 = vector.shape_cast %25 : vector<1x4x64xbf16> to vector<4x64xbf16>
    %cst_11 = arith.constant dense<0.000000e+00> : vector<128x64xf32>
    %27 = tpu.matmul %24, %26, %cst_11 {dimension_numbers = #tpu.dot_dimension_numbers<[1], [0], [0], [1], [0, 0, 1, 1], [], []>} : vector<128x4xbf16>, vector<4x64xbf16>, vector<128x64xf32> -> vector<128x64xf32>
    %c0_12 = arith.constant 0 : index
    %c24 = arith.constant 24 : index
    %c0_13 = arith.constant 0 : index
    %28 = vector.load %arg1[%c0_12, %c24, %c0_13] : memref<1x208x4xbf16, #tpu.memory_space<vmem>>, vector<1x128x4xbf16>
    %29 = vector.shape_cast %28 : vector<1x128x4xbf16> to vector<128x4xbf16>
    %c1 = arith.constant 1 : index
    %c0_14 = arith.constant 0 : index
    %c0_15 = arith.constant 0 : index
    %30 = vector.load %arg2[%c1, %c0_14, %c0_15] : memref<9x4x64xbf16, #tpu.memory_space<vmem>>, vector<1x4x64xbf16>
    %31 = vector.shape_cast %30 : vector<1x4x64xbf16> to vector<4x64xbf16>
    %cst_16 = arith.constant dense<0.000000e+00> : vector<128x64xf32>
    %32 = tpu.matmul %29, %31, %cst_16 {dimension_numbers = #tpu.dot_dimension_numbers<[1], [0], [0], [1], [0, 0, 1, 1], [], []>} : vector<128x4xbf16>, vector<4x64xbf16>, vector<128x64xf32> -> vector<128x64xf32>
    %33 = arith.addf %27, %32 : vector<128x64xf32>
    %c0_17 = arith.constant 0 : index
    %c25 = arith.constant 25 : index
    %c0_18 = arith.constant 0 : index
    %34 = vector.load %arg1[%c0_17, %c25, %c0_18] : memref<1x208x4xbf16, #tpu.memory_space<vmem>>, vector<1x128x4xbf16>
    %35 = vector.shape_cast %34 : vector<1x128x4xbf16> to vector<128x4xbf16>
    %c2 = arith.constant 2 : index
    %c0_19 = arith.constant 0 : index
    %c0_20 = arith.constant 0 : index
    %36 = vector.load %arg2[%c2, %c0_19, %c0_20] : memref<9x4x64xbf16, #tpu.memory_space<vmem>>, vector<1x4x64xbf16>
    %37 = vector.shape_cast %36 : vector<1x4x64xbf16> to vector<4x64xbf16>
    %cst_21 = arith.constant dense<0.000000e+00> : vector<128x64xf32>
    %38 = tpu.matmul %35, %37, %cst_21 {dimension_numbers = #tpu.dot_dimension_numbers<[1], [0], [0], [1], [0, 0, 1, 1], [], []>} : vector<128x4xbf16>, vector<4x64xbf16>, vector<128x64xf32> -> vector<128x64xf32>
    %39 = arith.addf %33, %38 : vector<128x64xf32>
    %c0_22 = arith.constant 0 : index
    %c39 = arith.constant 39 : index
    %c0_23 = arith.constant 0 : index
    %40 = vector.load %arg1[%c0_22, %c39, %c0_23] : memref<1x208x4xbf16, #tpu.memory_space<vmem>>, vector<1x128x4xbf16>
    %41 = vector.shape_cast %40 : vector<1x128x4xbf16> to vector<128x4xbf16>
    %c3 = arith.constant 3 : index
    %c0_24 = arith.constant 0 : index
    %c0_25 = arith.constant 0 : index
    %42 = vector.load %arg2[%c3, %c0_24, %c0_25] : memref<9x4x64xbf16, #tpu.memory_space<vmem>>, vector<1x4x64xbf16>
    %43 = vector.shape_cast %42 : vector<1x4x64xbf16> to vector<4x64xbf16>
    %cst_26 = arith.constant dense<0.000000e+00> : vector<128x64xf32>
    %44 = tpu.matmul %41, %43, %cst_26 {dimension_numbers = #tpu.dot_dimension_numbers<[1], [0], [0], [1], [0, 0, 1, 1], [], []>} : vector<128x4xbf16>, vector<4x64xbf16>, vector<128x64xf32> -> vector<128x64xf32>
    %45 = arith.addf %39, %44 : vector<128x64xf32>
    %c0_27 = arith.constant 0 : index
    %c40 = arith.constant 40 : index
    %c0_28 = arith.constant 0 : index
    %46 = vector.load %arg1[%c0_27, %c40, %c0_28] : memref<1x208x4xbf16, #tpu.memory_space<vmem>>, vector<1x128x4xbf16>
    %47 = vector.shape_cast %46 : vector<1x128x4xbf16> to vector<128x4xbf16>
    %c4 = arith.constant 4 : index
    %c0_29 = arith.constant 0 : index
    %c0_30 = arith.constant 0 : index
    %48 = vector.load %arg2[%c4, %c0_29, %c0_30] : memref<9x4x64xbf16, #tpu.memory_space<vmem>>, vector<1x4x64xbf16>
    %49 = vector.shape_cast %48 : vector<1x4x64xbf16> to vector<4x64xbf16>
    %cst_31 = arith.constant dense<0.000000e+00> : vector<128x64xf32>
    %50 = tpu.matmul %47, %49, %cst_31 {dimension_numbers = #tpu.dot_dimension_numbers<[1], [0], [0], [1], [0, 0, 1, 1], [], []>} : vector<128x4xbf16>, vector<4x64xbf16>, vector<128x64xf32> -> vector<128x64xf32>
    %51 = arith.addf %45, %50 : vector<128x64xf32>
    %c0_32 = arith.constant 0 : index
    %c41 = arith.constant 41 : index
    %c0_33 = arith.constant 0 : index
    %52 = vector.load %arg1[%c0_32, %c41, %c0_33] : memref<1x208x4xbf16, #tpu.memory_space<vmem>>, vector<1x128x4xbf16>
    %53 = vector.shape_cast %52 : vector<1x128x4xbf16> to vector<128x4xbf16>
    %c5 = arith.constant 5 : index
    %c0_34 = arith.constant 0 : index
    %c0_35 = arith.constant 0 : index
    %54 = vector.load %arg2[%c5, %c0_34, %c0_35] : memref<9x4x64xbf16, #tpu.memory_space<vmem>>, vector<1x4x64xbf16>
    %55 = vector.shape_cast %54 : vector<1x4x64xbf16> to vector<4x64xbf16>
    %cst_36 = arith.constant dense<0.000000e+00> : vector<128x64xf32>
    %56 = tpu.matmul %53, %55, %cst_36 {dimension_numbers = #tpu.dot_dimension_numbers<[1], [0], [0], [1], [0, 0, 1, 1], [], []>} : vector<128x4xbf16>, vector<4x64xbf16>, vector<128x64xf32> -> vector<128x64xf32>
    %57 = arith.addf %51, %56 : vector<128x64xf32>
    %c0_37 = arith.constant 0 : index
    %c55 = arith.constant 55 : index
    %c0_38 = arith.constant 0 : index
    %58 = vector.load %arg1[%c0_37, %c55, %c0_38] : memref<1x208x4xbf16, #tpu.memory_space<vmem>>, vector<1x128x4xbf16>
    %59 = vector.shape_cast %58 : vector<1x128x4xbf16> to vector<128x4xbf16>
    %c6 = arith.constant 6 : index
    %c0_39 = arith.constant 0 : index
    %c0_40 = arith.constant 0 : index
    %60 = vector.load %arg2[%c6, %c0_39, %c0_40] : memref<9x4x64xbf16, #tpu.memory_space<vmem>>, vector<1x4x64xbf16>
    %61 = vector.shape_cast %60 : vector<1x4x64xbf16> to vector<4x64xbf16>
    %cst_41 = arith.constant dense<0.000000e+00> : vector<128x64xf32>
    %62 = tpu.matmul %59, %61, %cst_41 {dimension_numbers = #tpu.dot_dimension_numbers<[1], [0], [0], [1], [0, 0, 1, 1], [], []>} : vector<128x4xbf16>, vector<4x64xbf16>, vector<128x64xf32> -> vector<128x64xf32>
    %63 = arith.addf %57, %62 : vector<128x64xf32>
    %c0_42 = arith.constant 0 : index
    %c56 = arith.constant 56 : index
    %c0_43 = arith.constant 0 : index
    %64 = vector.load %arg1[%c0_42, %c56, %c0_43] : memref<1x208x4xbf16, #tpu.memory_space<vmem>>, vector<1x128x4xbf16>
    %65 = vector.shape_cast %64 : vector<1x128x4xbf16> to vector<128x4xbf16>
    %c7 = arith.constant 7 : index
    %c0_44 = arith.constant 0 : index
    %c0_45 = arith.constant 0 : index
    %66 = vector.load %arg2[%c7, %c0_44, %c0_45] : memref<9x4x64xbf16, #tpu.memory_space<vmem>>, vector<1x4x64xbf16>
    %67 = vector.shape_cast %66 : vector<1x4x64xbf16> to vector<4x64xbf16>
    %cst_46 = arith.constant dense<0.000000e+00> : vector<128x64xf32>
    %68 = tpu.matmul %65, %67, %cst_46 {dimension_numbers = #tpu.dot_dimension_numbers<[1], [0], [0], [1], [0, 0, 1, 1], [], []>} : vector<128x4xbf16>, vector<4x64xbf16>, vector<128x64xf32> -> vector<128x64xf32>
    %69 = arith.addf %63, %68 : vector<128x64xf32>
    %c0_47 = arith.constant 0 : index
    %c57 = arith.constant 57 : index
    %c0_48 = arith.constant 0 : index
    %70 = vector.load %arg1[%c0_47, %c57, %c0_48] : memref<1x208x4xbf16, #tpu.memory_space<vmem>>, vector<1x128x4xbf16>
    %71 = vector.shape_cast %70 : vector<1x128x4xbf16> to vector<128x4xbf16>
    %c8 = arith.constant 8 : index
    %c0_49 = arith.constant 0 : index
    %c0_50 = arith.constant 0 : index
    %72 = vector.load %arg2[%c8, %c0_49, %c0_50] : memref<9x4x64xbf16, #tpu.memory_space<vmem>>, vector<1x4x64xbf16>
    %73 = vector.shape_cast %72 : vector<1x4x64xbf16> to vector<4x64xbf16>
    %cst_51 = arith.constant dense<0.000000e+00> : vector<128x64xf32>
    %74 = tpu.matmul %71, %73, %cst_51 {dimension_numbers = #tpu.dot_dimension_numbers<[1], [0], [0], [1], [0, 0, 1, 1], [], []>} : vector<128x4xbf16>, vector<4x64xbf16>, vector<128x64xf32> -> vector<128x64xf32>
    %75 = arith.addf %69, %74 : vector<128x64xf32>
    %c0_52 = arith.constant 0 : index
    %c0_53 = arith.constant 0 : index
    %76 = vector.load %arg3[%c0_52, %c0_53] : memref<1x64xf32, #tpu.memory_space<vmem>>, vector<1x64xf32>
    %77 = vector.broadcast %76 : vector<1x64xf32> to vector<128x64xf32>
    %78 = arith.addf %75, %77 : vector<128x64xf32>
    %cst_54 = arith.constant 0.000000e+00 : f32
    %79 = vector.broadcast %cst_54 : f32 to vector<128x64xf32>
    %80 = arith.maximumf %78, %79 : vector<128x64xf32>
    %cst_55 = arith.constant 0.000000e+00 : f32
    %81 = vector.shape_cast %22 : vector<128x1xi1> to vector<128x1xi1>
    %82 = vector.broadcast %81 : vector<128x1xi1> to vector<128x64xi1>
    %83 = vector.broadcast %cst_55 : f32 to vector<128x64xf32>
    %84 = arith.select %82, %80, %83 : vector<128x64xi1>, vector<128x64xf32>
    %85 = arith.truncf %84 : vector<128x64xf32> to vector<128x64xbf16>
    %c40_56 = arith.constant 40 : index
    %c0_57 = arith.constant 0 : index
    %86 = vector.load %arg15[%c40_56, %c0_57] : memref<208x64xbf16, #tpu.memory_space<vmem>>, vector<128x64xbf16>
    tpu.vector_store %arg15[%c40_56, %c0_57], %85 {strides = array<i32>} : memref<208x64xbf16, #tpu.memory_space<vmem>>, vector<128x64xbf16>,
    %c6_58 = arith.constant 6 : index
    %c0_59 = arith.constant 0 : index
    %87 = vector.load %arg15[%c6_58, %c0_59] : memref<208x64xbf16, #tpu.memory_space<vmem>>, vector<128x64xbf16>
    %c0_60 = arith.constant 0 : index
    %c0_61 = arith.constant 0 : index
    %c0_62 = arith.constant 0 : index
    %88 = vector.load %arg4[%c0_60, %c0_61, %c0_62] : memref<25x64x64xbf16, #tpu.memory_space<vmem>>, vector<1x64x64xbf16>
    %89 = vector.shape_cast %88 : vector<1x64x64xbf16> to vector<64x64xbf16>
    %cst_63 = arith.constant dense<0.000000e+00> : vector<128x64xf32>
    %90 = tpu.matmul %87, %89, %cst_63 {dimension_numbers = #tpu.dot_dimension_numbers<[1], [0], [0], [1], [0, 0, 1, 1], [], []>} : vector<128x64xbf16>, vector<64x64xbf16>, vector<128x64xf32> -> vector<128x64xf32>
    %c7_64 = arith.constant 7 : index
    %c0_65 = arith.constant 0 : index
    %91 = vector.load %arg15[%c7_64, %c0_65] : memref<208x64xbf16, #tpu.memory_space<vmem>>, vector<128x64xbf16>
    %c1_66 = arith.constant 1 : index
    %c0_67 = arith.constant 0 : index
    %c0_68 = arith.constant 0 : index
    %92 = vector.load %arg4[%c1_66, %c0_67, %c0_68] : memref<25x64x64xbf16, #tpu.memory_space<vmem>>, vector<1x64x64xbf16>
    %93 = vector.shape_cast %92 : vector<1x64x64xbf16> to vector<64x64xbf16>
    %cst_69 = arith.constant dense<0.000000e+00> : vector<128x64xf32>
    %94 = tpu.matmul %91, %93, %cst_69 {dimension_numbers = #tpu.dot_dimension_numbers<[1], [0], [0], [1], [0, 0, 1, 1], [], []>} : vector<128x64xbf16>, vector<64x64xbf16>, vector<128x64xf32> -> vector<128x64xf32>
    %95 = arith.addf %90, %94 : vector<128x64xf32>
    %c8_70 = arith.constant 8 : index
    %c0_71 = arith.constant 0 : index
    %96 = vector.load %arg15[%c8_70, %c0_71] : memref<208x64xbf16, #tpu.memory_space<vmem>>, vector<128x64xbf16>
    %c2_72 = arith.constant 2 : index
    %c0_73 = arith.constant 0 : index
    %c0_74 = arith.constant 0 : index
    %97 = vector.load %arg4[%c2_72, %c0_73, %c0_74] : memref<25x64x64xbf16, #tpu.memory_space<vmem>>, vector<1x64x64xbf16>
    %98 = vector.shape_cast %97 : vector<1x64x64xbf16> to vector<64x64xbf16>
    %cst_75 = arith.constant dense<0.000000e+00> : vector<128x64xf32>
    %99 = tpu.matmul %96, %98, %cst_75 {dimension_numbers = #tpu.dot_dimension_numbers<[1], [0], [0], [1], [0, 0, 1, 1], [], []>} : vector<128x64xbf16>, vector<64x64xbf16>, vector<128x64xf32> -> vector<128x64xf32>
    %100 = arith.addf %95, %99 : vector<128x64xf32>
    %c9 = arith.constant 9 : index
    %c0_76 = arith.constant 0 : index
    %101 = vector.load %arg15[%c9, %c0_76] : memref<208x64xbf16, #tpu.memory_space<vmem>>, vector<128x64xbf16>
    %c3_77 = arith.constant 3 : index
    %c0_78 = arith.constant 0 : index
    %c0_79 = arith.constant 0 : index
    %102 = vector.load %arg4[%c3_77, %c0_78, %c0_79] : memref<25x64x64xbf16, #tpu.memory_space<vmem>>, vector<1x64x64xbf16>
    %103 = vector.shape_cast %102 : vector<1x64x64xbf16> to vector<64x64xbf16>
    %cst_80 = arith.constant dense<0.000000e+00> : vector<128x64xf32>
    %104 = tpu.matmul %101, %103, %cst_80 {dimension_numbers = #tpu.dot_dimension_numbers<[1], [0], [0], [1], [0, 0, 1, 1], [], []>} : vector<128x64xbf16>, vector<64x64xbf16>, vector<128x64xf32> -> vector<128x64xf32>
    %105 = arith.addf %100, %104 : vector<128x64xf32>
    %c10 = arith.constant 10 : index
    %c0_81 = arith.constant 0 : index
    %106 = vector.load %arg15[%c10, %c0_81] : memref<208x64xbf16, #tpu.memory_space<vmem>>, vector<128x64xbf16>
    %c4_82 = arith.constant 4 : index
    %c0_83 = arith.constant 0 : index
    %c0_84 = arith.constant 0 : index
    %107 = vector.load %arg4[%c4_82, %c0_83, %c0_84] : memref<25x64x64xbf16, #tpu.memory_space<vmem>>, vector<1x64x64xbf16>
    %108 = vector.shape_cast %107 : vector<1x64x64xbf16> to vector<64x64xbf16>
    %cst_85 = arith.constant dense<0.000000e+00> : vector<128x64xf32>
    %109 = tpu.matmul %106, %108, %cst_85 {dimension_numbers = #tpu.dot_dimension_numbers<[1], [0], [0], [1], [0, 0, 1, 1], [], []>} : vector<128x64xbf16>, vector<64x64xbf16>, vector<128x64xf32> -> vector<128x64xf32>
    %110 = arith.addf %105, %109 : vector<128x64xf32>
    %c22 = arith.constant 22 : index
    %c0_86 = arith.constant 0 : index
    %111 = vector.load %arg15[%c22, %c0_86] : memref<208x64xbf16, #tpu.memory_space<vmem>>, vector<128x64xbf16>
    %c5_87 = arith.constant 5 : index
    %c0_88 = arith.constant 0 : index
    %c0_89 = arith.constant 0 : index
    %112 = vector.load %arg4[%c5_87, %c0_88, %c0_89] : memref<25x64x64xbf16, #tpu.memory_space<vmem>>, vector<1x64x64xbf16>
    %113 = vector.shape_cast %112 : vector<1x64x64xbf16> to vector<64x64xbf16>
    %cst_90 = arith.constant dense<0.000000e+00> : vector<128x64xf32>
    %114 = tpu.matmul %111, %113, %cst_90 {dimension_numbers = #tpu.dot_dimension_numbers<[1], [0], [0], [1], [0, 0, 1, 1], [], []>} : vector<128x64xbf16>, vector<64x64xbf16>, vector<128x64xf32> -> vector<128x64xf32>
    %115 = arith.addf %110, %114 : vector<128x64xf32>
    %c23_91 = arith.constant 23 : index
    %c0_92 = arith.constant 0 : index
    %116 = vector.load %arg15[%c23_91, %c0_92] : memref<208x64xbf16, #tpu.memory_space<vmem>>, vector<128x64xbf16>
    %c6_93 = arith.constant 6 : index
    %c0_94 = arith.constant 0 : index
    %c0_95 = arith.constant 0 : index
    %117 = vector.load %arg4[%c6_93, %c0_94, %c0_95] : memref<25x64x64xbf16, #tpu.memory_space<vmem>>, vector<1x64x64xbf16>
    %118 = vector.shape_cast %117 : vector<1x64x64xbf16> to vector<64x64xbf16>
    %cst_96 = arith.constant dense<0.000000e+00> : vector<128x64xf32>
    %119 = tpu.matmul %116, %118, %cst_96 {dimension_numbers = #tpu.dot_dimension_numbers<[1], [0], [0], [1], [0, 0, 1, 1], [], []>} : vector<128x64xbf16>, vector<64x64xbf16>, vector<128x64xf32> -> vector<128x64xf32>
    %120 = arith.addf %115, %119 : vector<128x64xf32>
    %c24_97 = arith.constant 24 : index
    %c0_98 = arith.constant 0 : index
    %121 = vector.load %arg15[%c24_97, %c0_98] : memref<208x64xbf16, #tpu.memory_space<vmem>>, vector<128x64xbf16>
    %c7_99 = arith.constant 7 : index
    %c0_100 = arith.constant 0 : index
    %c0_101 = arith.constant 0 : index
    %122 = vector.load %arg4[%c7_99, %c0_100, %c0_101] : memref<25x64x64xbf16, #tpu.memory_space<vmem>>, vector<1x64x64xbf16>
    %123 = vector.shape_cast %122 : vector<1x64x64xbf16> to vector<64x64xbf16>
    %cst_102 = arith.constant dense<0.000000e+00> : vector<128x64xf32>
    %124 = tpu.matmul %121, %123, %cst_102 {dimension_numbers = #tpu.dot_dimension_numbers<[1], [0], [0], [1], [0, 0, 1, 1], [], []>} : vector<128x64xbf16>, vector<64x64xbf16>, vector<128x64xf32> -> vector<128x64xf32>
    %125 = arith.addf %120, %124 : vector<128x64xf32>
    %c25_103 = arith.constant 25 : index
    %c0_104 = arith.constant 0 : index
    %126 = vector.load %arg15[%c25_103, %c0_104] : memref<208x64xbf16, #tpu.memory_space<vmem>>, vector<128x64xbf16>
    %c8_105 = arith.constant 8 : index
    %c0_106 = arith.constant 0 : index
    %c0_107 = arith.constant 0 : index
    %127 = vector.load %arg4[%c8_105, %c0_106, %c0_107] : memref<25x64x64xbf16, #tpu.memory_space<vmem>>, vector<1x64x64xbf16>
    %128 = vector.shape_cast %127 : vector<1x64x64xbf16> to vector<64x64xbf16>
    %cst_108 = arith.constant dense<0.000000e+00> : vector<128x64xf32>
    %129 = tpu.matmul %126, %128, %cst_108 {dimension_numbers = #tpu.dot_dimension_numbers<[1], [0], [0], [1], [0, 0, 1, 1], [], []>} : vector<128x64xbf16>, vector<64x64xbf16>, vector<128x64xf32> -> vector<128x64xf32>
    %130 = arith.addf %125, %129 : vector<128x64xf32>
    %c26 = arith.constant 26 : index
    %c0_109 = arith.constant 0 : index
    %131 = vector.load %arg15[%c26, %c0_109] : memref<208x64xbf16, #tpu.memory_space<vmem>>, vector<128x64xbf16>
    %c9_110 = arith.constant 9 : index
    %c0_111 = arith.constant 0 : index
    %c0_112 = arith.constant 0 : index
    %132 = vector.load %arg4[%c9_110, %c0_111, %c0_112] : memref<25x64x64xbf16, #tpu.memory_space<vmem>>, vector<1x64x64xbf16>
    %133 = vector.shape_cast %132 : vector<1x64x64xbf16> to vector<64x64xbf16>
    %cst_113 = arith.constant dense<0.000000e+00> : vector<128x64xf32>
    %134 = tpu.matmul %131, %133, %cst_113 {dimension_numbers = #tpu.dot_dimension_numbers<[1], [0], [0], [1], [0, 0, 1, 1], [], []>} : vector<128x64xbf16>, vector<64x64xbf16>, vector<128x64xf32> -> vector<128x64xf32>
    %135 = arith.addf %130, %134 : vector<128x64xf32>
    %c38 = arith.constant 38 : index
    %c0_114 = arith.constant 0 : index
    %136 = vector.load %arg15[%c38, %c0_114] : memref<208x64xbf16, #tpu.memory_space<vmem>>, vector<128x64xbf16>
    %c10_115 = arith.constant 10 : index
    %c0_116 = arith.constant 0 : index
    %c0_117 = arith.constant 0 : index
    %137 = vector.load %arg4[%c10_115, %c0_116, %c0_117] : memref<25x64x64xbf16, #tpu.memory_space<vmem>>, vector<1x64x64xbf16>
    %138 = vector.shape_cast %137 : vector<1x64x64xbf16> to vector<64x64xbf16>
    %cst_118 = arith.constant dense<0.000000e+00> : vector<128x64xf32>
    %139 = tpu.matmul %136, %138, %cst_118 {dimension_numbers = #tpu.dot_dimension_numbers<[1], [0], [0], [1], [0, 0, 1, 1], [], []>} : vector<128x64xbf16>, vector<64x64xbf16>, vector<128x64xf32> -> vector<128x64xf32>
    %140 = arith.addf %135, %139 : vector<128x64xf32>
    %c39_119 = arith.constant 39 : index
    %c0_120 = arith.constant 0 : index
    %141 = vector.load %arg15[%c39_119, %c0_120] : memref<208x64xbf16, #tpu.memory_space<vmem>>, vector<128x64xbf16>
    %c11 = arith.constant 11 : index
    %c0_121 = arith.constant 0 : index
    %c0_122 = arith.constant 0 : index
    %142 = vector.load %arg4[%c11, %c0_121, %c0_122] : memref<25x64x64xbf16, #tpu.memory_space<vmem>>, vector<1x64x64xbf16>
    %143 = vector.shape_cast %142 : vector<1x64x64xbf16> to vector<64x64xbf16>
    %cst_123 = arith.constant dense<0.000000e+00> : vector<128x64xf32>
    %144 = tpu.matmul %141, %143, %cst_123 {dimension_numbers = #tpu.dot_dimension_numbers<[1], [0], [0], [1], [0, 0, 1, 1], [], []>} : vector<128x64xbf16>, vector<64x64xbf16>, vector<128x64xf32> -> vector<128x64xf32>
    %145 = arith.addf %140, %144 : vector<128x64xf32>
    %c40_124 = arith.constant 40 : index
    %c0_125 = arith.constant 0 : index
    %146 = vector.load %arg15[%c40_124, %c0_125] : memref<208x64xbf16, #tpu.memory_space<vmem>>, vector<128x64xbf16>
    %c12 = arith.constant 12 : index
    %c0_126 = arith.constant 0 : index
    %c0_127 = arith.constant 0 : index
    %147 = vector.load %arg4[%c12, %c0_126, %c0_127] : memref<25x64x64xbf16, #tpu.memory_space<vmem>>, vector<1x64x64xbf16>
    %148 = vector.shape_cast %147 : vector<1x64x64xbf16> to vector<64x64xbf16>
    %cst_128 = arith.constant dense<0.000000e+00> : vector<128x64xf32>
    %149 = tpu.matmul %146, %148, %cst_128 {dimension_numbers = #tpu.dot_dimension_numbers<[1], [0], [0], [1], [0, 0, 1, 1], [], []>} : vector<128x64xbf16>, vector<64x64xbf16>, vector<128x64xf32> -> vector<128x64xf32>
    %150 = arith.addf %145, %149 : vector<128x64xf32>
    %c41_129 = arith.constant 41 : index
    %c0_130 = arith.constant 0 : index
    %151 = vector.load %arg15[%c41_129, %c0_130] : memref<208x64xbf16, #tpu.memory_space<vmem>>, vector<128x64xbf16>
    %c13 = arith.constant 13 : index
    %c0_131 = arith.constant 0 : index
    %c0_132 = arith.constant 0 : index
    %152 = vector.load %arg4[%c13, %c0_131, %c0_132] : memref<25x64x64xbf16, #tpu.memory_space<vmem>>, vector<1x64x64xbf16>
    %153 = vector.shape_cast %152 : vector<1x64x64xbf16> to vector<64x64xbf16>
    %cst_133 = arith.constant dense<0.000000e+00> : vector<128x64xf32>
    %154 = tpu.matmul %151, %153, %cst_133 {dimension_numbers = #tpu.dot_dimension_numbers<[1], [0], [0], [1], [0, 0, 1, 1], [], []>} : vector<128x64xbf16>, vector<64x64xbf16>, vector<128x64xf32> -> vector<128x64xf32>
    %155 = arith.addf %150, %154 : vector<128x64xf32>
    %c42 = arith.constant 42 : index
    %c0_134 = arith.constant 0 : index
    %156 = vector.load %arg15[%c42, %c0_134] : memref<208x64xbf16, #tpu.memory_space<vmem>>, vector<128x64xbf16>
    %c14 = arith.constant 14 : index
    %c0_135 = arith.constant 0 : index
    %c0_136 = arith.constant 0 : index
    %157 = vector.load %arg4[%c14, %c0_135, %c0_136] : memref<25x64x64xbf16, #tpu.memory_space<vmem>>, vector<1x64x64xbf16>
    %158 = vector.shape_cast %157 : vector<1x64x64xbf16> to vector<64x64xbf16>
    %cst_137 = arith.constant dense<0.000000e+00> : vector<128x64xf32>
    %159 = tpu.matmul %156, %158, %cst_137 {dimension_numbers = #tpu.dot_dimension_numbers<[1], [0], [0], [1], [0, 0, 1, 1], [], []>} : vector<128x64xbf16>, vector<64x64xbf16>, vector<128x64xf32> -> vector<128x64xf32>
    %160 = arith.addf %155, %159 : vector<128x64xf32>
    %c54 = arith.constant 54 : index
    %c0_138 = arith.constant 0 : index
    %161 = vector.load %arg15[%c54, %c0_138] : memref<208x64xbf16, #tpu.memory_space<vmem>>, vector<128x64xbf16>
    %c15 = arith.constant 15 : index
    %c0_139 = arith.constant 0 : index
    %c0_140 = arith.constant 0 : index
    %162 = vector.load %arg4[%c15, %c0_139, %c0_140] : memref<25x64x64xbf16, #tpu.memory_space<vmem>>, vector<1x64x64xbf16>
    %163 = vector.shape_cast %162 : vector<1x64x64xbf16> to vector<64x64xbf16>
    %cst_141 = arith.constant dense<0.000000e+00> : vector<128x64xf32>
    %164 = tpu.matmul %161, %163, %cst_141 {dimension_numbers = #tpu.dot_dimension_numbers<[1], [0], [0], [1], [0, 0, 1, 1], [], []>} : vector<128x64xbf16>, vector<64x64xbf16>, vector<128x64xf32> -> vector<128x64xf32>
    %165 = arith.addf %160, %164 : vector<128x64xf32>
    %c55_142 = arith.constant 55 : index
    %c0_143 = arith.constant 0 : index
    %166 = vector.load %arg15[%c55_142, %c0_143] : memref<208x64xbf16, #tpu.memory_space<vmem>>, vector<128x64xbf16>
    %c16 = arith.constant 16 : index
    %c0_144 = arith.constant 0 : index
    %c0_145 = arith.constant 0 : index
    %167 = vector.load %arg4[%c16, %c0_144, %c0_145] : memref<25x64x64xbf16, #tpu.memory_space<vmem>>, vector<1x64x64xbf16>
    %168 = vector.shape_cast %167 : vector<1x64x64xbf16> to vector<64x64xbf16>
    %cst_146 = arith.constant dense<0.000000e+00> : vector<128x64xf32>
    %169 = tpu.matmul %166, %168, %cst_146 {dimension_numbers = #tpu.dot_dimension_numbers<[1], [0], [0], [1], [0, 0, 1, 1], [], []>} : vector<128x64xbf16>, vector<64x64xbf16>, vector<128x64xf32> -> vector<128x64xf32>
    %170 = arith.addf %165, %169 : vector<128x64xf32>
    %c56_147 = arith.constant 56 : index
    %c0_148 = arith.constant 0 : index
    %171 = vector.load %arg15[%c56_147, %c0_148] : memref<208x64xbf16, #tpu.memory_space<vmem>>, vector<128x64xbf16>
    %c17 = arith.constant 17 : index
    %c0_149 = arith.constant 0 : index
    %c0_150 = arith.constant 0 : index
    %172 = vector.load %arg4[%c17, %c0_149, %c0_150] : memref<25x64x64xbf16, #tpu.memory_space<vmem>>, vector<1x64x64xbf16>
    %173 = vector.shape_cast %172 : vector<1x64x64xbf16> to vector<64x64xbf16>
    %cst_151 = arith.constant dense<0.000000e+00> : vector<128x64xf32>
    %174 = tpu.matmul %171, %173, %cst_151 {dimension_numbers = #tpu.dot_dimension_numbers<[1], [0], [0], [1], [0, 0, 1, 1], [], []>} : vector<128x64xbf16>, vector<64x64xbf16>, vector<128x64xf32> -> vector<128x64xf32>
    %175 = arith.addf %170, %174 : vector<128x64xf32>
    %c57_152 = arith.constant 57 : index
    %c0_153 = arith.constant 0 : index
    %176 = vector.load %arg15[%c57_152, %c0_153] : memref<208x64xbf16, #tpu.memory_space<vmem>>, vector<128x64xbf16>
    %c18 = arith.constant 18 : index
    %c0_154 = arith.constant 0 : index
    %c0_155 = arith.constant 0 : index
    %177 = vector.load %arg4[%c18, %c0_154, %c0_155] : memref<25x64x64xbf16, #tpu.memory_space<vmem>>, vector<1x64x64xbf16>
    %178 = vector.shape_cast %177 : vector<1x64x64xbf16> to vector<64x64xbf16>
    %cst_156 = arith.constant dense<0.000000e+00> : vector<128x64xf32>
    %179 = tpu.matmul %176, %178, %cst_156 {dimension_numbers = #tpu.dot_dimension_numbers<[1], [0], [0], [1], [0, 0, 1, 1], [], []>} : vector<128x64xbf16>, vector<64x64xbf16>, vector<128x64xf32> -> vector<128x64xf32>
    %180 = arith.addf %175, %179 : vector<128x64xf32>
    %c58 = arith.constant 58 : index
    %c0_157 = arith.constant 0 : index
    %181 = vector.load %arg15[%c58, %c0_157] : memref<208x64xbf16, #tpu.memory_space<vmem>>, vector<128x64xbf16>
    %c19 = arith.constant 19 : index
    %c0_158 = arith.constant 0 : index
    %c0_159 = arith.constant 0 : index
    %182 = vector.load %arg4[%c19, %c0_158, %c0_159] : memref<25x64x64xbf16, #tpu.memory_space<vmem>>, vector<1x64x64xbf16>
    %183 = vector.shape_cast %182 : vector<1x64x64xbf16> to vector<64x64xbf16>
    %cst_160 = arith.constant dense<0.000000e+00> : vector<128x64xf32>
    %184 = tpu.matmul %181, %183, %cst_160 {dimension_numbers = #tpu.dot_dimension_numbers<[1], [0], [0], [1], [0, 0, 1, 1], [], []>} : vector<128x64xbf16>, vector<64x64xbf16>, vector<128x64xf32> -> vector<128x64xf32>
    %185 = arith.addf %180, %184 : vector<128x64xf32>
    %c70 = arith.constant 70 : index
    %c0_161 = arith.constant 0 : index
    %186 = vector.load %arg15[%c70, %c0_161] : memref<208x64xbf16, #tpu.memory_space<vmem>>, vector<128x64xbf16>
    %c20 = arith.constant 20 : index
    %c0_162 = arith.constant 0 : index
    %c0_163 = arith.constant 0 : index
    %187 = vector.load %arg4[%c20, %c0_162, %c0_163] : memref<25x64x64xbf16, #tpu.memory_space<vmem>>, vector<1x64x64xbf16>
    %188 = vector.shape_cast %187 : vector<1x64x64xbf16> to vector<64x64xbf16>
    %cst_164 = arith.constant dense<0.000000e+00> : vector<128x64xf32>
    %189 = tpu.matmul %186, %188, %cst_164 {dimension_numbers = #tpu.dot_dimension_numbers<[1], [0], [0], [1], [0, 0, 1, 1], [], []>} : vector<128x64xbf16>, vector<64x64xbf16>, vector<128x64xf32> -> vector<128x64xf32>
    %190 = arith.addf %185, %189 : vector<128x64xf32>
    %c71 = arith.constant 71 : index
    %c0_165 = arith.constant 0 : index
    %191 = vector.load %arg15[%c71, %c0_165] : memref<208x64xbf16, #tpu.memory_space<vmem>>, vector<128x64xbf16>
    %c21 = arith.constant 21 : index
    %c0_166 = arith.constant 0 : index
    %c0_167 = arith.constant 0 : index
    %192 = vector.load %arg4[%c21, %c0_166, %c0_167] : memref<25x64x64xbf16, #tpu.memory_space<vmem>>, vector<1x64x64xbf16>
    %193 = vector.shape_cast %192 : vector<1x64x64xbf16> to vector<64x64xbf16>
    %cst_168 = arith.constant dense<0.000000e+00> : vector<128x64xf32>
    %194 = tpu.matmul %191, %193, %cst_168 {dimension_numbers = #tpu.dot_dimension_numbers<[1], [0], [0], [1], [0, 0, 1, 1], [], []>} : vector<128x64xbf16>, vector<64x64xbf16>, vector<128x64xf32> -> vector<128x64xf32>
    %195 = arith.addf %190, %194 : vector<128x64xf32>
    %c72 = arith.constant 72 : index
    %c0_169 = arith.constant 0 : index
    %196 = vector.load %arg15[%c72, %c0_169] : memref<208x64xbf16, #tpu.memory_space<vmem>>, vector<128x64xbf16>
    %c22_170 = arith.constant 22 : index
    %c0_171 = arith.constant 0 : index
    %c0_172 = arith.constant 0 : index
    %197 = vector.load %arg4[%c22_170, %c0_171, %c0_172] : memref<25x64x64xbf16, #tpu.memory_space<vmem>>, vector<1x64x64xbf16>
    %198 = vector.shape_cast %197 : vector<1x64x64xbf16> to vector<64x64xbf16>
    %cst_173 = arith.constant dense<0.000000e+00> : vector<128x64xf32>
    %199 = tpu.matmul %196, %198, %cst_173 {dimension_numbers = #tpu.dot_dimension_numbers<[1], [0], [0], [1], [0, 0, 1, 1], [], []>} : vector<128x64xbf16>, vector<64x64xbf16>, vector<128x64xf32> -> vector<128x64xf32>
    %200 = arith.addf %195, %199 : vector<128x64xf32>
    %c73 = arith.constant 73 : index
    %c0_174 = arith.constant 0 : index
    %201 = vector.load %arg15[%c73, %c0_174] : memref<208x64xbf16, #tpu.memory_space<vmem>>, vector<128x64xbf16>
    %c23_175 = arith.constant 23 : index
    %c0_176 = arith.constant 0 : index
    %c0_177 = arith.constant 0 : index
    %202 = vector.load %arg4[%c23_175, %c0_176, %c0_177] : memref<25x64x64xbf16, #tpu.memory_space<vmem>>, vector<1x64x64xbf16>
    %203 = vector.shape_cast %202 : vector<1x64x64xbf16> to vector<64x64xbf16>
    %cst_178 = arith.constant dense<0.000000e+00> : vector<128x64xf32>
    %204 = tpu.matmul %201, %203, %cst_178 {dimension_numbers = #tpu.dot_dimension_numbers<[1], [0], [0], [1], [0, 0, 1, 1], [], []>} : vector<128x64xbf16>, vector<64x64xbf16>, vector<128x64xf32> -> vector<128x64xf32>
    %205 = arith.addf %200, %204 : vector<128x64xf32>
    %c74 = arith.constant 74 : index
    %c0_179 = arith.constant 0 : index
    %206 = vector.load %arg15[%c74, %c0_179] : memref<208x64xbf16, #tpu.memory_space<vmem>>, vector<128x64xbf16>
    %c24_180 = arith.constant 24 : index
    %c0_181 = arith.constant 0 : index
    %c0_182 = arith.constant 0 : index
    %207 = vector.load %arg4[%c24_180, %c0_181, %c0_182] : memref<25x64x64xbf16, #tpu.memory_space<vmem>>, vector<1x64x64xbf16>
    %208 = vector.shape_cast %207 : vector<1x64x64xbf16> to vector<64x64xbf16>
    %cst_183 = arith.constant dense<0.000000e+00> : vector<128x64xf32>
    %209 = tpu.matmul %206, %208, %cst_183 {dimension_numbers = #tpu.dot_dimension_numbers<[1], [0], [0], [1], [0, 0, 1, 1], [], []>} : vector<128x64xbf16>, vector<64x64xbf16>, vector<128x64xf32> -> vector<128x64xf32>
    %210 = arith.addf %205, %209 : vector<128x64xf32>
    %c0_184 = arith.constant 0 : index
    %c0_185 = arith.constant 0 : index
    %211 = vector.load %arg5[%c0_184, %c0_185] : memref<1x64xf32, #tpu.memory_space<vmem>>, vector<1x64xf32>
    %212 = vector.broadcast %211 : vector<1x64xf32> to vector<128x64xf32>
    %213 = arith.addf %210, %212 : vector<128x64xf32>
    %cst_186 = arith.constant 0.000000e+00 : f32
    %214 = vector.broadcast %cst_186 : f32 to vector<128x64xf32>
    %215 = arith.maximumf %213, %214 : vector<128x64xf32>
    %cst_187 = arith.constant 0.000000e+00 : f32
    %216 = vector.shape_cast %22 : vector<128x1xi1> to vector<128x1xi1>
    %217 = vector.broadcast %216 : vector<128x1xi1> to vector<128x64xi1>
    %218 = vector.broadcast %cst_187 : f32 to vector<128x64xf32>
    %219 = arith.select %217, %215, %218 : vector<128x64xi1>, vector<128x64xf32>
    %220 = arith.truncf %219 : vector<128x64xf32> to vector<128x64xbf16>
    %c40_188 = arith.constant 40 : index
    %c0_189 = arith.constant 0 : index
    %221 = vector.load %arg15[%c40_188, %c0_189] : memref<208x64xbf16, #tpu.memory_space<vmem>>, vector<128x64xbf16>
    tpu.vector_store %arg15[%c40_188, %c0_189], %220 {strides = array<i32>} : memref<208x64xbf16, #tpu.memory_space<vmem>>, vector<128x64xbf16>,
    %c23_190 = arith.constant 23 : index
    %c0_191 = arith.constant 0 : index
    %222 = vector.load %arg15[%c23_190, %c0_191] : memref<208x64xbf16, #tpu.memory_space<vmem>>, vector<128x64xbf16>
    %c0_192 = arith.constant 0 : index
    %c0_193 = arith.constant 0 : index
    %c0_194 = arith.constant 0 : index
    %223 = vector.load %arg6[%c0_192, %c0_193, %c0_194] : memref<9x64x64xbf16, #tpu.memory_space<vmem>>, vector<1x64x64xbf16>
    %224 = vector.shape_cast %223 : vector<1x64x64xbf16> to vector<64x64xbf16>
    %cst_195 = arith.constant dense<0.000000e+00> : vector<128x64xf32>
    %225 = tpu.matmul %222, %224, %cst_195 {dimension_numbers = #tpu.dot_dimension_numbers<[1], [0], [0], [1], [0, 0, 1, 1], [], []>} : vector<128x64xbf16>, vector<64x64xbf16>, vector<128x64xf32> -> vector<128x64xf32>
    %c24_196 = arith.constant 24 : index
    %c0_197 = arith.constant 0 : index
    %226 = vector.load %arg15[%c24_196, %c0_197] : memref<208x64xbf16, #tpu.memory_space<vmem>>, vector<128x64xbf16>
    %c1_198 = arith.constant 1 : index
    %c0_199 = arith.constant 0 : index
    %c0_200 = arith.constant 0 : index
    %227 = vector.load %arg6[%c1_198, %c0_199, %c0_200] : memref<9x64x64xbf16, #tpu.memory_space<vmem>>, vector<1x64x64xbf16>
    %228 = vector.shape_cast %227 : vector<1x64x64xbf16> to vector<64x64xbf16>
    %cst_201 = arith.constant dense<0.000000e+00> : vector<128x64xf32>
    %229 = tpu.matmul %226, %228, %cst_201 {dimension_numbers = #tpu.dot_dimension_numbers<[1], [0], [0], [1], [0, 0, 1, 1], [], []>} : vector<128x64xbf16>, vector<64x64xbf16>, vector<128x64xf32> -> vector<128x64xf32>
    %230 = arith.addf %225, %229 : vector<128x64xf32>
    %c25_202 = arith.constant 25 : index
    %c0_203 = arith.constant 0 : index
    %231 = vector.load %arg15[%c25_202, %c0_203] : memref<208x64xbf16, #tpu.memory_space<vmem>>, vector<128x64xbf16>
    %c2_204 = arith.constant 2 : index
    %c0_205 = arith.constant 0 : index
    %c0_206 = arith.constant 0 : index
    %232 = vector.load %arg6[%c2_204, %c0_205, %c0_206] : memref<9x64x64xbf16, #tpu.memory_space<vmem>>, vector<1x64x64xbf16>
    %233 = vector.shape_cast %232 : vector<1x64x64xbf16> to vector<64x64xbf16>
    %cst_207 = arith.constant dense<0.000000e+00> : vector<128x64xf32>
    %234 = tpu.matmul %231, %233, %cst_207 {dimension_numbers = #tpu.dot_dimension_numbers<[1], [0], [0], [1], [0, 0, 1, 1], [], []>} : vector<128x64xbf16>, vector<64x64xbf16>, vector<128x64xf32> -> vector<128x64xf32>
    %235 = arith.addf %230, %234 : vector<128x64xf32>
    %c39_208 = arith.constant 39 : index
    %c0_209 = arith.constant 0 : index
    %236 = vector.load %arg15[%c39_208, %c0_209] : memref<208x64xbf16, #tpu.memory_space<vmem>>, vector<128x64xbf16>
    %c3_210 = arith.constant 3 : index
    %c0_211 = arith.constant 0 : index
    %c0_212 = arith.constant 0 : index
    %237 = vector.load %arg6[%c3_210, %c0_211, %c0_212] : memref<9x64x64xbf16, #tpu.memory_space<vmem>>, vector<1x64x64xbf16>
    %238 = vector.shape_cast %237 : vector<1x64x64xbf16> to vector<64x64xbf16>
    %cst_213 = arith.constant dense<0.000000e+00> : vector<128x64xf32>
    %239 = tpu.matmul %236, %238, %cst_213 {dimension_numbers = #tpu.dot_dimension_numbers<[1], [0], [0], [1], [0, 0, 1, 1], [], []>} : vector<128x64xbf16>, vector<64x64xbf16>, vector<128x64xf32> -> vector<128x64xf32>
    %240 = arith.addf %235, %239 : vector<128x64xf32>
    %c40_214 = arith.constant 40 : index
    %c0_215 = arith.constant 0 : index
    %241 = vector.load %arg15[%c40_214, %c0_215] : memref<208x64xbf16, #tpu.memory_space<vmem>>, vector<128x64xbf16>
    %c4_216 = arith.constant 4 : index
    %c0_217 = arith.constant 0 : index
    %c0_218 = arith.constant 0 : index
    %242 = vector.load %arg6[%c4_216, %c0_217, %c0_218] : memref<9x64x64xbf16, #tpu.memory_space<vmem>>, vector<1x64x64xbf16>
    %243 = vector.shape_cast %242 : vector<1x64x64xbf16> to vector<64x64xbf16>
    %cst_219 = arith.constant dense<0.000000e+00> : vector<128x64xf32>
    %244 = tpu.matmul %241, %243, %cst_219 {dimension_numbers = #tpu.dot_dimension_numbers<[1], [0], [0], [1], [0, 0, 1, 1], [], []>} : vector<128x64xbf16>, vector<64x64xbf16>, vector<128x64xf32> -> vector<128x64xf32>
    %245 = arith.addf %240, %244 : vector<128x64xf32>
    %c41_220 = arith.constant 41 : index
    %c0_221 = arith.constant 0 : index
    %246 = vector.load %arg15[%c41_220, %c0_221] : memref<208x64xbf16, #tpu.memory_space<vmem>>, vector<128x64xbf16>
    %c5_222 = arith.constant 5 : index
    %c0_223 = arith.constant 0 : index
    %c0_224 = arith.constant 0 : index
    %247 = vector.load %arg6[%c5_222, %c0_223, %c0_224] : memref<9x64x64xbf16, #tpu.memory_space<vmem>>, vector<1x64x64xbf16>
    %248 = vector.shape_cast %247 : vector<1x64x64xbf16> to vector<64x64xbf16>
    %cst_225 = arith.constant dense<0.000000e+00> : vector<128x64xf32>
    %249 = tpu.matmul %246, %248, %cst_225 {dimension_numbers = #tpu.dot_dimension_numbers<[1], [0], [0], [1], [0, 0, 1, 1], [], []>} : vector<128x64xbf16>, vector<64x64xbf16>, vector<128x64xf32> -> vector<128x64xf32>
    %250 = arith.addf %245, %249 : vector<128x64xf32>
    %c55_226 = arith.constant 55 : index
    %c0_227 = arith.constant 0 : index
    %251 = vector.load %arg15[%c55_226, %c0_227] : memref<208x64xbf16, #tpu.memory_space<vmem>>, vector<128x64xbf16>
    %c6_228 = arith.constant 6 : index
    %c0_229 = arith.constant 0 : index
    %c0_230 = arith.constant 0 : index
    %252 = vector.load %arg6[%c6_228, %c0_229, %c0_230] : memref<9x64x64xbf16, #tpu.memory_space<vmem>>, vector<1x64x64xbf16>
    %253 = vector.shape_cast %252 : vector<1x64x64xbf16> to vector<64x64xbf16>
    %cst_231 = arith.constant dense<0.000000e+00> : vector<128x64xf32>
    %254 = tpu.matmul %251, %253, %cst_231 {dimension_numbers = #tpu.dot_dimension_numbers<[1], [0], [0], [1], [0, 0, 1, 1], [], []>} : vector<128x64xbf16>, vector<64x64xbf16>, vector<128x64xf32> -> vector<128x64xf32>
    %255 = arith.addf %250, %254 : vector<128x64xf32>
    %c56_232 = arith.constant 56 : index
    %c0_233 = arith.constant 0 : index
    %256 = vector.load %arg15[%c56_232, %c0_233] : memref<208x64xbf16, #tpu.memory_space<vmem>>, vector<128x64xbf16>
    %c7_234 = arith.constant 7 : index
    %c0_235 = arith.constant 0 : index
    %c0_236 = arith.constant 0 : index
    %257 = vector.load %arg6[%c7_234, %c0_235, %c0_236] : memref<9x64x64xbf16, #tpu.memory_space<vmem>>, vector<1x64x64xbf16>
    %258 = vector.shape_cast %257 : vector<1x64x64xbf16> to vector<64x64xbf16>
    %cst_237 = arith.constant dense<0.000000e+00> : vector<128x64xf32>
    %259 = tpu.matmul %256, %258, %cst_237 {dimension_numbers = #tpu.dot_dimension_numbers<[1], [0], [0], [1], [0, 0, 1, 1], [], []>} : vector<128x64xbf16>, vector<64x64xbf16>, vector<128x64xf32> -> vector<128x64xf32>
    %260 = arith.addf %255, %259 : vector<128x64xf32>
    %c57_238 = arith.constant 57 : index
    %c0_239 = arith.constant 0 : index
    %261 = vector.load %arg15[%c57_238, %c0_239] : memref<208x64xbf16, #tpu.memory_space<vmem>>, vector<128x64xbf16>
    %c8_240 = arith.constant 8 : index
    %c0_241 = arith.constant 0 : index
    %c0_242 = arith.constant 0 : index
    %262 = vector.load %arg6[%c8_240, %c0_241, %c0_242] : memref<9x64x64xbf16, #tpu.memory_space<vmem>>, vector<1x64x64xbf16>
    %263 = vector.shape_cast %262 : vector<1x64x64xbf16> to vector<64x64xbf16>
    %cst_243 = arith.constant dense<0.000000e+00> : vector<128x64xf32>
    %264 = tpu.matmul %261, %263, %cst_243 {dimension_numbers = #tpu.dot_dimension_numbers<[1], [0], [0], [1], [0, 0, 1, 1], [], []>} : vector<128x64xbf16>, vector<64x64xbf16>, vector<128x64xf32> -> vector<128x64xf32>
    %265 = arith.addf %260, %264 : vector<128x64xf32>
    %c0_244 = arith.constant 0 : index
    %c0_245 = arith.constant 0 : index
    %266 = vector.load %arg7[%c0_244, %c0_245] : memref<1x64xf32, #tpu.memory_space<vmem>>, vector<1x64xf32>
    %267 = vector.broadcast %266 : vector<1x64xf32> to vector<128x64xf32>
    %268 = arith.addf %265, %267 : vector<128x64xf32>
    %cst_246 = arith.constant 0.000000e+00 : f32
    %269 = vector.broadcast %cst_246 : f32 to vector<128x64xf32>
    %270 = arith.maximumf %268, %269 : vector<128x64xf32>
    %cst_247 = arith.constant 0.000000e+00 : f32
    %271 = vector.shape_cast %22 : vector<128x1xi1> to vector<128x1xi1>
    %272 = vector.broadcast %271 : vector<128x1xi1> to vector<128x64xi1>
    %273 = vector.broadcast %cst_247 : f32 to vector<128x64xf32>
    %274 = arith.select %272, %270, %273 : vector<128x64xi1>, vector<128x64xf32>
    %275 = arith.truncf %274 : vector<128x64xf32> to vector<128x64xbf16>
    %c40_248 = arith.constant 40 : index
    %c0_249 = arith.constant 0 : index
    %276 = vector.load %arg15[%c40_248, %c0_249] : memref<208x64xbf16, #tpu.memory_space<vmem>>, vector<128x64xbf16>
    tpu.vector_store %arg15[%c40_248, %c0_249], %275 {strides = array<i32>} : memref<208x64xbf16, #tpu.memory_space<vmem>>, vector<128x64xbf16>,
    %c6_250 = arith.constant 6 : index
    %c0_251 = arith.constant 0 : index
    %277 = vector.load %arg15[%c6_250, %c0_251] : memref<208x64xbf16, #tpu.memory_space<vmem>>, vector<128x64xbf16>
    %c0_252 = arith.constant 0 : index
    %c0_253 = arith.constant 0 : index
    %c0_254 = arith.constant 0 : index
    %278 = vector.load %arg8[%c0_252, %c0_253, %c0_254] : memref<25x64x64xbf16, #tpu.memory_space<vmem>>, vector<1x64x64xbf16>
    %279 = vector.shape_cast %278 : vector<1x64x64xbf16> to vector<64x64xbf16>
    %cst_255 = arith.constant dense<0.000000e+00> : vector<128x64xf32>
    %280 = tpu.matmul %277, %279, %cst_255 {dimension_numbers = #tpu.dot_dimension_numbers<[1], [0], [0], [1], [0, 0, 1, 1], [], []>} : vector<128x64xbf16>, vector<64x64xbf16>, vector<128x64xf32> -> vector<128x64xf32>
    %c7_256 = arith.constant 7 : index
    %c0_257 = arith.constant 0 : index
    %281 = vector.load %arg15[%c7_256, %c0_257] : memref<208x64xbf16, #tpu.memory_space<vmem>>, vector<128x64xbf16>
    %c1_258 = arith.constant 1 : index
    %c0_259 = arith.constant 0 : index
    %c0_260 = arith.constant 0 : index
    %282 = vector.load %arg8[%c1_258, %c0_259, %c0_260] : memref<25x64x64xbf16, #tpu.memory_space<vmem>>, vector<1x64x64xbf16>
    %283 = vector.shape_cast %282 : vector<1x64x64xbf16> to vector<64x64xbf16>
    %cst_261 = arith.constant dense<0.000000e+00> : vector<128x64xf32>
    %284 = tpu.matmul %281, %283, %cst_261 {dimension_numbers = #tpu.dot_dimension_numbers<[1], [0], [0], [1], [0, 0, 1, 1], [], []>} : vector<128x64xbf16>, vector<64x64xbf16>, vector<128x64xf32> -> vector<128x64xf32>
    %285 = arith.addf %280, %284 : vector<128x64xf32>
    %c8_262 = arith.constant 8 : index
    %c0_263 = arith.constant 0 : index
    %286 = vector.load %arg15[%c8_262, %c0_263] : memref<208x64xbf16, #tpu.memory_space<vmem>>, vector<128x64xbf16>
    %c2_264 = arith.constant 2 : index
    %c0_265 = arith.constant 0 : index
    %c0_266 = arith.constant 0 : index
    %287 = vector.load %arg8[%c2_264, %c0_265, %c0_266] : memref<25x64x64xbf16, #tpu.memory_space<vmem>>, vector<1x64x64xbf16>
    %288 = vector.shape_cast %287 : vector<1x64x64xbf16> to vector<64x64xbf16>
    %cst_267 = arith.constant dense<0.000000e+00> : vector<128x64xf32>
    %289 = tpu.matmul %286, %288, %cst_267 {dimension_numbers = #tpu.dot_dimension_numbers<[1], [0], [0], [1], [0, 0, 1, 1], [], []>} : vector<128x64xbf16>, vector<64x64xbf16>, vector<128x64xf32> -> vector<128x64xf32>
    %290 = arith.addf %285, %289 : vector<128x64xf32>
    %c9_268 = arith.constant 9 : index
    %c0_269 = arith.constant 0 : index
    %291 = vector.load %arg15[%c9_268, %c0_269] : memref<208x64xbf16, #tpu.memory_space<vmem>>, vector<128x64xbf16>
    %c3_270 = arith.constant 3 : index
    %c0_271 = arith.constant 0 : index
    %c0_272 = arith.constant 0 : index
    %292 = vector.load %arg8[%c3_270, %c0_271, %c0_272] : memref<25x64x64xbf16, #tpu.memory_space<vmem>>, vector<1x64x64xbf16>
    %293 = vector.shape_cast %292 : vector<1x64x64xbf16> to vector<64x64xbf16>
    %cst_273 = arith.constant dense<0.000000e+00> : vector<128x64xf32>
    %294 = tpu.matmul %291, %293, %cst_273 {dimension_numbers = #tpu.dot_dimension_numbers<[1], [0], [0], [1], [0, 0, 1, 1], [], []>} : vector<128x64xbf16>, vector<64x64xbf16>, vector<128x64xf32> -> vector<128x64xf32>
    %295 = arith.addf %290, %294 : vector<128x64xf32>
    %c10_274 = arith.constant 10 : index
    %c0_275 = arith.constant 0 : index
    %296 = vector.load %arg15[%c10_274, %c0_275] : memref<208x64xbf16, #tpu.memory_space<vmem>>, vector<128x64xbf16>
    %c4_276 = arith.constant 4 : index
    %c0_277 = arith.constant 0 : index
    %c0_278 = arith.constant 0 : index
    %297 = vector.load %arg8[%c4_276, %c0_277, %c0_278] : memref<25x64x64xbf16, #tpu.memory_space<vmem>>, vector<1x64x64xbf16>
    %298 = vector.shape_cast %297 : vector<1x64x64xbf16> to vector<64x64xbf16>
    %cst_279 = arith.constant dense<0.000000e+00> : vector<128x64xf32>
    %299 = tpu.matmul %296, %298, %cst_279 {dimension_numbers = #tpu.dot_dimension_numbers<[1], [0], [0], [1], [0, 0, 1, 1], [], []>} : vector<128x64xbf16>, vector<64x64xbf16>, vector<128x64xf32> -> vector<128x64xf32>
    %300 = arith.addf %295, %299 : vector<128x64xf32>
    %c22_280 = arith.constant 22 : index
    %c0_281 = arith.constant 0 : index
    %301 = vector.load %arg15[%c22_280, %c0_281] : memref<208x64xbf16, #tpu.memory_space<vmem>>, vector<128x64xbf16>
    %c5_282 = arith.constant 5 : index
    %c0_283 = arith.constant 0 : index
    %c0_284 = arith.constant 0 : index
    %302 = vector.load %arg8[%c5_282, %c0_283, %c0_284] : memref<25x64x64xbf16, #tpu.memory_space<vmem>>, vector<1x64x64xbf16>
    %303 = vector.shape_cast %302 : vector<1x64x64xbf16> to vector<64x64xbf16>
    %cst_285 = arith.constant dense<0.000000e+00> : vector<128x64xf32>
    %304 = tpu.matmul %301, %303, %cst_285 {dimension_numbers = #tpu.dot_dimension_numbers<[1], [0], [0], [1], [0, 0, 1, 1], [], []>} : vector<128x64xbf16>, vector<64x64xbf16>, vector<128x64xf32> -> vector<128x64xf32>
    %305 = arith.addf %300, %304 : vector<128x64xf32>
    %c23_286 = arith.constant 23 : index
    %c0_287 = arith.constant 0 : index
    %306 = vector.load %arg15[%c23_286, %c0_287] : memref<208x64xbf16, #tpu.memory_space<vmem>>, vector<128x64xbf16>
    %c6_288 = arith.constant 6 : index
    %c0_289 = arith.constant 0 : index
    %c0_290 = arith.constant 0 : index
    %307 = vector.load %arg8[%c6_288, %c0_289, %c0_290] : memref<25x64x64xbf16, #tpu.memory_space<vmem>>, vector<1x64x64xbf16>
    %308 = vector.shape_cast %307 : vector<1x64x64xbf16> to vector<64x64xbf16>
    %cst_291 = arith.constant dense<0.000000e+00> : vector<128x64xf32>
    %309 = tpu.matmul %306, %308, %cst_291 {dimension_numbers = #tpu.dot_dimension_numbers<[1], [0], [0], [1], [0, 0, 1, 1], [], []>} : vector<128x64xbf16>, vector<64x64xbf16>, vector<128x64xf32> -> vector<128x64xf32>
    %310 = arith.addf %305, %309 : vector<128x64xf32>
    %c24_292 = arith.constant 24 : index
    %c0_293 = arith.constant 0 : index
    %311 = vector.load %arg15[%c24_292, %c0_293] : memref<208x64xbf16, #tpu.memory_space<vmem>>, vector<128x64xbf16>
    %c7_294 = arith.constant 7 : index
    %c0_295 = arith.constant 0 : index
    %c0_296 = arith.constant 0 : index
    %312 = vector.load %arg8[%c7_294, %c0_295, %c0_296] : memref<25x64x64xbf16, #tpu.memory_space<vmem>>, vector<1x64x64xbf16>
    %313 = vector.shape_cast %312 : vector<1x64x64xbf16> to vector<64x64xbf16>
    %cst_297 = arith.constant dense<0.000000e+00> : vector<128x64xf32>
    %314 = tpu.matmul %311, %313, %cst_297 {dimension_numbers = #tpu.dot_dimension_numbers<[1], [0], [0], [1], [0, 0, 1, 1], [], []>} : vector<128x64xbf16>, vector<64x64xbf16>, vector<128x64xf32> -> vector<128x64xf32>
    %315 = arith.addf %310, %314 : vector<128x64xf32>
    %c25_298 = arith.constant 25 : index
    %c0_299 = arith.constant 0 : index
    %316 = vector.load %arg15[%c25_298, %c0_299] : memref<208x64xbf16, #tpu.memory_space<vmem>>, vector<128x64xbf16>
    %c8_300 = arith.constant 8 : index
    %c0_301 = arith.constant 0 : index
    %c0_302 = arith.constant 0 : index
    %317 = vector.load %arg8[%c8_300, %c0_301, %c0_302] : memref<25x64x64xbf16, #tpu.memory_space<vmem>>, vector<1x64x64xbf16>
    %318 = vector.shape_cast %317 : vector<1x64x64xbf16> to vector<64x64xbf16>
    %cst_303 = arith.constant dense<0.000000e+00> : vector<128x64xf32>
    %319 = tpu.matmul %316, %318, %cst_303 {dimension_numbers = #tpu.dot_dimension_numbers<[1], [0], [0], [1], [0, 0, 1, 1], [], []>} : vector<128x64xbf16>, vector<64x64xbf16>, vector<128x64xf32> -> vector<128x64xf32>
    %320 = arith.addf %315, %319 : vector<128x64xf32>
    %c26_304 = arith.constant 26 : index
    %c0_305 = arith.constant 0 : index
    %321 = vector.load %arg15[%c26_304, %c0_305] : memref<208x64xbf16, #tpu.memory_space<vmem>>, vector<128x64xbf16>
    %c9_306 = arith.constant 9 : index
    %c0_307 = arith.constant 0 : index
    %c0_308 = arith.constant 0 : index
    %322 = vector.load %arg8[%c9_306, %c0_307, %c0_308] : memref<25x64x64xbf16, #tpu.memory_space<vmem>>, vector<1x64x64xbf16>
    %323 = vector.shape_cast %322 : vector<1x64x64xbf16> to vector<64x64xbf16>
    %cst_309 = arith.constant dense<0.000000e+00> : vector<128x64xf32>
    %324 = tpu.matmul %321, %323, %cst_309 {dimension_numbers = #tpu.dot_dimension_numbers<[1], [0], [0], [1], [0, 0, 1, 1], [], []>} : vector<128x64xbf16>, vector<64x64xbf16>, vector<128x64xf32> -> vector<128x64xf32>
    %325 = arith.addf %320, %324 : vector<128x64xf32>
    %c38_310 = arith.constant 38 : index
    %c0_311 = arith.constant 0 : index
    %326 = vector.load %arg15[%c38_310, %c0_311] : memref<208x64xbf16, #tpu.memory_space<vmem>>, vector<128x64xbf16>
    %c10_312 = arith.constant 10 : index
    %c0_313 = arith.constant 0 : index
    %c0_314 = arith.constant 0 : index
    %327 = vector.load %arg8[%c10_312, %c0_313, %c0_314] : memref<25x64x64xbf16, #tpu.memory_space<vmem>>, vector<1x64x64xbf16>
    %328 = vector.shape_cast %327 : vector<1x64x64xbf16> to vector<64x64xbf16>
    %cst_315 = arith.constant dense<0.000000e+00> : vector<128x64xf32>
    %329 = tpu.matmul %326, %328, %cst_315 {dimension_numbers = #tpu.dot_dimension_numbers<[1], [0], [0], [1], [0, 0, 1, 1], [], []>} : vector<128x64xbf16>, vector<64x64xbf16>, vector<128x64xf32> -> vector<128x64xf32>
    %330 = arith.addf %325, %329 : vector<128x64xf32>
    %c39_316 = arith.constant 39 : index
    %c0_317 = arith.constant 0 : index
    %331 = vector.load %arg15[%c39_316, %c0_317] : memref<208x64xbf16, #tpu.memory_space<vmem>>, vector<128x64xbf16>
    %c11_318 = arith.constant 11 : index
    %c0_319 = arith.constant 0 : index
    %c0_320 = arith.constant 0 : index
    %332 = vector.load %arg8[%c11_318, %c0_319, %c0_320] : memref<25x64x64xbf16, #tpu.memory_space<vmem>>, vector<1x64x64xbf16>
    %333 = vector.shape_cast %332 : vector<1x64x64xbf16> to vector<64x64xbf16>
    %cst_321 = arith.constant dense<0.000000e+00> : vector<128x64xf32>
    %334 = tpu.matmul %331, %333, %cst_321 {dimension_numbers = #tpu.dot_dimension_numbers<[1], [0], [0], [1], [0, 0, 1, 1], [], []>} : vector<128x64xbf16>, vector<64x64xbf16>, vector<128x64xf32> -> vector<128x64xf32>
    %335 = arith.addf %330, %334 : vector<128x64xf32>
    %c40_322 = arith.constant 40 : index
    %c0_323 = arith.constant 0 : index
    %336 = vector.load %arg15[%c40_322, %c0_323] : memref<208x64xbf16, #tpu.memory_space<vmem>>, vector<128x64xbf16>
    %c12_324 = arith.constant 12 : index
    %c0_325 = arith.constant 0 : index
    %c0_326 = arith.constant 0 : index
    %337 = vector.load %arg8[%c12_324, %c0_325, %c0_326] : memref<25x64x64xbf16, #tpu.memory_space<vmem>>, vector<1x64x64xbf16>
    %338 = vector.shape_cast %337 : vector<1x64x64xbf16> to vector<64x64xbf16>
    %cst_327 = arith.constant dense<0.000000e+00> : vector<128x64xf32>
    %339 = tpu.matmul %336, %338, %cst_327 {dimension_numbers = #tpu.dot_dimension_numbers<[1], [0], [0], [1], [0, 0, 1, 1], [], []>} : vector<128x64xbf16>, vector<64x64xbf16>, vector<128x64xf32> -> vector<128x64xf32>
    %340 = arith.addf %335, %339 : vector<128x64xf32>
    %c41_328 = arith.constant 41 : index
    %c0_329 = arith.constant 0 : index
    %341 = vector.load %arg15[%c41_328, %c0_329] : memref<208x64xbf16, #tpu.memory_space<vmem>>, vector<128x64xbf16>
    %c13_330 = arith.constant 13 : index
    %c0_331 = arith.constant 0 : index
    %c0_332 = arith.constant 0 : index
    %342 = vector.load %arg8[%c13_330, %c0_331, %c0_332] : memref<25x64x64xbf16, #tpu.memory_space<vmem>>, vector<1x64x64xbf16>
    %343 = vector.shape_cast %342 : vector<1x64x64xbf16> to vector<64x64xbf16>
    %cst_333 = arith.constant dense<0.000000e+00> : vector<128x64xf32>
    %344 = tpu.matmul %341, %343, %cst_333 {dimension_numbers = #tpu.dot_dimension_numbers<[1], [0], [0], [1], [0, 0, 1, 1], [], []>} : vector<128x64xbf16>, vector<64x64xbf16>, vector<128x64xf32> -> vector<128x64xf32>
    %345 = arith.addf %340, %344 : vector<128x64xf32>
    %c42_334 = arith.constant 42 : index
    %c0_335 = arith.constant 0 : index
    %346 = vector.load %arg15[%c42_334, %c0_335] : memref<208x64xbf16, #tpu.memory_space<vmem>>, vector<128x64xbf16>
    %c14_336 = arith.constant 14 : index
    %c0_337 = arith.constant 0 : index
    %c0_338 = arith.constant 0 : index
    %347 = vector.load %arg8[%c14_336, %c0_337, %c0_338] : memref<25x64x64xbf16, #tpu.memory_space<vmem>>, vector<1x64x64xbf16>
    %348 = vector.shape_cast %347 : vector<1x64x64xbf16> to vector<64x64xbf16>
    %cst_339 = arith.constant dense<0.000000e+00> : vector<128x64xf32>
    %349 = tpu.matmul %346, %348, %cst_339 {dimension_numbers = #tpu.dot_dimension_numbers<[1], [0], [0], [1], [0, 0, 1, 1], [], []>} : vector<128x64xbf16>, vector<64x64xbf16>, vector<128x64xf32> -> vector<128x64xf32>
    %350 = arith.addf %345, %349 : vector<128x64xf32>
    %c54_340 = arith.constant 54 : index
    %c0_341 = arith.constant 0 : index
    %351 = vector.load %arg15[%c54_340, %c0_341] : memref<208x64xbf16, #tpu.memory_space<vmem>>, vector<128x64xbf16>
    %c15_342 = arith.constant 15 : index
    %c0_343 = arith.constant 0 : index
    %c0_344 = arith.constant 0 : index
    %352 = vector.load %arg8[%c15_342, %c0_343, %c0_344] : memref<25x64x64xbf16, #tpu.memory_space<vmem>>, vector<1x64x64xbf16>
    %353 = vector.shape_cast %352 : vector<1x64x64xbf16> to vector<64x64xbf16>
    %cst_345 = arith.constant dense<0.000000e+00> : vector<128x64xf32>
    %354 = tpu.matmul %351, %353, %cst_345 {dimension_numbers = #tpu.dot_dimension_numbers<[1], [0], [0], [1], [0, 0, 1, 1], [], []>} : vector<128x64xbf16>, vector<64x64xbf16>, vector<128x64xf32> -> vector<128x64xf32>
    %355 = arith.addf %350, %354 : vector<128x64xf32>
    %c55_346 = arith.constant 55 : index
    %c0_347 = arith.constant 0 : index
    %356 = vector.load %arg15[%c55_346, %c0_347] : memref<208x64xbf16, #tpu.memory_space<vmem>>, vector<128x64xbf16>
    %c16_348 = arith.constant 16 : index
    %c0_349 = arith.constant 0 : index
    %c0_350 = arith.constant 0 : index
    %357 = vector.load %arg8[%c16_348, %c0_349, %c0_350] : memref<25x64x64xbf16, #tpu.memory_space<vmem>>, vector<1x64x64xbf16>
    %358 = vector.shape_cast %357 : vector<1x64x64xbf16> to vector<64x64xbf16>
    %cst_351 = arith.constant dense<0.000000e+00> : vector<128x64xf32>
    %359 = tpu.matmul %356, %358, %cst_351 {dimension_numbers = #tpu.dot_dimension_numbers<[1], [0], [0], [1], [0, 0, 1, 1], [], []>} : vector<128x64xbf16>, vector<64x64xbf16>, vector<128x64xf32> -> vector<128x64xf32>
    %360 = arith.addf %355, %359 : vector<128x64xf32>
    %c56_352 = arith.constant 56 : index
    %c0_353 = arith.constant 0 : index
    %361 = vector.load %arg15[%c56_352, %c0_353] : memref<208x64xbf16, #tpu.memory_space<vmem>>, vector<128x64xbf16>
    %c17_354 = arith.constant 17 : index
    %c0_355 = arith.constant 0 : index
    %c0_356 = arith.constant 0 : index
    %362 = vector.load %arg8[%c17_354, %c0_355, %c0_356] : memref<25x64x64xbf16, #tpu.memory_space<vmem>>, vector<1x64x64xbf16>
    %363 = vector.shape_cast %362 : vector<1x64x64xbf16> to vector<64x64xbf16>
    %cst_357 = arith.constant dense<0.000000e+00> : vector<128x64xf32>
    %364 = tpu.matmul %361, %363, %cst_357 {dimension_numbers = #tpu.dot_dimension_numbers<[1], [0], [0], [1], [0, 0, 1, 1], [], []>} : vector<128x64xbf16>, vector<64x64xbf16>, vector<128x64xf32> -> vector<128x64xf32>
    %365 = arith.addf %360, %364 : vector<128x64xf32>
    %c57_358 = arith.constant 57 : index
    %c0_359 = arith.constant 0 : index
    %366 = vector.load %arg15[%c57_358, %c0_359] : memref<208x64xbf16, #tpu.memory_space<vmem>>, vector<128x64xbf16>
    %c18_360 = arith.constant 18 : index
    %c0_361 = arith.constant 0 : index
    %c0_362 = arith.constant 0 : index
    %367 = vector.load %arg8[%c18_360, %c0_361, %c0_362] : memref<25x64x64xbf16, #tpu.memory_space<vmem>>, vector<1x64x64xbf16>
    %368 = vector.shape_cast %367 : vector<1x64x64xbf16> to vector<64x64xbf16>
    %cst_363 = arith.constant dense<0.000000e+00> : vector<128x64xf32>
    %369 = tpu.matmul %366, %368, %cst_363 {dimension_numbers = #tpu.dot_dimension_numbers<[1], [0], [0], [1], [0, 0, 1, 1], [], []>} : vector<128x64xbf16>, vector<64x64xbf16>, vector<128x64xf32> -> vector<128x64xf32>
    %370 = arith.addf %365, %369 : vector<128x64xf32>
    %c58_364 = arith.constant 58 : index
    %c0_365 = arith.constant 0 : index
    %371 = vector.load %arg15[%c58_364, %c0_365] : memref<208x64xbf16, #tpu.memory_space<vmem>>, vector<128x64xbf16>
    %c19_366 = arith.constant 19 : index
    %c0_367 = arith.constant 0 : index
    %c0_368 = arith.constant 0 : index
    %372 = vector.load %arg8[%c19_366, %c0_367, %c0_368] : memref<25x64x64xbf16, #tpu.memory_space<vmem>>, vector<1x64x64xbf16>
    %373 = vector.shape_cast %372 : vector<1x64x64xbf16> to vector<64x64xbf16>
    %cst_369 = arith.constant dense<0.000000e+00> : vector<128x64xf32>
    %374 = tpu.matmul %371, %373, %cst_369 {dimension_numbers = #tpu.dot_dimension_numbers<[1], [0], [0], [1], [0, 0, 1, 1], [], []>} : vector<128x64xbf16>, vector<64x64xbf16>, vector<128x64xf32> -> vector<128x64xf32>
    %375 = arith.addf %370, %374 : vector<128x64xf32>
    %c70_370 = arith.constant 70 : index
    %c0_371 = arith.constant 0 : index
    %376 = vector.load %arg15[%c70_370, %c0_371] : memref<208x64xbf16, #tpu.memory_space<vmem>>, vector<128x64xbf16>
    %c20_372 = arith.constant 20 : index
    %c0_373 = arith.constant 0 : index
    %c0_374 = arith.constant 0 : index
    %377 = vector.load %arg8[%c20_372, %c0_373, %c0_374] : memref<25x64x64xbf16, #tpu.memory_space<vmem>>, vector<1x64x64xbf16>
    %378 = vector.shape_cast %377 : vector<1x64x64xbf16> to vector<64x64xbf16>
    %cst_375 = arith.constant dense<0.000000e+00> : vector<128x64xf32>
    %379 = tpu.matmul %376, %378, %cst_375 {dimension_numbers = #tpu.dot_dimension_numbers<[1], [0], [0], [1], [0, 0, 1, 1], [], []>} : vector<128x64xbf16>, vector<64x64xbf16>, vector<128x64xf32> -> vector<128x64xf32>
    %380 = arith.addf %375, %379 : vector<128x64xf32>
    %c71_376 = arith.constant 71 : index
    %c0_377 = arith.constant 0 : index
    %381 = vector.load %arg15[%c71_376, %c0_377] : memref<208x64xbf16, #tpu.memory_space<vmem>>, vector<128x64xbf16>
    %c21_378 = arith.constant 21 : index
    %c0_379 = arith.constant 0 : index
    %c0_380 = arith.constant 0 : index
    %382 = vector.load %arg8[%c21_378, %c0_379, %c0_380] : memref<25x64x64xbf16, #tpu.memory_space<vmem>>, vector<1x64x64xbf16>
    %383 = vector.shape_cast %382 : vector<1x64x64xbf16> to vector<64x64xbf16>
    %cst_381 = arith.constant dense<0.000000e+00> : vector<128x64xf32>
    %384 = tpu.matmul %381, %383, %cst_381 {dimension_numbers = #tpu.dot_dimension_numbers<[1], [0], [0], [1], [0, 0, 1, 1], [], []>} : vector<128x64xbf16>, vector<64x64xbf16>, vector<128x64xf32> -> vector<128x64xf32>
    %385 = arith.addf %380, %384 : vector<128x64xf32>
    %c72_382 = arith.constant 72 : index
    %c0_383 = arith.constant 0 : index
    %386 = vector.load %arg15[%c72_382, %c0_383] : memref<208x64xbf16, #tpu.memory_space<vmem>>, vector<128x64xbf16>
    %c22_384 = arith.constant 22 : index
    %c0_385 = arith.constant 0 : index
    %c0_386 = arith.constant 0 : index
    %387 = vector.load %arg8[%c22_384, %c0_385, %c0_386] : memref<25x64x64xbf16, #tpu.memory_space<vmem>>, vector<1x64x64xbf16>
    %388 = vector.shape_cast %387 : vector<1x64x64xbf16> to vector<64x64xbf16>
    %cst_387 = arith.constant dense<0.000000e+00> : vector<128x64xf32>
    %389 = tpu.matmul %386, %388, %cst_387 {dimension_numbers = #tpu.dot_dimension_numbers<[1], [0], [0], [1], [0, 0, 1, 1], [], []>} : vector<128x64xbf16>, vector<64x64xbf16>, vector<128x64xf32> -> vector<128x64xf32>
    %390 = arith.addf %385, %389 : vector<128x64xf32>
    %c73_388 = arith.constant 73 : index
    %c0_389 = arith.constant 0 : index
    %391 = vector.load %arg15[%c73_388, %c0_389] : memref<208x64xbf16, #tpu.memory_space<vmem>>, vector<128x64xbf16>
    %c23_390 = arith.constant 23 : index
    %c0_391 = arith.constant 0 : index
    %c0_392 = arith.constant 0 : index
    %392 = vector.load %arg8[%c23_390, %c0_391, %c0_392] : memref<25x64x64xbf16, #tpu.memory_space<vmem>>, vector<1x64x64xbf16>
    %393 = vector.shape_cast %392 : vector<1x64x64xbf16> to vector<64x64xbf16>
    %cst_393 = arith.constant dense<0.000000e+00> : vector<128x64xf32>
    %394 = tpu.matmul %391, %393, %cst_393 {dimension_numbers = #tpu.dot_dimension_numbers<[1], [0], [0], [1], [0, 0, 1, 1], [], []>} : vector<128x64xbf16>, vector<64x64xbf16>, vector<128x64xf32> -> vector<128x64xf32>
    %395 = arith.addf %390, %394 : vector<128x64xf32>
    %c74_394 = arith.constant 74 : index
    %c0_395 = arith.constant 0 : index
    %396 = vector.load %arg15[%c74_394, %c0_395] : memref<208x64xbf16, #tpu.memory_space<vmem>>, vector<128x64xbf16>
    %c24_396 = arith.constant 24 : index
    %c0_397 = arith.constant 0 : index
    %c0_398 = arith.constant 0 : index
    %397 = vector.load %arg8[%c24_396, %c0_397, %c0_398] : memref<25x64x64xbf16, #tpu.memory_space<vmem>>, vector<1x64x64xbf16>
    %398 = vector.shape_cast %397 : vector<1x64x64xbf16> to vector<64x64xbf16>
    %cst_399 = arith.constant dense<0.000000e+00> : vector<128x64xf32>
    %399 = tpu.matmul %396, %398, %cst_399 {dimension_numbers = #tpu.dot_dimension_numbers<[1], [0], [0], [1], [0, 0, 1, 1], [], []>} : vector<128x64xbf16>, vector<64x64xbf16>, vector<128x64xf32> -> vector<128x64xf32>
    %400 = arith.addf %395, %399 : vector<128x64xf32>
    %c0_400 = arith.constant 0 : index
    %c0_401 = arith.constant 0 : index
    %401 = vector.load %arg9[%c0_400, %c0_401] : memref<1x64xf32, #tpu.memory_space<vmem>>, vector<1x64xf32>
    %402 = vector.broadcast %401 : vector<1x64xf32> to vector<128x64xf32>
    %403 = arith.addf %400, %402 : vector<128x64xf32>
    %cst_402 = arith.constant 0.000000e+00 : f32
    %404 = vector.broadcast %cst_402 : f32 to vector<128x64xf32>
    %405 = arith.maximumf %403, %404 : vector<128x64xf32>
    %cst_403 = arith.constant 0.000000e+00 : f32
    %406 = vector.shape_cast %22 : vector<128x1xi1> to vector<128x1xi1>
    %407 = vector.broadcast %406 : vector<128x1xi1> to vector<128x64xi1>
    %408 = vector.broadcast %cst_403 : f32 to vector<128x64xf32>
    %409 = arith.select %407, %405, %408 : vector<128x64xi1>, vector<128x64xf32>
    %410 = arith.truncf %409 : vector<128x64xf32> to vector<128x64xbf16>
    %c40_404 = arith.constant 40 : index
    %c0_405 = arith.constant 0 : index
    %411 = vector.load %arg15[%c40_404, %c0_405] : memref<208x64xbf16, #tpu.memory_space<vmem>>, vector<128x64xbf16>
    tpu.vector_store %arg15[%c40_404, %c0_405], %410 {strides = array<i32>} : memref<208x64xbf16, #tpu.memory_space<vmem>>, vector<128x64xbf16>,
    %c23_406 = arith.constant 23 : index
    %c0_407 = arith.constant 0 : index
    %412 = vector.load %arg15[%c23_406, %c0_407] : memref<208x64xbf16, #tpu.memory_space<vmem>>, vector<128x64xbf16>
    %c0_408 = arith.constant 0 : index
    %c0_409 = arith.constant 0 : index
    %c0_410 = arith.constant 0 : index
    %413 = vector.load %arg10[%c0_408, %c0_409, %c0_410] : memref<9x64x64xbf16, #tpu.memory_space<vmem>>, vector<1x64x64xbf16>
    %414 = vector.shape_cast %413 : vector<1x64x64xbf16> to vector<64x64xbf16>
    %cst_411 = arith.constant dense<0.000000e+00> : vector<128x64xf32>
    %415 = tpu.matmul %412, %414, %cst_411 {dimension_numbers = #tpu.dot_dimension_numbers<[1], [0], [0], [1], [0, 0, 1, 1], [], []>} : vector<128x64xbf16>, vector<64x64xbf16>, vector<128x64xf32> -> vector<128x64xf32>
    %c24_412 = arith.constant 24 : index
    %c0_413 = arith.constant 0 : index
    %416 = vector.load %arg15[%c24_412, %c0_413] : memref<208x64xbf16, #tpu.memory_space<vmem>>, vector<128x64xbf16>
    %c1_414 = arith.constant 1 : index
    %c0_415 = arith.constant 0 : index
    %c0_416 = arith.constant 0 : index
    %417 = vector.load %arg10[%c1_414, %c0_415, %c0_416] : memref<9x64x64xbf16, #tpu.memory_space<vmem>>, vector<1x64x64xbf16>
    %418 = vector.shape_cast %417 : vector<1x64x64xbf16> to vector<64x64xbf16>
    %cst_417 = arith.constant dense<0.000000e+00> : vector<128x64xf32>
    %419 = tpu.matmul %416, %418, %cst_417 {dimension_numbers = #tpu.dot_dimension_numbers<[1], [0], [0], [1], [0, 0, 1, 1], [], []>} : vector<128x64xbf16>, vector<64x64xbf16>, vector<128x64xf32> -> vector<128x64xf32>
    %420 = arith.addf %415, %419 : vector<128x64xf32>
    %c25_418 = arith.constant 25 : index
    %c0_419 = arith.constant 0 : index
    %421 = vector.load %arg15[%c25_418, %c0_419] : memref<208x64xbf16, #tpu.memory_space<vmem>>, vector<128x64xbf16>
    %c2_420 = arith.constant 2 : index
    %c0_421 = arith.constant 0 : index
    %c0_422 = arith.constant 0 : index
    %422 = vector.load %arg10[%c2_420, %c0_421, %c0_422] : memref<9x64x64xbf16, #tpu.memory_space<vmem>>, vector<1x64x64xbf16>
    %423 = vector.shape_cast %422 : vector<1x64x64xbf16> to vector<64x64xbf16>
    %cst_423 = arith.constant dense<0.000000e+00> : vector<128x64xf32>
    %424 = tpu.matmul %421, %423, %cst_423 {dimension_numbers = #tpu.dot_dimension_numbers<[1], [0], [0], [1], [0, 0, 1, 1], [], []>} : vector<128x64xbf16>, vector<64x64xbf16>, vector<128x64xf32> -> vector<128x64xf32>
    %425 = arith.addf %420, %424 : vector<128x64xf32>
    %c39_424 = arith.constant 39 : index
    %c0_425 = arith.constant 0 : index
    %426 = vector.load %arg15[%c39_424, %c0_425] : memref<208x64xbf16, #tpu.memory_space<vmem>>, vector<128x64xbf16>
    %c3_426 = arith.constant 3 : index
    %c0_427 = arith.constant 0 : index
    %c0_428 = arith.constant 0 : index
    %427 = vector.load %arg10[%c3_426, %c0_427, %c0_428] : memref<9x64x64xbf16, #tpu.memory_space<vmem>>, vector<1x64x64xbf16>
    %428 = vector.shape_cast %427 : vector<1x64x64xbf16> to vector<64x64xbf16>
    %cst_429 = arith.constant dense<0.000000e+00> : vector<128x64xf32>
    %429 = tpu.matmul %426, %428, %cst_429 {dimension_numbers = #tpu.dot_dimension_numbers<[1], [0], [0], [1], [0, 0, 1, 1], [], []>} : vector<128x64xbf16>, vector<64x64xbf16>, vector<128x64xf32> -> vector<128x64xf32>
    %430 = arith.addf %425, %429 : vector<128x64xf32>
    %c40_430 = arith.constant 40 : index
    %c0_431 = arith.constant 0 : index
    %431 = vector.load %arg15[%c40_430, %c0_431] : memref<208x64xbf16, #tpu.memory_space<vmem>>, vector<128x64xbf16>
    %c4_432 = arith.constant 4 : index
    %c0_433 = arith.constant 0 : index
    %c0_434 = arith.constant 0 : index
    %432 = vector.load %arg10[%c4_432, %c0_433, %c0_434] : memref<9x64x64xbf16, #tpu.memory_space<vmem>>, vector<1x64x64xbf16>
    %433 = vector.shape_cast %432 : vector<1x64x64xbf16> to vector<64x64xbf16>
    %cst_435 = arith.constant dense<0.000000e+00> : vector<128x64xf32>
    %434 = tpu.matmul %431, %433, %cst_435 {dimension_numbers = #tpu.dot_dimension_numbers<[1], [0], [0], [1], [0, 0, 1, 1], [], []>} : vector<128x64xbf16>, vector<64x64xbf16>, vector<128x64xf32> -> vector<128x64xf32>
    %435 = arith.addf %430, %434 : vector<128x64xf32>
    %c41_436 = arith.constant 41 : index
    %c0_437 = arith.constant 0 : index
    %436 = vector.load %arg15[%c41_436, %c0_437] : memref<208x64xbf16, #tpu.memory_space<vmem>>, vector<128x64xbf16>
    %c5_438 = arith.constant 5 : index
    %c0_439 = arith.constant 0 : index
    %c0_440 = arith.constant 0 : index
    %437 = vector.load %arg10[%c5_438, %c0_439, %c0_440] : memref<9x64x64xbf16, #tpu.memory_space<vmem>>, vector<1x64x64xbf16>
    %438 = vector.shape_cast %437 : vector<1x64x64xbf16> to vector<64x64xbf16>
    %cst_441 = arith.constant dense<0.000000e+00> : vector<128x64xf32>
    %439 = tpu.matmul %436, %438, %cst_441 {dimension_numbers = #tpu.dot_dimension_numbers<[1], [0], [0], [1], [0, 0, 1, 1], [], []>} : vector<128x64xbf16>, vector<64x64xbf16>, vector<128x64xf32> -> vector<128x64xf32>
    %440 = arith.addf %435, %439 : vector<128x64xf32>
    %c55_442 = arith.constant 55 : index
    %c0_443 = arith.constant 0 : index
    %441 = vector.load %arg15[%c55_442, %c0_443] : memref<208x64xbf16, #tpu.memory_space<vmem>>, vector<128x64xbf16>
    %c6_444 = arith.constant 6 : index
    %c0_445 = arith.constant 0 : index
    %c0_446 = arith.constant 0 : index
    %442 = vector.load %arg10[%c6_444, %c0_445, %c0_446] : memref<9x64x64xbf16, #tpu.memory_space<vmem>>, vector<1x64x64xbf16>
    %443 = vector.shape_cast %442 : vector<1x64x64xbf16> to vector<64x64xbf16>
    %cst_447 = arith.constant dense<0.000000e+00> : vector<128x64xf32>
    %444 = tpu.matmul %441, %443, %cst_447 {dimension_numbers = #tpu.dot_dimension_numbers<[1], [0], [0], [1], [0, 0, 1, 1], [], []>} : vector<128x64xbf16>, vector<64x64xbf16>, vector<128x64xf32> -> vector<128x64xf32>
    %445 = arith.addf %440, %444 : vector<128x64xf32>
    %c56_448 = arith.constant 56 : index
    %c0_449 = arith.constant 0 : index
    %446 = vector.load %arg15[%c56_448, %c0_449] : memref<208x64xbf16, #tpu.memory_space<vmem>>, vector<128x64xbf16>
    %c7_450 = arith.constant 7 : index
    %c0_451 = arith.constant 0 : index
    %c0_452 = arith.constant 0 : index
    %447 = vector.load %arg10[%c7_450, %c0_451, %c0_452] : memref<9x64x64xbf16, #tpu.memory_space<vmem>>, vector<1x64x64xbf16>
    %448 = vector.shape_cast %447 : vector<1x64x64xbf16> to vector<64x64xbf16>
    %cst_453 = arith.constant dense<0.000000e+00> : vector<128x64xf32>
    %449 = tpu.matmul %446, %448, %cst_453 {dimension_numbers = #tpu.dot_dimension_numbers<[1], [0], [0], [1], [0, 0, 1, 1], [], []>} : vector<128x64xbf16>, vector<64x64xbf16>, vector<128x64xf32> -> vector<128x64xf32>
    %450 = arith.addf %445, %449 : vector<128x64xf32>
    %c57_454 = arith.constant 57 : index
    %c0_455 = arith.constant 0 : index
    %451 = vector.load %arg15[%c57_454, %c0_455] : memref<208x64xbf16, #tpu.memory_space<vmem>>, vector<128x64xbf16>
    %c8_456 = arith.constant 8 : index
    %c0_457 = arith.constant 0 : index
    %c0_458 = arith.constant 0 : index
    %452 = vector.load %arg10[%c8_456, %c0_457, %c0_458] : memref<9x64x64xbf16, #tpu.memory_space<vmem>>, vector<1x64x64xbf16>
    %453 = vector.shape_cast %452 : vector<1x64x64xbf16> to vector<64x64xbf16>
    %cst_459 = arith.constant dense<0.000000e+00> : vector<128x64xf32>
    %454 = tpu.matmul %451, %453, %cst_459 {dimension_numbers = #tpu.dot_dimension_numbers<[1], [0], [0], [1], [0, 0, 1, 1], [], []>} : vector<128x64xbf16>, vector<64x64xbf16>, vector<128x64xf32> -> vector<128x64xf32>
    %455 = arith.addf %450, %454 : vector<128x64xf32>
    %c0_460 = arith.constant 0 : index
    %c0_461 = arith.constant 0 : index
    %456 = vector.load %arg11[%c0_460, %c0_461] : memref<1x64xf32, #tpu.memory_space<vmem>>, vector<1x64xf32>
    %457 = vector.broadcast %456 : vector<1x64xf32> to vector<128x64xf32>
    %458 = arith.addf %455, %457 : vector<128x64xf32>
    %cst_462 = arith.constant 0.000000e+00 : f32
    %459 = vector.broadcast %cst_462 : f32 to vector<128x64xf32>
    %460 = arith.maximumf %458, %459 : vector<128x64xf32>
    %c0_463 = arith.constant 0 : index
    %c0_464 = arith.constant 0 : index
    %461 = vector.load %arg12[%c0_463, %c0_464] : memref<4x64xbf16, #tpu.memory_space<vmem>>, vector<4x64xbf16>
    %462 = arith.truncf %460 : vector<128x64xf32> to vector<128x64xbf16>
    %cst_465 = arith.constant dense<0.000000e+00> : vector<4x128xf32>
    %463 = tpu.matmul %461, %462, %cst_465 {dimension_numbers = #tpu.dot_dimension_numbers<[1], [1], [0], [0], [0, 0, 1, 0], [], []>} : vector<4x64xbf16>, vector<128x64xbf16>, vector<4x128xf32> -> vector<4x128xf32>
    %c0_466 = arith.constant 0 : index
    %c0_467 = arith.constant 0 : index
    %464 = vector.load %arg13[%c0_466, %c0_467] : memref<4x1xf32, #tpu.memory_space<vmem>>, vector<4x1xf32>
    %465 = vector.broadcast %464 : vector<4x1xf32> to vector<4x128xf32>
    %466 = arith.addf %463, %465 : vector<4x128xf32>
    %467 = vector.shape_cast %466 : vector<4x128xf32> to vector<1x4x128xf32>
    %c0_468 = arith.constant 0 : index
    %c0_469 = arith.constant 0 : index
    %c0_470 = arith.constant 0 : index
    %468 = vector.load %arg14[%c0_468, %c0_469, %c0_470] : memref<1x4x128xf32, #tpu.memory_space<vmem>>, vector<1x4x128xf32>
    tpu.vector_store %arg14[%c0_468, %c0_469, %c0_470], %467 {strides = array<i32>} : memref<1x4x128xf32, #tpu.memory_space<vmem>>, vector<1x4x128xf32>,
    return
  }
  func.func @transform_0(%arg0: i32) -> (i32, i32, i32) {
    %c0_i32 = arith.constant 0 : i32
    %c0_i32_0 = arith.constant 0 : i32
    %c0_i32_1 = arith.constant 0 : i32
    return %arg0, %c0_i32, %c0_i32_0 : i32, i32, i32
  }
  func.func @transform_1(%arg0: i32) -> (i32, i32, i32) {
    %c0_i32 = arith.constant 0 : i32
    %c0_i32_0 = arith.constant 0 : i32
    %c0_i32_1 = arith.constant 0 : i32
    %c0_i32_2 = arith.constant 0 : i32
    return %c0_i32, %c0_i32_0, %c0_i32_1 : i32, i32, i32
  }
  func.func @transform_2(%arg0: i32) -> (i32, i32) {
    %c0_i32 = arith.constant 0 : i32
    %c0_i32_0 = arith.constant 0 : i32
    %c0_i32_1 = arith.constant 0 : i32
    return %c0_i32, %c0_i32_0 : i32, i32
  }
  func.func @transform_3(%arg0: i32) -> (i32, i32, i32) {
    %c0_i32 = arith.constant 0 : i32
    %c0_i32_0 = arith.constant 0 : i32
    %c0_i32_1 = arith.constant 0 : i32
    %c0_i32_2 = arith.constant 0 : i32
    return %c0_i32, %c0_i32_0, %c0_i32_1 : i32, i32, i32
  }
  func.func @transform_4(%arg0: i32) -> (i32, i32) {
    %c0_i32 = arith.constant 0 : i32
    %c0_i32_0 = arith.constant 0 : i32
    %c0_i32_1 = arith.constant 0 : i32
    return %c0_i32, %c0_i32_0 : i32, i32
  }
  func.func @transform_5(%arg0: i32) -> (i32, i32, i32) {
    %c0_i32 = arith.constant 0 : i32
    %c0_i32_0 = arith.constant 0 : i32
    %c0_i32_1 = arith.constant 0 : i32
    %c0_i32_2 = arith.constant 0 : i32
    return %c0_i32, %c0_i32_0, %c0_i32_1 : i32, i32, i32
  }
  func.func @transform_6(%arg0: i32) -> (i32, i32) {
    %c0_i32 = arith.constant 0 : i32
    %c0_i32_0 = arith.constant 0 : i32
    %c0_i32_1 = arith.constant 0 : i32
    return %c0_i32, %c0_i32_0 : i32, i32
  }
  func.func @transform_7(%arg0: i32) -> (i32, i32, i32) {
    %c0_i32 = arith.constant 0 : i32
    %c0_i32_0 = arith.constant 0 : i32
    %c0_i32_1 = arith.constant 0 : i32
    %c0_i32_2 = arith.constant 0 : i32
    return %c0_i32, %c0_i32_0, %c0_i32_1 : i32, i32, i32
  }
  func.func @transform_8(%arg0: i32) -> (i32, i32) {
    %c0_i32 = arith.constant 0 : i32
    %c0_i32_0 = arith.constant 0 : i32
    %c0_i32_1 = arith.constant 0 : i32
    return %c0_i32, %c0_i32_0 : i32, i32
  }
  func.func @transform_9(%arg0: i32) -> (i32, i32, i32) {
    %c0_i32 = arith.constant 0 : i32
    %c0_i32_0 = arith.constant 0 : i32
    %c0_i32_1 = arith.constant 0 : i32
    %c0_i32_2 = arith.constant 0 : i32
    return %c0_i32, %c0_i32_0, %c0_i32_1 : i32, i32, i32
  }
  func.func @transform_10(%arg0: i32) -> (i32, i32) {
    %c0_i32 = arith.constant 0 : i32
    %c0_i32_0 = arith.constant 0 : i32
    %c0_i32_1 = arith.constant 0 : i32
    return %c0_i32, %c0_i32_0 : i32, i32
  }
  func.func @transform_11(%arg0: i32) -> (i32, i32) {
    %c0_i32 = arith.constant 0 : i32
    %c0_i32_0 = arith.constant 0 : i32
    %c0_i32_1 = arith.constant 0 : i32
    return %c0_i32, %c0_i32_0 : i32, i32
  }
  func.func @transform_12(%arg0: i32) -> (i32, i32) {
    %c0_i32 = arith.constant 0 : i32
    %c0_i32_0 = arith.constant 0 : i32
    %c0_i32_1 = arith.constant 0 : i32
    return %c0_i32, %c0_i32_0 : i32, i32
  }
  func.func @transform_13(%arg0: i32) -> (i32, i32, i32) {
    %c0_i32 = arith.constant 0 : i32
    %c0_i32_0 = arith.constant 0 : i32
    %c0_i32_1 = arith.constant 0 : i32
    return %arg0, %c0_i32, %c0_i32_0 : i32, i32, i32
  }
}

</mosaic_0001>

<bundles_post_ra>
// kernel: estimator_forward.1
= control target key start
LH: loop header
LB: loop body
LE: loop exit
PB: predicated region body
PF: predicated region fallthrough
CT: control target
= control target key end

     0   :  { %s22625_s25 = smov 0   ;;  %s27804_s0 = inlined_call_operand.vmem [shape: bf16[2,208,4], index: 0, kind: input, shape index: {}]   ;;  %s27805_s1 = inlined_call_operand.vmem [shape: bf16[9,4,64], index: 1, kind: input, shape index: {}]   ;;  %s27806_s2 = inlined_call_operand.vmem [shape: f32[1,64], index: 2, kind: input, shape index: {}]   ;;  %s27807_s3 = inlined_call_operand.vmem [shape: bf16[25,64,64], index: 3, kind: input, shape index: {}]   ;;  %s27808_s4 = inlined_call_operand.vmem [shape: f32[1,64], index: 4, kind: input, shape index: {}]   ;;  %s27809_s5 = inlined_call_operand.vmem [shape: bf16[9,64,64], index: 5, kind: input, shape index: {}]   ;;  %s27810_s6 = inlined_call_operand.vmem [shape: f32[1,64], index: 6, kind: input, shape index: {}]   ;;  %s27811_s7 = inlined_call_operand.vmem [shape: bf16[25,64,64], index: 7, kind: input, shape index: {}]   ;;  %s27812_s8 = inlined_call_operand.vmem [shape: f32[1,64], index: 8, kind: input, shape index: {}]   ;;  %s27813_s9 = inlined_call_operand.vmem [shape: bf16[9,64,64], index: 9, kind: input, shape index: {}]   ;;  %s27814_s10 = inlined_call_operand.vmem [shape: f32[1,64], index: 10, kind: input, shape index: {}]   ;;  %s27815_s11 = inlined_call_operand.vmem [shape: bf16[4,64], index: 11, kind: input, shape index: {}]   ;;  %s27816_s12 = inlined_call_operand.vmem [shape: f32[4,1], index: 12, kind: input, shape index: {}]   ;;  %s27817_s13 = inlined_call_operand.vmem [shape: f32[2,4,128], index: 13, kind: output, shape index: {}]  }
   0x1 LB: > { %s17798_s26 = sadd.s32 4294967295, %s22550_s25   ;;  %p17802_p0 = scmp.ge.s32.totalorder %s22550_s25, 1  ;;  %s22550_s25 = sphi %s22625_s25, %s23_s25  }
   0x2   : > { %p387_p1 = scmp.lt.s32.totalorder %s22550_s25, 3 }
   0x4   : > { %p388_p2 = pnand %p17802_p0, %p387_p1 }
   0x6   : > { %391 = sbr.rel (%p388_p2) target bundleno = 2853 (0xb25), region = 72 }
   0xd   : > { %v17805_v0 = vld [vmem:[%s27805_s1 + $0x2] sm:$0x3]  ;;  %vm759_vm0 = vcmask 1041408   ;;  %p430_p3 = scmp.lt.s32.totalorder %s17798_s26, 1  ;;  %v691_v2 = vld [vmem:[%s27805_s1] sm:$0x3] }
   0xe   : > { %22147 = vmatprep.subr.msk.bf16.mxu1 %vm759_vm0, %v17805_v0  ;;  %v761_v1 = vsel %vm759_vm0, %v17805_v0, 0  ;;  %vm734_vm1 = vcmask 31744   ;;  %v977_v10 = vsel %vm759_vm0, %v691_v2, 0  ;;  %v17839_v13 = vld [vmem:[%s27805_s1 + $0x4] sm:$0x3]  ;;  %vm440_vm4 = vcmask 523264  }
   0xf   : > { %20206 = vmatpush3.bf16.msra.mxu1 %v761_v1  ;;  %s27877_s26 = smov (!%p430_p3, %s17798_s26), 1  ;;  %v22678_v42 = vld [vmem:[%s27805_s1 + $0x6] sm:$0x3]  ;;  %v22683_v43 = vld [vmem:[%s27805_s1 + $0x8] sm:$0x3]  ;;  %v22689_v54 = vsel %vm759_vm0, %v17839_v13, 0 }
  0x10   : > { %22148 = vmatprep.subr.msk.bf16.mxu1 %vm759_vm0, %v691_v2  ;;  %s22156_s14 = smul.u32 104, %s27877_s26  ;;  %vm871_vm2 = vsmask.f32 4352  ;;  %v22700_v63 = vsel %vm759_vm0, %v22678_v42, 0  ;;  %v22704_v0 = vsel %vm759_vm0, %v22683_v43, 0  ;;  %vm445_vm5 = vcmask 523268  }
  0x11   : > { %vm1138_vm3 = vsmask.f32 7424  ;;  %vm443_vm6 = vcmask 519168   ;;  %vm3149_vm7 = vcmask 1044480   ;;  %vm2854_vm8 = vcmask 1043456   ;;  %s17804_s20 = sshll.u32 %s27877_s26, 2 }
  0x12   : > { %s22648_s17 = scalar_lea.vmem %s27804_s0, %s22156_s14  ;;  %vm3512_vm9 = vsmask.f32 3328  ;;  %vm3731_vm10 = vcmask 1042432   ;;  %vm22554_vm11 = vmmov 0   ;;  %s438_s23 = scalar_lea.vmem %s27817_s13, %s17804_s20 }
  0x13   : > { %v675_v3 = vld [vmem:[%s22648_s17 + $0xc] sm:$0xf]  ;;  %v676_v4 = vld [vmem:[%s22648_s17 + $0x10] sm:$0xf]  ;;  %v677_v5 = vld [vmem:[%s22648_s17 + $0x14] sm:$0xf] }
  0x14   : > { %v678_v6 = vld [vmem:[%s22648_s17 + $0x18] sm:$0xf]  ;;  %v679_v7 = vld [vmem:[%s22648_s17 + $0x1c] sm:$0xf]  ;;  %v17806_v8 = vcombine.low %v675_v3, %v676_v4  ;;  %v680_v11 = vld [vmem:[%s22648_s17 + $0x20] sm:$0xf]  ;;  %v17823_v20 = vcombine.low %v676_v4, %v677_v5 }
  0x15   : > { %v17807_v9 = vcombine.low %v677_v5, %v678_v6  ;;  %v17808_v12 = vcombine.low %v679_v7, %v680_v11  ;;  %v674_v14 = vld [vmem:[%s22648_s17 + $0x8] sm:$0x8]  ;;  %v681_v15 = vld [vmem:[%s22648_s17 + $0x24] sm:$0xf]  ;;  %v683_v17 = vld [vmem:[%s22648_s17 + $0x2c] sm:$0xf]  ;;  %v17824_v21 = vcombine.low %v678_v6, %v679_v7 }
  0x16   : > { %20207 = vmatprep.mubr.msk.bf16.mxu1 %vm734_vm1, %v17806_v8  ;;  %v682_v16 = vld [vmem:[%s22648_s17 + $0x28] sm:$0xf]  ;;  %v684_v18 = vld [vmem:[%s22648_s17 + $0x30] sm:$0xf]  ;;  %v17822_v19 = vcombine.low %v674_v14, %v675_v3  ;;  %v881_v26 = vshrl.u32 %v17823_v20, 16  ;;  %v884_v27 = vshll.u32 %v17823_v20, 16  ;;  %v17825_v34 = vcombine.low %v680_v11, %v681_v15 }
  0x17   : > { %20208 = vmatmul.mubr.msk.bf16.vlgmr.msra.gmra.mrb[0].mxu1 %vm734_vm1, %v17807_v9  ;;  %v17809_v22 = vcombine.low %v681_v15, %v682_v16  ;;  %v17810_v23 = vcombine.low %v683_v17, %v684_v18  ;;  %v890_v28 = vshrl.u32 %v17824_v21, 16  ;;  %v893_v29 = vshll.u32 %v17824_v21, 16  ;;  %v685_v30 = vld [vmem:[%s22648_s17 + $0x34] sm:$0xf]  ;;  %v686_v31 = vld [vmem:[%s22648_s17 + $0x38] sm:$0xf] }
  0x18   : > { %20224 = vmatpush3.bf16.msra.mxu1 %v977_v10  ;;  %20211 = vmatprep.mubr.msk.bf16.mxu1 %vm734_vm1, %v17808_v12  ;;  %v873_v24 = vshrl.u32 %v17822_v19, 16  ;;  %v876_v25 = vshll.u32 %v17822_v19, 16  ;;  %v687_v32 = vld [vmem:[%s22648_s17 + $0x3c] sm:$0xf]  ;;  %v688_v33 = vld [vmem:[%s22648_s17 + $0x40] sm:$0xf]  ;;  %v17811_v37 = vcombine.low %v685_v30, %v686_v31  ;;  %v17826_v40 = vcombine.low %v682_v16, %v683_v17 }
  0x19   : > { %22149 = vmatprep.subr.msk.bf16.mxu1 %vm759_vm0, %v17839_v13  ;;  %v883_v38 = vrot.slane %v881_v26, 3  ;;  %v886_v39 = vrot.slane %v884_v27, 4  ;;  %v17812_v41 = vcombine.low %v687_v32, %v688_v33  ;;  %v892_v44 = vrot.slane %v890_v28, 3  ;;  %v689_v47 = vld [vmem:[%s22648_s17 + $0x44] sm:$0xf]  ;;  %v22693_v61 = vld [vmem:[%s22648_s17 + $0xc] sm:$0xff]  }
  0x1a   : > { %v875_v35 = vrot.slane %v873_v24, 3  ;;  %v878_v36 = vrot.slane %v876_v25, 4  ;;  %v895_v45 = vrot.slane %v893_v29, 4  ;;  %v17827_v46 = vcombine.low %v684_v18, %v685_v30  ;;  %v690_v49 = vld [vmem:[%s22648_s17 + $0x48] sm:$0xf]  ;;  %v22696_v62 = vld [vmem:[%s22648_s17 + $0x14] sm:$0xff]  }
  0x1b   : > { %v17828_v48 = vcombine.low %v686_v31, %v687_v32  ;;  %v899_v50 = vshrl.u32 %v17825_v34, 16  ;;  %v902_v51 = vshll.u32 %v17825_v34, 16  ;;  %v17829_v52 = vcombine.low %v688_v33, %v689_v47  ;;  %v22707_v5 = vld [vmem:[%s22648_s17 + $0x1c] sm:$0xff]   ;;  %v22710_v10 = vld [vmem:[%s22648_s17 + $0x24] sm:$0xff]   ;;  %v22714_v15 = vld [vmem:[%s22648_s17 + $0x2c] sm:$0xff]  }
  0x1c   : > { %v17830_v53 = vcombine.low %v690_v49, %v690_v49  ;;  %v879_v55 = vor.u32 %v878_v36, %v875_v35  ;;  %v887_v56 = vor.u32 %v886_v39, %v883_v38  ;;  %v908_v57 = vshrl.u32 %v17826_v40, 16  ;;  %v22724_v28 = vld [vmem:[%s22648_s17 + $0x34] sm:$0xff]   ;;  %v22743_v38 = vld [vmem:[%s22648_s17 + $0x44] sm:$0xff]  }
  0x1d   : > { %v911_v58 = vshll.u32 %v17826_v40, 16  ;;  %v896_v59 = vor.u32 %v895_v45, %v892_v44  ;;  %v917_v60 = vshrl.u32 %v17827_v46, 16  ;;  %v901_v1 = vrot.slane %v899_v50, 3  ;;  %v22194_v40 = vld [vmem:[%s22648_s17 + $0x4c] ss:$0 sps:$4 sm:$0x11]  }
  0x1e   : > { %v904_v2 = vrot.slane %v902_v51, 4  ;;  %v920_v3 = vshll.u32 %v17827_v46, 16  ;;  %v926_v4 = vshrl.u32 %v17828_v48, 16  ;;  %v17813_v6 = vcombine.low %v689_v47, %v690_v49  ;;  %v1347_v47 = vld [vmem:[%s22648_s17 + $0x10] sm:$0x8] }
  0x1f   : > { %20212 = vmatmul.mubr.msk.bf16.gmra.mrb[4].mxu1 %vm734_vm1, %v17809_v22  ;;  %v929_v7 = vshll.u32 %v17828_v48, 16  ;;  %v935_v8 = vshrl.u32 %v17829_v52, 16  ;;  %v938_v9 = vshll.u32 %v17829_v52, 16  ;;  %v888_v11 = vsel %vm871_vm2, %v879_v55, %v887_v56  ;;  %v22759_v51 = vld [vmem:[%s22648_s17 + $0x14] sm:$0xf] }
  0x20   : > { %20215 = vmatprep.mubr.msk.bf16.mxu1 %vm734_vm1, %v17810_v23  ;;  %v910_v12 = vrot.slane %v908_v57, 3  ;;  %v913_v13 = vrot.slane %v911_v58, 4  ;;  %v944_v14 = vshrl.u32 %v17830_v53, 16  ;;  %v919_v16 = vrot.slane %v917_v60, 3  ;;  %v22766_v57 = vld [vmem:[%s22648_s17 + $0x18] sm:$0xf] }
  0x21   : > { %v947_v17 = vshll.u32 %v17830_v53, 16  ;;  %v1142_v18 = vshll.u32 %v22693_v61, 16  ;;  %v1147_v19 = vshll.u32 %v22696_v62, 16  ;;  %v22718_v20 = vor.u32 %v904_v2, %v901_v1  ;;  %v22769_v58 = vld [vmem:[%s22648_s17 + $0x1c] sm:$0xf] }
  0x22   : > { %v922_v21 = vrot.slane %v920_v3, 4  ;;  %v928_v22 = vrot.slane %v926_v4, 3  ;;  %v1155_v23 = vshll.u32 %v22707_v5, 16  ;;  %v931_v24 = vrot.slane %v929_v7, 4  ;;  %v22775_v60 = vld [vmem:[%s22648_s17 + $0x24] sm:$0xf] }
  0x23   : > { %v937_v25 = vrot.slane %v935_v8, 3  ;;  %v940_v26 = vrot.slane %v938_v9, 4  ;;  %v1163_v27 = vshll.u32 %v22710_v10, 16  ;;  %v22727_v29 = vrot.slane %v944_v14, 3  ;;  %27831 = vst [vmem:[#allocation3_spill] sm:$0xff] %v22775_v60 }
  0x24   : > { %v1140_v30 = vshrl.u32 %v22693_v61, 16  ;;  %v1171_v32 = vshll.u32 %v22714_v15, 16  ;;  %v22732_v33 = vrot.slane %v947_v17, 4  ;;  %v22734_v34 = vrot.slane %v1142_v18, 1  ;;  %v22782_v3 = vld [vmem:[%s22648_s17 + $0x28] sm:$0xf] }
  0x25   : > { %v22736_v35 = vrot.slane %v1147_v19, 1  ;;  %v22745_v39 = vrot.slane %v1155_v23, 1  ;;  %v1179_v46 = vshll.u32 %v22724_v28, 16  ;;  %v897_v48 = vsel %vm871_vm2, %v887_v56, %v896_v59  ;;  %v22772_v56 = vld [vmem:[%s22648_s17 + $0x20] sm:$0xf]  ;;  %27832 = vst [vmem:[#allocation4_spill] sm:$0xff] %v22782_v3 }
  0x26   : > { %v22755_v49 = vrot.slane %v1171_v32, 1  ;;  %v906_v52 = vsel %vm871_vm2, %v896_v59, %v22718_v20  ;;  %v1195_v55 = vshll.u32 %v22743_v38, 16  ;;  %v914_v1 = vor.u32 %v913_v13, %v910_v12  ;;  %v22785_v4 = vld [vmem:[%s22648_s17 + $0x2c] sm:$0xf]  ;;  %v22792_v9 = vld [vmem:[%s22648_s17 + $0x30] sm:$0xf] }
  0x27   : > { %20216 = vmatmul.mubr.msk.bf16.gmra.mrb[8].mxu1 %vm734_vm1, %v17811_v37  ;;  %v22740_v37 = vld [vmem:[%s22648_s17 + $0x3c] sm:$0xff]   ;;  %v22778_v2 = vrot.slane %v1179_v46, 1  ;;  %27833 = vst [vmem:[#allocation5_spill] sm:$0xff] %v22785_v4  ;;  %v1203_v7 = vshll.u32 %v22194_v40, 16  ;;  %v17858_v8 = vcombine.low %v1347_v47, %v22759_v51  ;;  %27834 = vst [vmem:[#allocation6_spill] sm:$0xff] %v22792_v9  ;;  %v923_v12 = vor.u32 %v922_v21, %v919_v16 }
  0x28   : > { %20219 = vmatprep.mubr.msk.bf16.mxu1 %vm734_vm1, %v17812_v41  ;;  %v22748_v41 = vrot.slane %v1163_v27, 1  ;;  %v1187_v53 = vshll.u32 %v22740_v37, 16  ;;  %v932_v13 = vor.u32 %v931_v24, %v928_v22  ;;  %v22801_v14 = vrot.slane %v1195_v55, 1  ;;  %v22804_v17 = vld [vmem:[%s22648_s17 + $0x38] sm:$0xf] }
  0x29   : > { %27836 = vst [vmem:[#allocation8_spill] sm:$0xff] %v22804_v17  ;;  %v1358_v18 = vld [vmem:[%s22648_s17 + $0x3c] sm:$0xf]  ;;  %v17859_v19 = vcombine.low %v22766_v57, %v22769_v58  ;;  %v1359_v23 = vld [vmem:[%s22648_s17 + $0x40] sm:$0xf]  ;;  %v915_v16 = vsel %vm871_vm2, %v22718_v20, %v914_v1  ;;  %v22816_v21 = vor.u32 %v940_v26, %v937_v25  ;;  %v22818_v22 = vrot.slane %v1203_v7, 1 }
  0x2a   : > { %v1360_v27 = vld [vmem:[%s22648_s17 + $0x44] sm:$0xf]  ;;  %v1361_v32 = vld [vmem:[%s22648_s17 + $0x48] sm:$0xf]  ;;  %v1410_v24 = vshrl.u32 %v17858_v8, 16  ;;  %v17861_v40 = vcombine.low %v22782_v3, %v22785_v4  ;;  %v924_v47 = vsel %vm871_vm2, %v914_v1, %v923_v12  ;;  %v17863_v25 = vcombine.low %v22804_v17, %v1358_v18 }
  0x2b   : > { %v1362_v46 = vld [vmem:[%s22648_s17 + $0x4c] sm:$0xf]  ;;  %v1363_v20 = vld [vmem:[%s22648_s17 + $0x50] sm:$0xf]  ;;  %v1418_v55 = vshrl.u32 %v17859_v19, 16  ;;  %v17864_v59 = vcombine.low %v1359_v23, %v1360_v27  ;;  %v942_v1 = vsel %vm871_vm2, %v932_v13, %v22816_v21  ;;  %v950_v18 = vor.u32 %v22732_v33, %v22727_v29  ;;  %v22853_v33 = vld [vmem:[%s22648_s17 + $0x1c] sm:$0xff]  }
  0x2c   : > { %v17865_v50 = vcombine.low %v1361_v32, %v1362_v46  ;;  %v1145_v23 = vor.u32 %v22734_v34, %v1140_v30  ;;  %v1439_v27 = vshll.u32 %v17861_v40, 16  ;;  %v1457_v46 = vshll.u32 %v17863_v25, 16  ;;  %27837 = vst [vmem:[#allocation9_spill] sm:$0xff] %v22853_v33  ;;  %v22856_v34 = vld [vmem:[%s22648_s17 + $0x24] sm:$0xff]  }
  0x2d   : > { %v1463_v29 = vshrl.u32 %v17864_v59, 16  ;;  %v1466_v61 = vshll.u32 %v17864_v59, 16  ;;  %27838 = vst [vmem:[#allocation10_spill] sm:$0xff] %v22856_v34  ;;  %v22912_v17 = vld [vmem:[%s22648_s17 + $0x44] sm:$0xff]  }
  0x2e   : > { %v1472_v30 = vshrl.u32 %v17865_v50, 16  ;;  %v1889_v4 = vshll.u32 %v22912_v17, 16 }
  0x2f   : > { %20220 = vmatmul.mubr.msk.bf16.gmra.mrb[12].mxu1 %vm734_vm1, %v17813_v6  ;;  %v1421_v6 = vshll.u32 %v17859_v19, 16  ;;  %v17866_v19 = vcombine.low %v1363_v20, %v1363_v20  ;;  %v22850_v20 = vrot.slane %v1418_v55, 3  ;;  %v22866_v55 = vrot.slane %v1439_v27, 4 }
  0x30   : > { %20225 = vmatprep.mubr.msk.bf16.mxu1 %vm734_vm1, %v888_v11  ;;  %v22795_v11 = vld [vmem:[%s22648_s17 + $0x34] sm:$0xf]  ;;  %v22887_v27 = vrot.slane %v1472_v30, 3 }
  0x31   : > { %27835 = vst [vmem:[#allocation7_spill] sm:$0xff] %v22795_v11 }
  0x37   : > { %20226 = vmatmul.mubr.msk.bf16.vlgmr.msra.gmra.mrb[16].mxu1 %vm734_vm1, %v897_v48  ;;  %v933_v48 = vsel %vm871_vm2, %v923_v12, %v932_v13  ;;  %v22833_v12 = vrot.slane %v1410_v24, 3  ;;  %v1454_v13 = vshrl.u32 %v17863_v25, 16  ;;  %v22845_v24 = vld [vmem:[%s27805_s1 + $0xa] sm:$0x3]  ;;  %v1481_v25 = vshrl.u32 %v17866_v19, 16 }
  0x38   : > { %20242 = vmatpush3.bf16.msra.mxu1 %v22689_v54  ;;  %20229 = vmatprep.mubr.msk.bf16.mxu1 %vm734_vm1, %v906_v52  ;;  %v22799_v54 = vrot.slane %v1187_v53, 1  ;;  %v17862_v52 = vcombine.low %v22792_v9, %v22795_v11  ;;  %v1413_v53 = vshll.u32 %v17858_v8, 16  ;;  %v1436_v8 = vshrl.u32 %v17861_v40, 16 }
  0x39   : > { %22150 = vmatprep.subr.msk.bf16.mxu1 %vm759_vm0, %v22678_v42  ;;  %v17860_v42 = vcombine.low %v22772_v56, %v22775_v60  ;;  %v22858_v40 = vrot.slane %v1421_v6, 4  ;;  %v22872_v31 = vrot.slane %v1454_v13, 3  ;;  %v22874_v11 = vrot.slane %v1457_v46, 4  ;;  %v22905_v46 = vld [vmem:[%s22648_s17 + $0x3c] sm:$0xff]  }
  0x3a   : > { %v1445_v32 = vshrl.u32 %v17862_v52, 16  ;;  %v22864_v44 = vrot.slane %v1436_v8, 3  ;;  %v1484_v6 = vshll.u32 %v17866_v19, 16  ;;  %v22885_v8 = vrot.slane %v1466_v61, 4  ;;  %v22896_v19 = vld [vmem:[%s27805_s1 + $0xc] sm:$0x3] }
  0x3b   : > { %v1427_v26 = vshrl.u32 %v17860_v42, 16  ;;  %v1430_v7 = vshll.u32 %v17860_v42, 16  ;;  %v1448_v42 = vshll.u32 %v17862_v52, 16  ;;  %v1857_v61 = vshll.u32 %v22856_v34, 16 }
  0x3c   : > { %v22868_v59 = vrot.slane %v1445_v32, 3  ;;  %v22891_v32 = vsel %vm759_vm0, %v22845_v24, 0  ;;  %v22909_v30 = vrot.slane %v1484_v6, 4  ;;  %v22922_v9 = vsel %vm759_vm0, %v22896_v19, 0 }
  0x3d   : > { %v22860_v52 = vrot.slane %v1427_v26, 3  ;;  %v22862_v45 = vrot.slane %v1430_v7, 4  ;;  %v22870_v36 = vrot.slane %v1448_v42, 4  ;;  %v22877_v26 = vld [vmem:[%s22648_s17 + $0x2c] sm:$0xff]   ;;  %v22883_v7 = vrot.slane %v1463_v29, 3  ;;  %27841 = vst [vmem:[#allocation13_spill] sm:$0xff] %v22891_v32 }
  0x3e   : > { %27839 = vst [vmem:[#allocation11_spill] sm:$0xff] %v22877_v26  ;;  %v1849_v29 = vshll.u32 %v22853_v33, 16  ;;  %27842 = vst [vmem:[#allocation14_spill] sm:$0xff] %v22922_v9  ;;  %v1865_v32 = vshll.u32 %v22877_v26, 16  ;;  %v27844_v6 = vshrl.u32 %v22696_v62, 16  ;;  %v27846_v62 = vshrl.u32 %v22707_v5, 16 }
  0x3f   : > { %20230 = vmatmul.mubr.msk.bf16.gmra.mrb[20].mxu1 %vm734_vm1, %v915_v16  ;;  %v22840_v16 = vrot.slane %v1413_v53, 4  ;;  %v1475_v53 = vshll.u32 %v17865_v50, 16  ;;  %v22880_v50 = vld [vmem:[%s22648_s17 + $0x34] sm:$0xff]   ;;  %v22958_v33 = vrot.slane %v1889_v4, 1  ;;  %v2053_v5 = vld [vmem:[%s22648_s17 + $0x28] sm:$0xf] }
  0x40   : > { %20233 = vmatprep.mubr.msk.bf16.mxu1 %vm734_vm1, %v924_v47  ;;  %v22848_v47 = vld [vmem:[%s22648_s17 + $0x14] sm:$0xff]   ;;  %27840 = vst [vmem:[#allocation12_spill] sm:$0xff] %v22880_v50  ;;  %v1873_v60 = vshll.u32 %v22880_v50, 16  ;;  %v1153_v9 = vor.u32 %v27844_v6, %v22736_v35 }
  0x41   : > { %v22899_v42 = vrot.slane %v1475_v53, 4  ;;  %v1844_v13 = vshll.u32 %v22848_v47, 16  ;;  %v1150_v53 = vsel %vm1138_vm3, %v1145_v23, %v22736_v35  ;;  %v1881_v23 = vshll.u32 %v22905_v46, 16  ;;  %v2049_v6 = vld [vmem:[%s22648_s17 + $0x18] sm:$0x8]  ;;  %27847 = vst [vmem:[#allocation17_spill] sm:$0xff] %v22958_v33 }
  0x42   : > { %v22947_v34 = vrot.slane %v1873_v60, 1  ;;  %v1161_v35 = vor.u32 %v27846_v62, %v22745_v39  ;;  %v1158_v60 = vsel %vm1138_vm3, %v1153_v9, %v22745_v39  ;;  %v2054_v62 = vld [vmem:[%s22648_s17 + $0x2c] sm:$0xf] }
  0x43   : > { %v22927_v3 = vrot.slane %v1844_v13, 1  ;;  %v2050_v13 = vld [vmem:[%s22648_s17 + $0x1c] sm:$0xf]  ;;  %v22956_v26 = vrot.slane %v1881_v23, 1  ;;  %v27848_v23 = vshrl.u32 %v22710_v10, 16  ;;  %v17913_v10 = vcombine.low %v2053_v5, %v2054_v62 }
  0x44   : > { %27845 = vst [vmem:[#allocation16_spill] sm:$0xff] %v22947_v34  ;;  %v2051_v34 = vld [vmem:[%s22648_s17 + $0x20] sm:$0xf]  ;;  %v17911_v50 = vcombine.low %v2049_v6, %v2050_v13  ;;  %v27849_v6 = vshrl.u32 %v22714_v15, 16  ;;  %v22995_v15 = vld [vmem:[%s27805_s1 + $0xe] sm:$0x3] }
  0x45   : > { %v1169_v4 = vor.u32 %v27848_v23, %v22748_v41  ;;  %v2129_v39 = vshrl.u32 %v17913_v10, 16  ;;  %v2058_v5 = vld [vmem:[%s22648_s17 + $0x3c] sm:$0xf] }
  0x47   : > { %20234 = vmatmul.mubr.msk.bf16.gmra.mrb[24].mxu1 %vm734_vm1, %v933_v48  ;;  %v22901_v48 = vrot.slane %v1481_v25, 3  ;;  %v22220_v25 = vld [vmem:[%s22648_s17 + $0x54] ss:$0 sps:$4 sm:$0x11]  }
  0x48   : > { %20237 = vmatprep.mubr.msk.bf16.mxu1 %vm734_vm1, %v942_v1  ;;  %v951_v1 = vsel %vm871_vm2, %v22816_v21, %v950_v18  ;;  %v22929_v21 = vrot.slane %v1849_v29, 1  ;;  %v22931_v18 = vrot.slane %v1857_v61, 1  ;;  %v22942_v29 = vld [vmem:[%s22648_s17 + $0x4c] sm:$0xff]   ;;  %v22945_v61 = vrot.slane %v1865_v32, 1 }
  0x49   : > { %v1897_v32 = vshll.u32 %v22942_v29, 16 }
  0x4a   : > { %27843 = vst [vmem:[#allocation15_spill] sm:$0xff] %v22931_v18  ;;  %v1166_v18 = vsel %vm1138_vm3, %v1161_v35, %v22748_v41  ;;  %v2112_v35 = vshrl.u32 %v17911_v50, 16  ;;  %v2115_v41 = vshll.u32 %v17911_v50, 16  ;;  %v2057_v50 = vld [vmem:[%s22648_s17 + $0x38] sm:$0xf] }
  0x4b   : > { %v22974_v33 = vrot.slane %v1897_v32, 1  ;;  %v2055_v32 = vld [vmem:[%s22648_s17 + $0x30] sm:$0xf] }
  0x4c   : > { %v23000_v62 = vrot.slane %v2112_v35, 3  ;;  %v23015_v35 = vrot.slane %v2129_v39, 3  ;;  %v2060_v39 = vld [vmem:[%s22648_s17 + $0x44] sm:$0xf] }
  0x4f   : > { %20238 = vmatmul.mubr.msk.bf16.gmra.mrb[28].mxu1 %vm734_vm1, %v951_v1  ;;  %v2052_v1 = vld [vmem:[%s22648_s17 + $0x24] sm:$0xf] }
  0x50   : > { %20243 = vmatprep.mubr.msk.bf16.mxu1 %vm734_vm1, %v1150_v53  ;;  %v1905_v53 = vshll.u32 %v22220_v25, 16  ;;  %v17912_v13 = vcombine.low %v2051_v34, %v2052_v1  ;;  %v2132_v34 = vshll.u32 %v17913_v10, 16 }
  0x52   : > { %v22977_v9 = vrot.slane %v1905_v53, 1  ;;  %v2056_v53 = vld [vmem:[%s22648_s17 + $0x34] sm:$0xf]  ;;  %v2120_v23 = vshrl.u32 %v17912_v13, 16 }
  0x54   : > { %v23008_v10 = vrot.slane %v2120_v23, 3 }
  0x57   : > { %20244 = vmatmul.mubr.msk.bf16.vlgmr.msra.gmra.mrb[32].mxu1 %vm734_vm1, %v1158_v60  ;;  %v1177_v60 = vor.u32 %v27849_v6, %v22755_v49 }
  0x58   : > { %20260 = vmatpush3.bf16.msra.mxu1 %v22700_v63  ;;  %20247 = vmatprep.mubr.msk.bf16.mxu1 %vm734_vm1, %v1166_v18  ;;  %v1174_v63 = vsel %vm1138_vm3, %v1169_v4, %v22755_v49  ;;  %v2123_v18 = vshll.u32 %v17912_v13, 16  ;;  %v23002_v49 = vrot.slane %v2115_v41, 4  ;;  %v27850_v4 = vshrl.u32 %v22724_v28, 16 }
  0x59   : > { %22151 = vmatprep.subr.msk.bf16.mxu1 %vm759_vm0, %v22683_v43  ;;  %v1182_v1 = vsel %vm1138_vm3, %v1177_v60, %v22778_v2  ;;  %v17914_v43 = vcombine.low %v2055_v32, %v2056_v53  ;;  %v17915_v60 = vcombine.low %v2057_v50, %v2058_v5  ;;  %v27851_v32 = vshrl.u32 %v22740_v37, 16 }
  0x5a   : > { %v1185_v13 = vor.u32 %v27850_v4, %v22778_v2  ;;  %v23010_v6 = vrot.slane %v2123_v18, 4  ;;  %v23017_v41 = vrot.slane %v2132_v34, 4  ;;  %v2059_v18 = vld [vmem:[%s22648_s17 + $0x40] sm:$0xf] }
  0x5b   : > { %v1193_v53 = vor.u32 %v27851_v32, %v22799_v54  ;;  %v2141_v2 = vshll.u32 %v17914_v43, 16  ;;  %v2147_v23 = vshrl.u32 %v17915_v60, 16  ;;  %v2150_v50 = vshll.u32 %v17915_v60, 16  ;;  %v2061_v60 = vld [vmem:[%s22648_s17 + $0x48] sm:$0xf] }
  0x5c   : > { %v1190_v28 = vsel %vm1138_vm3, %v1185_v13, %v22799_v54  ;;  %v27852_v54 = vshrl.u32 %v22743_v38, 16  ;;  %v1416_v13 = vor.u32 %v22840_v16, %v22833_v12  ;;  %v1424_v32 = vor.u32 %v22858_v40, %v22850_v20  ;;  %v22231_v38 = vld [vmem:[%s22648_s17 + $0x1c] sm:$0xff]   ;;  %v22234_v20 = vld [vmem:[%s22648_s17 + $0x2c] sm:$0xff]  }
  0x5d   : > { %v1198_v37 = vsel %vm1138_vm3, %v1193_v53, %v22801_v14  ;;  %v23038_v4 = vrot.slane %v2147_v23, 3  ;;  %v17916_v53 = vcombine.low %v2059_v18, %v2060_v39  ;;  %v2546_v12 = vshll.u32 %v22231_v38, 16 }
  0x5e   : > { %v1201_v5 = vor.u32 %v27852_v54, %v22801_v14  ;;  %v1425_v14 = vsel %vm871_vm2, %v1416_v13, %v1424_v32  ;;  %v22232_v54 = vld [vmem:[%s22648_s17 + $0x24] sm:$0xff]   ;;  %v1433_v40 = vor.u32 %v22862_v45, %v22860_v52  ;;  %v2544_v18 = vshrl.u32 %v22231_v38, 16 }
  0x5f   : > { %20248 = vmatmul.mubr.msk.bf16.gmra.mrb[36].mxu1 %vm734_vm1, %v1174_v63  ;;  %v23021_v63 = vsel %vm759_vm0, %v22995_v15, 0  ;;  %v2159_v25 = vshll.u32 %v17916_v53, 16  ;;  %v2551_v16 = vshll.u32 %v22232_v54, 16  ;;  %v2548_v39 = vrot.slane %v2546_v12, 1  ;;  %v2064_v12 = vld [vmem:[%s22648_s17 + $0x54] sm:$0xf] }
  0x60   : > { %20251 = vmatprep.mubr.msk.bf16.mxu1 %vm734_vm1, %v1182_v1  ;;  %v2138_v1 = vshrl.u32 %v17914_v43, 16  ;;  %v23036_v43 = vrot.slane %v2141_v2, 4  ;;  %v2156_v2 = vshrl.u32 %v17916_v53, 16  ;;  %v2555_v53 = vshrl.u32 %v22232_v54, 16 }
  0x61   : > { %v2553_v13 = vrot.slane %v2551_v16, 1  ;;  %v2549_v52 = vor.u32 %v2548_v39, %v2544_v18  ;;  %v1434_v38 = vsel %vm871_vm2, %v1424_v32, %v1433_v40  ;;  %v23072_v16 = vrot.slane %v2159_v25, 4  ;;  %v22235_v18 = vld [vmem:[%s22648_s17 + $0x34] sm:$0xff]   ;;  %v22237_v32 = vld [vmem:[%s22648_s17 + $0x3c] sm:$0xff]  }
  0x62   : > { %v23030_v34 = vrot.slane %v2138_v1, 3  ;;  %v2062_v1 = vld [vmem:[%s22648_s17 + $0x4c] sm:$0xf]  ;;  %v2567_v39 = vshll.u32 %v22235_v18, 16  ;;  %v1460_v25 = vor.u32 %v22874_v11, %v22872_v31 }
  0x63   : > { %v17917_v23 = vcombine.low %v2061_v60, %v2062_v1  ;;  %v2559_v60 = vshll.u32 %v22234_v20, 16  ;;  %v2554_v54 = vsel %vm1138_vm3, %v2549_v52, %v2553_v13  ;;  %v2571_v52 = vshrl.u32 %v22235_v18, 16 }
  0x64   : > { %20351 = vmatprep.mubr.msk.bf16.mxu0 %vm734_vm1, %v2554_v54 }
  0x65   : > { %v2168_v1 = vshll.u32 %v17917_v23, 16 }
  0x67   : > { %20252 = vmatmul.mubr.msk.bf16.gmra.mrb[40].mxu1 %vm734_vm1, %v1190_v28  ;;  %v1206_v28 = vsel %vm1138_vm3, %v1201_v5, %v22818_v22  ;;  %v1442_v22 = vor.u32 %v22866_v55, %v22864_v44  ;;  %v17945_v5 = vld [vmem:[%s27805_s1 + $0x10] sm:$0x3]  ;;  %v23065_v44 = vrot.slane %v2156_v2, 3  ;;  %v2557_v55 = vor.u32 %v2555_v53, %v2553_v13  ;;  %v2065_v13 = vld [vmem:[%s22648_s17 + $0x58] sm:$0xf] }
  0x68   : > { %20255 = vmatprep.mubr.msk.bf16.mxu1 %vm734_vm1, %v1198_v37  ;;  %v23048_v37 = vrot.slane %v2150_v50, 4  ;;  %v2165_v50 = vshrl.u32 %v17917_v23, 16  ;;  %22155 = vmatprep.subr.msk.bf16.mxu0 %vm759_vm0, %v17945_v5  ;;  %v2636_v45 = vsel %vm759_vm0, %v17945_v5, 0  ;;  %v2563_v53 = vshrl.u32 %v22234_v20, 16 }
  0x69   : > { %20350 = vmatpush3.bf16.msra.mxu0 %v2636_v45  ;;  %v1443_v23 = vsel %vm871_vm2, %v1433_v40, %v1442_v22  ;;  %v1451_v40 = vor.u32 %v22870_v36, %v22868_v59  ;;  %v2569_v45 = vrot.slane %v2567_v39, 1  ;;  %v17919_v54 = vcombine.low %v2065_v13, %v2065_v13 }
  0x6a   : > { %v23086_v5 = vrot.slane %v2165_v50, 3 }
  0x6b   : > { %v2573_v36 = vor.u32 %v2571_v52, %v2569_v45  ;;  %v1452_v31 = vsel %vm871_vm2, %v1442_v22, %v1451_v40  ;;  %v1461_v20 = vsel %vm871_vm2, %v1451_v40, %v1460_v25  ;;  %v1469_v22 = vor.u32 %v22885_v8, %v22883_v7 }
  0x6c   : > { %v2183_v18 = vshrl.u32 %v17919_v54, 16 }
  0x6f   : > { %20256 = vmatmul.mubr.msk.bf16.gmra.mrb[44].mxu1 %vm734_vm1, %v1206_v28  ;;  %v2561_v28 = vrot.slane %v2559_v60, 1 }
  0x70   : > { %20261 = vmatprep.mubr.msk.bf16.mxu1 %vm734_vm1, %v1425_v14  ;;  %v2063_v14 = vld [vmem:[%s22648_s17 + $0x50] sm:$0xf] }
  0x71   : > { %v2562_v2 = vsel %vm1138_vm3, %v2557_v55, %v2561_v28  ;;  %v17918_v60 = vcombine.low %v2063_v14, %v2064_v12  ;;  %v2565_v55 = vor.u32 %v2563_v53, %v2561_v28  ;;  %v22239_v14 = vld [vmem:[%s22648_s17 + $0x44] sm:$0xff]   ;;  %v22241_v28 = vld [vmem:[%s22648_s17 + $0x4c] sm:$0xff]   ;;  %v1478_v12 = vor.u32 %v22899_v42, %v22887_v27  ;;  %v22243_v42 = vld [vmem:[%s22648_s17 + $0x54] sm:$0xff]  }
  0x72   : > { %20352 = vmatmul.mubr.msk.bf16.vlgmr.msra.gmra.mrb[0].mxu0 %vm734_vm1, %v2562_v2  ;;  %v2579_v2 = vshrl.u32 %v22237_v32, 16  ;;  %v2587_v40 = vshrl.u32 %v22239_v14, 16  ;;  %v2591_v13 = vshll.u32 %v22241_v28, 16 }
  0x73   : > { %v2570_v11 = vsel %vm1138_vm3, %v2565_v55, %v2569_v45  ;;  %v2174_v50 = vshrl.u32 %v17918_v60, 16  ;;  %v2186_v45 = vshll.u32 %v17919_v54, 16  ;;  %v1470_v55 = vsel %vm871_vm2, %v1460_v25, %v1469_v22 }
  0x74   : > { %20355 = vmatprep.mubr.msk.bf16.mxu0 %vm734_vm1, %v2570_v11  ;;  %v1479_v7 = vsel %vm871_vm2, %v1469_v22, %v1478_v12  ;;  %v1487_v25 = vor.u32 %v22909_v30, %v22901_v48  ;;  %v23123_v11 = vrot.slane %v2183_v18, 3  ;;  %v27856_v18 = vld [vmem:[#allocation6_spill] sm:$0xff] }
  0x75   : > { %v23110_v8 = vrot.slane %v2174_v50, 3  ;;  %v2603_v50 = vshrl.u32 %v22243_v42, 16 }
  0x77   : > { %20262 = vmatmul.mubr.msk.bf16.vlgmr.msra.gmra.mrb[48].mxu1 %vm734_vm1, %v1434_v38  ;;  %v23091_v38 = vrot.slane %v2168_v1, 4  ;;  %v2583_v1 = vshll.u32 %v22239_v14, 16  ;;  %v23125_v14 = vrot.slane %v2186_v45, 4  ;;  %v27859_v45 = vld [vmem:[#allocation7_spill] sm:$0xff] }
  0x78   : > { %20278 = vmatpush3.bf16.msra.mxu1 %v22704_v0  ;;  %20265 = vmatprep.mubr.msk.bf16.mxu1 %vm734_vm1, %v1443_v23  ;;  %v2575_v0 = vshll.u32 %v22237_v32, 16  ;;  %v2177_v23 = vshll.u32 %v17918_v60, 16  ;;  %v2599_v32 = vshll.u32 %v22243_v42, 16  ;;  %v22245_v60 = vld [vmem:[%s22648_s17 + $0x5c] ss:$0 sps:$4 sm:$0x11]  }
  0x79   : > { %22152 = vmatprep.subr.msk.bf16.mxu1 %vm759_vm0, %v22845_v24  ;;  %v2585_v39 = vrot.slane %v2583_v1, 1  ;;  %v2607_v54 = vshll.u32 %v22245_v60, 16  ;;  %v22523_v42 = vld [vmem:[%s22648_s17 + $0x4c] sm:$0xf] }
  0x7a   : > { %v2577_v59 = vrot.slane %v2575_v0, 1  ;;  %v2593_v0 = vrot.slane %v2591_v13, 1 }
  0x7b   : > { %v2589_v52 = vor.u32 %v2587_v40, %v2585_v39  ;;  %v2609_v22 = vrot.slane %v2607_v54, 1  ;;  %v27857_v40 = vld [vmem:[#allocation5_spill] sm:$0xff]  ;;  %v27863_v54 = vld [vmem:[#allocation15_spill] sm:$0xff] }
  0x7c   : > { %v2578_v24 = vsel %vm1138_vm3, %v2573_v36, %v2577_v59  ;;  %v2581_v53 = vor.u32 %v2579_v2, %v2577_v59  ;;  %v23121_v59 = vrot.slane %v2177_v23, 4  ;;  %v1488_v2 = vsel %vm871_vm2, %v1478_v12, %v1487_v25  ;;  %v27855_v23 = vld [vmem:[#allocation13_spill] sm:$0xff] }
  0x7d   : > { %20356 = vmatmul.mubr.msk.bf16.gmra.mrb[4].mxu0 %vm734_vm1, %v2578_v24  ;;  %v2594_v27 = vsel %vm1138_vm3, %v2589_v52, %v2593_v0  ;;  %v17879_v13 = vcombine.low %v27857_v40, %v27856_v18  ;;  %v22520_v52 = vld [vmem:[%s22648_s17 + $0x40] sm:$0xf]  ;;  %v27873_v40 = vld [vmem:[#allocation17_spill] sm:$0xff] }
  0x7e   : > { %v2586_v36 = vsel %vm1138_vm3, %v2581_v53, %v2585_v39  ;;  %v17876_v39 = vcombine.low %v22759_v51, %v22766_v57  ;;  %v27853_v51 = vld [vmem:[#allocation4_spill] sm:$0xff]  ;;  %v27854_v57 = vld [vmem:[#allocation3_spill] sm:$0xff] }
  0x7f   : > { %20266 = vmatmul.mubr.msk.bf16.gmra.mrb[52].mxu1 %vm734_vm1, %v1452_v31  ;;  %20359 = vmatprep.mubr.msk.bf16.mxu0 %vm734_vm1, %v2586_v36  ;;  %v2595_v31 = vshrl.u32 %v22241_v28, 16  ;;  %v17877_v28 = vcombine.low %v22769_v58, %v22772_v56  ;;  %v17878_v12 = vcombine.low %v27854_v57, %v27853_v51  ;;  %v27858_v53 = vld [vmem:[#allocation8_spill] sm:$0xff]  ;;  %v22519_v56 = vld [vmem:[%s22648_s17 + $0x3c] sm:$0xf]  ;;  %v22522_v36 = vld [vmem:[%s22648_s17 + $0x48] sm:$0xf] }
  0x80   : > { %20269 = vmatprep.mubr.msk.bf16.mxu1 %vm734_vm1, %v1461_v20  ;;  %v2601_v20 = vrot.slane %v2599_v32, 1  ;;  %v17880_v58 = vcombine.low %v27859_v45, %v27858_v53  ;;  %v22524_v32 = vld [vmem:[%s22648_s17 + $0x50] sm:$0xf] }
  0x81   : > { %v2597_v24 = vor.u32 %v2595_v31, %v2593_v0  ;;  %v17881_v0 = vcombine.low %v22519_v56, %v22520_v52  ;;  %v17883_v60 = vcombine.low %v22523_v42, %v22524_v32  ;;  %v27861_v31 = vld [vmem:[#allocation9_spill] sm:$0xff]  ;;  %v22530_v42 = vld [vmem:[%s22648_s17 + $0x30] sm:$0xf] }
  0x82   : > { %v2605_v1 = vor.u32 %v2603_v50, %v2601_v20 }
  0x83   : > { %v2602_v48 = vsel %vm1138_vm3, %v2597_v24, %v2601_v20  ;;  %v27862_v20 = vshrl.u32 %v27861_v31, 16  ;;  %v27864_v24 = vld [vmem:[#allocation10_spill] sm:$0xff] }
  0x84   : > { %v2610_v30 = vsel %vm1138_vm3, %v2605_v1, %v2609_v22  ;;  %v27865_v1 = vshrl.u32 %v27864_v24, 16 }
  0x85   : > { %20360 = vmatmul.mubr.msk.bf16.gmra.mrb[8].mxu0 %vm734_vm1, %v2594_v27  ;;  %v1855_v50 = vor.u32 %v27862_v20, %v22929_v21  ;;  %v22531_v20 = vld [vmem:[%s22648_s17 + $0x34] sm:$0xf] }
  0x86   : > { %20363 = vmatprep.mubr.msk.bf16.mxu0 %vm734_vm1, %v2602_v48 }
  0x87   : > { %20270 = vmatmul.mubr.msk.bf16.gmra.mrb[56].mxu1 %vm734_vm1, %v1470_v55  ;;  %v22521_v55 = vld [vmem:[%s22648_s17 + $0x44] sm:$0xf] }
  0x88   : > { %20273 = vmatprep.mubr.msk.bf16.mxu1 %vm734_vm1, %v1479_v7  ;;  %v17882_v7 = vcombine.low %v22521_v55, %v22522_v36  ;;  %v22527_v36 = vld [vmem:[%s22648_s17 + $0x24] sm:$0xf] }
  0x8d   : > { %20364 = vmatmul.mubr.msk.bf16.gmra.mrb[12].mxu0 %vm734_vm1, %v2610_v30  ;;  %v27869_v30 = vld [vmem:[#allocation16_spill] sm:$0xff] }
  0x8f   : > { %20274 = vmatmul.mubr.msk.bf16.gmra.mrb[60].mxu1 %vm734_vm1, %v1488_v2  ;;  %v27866_v2 = vld [vmem:[#allocation14_spill] sm:$0xff] }
  0x90   : > { %20279 = vmatprep.mubr.msk.bf16.mxu1 %vm734_vm1, %v17876_v39 }
  0x97   : > { %20280 = vmatmul.mubr.msk.bf16.vlgmr.msra.gmra.mrb[64].mxu1 %vm734_vm1, %v17877_v28  ;;  %v27870_v28 = vld [vmem:[#allocation12_spill] sm:$0xff] }
  0x98   : > { %20296 = vmatpush3.bf16.msra.mxu1 %v27855_v23  ;;  %20283 = vmatprep.mubr.msk.bf16.mxu1 %vm734_vm1, %v17878_v12  ;;  %v27871_v51 = vshrl.u32 %v27870_v28, 16 }
  0x99   : > { %22153 = vmatprep.subr.msk.bf16.mxu1 %vm759_vm0, %v22896_v19  ;;  %v27860_v19 = vshrl.u32 %v22848_v47, 16  ;;  %v1863_v47 = vor.u32 %v27865_v1, %v27863_v54  ;;  %v22533_v1 = vld [vmem:[%s22648_s17 + $0x3c] sm:$0xf] }
  0x9a   : > { %v1879_v57 = vor.u32 %v27871_v51, %v27869_v30  ;;  %v22537_v51 = vld [vmem:[%s22648_s17 + $0x4c] sm:$0xf] }
  0x9b   : > { %v1847_v27 = vor.u32 %v22927_v3, %v27860_v19  ;;  %v1860_v3 = vsel %vm1138_vm3, %v1855_v50, %v27863_v54  ;;  %v1868_v22 = vsel %vm1138_vm3, %v1863_v47, %v22945_v61  ;;  %v22532_v50 = vld [vmem:[%s22648_s17 + $0x38] sm:$0xf]  ;;  %v22534_v47 = vld [vmem:[%s22648_s17 + $0x40] sm:$0xf] }
  0x9c   : > { %v1884_v23 = vsel %vm1138_vm3, %v1879_v57, %v22956_v26  ;;  %v17932_v54 = vcombine.low %v22531_v20, %v22532_v50  ;;  %v22538_v57 = vld [vmem:[%s22648_s17 + $0x50] sm:$0xf] }
  0x9d   : > { %v1852_v25 = vsel %vm1138_vm3, %v1847_v27, %v22929_v21  ;;  %v27867_v21 = vld [vmem:[#allocation11_spill] sm:$0xff] }
  0x9e   : > { %v27868_v39 = vshrl.u32 %v27867_v21, 16  ;;  %v22529_v27 = vld [vmem:[%s22648_s17 + $0x2c] sm:$0xf] }
  0x9f   : > { %20284 = vmatmul.mubr.msk.bf16.gmra.mrb[68].mxu1 %vm734_vm1, %v17879_v13  ;;  %v27874_v13 = vshrl.u32 %v22912_v17, 16  ;;  %v2126_v17 = vor.u32 %v23010_v6, %v23008_v10  ;;  %v17931_v32 = vcombine.low %v22529_v27, %v22530_v42 }
  0xa0   : > { %20287 = vmatprep.mubr.msk.bf16.mxu1 %vm734_vm1, %v17880_v58  ;;  %v1871_v48 = vor.u32 %v27868_v39, %v22945_v61  ;;  %v27872_v61 = vshrl.u32 %v22905_v46, 16  ;;  %v27875_v58 = vshrl.u32 %v22942_v29, 16  ;;  %v22535_v39 = vld [vmem:[%s22648_s17 + $0x44] sm:$0xf] }
  0xa1   : > { %v1895_v53 = vor.u32 %v27874_v13, %v27873_v40  ;;  %v22539_v13 = vld [vmem:[%s22648_s17 + $0x54] sm:$0xf] }
  0xa2   : > { %v1876_v12 = vsel %vm1138_vm3, %v1871_v48, %v27869_v30  ;;  %v1887_v18 = vor.u32 %v27872_v61, %v22956_v26  ;;  %v1903_v56 = vor.u32 %v27875_v58, %v22974_v33  ;;  %v2118_v26 = vor.u32 %v23002_v49, %v23000_v62  ;;  %v22536_v48 = vld [vmem:[%s22648_s17 + $0x48] sm:$0xf] }
  0xa3   : > { %v1900_v45 = vsel %vm1138_vm3, %v1895_v53, %v22974_v33  ;;  %v2144_v33 = vor.u32 %v23036_v43, %v23030_v34  ;;  %v2162_v49 = vor.u32 %v23072_v16, %v23065_v44  ;;  %v2189_v43 = vor.u32 %v23125_v14, %v23123_v11  ;;  %v22528_v11 = vld [vmem:[%s22648_s17 + $0x28] sm:$0xf]  ;;  %v22540_v53 = vld [vmem:[%s22648_s17 + $0x58] sm:$0xf] }
  0xa4   : > { %v1908_v46 = vsel %vm1138_vm3, %v1903_v56, %v22977_v9  ;;  %v2127_v52 = vsel %vm871_vm2, %v2118_v26, %v2126_v17  ;;  %v2153_v9 = vor.u32 %v23048_v37, %v23038_v4  ;;  %v17930_v14 = vcombine.low %v22527_v36, %v22528_v11 }
  0xa5   : > { %v17934_v30 = vcombine.low %v22535_v39, %v22536_v48 }
  0xa6   : > { %v2154_v10 = vsel %vm871_vm2, %v2144_v33, %v2153_v9  ;;  %v2163_v6 = vsel %vm871_vm2, %v2153_v9, %v2162_v49 }
  0xa7   : > { %20288 = vmatmul.mubr.msk.bf16.gmra.mrb[72].mxu1 %vm734_vm1, %v17881_v0  ;;  %v2135_v0 = vor.u32 %v23017_v41, %v23015_v35  ;;  %v2171_v35 = vor.u32 %v23091_v38, %v23086_v5  ;;  %v2180_v41 = vor.u32 %v23121_v59, %v23110_v8  ;;  %v22525_v5 = vld [vmem:[%s22648_s17 + $0x1c] sm:$0xf]  ;;  %v22526_v38 = vld [vmem:[%s22648_s17 + $0x20] sm:$0xf] }
  0xa8   : > { %20291 = vmatprep.mubr.msk.bf16.mxu1 %vm734_vm1, %v17882_v7  ;;  %v17929_v8 = vcombine.low %v22525_v5, %v22526_v38 }
  0xa9   : > { %v2136_v29 = vsel %vm871_vm2, %v2126_v17, %v2135_v0  ;;  %v2145_v62 = vsel %vm871_vm2, %v2135_v0, %v2144_v33  ;;  %v2181_v34 = vsel %vm871_vm2, %v2171_v35, %v2180_v41  ;;  %v2190_v16 = vsel %vm871_vm2, %v2180_v41, %v2189_v43 }
  0xaf   : > { %20292 = vmatmul.mubr.msk.bf16.gmra.mrb[76].mxu1 %vm734_vm1, %v17883_v60 }
  0xb0   : > { %20297 = vmatprep.mubr.msk.bf16.mxu1 %vm734_vm1, %v1852_v25 }
  0xb7   : > { %20298 = vmatmul.mubr.msk.bf16.vlgmr.msra.gmra.mrb[80].mxu1 %vm734_vm1, %v1860_v3  ;;  %v17933_v3 = vcombine.low %v22533_v1, %v22534_v47  ;;  %v22247_v47 = vld [vmem:[%s27807_s3 + $0x20] sm:$0xff]  }
  0xb8   : > { %20314 = vmatpush3.bf16.msra.mxu1 %v27866_v2  ;;  %20301 = vmatprep.mubr.msk.bf16.mxu1 %vm734_vm1, %v1868_v22 }
  0xb9   : > { %22154 = vmatprep.subr.msk.bf16.mxu1 %vm759_vm0, %v22995_v15  ;;  %v1892_v15 = vsel %vm1138_vm3, %v1887_v18, %v27873_v40 }
  0xbf   : > { %20302 = vmatmul.mubr.msk.bf16.gmra.mrb[84].mxu1 %vm734_vm1, %v1876_v12  ;;  %v17935_v12 = vcombine.low %v22537_v51, %v22538_v57 }
  0xc0   : > { %20305 = vmatprep.mubr.msk.bf16.mxu1 %vm734_vm1, %v1884_v23 }
  0xc7   : > { %20306 = vmatmul.mubr.msk.bf16.gmra.mrb[88].mxu1 %vm734_vm1, %v1892_v15  ;;  %v17936_v15 = vcombine.low %v22539_v13, %v22540_v53 }
  0xc8   : > { %20309 = vmatprep.mubr.msk.bf16.mxu1 %vm734_vm1, %v1900_v45 }
  0xcf   : > { %20310 = vmatmul.mubr.msk.bf16.gmra.mrb[92].mxu1 %vm734_vm1, %v1908_v46 }
  0xd0   : > { %20315 = vmatprep.mubr.msk.bf16.mxu1 %vm734_vm1, %v2127_v52 }
  0xd7   : > { %20316 = vmatmul.mubr.msk.bf16.vlgmr.msra.gmra.mrb[96].mxu1 %vm734_vm1, %v2136_v29 }
  0xd8   : > { %20332 = vmatpush3.bf16.msra.mxu1 %v23021_v63  ;;  %20319 = vmatprep.mubr.msk.bf16.mxu1 %vm734_vm1, %v2145_v62  ;;  %v2172_v63 = vsel %vm871_vm2, %v2162_v49, %v2171_v35 }
  0xd9   : > { %20367 = vmatprep.subr.bf16.mxu1 %v22247_v47 }
  0xdf   : > { %20320 = vmatmul.mubr.msk.bf16.gmra.mrb[100].mxu1 %vm734_vm1, %v2154_v10 }
  0xe0   : > { %20323 = vmatprep.mubr.msk.bf16.mxu1 %vm734_vm1, %v2163_v6 }
  0xe7   : > { %20324 = vmatmul.mubr.msk.bf16.gmra.mrb[104].mxu1 %vm734_vm1, %v2172_v63 }
  0xe8   : > { %20327 = vmatprep.mubr.msk.bf16.mxu1 %vm734_vm1, %v2181_v34 }
  0xea   : > { %v20209_v4 = vpop.f32.mrb[0].mxu1 }
  0xeb   : > { %v797_v37 = vpop.f32.mrb[1].mxu1 }
  0xec   : > { %v20210_v44 = vpop.f32.mrb[2].mxu1 }
  0xed   : > { %v800_v59 = vpop.f32.mrb[3].mxu1 }
  0xef   : > { %20328 = vmatmul.mubr.msk.bf16.gmra.mrb[108].mxu1 %vm734_vm1, %v2190_v16 }
  0xf0   : > { %20333 = vmatprep.mubr.msk.bf16.mxu1 %vm734_vm1, %v17929_v8 }
  0xf2   : > { %v20213_v55 = vpop.f32.mrb[4].mxu1 }
  0xf3   : > { %v813_v7 = vpop.f32.mrb[5].mxu1 }
  0xf4   : > { %v20214_v19 = vpop.f32.mrb[6].mxu1 }
  0xf5   : > { %v816_v60 = vpop.f32.mrb[7].mxu1 }
  0xf7   : > { %20334 = vmatmul.mubr.msk.bf16.vlgmr.msra.gmra.mrb[112].mxu1 %vm734_vm1, %v17930_v14 }
  0xf8   : > { %20337 = vmatprep.mubr.msk.bf16.mxu1 %vm734_vm1, %v17931_v32  ;;  %20368 = vmatpush3.bf16.msra.mxu1 %v22247_v47 }
  0xfa   : > { %v20217_v25 = vpop.f32.mrb[8].mxu1 }
  0xfb   : > { %v829_v31 = vpop.f32.mrb[9].mxu1 }
  0xfc   : > { %v20218_v24 = vpop.f32.mrb[10].mxu1 }
  0xfd   : > { %v832_v22 = vpop.f32.mrb[11].mxu1 }
  0xff   : > { %20338 = vmatmul.mubr.msk.bf16.gmra.mrb[116].mxu1 %vm734_vm1, %v17932_v54 }
 0x100   : > { %20341 = vmatprep.mubr.msk.bf16.mxu1 %vm734_vm1, %v17933_v3 }
 0x102   : > { %v20221_v2 = vpop.f32.mrb[12].mxu1 }
 0x103   : > { %v845_v21 = vpop.f32.mrb[13].mxu1 }
 0x104   : > { %v20222_v28 = vpop.f32.mrb[14].mxu1 }
 0x105   : > { %v848_v23 = vpop.f32.mrb[15].mxu1 }
 0x106   : > { %v22249_v23 = vld [vmem:[%s27807_s3] sm:$0xff]  }
 0x107   : > { %20342 = vmatmul.mubr.msk.bf16.gmra.mrb[120].mxu1 %vm734_vm1, %v17934_v30  ;;  %20391 = vmatprep.subr.bf16.mxu0 %v22249_v23 }
 0x108   : > { %20345 = vmatprep.mubr.msk.bf16.mxu1 %vm734_vm1, %v17935_v12  ;;  %20392 = vmatpush3.bf16.msra.mxu0 %v22249_v23 }
 0x10a   : > { %v20227_v61 = vpop.f32.mrb[16].mxu1 }
 0x10b   : > { %v1022_v18 = vadd.f32 %v20227_v61, %v20209_v4  ;;  %v1013_v40 = vpop.f32.mrb[17].mxu1 }
 0x10c   : > { %v1014_v45 = vadd.f32 %v1013_v40, %v797_v37  ;;  %v20228_v58 = vpop.f32.mrb[18].mxu1 }
 0x10d   : > { %v1016_v56 = vpop.f32.mrb[19].mxu1 }
 0x10f   : > { %20346 = vmatmul.mubr.msk.bf16.gmra.mrb[124].mxu1 %vm734_vm1, %v17936_v15 }
 0x112   : > { %v20231_v26 = vpop.f32.mrb[20].mxu1 }
 0x113   : > { %v1038_v17 = vadd.f32 %v20231_v26, %v20213_v55  ;;  %v1029_v46 = vpop.f32.mrb[21].mxu1  ;;  %v22251_v26 = vld [vmem:[%s27807_s3 + $0x8] sm:$0xff]  }
 0x114   : > { %v1030_v52 = vadd.f32 %v1029_v46, %v813_v7  ;;  %v20232_v0 = vpop.f32.mrb[22].mxu1  ;;  %20393 = vmatprep.subr.bf16.mxu0 %v22251_v26  ;;  %v22248_v46 = vld [vmem:[%s27807_s3 + $0x28] sm:$0xff]  }
 0x115   : > { %v1032_v33 = vpop.f32.mrb[23].mxu1  ;;  %20394 = vmatpush3.bf16.msra.mxu0 %v22251_v26  ;;  %v22252_v0 = vld [vmem:[%s27807_s3 + $0x10] sm:$0xff]   ;;  %20369 = vmatprep.subr.bf16.mxu1 %v22248_v46 }
 0x116   : > { %20395 = vmatprep.subr.bf16.mxu0 %v22252_v0  ;;  %20370 = vmatpush3.bf16.msra.mxu1 %v22248_v46 }
 0x119   : > { %20396 = vmatpush3.bf16.msra.mxu0 %v22252_v0 }
 0x11a   : > { %v20235_v29 = vpop.f32.mrb[24].mxu1 }
 0x11b   : > { %v1054_v62 = vadd.f32 %v20235_v29, %v20217_v25  ;;  %v1045_v9 = vpop.f32.mrb[25].mxu1 }
 0x11c   : > { %v1046_v49 = vadd.f32 %v1045_v9, %v829_v31  ;;  %v20236_v10 = vpop.f32.mrb[26].mxu1 }
 0x11d   : > { %v1048_v6 = vpop.f32.mrb[27].mxu1 }
 0x122   : > { %v20239_v35 = vpop.f32.mrb[28].mxu1 }
 0x123   : > { %v1070_v41 = vadd.f32 %v20239_v35, %v20221_v2  ;;  %v1061_v63 = vpop.f32.mrb[29].mxu1 }
 0x124   : > { %v1062_v34 = vadd.f32 %v1061_v63, %v845_v21  ;;  %v20240_v43 = vpop.f32.mrb[30].mxu1  ;;  %v22250_v63 = vld [vmem:[%s27807_s3 + $0x30] sm:$0xff]  }
 0x125   : > { %v1064_v4 = vpop.f32.mrb[31].mxu1  ;;  %20371 = vmatprep.subr.bf16.mxu1 %v22250_v63 }
 0x126   : > { %20372 = vmatpush3.bf16.msra.mxu1 %v22250_v63 }
 0x12a   : > { %v20245_v37 = vpop.f32.mrb[32].mxu1 }
 0x12b   : > { %v1333_v44 = vadd.f32 %v20245_v37, %v1022_v18  ;;  %v1268_v16 = vpop.f32.mrb[33].mxu1 }
 0x12c   : > { %v1331_v5 = vadd.f32 %v1268_v16, %v1014_v45  ;;  %v20246_v38 = vpop.f32.mrb[34].mxu1 }
 0x12d   : > { %v1271_v8 = vpop.f32.mrb[35].mxu1 }
 0x132   : > { %v20249_v59 = vpop.f32.mrb[36].mxu1 }
 0x133   : > { %v1337_v55 = vadd.f32 %v20249_v59, %v1038_v17  ;;  %v1284_v36 = vpop.f32.mrb[37].mxu1  ;;  %v22552_v17 = vmov 0   ;;  %v22253_v59 = vld [vmem:[%s27807_s3 + $0x38] sm:$0xff]  }
 0x134   : > { %v1335_v11 = vadd.f32 %v1284_v36, %v1030_v52  ;;  %v20250_v14 = vpop.f32.mrb[38].mxu1  ;;  %446 = vst.msk [vmem:[#allocation2 + $0x50] sm:$0xf0] %vm445_vm5, %v22552_v17  ;;  %22168 = vset.pattern.permute.xlu0 %v22552_v17  ;;  %20373 = vmatprep.subr.bf16.mxu1 %v22253_v59 }
 0x135   : > { %v1287_v7 = vpop.f32.mrb[39].mxu1  ;;  %441 = vst.msk [vmem:[#allocation2] sm:$0xff] %vm440_vm4, %v22552_v17  ;;  %442 = vst.msk [vmem:[#allocation2 + $0x8] sm:$0xff] %vm440_vm4, %v22552_v17  ;;  %20374 = vmatpush3.bf16.msra.mxu1 %v22253_v59 }
 0x136   : > { %447 = vst.msk [vmem:[#allocation2 + $0x58] sm:$0xff] %vm440_vm4, %v22552_v17  ;;  %448 = vst.msk [vmem:[#allocation2 + $0x60] sm:$0xff] %vm440_vm4, %v22552_v17 }
 0x137   : > { %444 = vst.msk [vmem:[#allocation2 + $0x10] sm:$0xf] %vm443_vm6, %v22552_v17 }
 0x13a   : > { %v20253_v19 = vpop.f32.mrb[40].mxu1 }
 0x13b   : > { %v1341_v27 = vadd.f32 %v20253_v19, %v1054_v62  ;;  %v1300_v42 = vpop.f32.mrb[41].mxu1 }
 0x13c   : > { %v1339_v32 = vadd.f32 %v1300_v42, %v1046_v49  ;;  %v20254_v60 = vpop.f32.mrb[42].mxu1  ;;  %v2888_v43 = vld [vmem:[#allocation2] sm:$0xf8]  ;;  %v23325_v4 = vld [vmem:[#allocation2 + $0x8] sm:$0xff] }
 0x13d   : > { %v1303_v25 = vpop.f32.mrb[43].mxu1  ;;  %v3150_v37 = vrot.slane %v2888_v43, 3  ;;  %v2916_v16 = vshrl.u32 %v2888_v43, 16  ;;  %v2924_v38 = vshrl.u32 %v23325_v4, 16  ;;  %v2927_v8 = vshll.u32 %v23325_v4, 16 }
 0x13f   : > { %v2929_v42 = vrot.slane %v2927_v8, 4 }
 0x142   : > { %v20257_v31 = vpop.f32.mrb[44].mxu1 }
 0x143   : > { %v23270_v20 = vadd.f32 %v20257_v31, %v1070_v41  ;;  %v1316_v50 = vpop.f32.mrb[45].mxu1 }
 0x144   : > { %v23272_v54 = vadd.f32 %v1316_v50, %v1062_v34  ;;  %v20258_v24 = vpop.f32.mrb[46].mxu1  ;;  %v22254_v34 = vld [vmem:[%s27807_s3 + $0x18] sm:$0xff]  }
 0x145   : > { %v1319_v1 = vpop.f32.mrb[47].mxu1  ;;  %v23277_v3 = vpop.f32.mrb[0].mxu0  ;;  %20397 = vmatprep.subr.bf16.mxu0 %v22254_v34 }
 0x146   : > { %v23279_v2 = vpop.f32.mrb[1].mxu0  ;;  %20398 = vmatpush3.bf16.msra.mxu0 %v22254_v34 }
 0x147   : > { %v20354_v48 = vpop.f32.mrb[2].mxu0 }
 0x148   : > { %v2675_v51 = vpop.f32.mrb[3].mxu0 }
 0x14a   : > { %v20263_v22 = vpop.f32.mrb[48].mxu1 }
 0x14b   : > { %v23281_v21 = vadd.f32 %v20263_v22, %v1333_v44  ;;  %v1550_v39 = vpop.f32.mrb[49].mxu1  ;;  %v3151_v44 = vrot.slane %v23325_v4, 3  ;;  %v3521_v22 = vrot.slane %v2924_v38, 4 }
 0x14c   : > { %v23283_v30 = vadd.f32 %v1550_v39, %v1331_v5  ;;  %v20264_v28 = vpop.f32.mrb[50].mxu1  ;;  %v2919_v5 = vshll.u32 %v2888_v43, 16  ;;  %v3522_v39 = vrot.slane %v2927_v8, 5 }
 0x14d   : > { %v1553_v57 = vpop.f32.mrb[51].mxu1  ;;  %v3152_v36 = vsel %vm3149_vm7, %v3150_v37, %v3151_v44 }
 0x14e   : > { %v2921_v14 = vrot.slane %v2919_v5, 4  ;;  %20399 = vmatprep.mubr.msk.bf16.mxu0 %vm440_vm4, %v3152_v36  ;;  %v23347_v51 = vor.u32 %v3522_v39, %v3521_v22 }
 0x150   : > { %v23285_v12 = vpop.f32.mrb[4].mxu0 }
 0x151   : > { %v23290_v18 = vpop.f32.mrb[5].mxu0 }
 0x152   : > { %v20267_v61 = vpop.f32.mrb[52].mxu1  ;;  %v20358_v53 = vpop.f32.mrb[6].mxu0 }
 0x153   : > { %v23292_v40 = vadd.f32 %v20267_v61, %v1337_v55  ;;  %v1566_v13 = vpop.f32.mrb[53].mxu1  ;;  %v2691_v58 = vpop.f32.mrb[7].mxu0  ;;  %v23355_v53 = vld [vmem:[%s27807_s3 + $0x40] sm:$0xff]  }
 0x154   : > { %v23294_v15 = vadd.f32 %v1566_v13, %v1335_v11  ;;  %v20268_v45 = vpop.f32.mrb[54].mxu1  ;;  %v2918_v11 = vrot.slane %v2916_v16, 3  ;;  %20415 = vmatprep.subr.bf16.mxu1 %v23355_v53 }
 0x155   : > { %v1569_v56 = vpop.f32.mrb[55].mxu1 }
 0x156   : > { %v2922_v31 = vor.u32 %v2921_v14, %v2918_v11 }
 0x158   : > { %v23308_v52 = vpop.f32.mrb[8].mxu0 }
 0x159   : > { %v23313_v29 = vpop.f32.mrb[9].mxu0 }
 0x15a   : > { %v20271_v33 = vpop.f32.mrb[56].mxu1  ;;  %v20362_v49 = vpop.f32.mrb[10].mxu0 }
 0x15b   : > { %v23315_v62 = vadd.f32 %v20271_v33, %v1341_v27  ;;  %v1582_v9 = vpop.f32.mrb[57].mxu1  ;;  %v2707_v35 = vpop.f32.mrb[11].mxu0  ;;  %v2926_v27 = vrot.slane %v2924_v38, 3 }
 0x15c   : > { %v23317_v10 = vadd.f32 %v1582_v9, %v1339_v32  ;;  %v20272_v6 = vpop.f32.mrb[58].mxu1 }
 0x15d   : > { %v1585_v41 = vpop.f32.mrb[59].mxu1  ;;  %v23343_v47 = vor.u32 %v2929_v42, %v2926_v27 }
 0x15f   : > { %v2931_v28 = vsel %vm871_vm2, %v2922_v31, %v23343_v47 }
 0x160   : > { %v23333_v55 = vpop.f32.mrb[12].mxu0  ;;  %20375 = vmatprep.mubr.msk.bf16.mxu1 %vm440_vm4, %v2931_v28 }
 0x161   : > { %v23338_v19 = vpop.f32.mrb[13].mxu0 }
 0x162   : > { %v20275_v7 = vpop.f32.mrb[60].mxu1  ;;  %v20366_v25 = vpop.f32.mrb[14].mxu0 }
 0x163   : > { %v1627_v32 = vadd.f32 %v20275_v7, %v23270_v20  ;;  %v1598_v60 = vpop.f32.mrb[61].mxu1  ;;  %v2723_v1 = vpop.f32.mrb[15].mxu0 }
 0x164   : > { %v1625_v50 = vadd.f32 %v1598_v60, %v23272_v54  ;;  %v20276_v24 = vpop.f32.mrb[62].mxu1 }
 0x165   : > { %v1601_v48 = vpop.f32.mrb[63].mxu1 }
 0x16a   : > { %v20281_v20 = vpop.f32.mrb[64].mxu1 }
 0x16b   : > { %v1765_v57 = vadd.f32 %v20281_v20, %v23281_v21  ;;  %v1700_v23 = vpop.f32.mrb[65].mxu1  ;;  %v23363_v21 = vld [vmem:[%s27807_s3 + $0x60] sm:$0xff]  }
 0x16c   : > { %v1763_v54 = vadd.f32 %v1700_v23, %v23283_v30  ;;  %v20282_v61 = vpop.f32.mrb[66].mxu1  ;;  %20439 = vmatprep.subr.bf16.mxu0 %v23363_v21 }
 0x16d   : > { %v1703_v13 = vpop.f32.mrb[67].mxu1 }
 0x172   : > { %v20285_v45 = vpop.f32.mrb[68].mxu1 }
 0x173   : > { %v1769_v58 = vadd.f32 %v20285_v45, %v23292_v40  ;;  %v1716_v56 = vpop.f32.mrb[69].mxu1 }
 0x174   : > { %v1767_v26 = vadd.f32 %v1716_v56, %v23294_v15  ;;  %v20286_v17 = vpop.f32.mrb[70].mxu1 }
 0x175   : > { %v1719_v30 = vpop.f32.mrb[71].mxu1 }
 0x17a   : > { %v20289_v46 = vpop.f32.mrb[72].mxu1 }
 0x17b   : > { %v1773_v0 = vadd.f32 %v20289_v46, %v23315_v62  ;;  %v1732_v33 = vpop.f32.mrb[73].mxu1 }
 0x17c   : > { %v1771_v40 = vadd.f32 %v1732_v33, %v23317_v10  ;;  %v20290_v9 = vpop.f32.mrb[74].mxu1 }
 0x17d   : > { %v1735_v49 = vpop.f32.mrb[75].mxu1 }
 0x182   : > { %v20293_v6 = vpop.f32.mrb[76].mxu1 }
 0x183   : > { %v1777_v35 = vadd.f32 %v20293_v6, %v1627_v32  ;;  %v1748_v15 = vpop.f32.mrb[77].mxu1 }
 0x184   : > { %v1775_v41 = vadd.f32 %v1748_v15, %v1625_v50  ;;  %v20294_v63 = vpop.f32.mrb[78].mxu1 }
 0x185   : > { %v1751_v34 = vpop.f32.mrb[79].mxu1 }
 0x18a   : > { %v20299_v43 = vpop.f32.mrb[80].mxu1 }
 0x18b   : > { %v2035_v37 = vadd.f32 %v20299_v43, %v1765_v57  ;;  %v1970_v16 = vpop.f32.mrb[81].mxu1 }
 0x18c   : > { %v2033_v5 = vadd.f32 %v1970_v16, %v1763_v54  ;;  %v20300_v38 = vpop.f32.mrb[82].mxu1 }
 0x18d   : > { %v1973_v8 = vpop.f32.mrb[83].mxu1 }
 0x192   : > { %v20303_v59 = vpop.f32.mrb[84].mxu1 }
 0x193   : > { %v2039_v36 = vadd.f32 %v20303_v59, %v1769_v58  ;;  %v1986_v62 = vpop.f32.mrb[85].mxu1 }
 0x194   : > { %v2037_v11 = vadd.f32 %v1986_v62, %v1767_v26  ;;  %v20304_v14 = vpop.f32.mrb[86].mxu1 }
 0x195   : > { %v1989_v10 = vpop.f32.mrb[87].mxu1 }
 0x19a   : > { %v20307_v7 = vpop.f32.mrb[88].mxu1 }
 0x19b   : > { %v2043_v27 = vadd.f32 %v20307_v7, %v1773_v0  ;;  %v2002_v42 = vpop.f32.mrb[89].mxu1  ;;  %v22553_v7 = vmov 0.0  }
 0x19c   : > { %v2041_v32 = vadd.f32 %v2002_v42, %v1771_v40  ;;  %v20308_v60 = vpop.f32.mrb[90].mxu1 }
 0x19d   : > { %v2005_v25 = vpop.f32.mrb[91].mxu1 }
 0x1a2   : > { %v20311_v31 = vpop.f32.mrb[92].mxu1 }
 0x1a3   : > { %v2047_v50 = vadd.f32 %v20311_v31, %v1777_v35  ;;  %v2018_v24 = vpop.f32.mrb[93].mxu1 }
 0x1a4   : > { %v2045_v1 = vadd.f32 %v2018_v24, %v1775_v41  ;;  %v20312_v22 = vpop.f32.mrb[94].mxu1 }
 0x1a5   : > { %v2021_v39 = vpop.f32.mrb[95].mxu1 }
 0x1aa   : > { %v20317_v48 = vpop.f32.mrb[96].mxu1 }
 0x1ab   : > { %v2317_v28 = vadd.f32 %v20317_v48, %v2035_v37  ;;  %v2252_v20 = vpop.f32.mrb[97].mxu1  ;;  %v23375_v37 = vld [vmem:[%s27806_s2] ss:$0 sm:$0xff] }
 0x1ac   : > { %v2315_v57 = vadd.f32 %v2252_v20, %v2033_v5  ;;  %v20318_v23 = vpop.f32.mrb[98].mxu1 }
 0x1ad   : > { %v2255_v54 = vpop.f32.mrb[99].mxu1 }
 0x1b2   : > { %v20321_v61 = vpop.f32.mrb[100].mxu1 }
 0x1b3   : > { %v2321_v13 = vadd.f32 %v20321_v61, %v2039_v36  ;;  %v2268_v45 = vpop.f32.mrb[101].mxu1 }
 0x1b4   : > { %v2319_v58 = vadd.f32 %v2268_v45, %v2037_v11  ;;  %v20322_v56 = vpop.f32.mrb[102].mxu1 }
 0x1b5   : > { %v2271_v26 = vpop.f32.mrb[103].mxu1 }
 0x1ba   : > { %v20325_v17 = vpop.f32.mrb[104].mxu1 }
 0x1bb   : > { %v2325_v30 = vadd.f32 %v20325_v17, %v2043_v27  ;;  %v2284_v46 = vpop.f32.mrb[105].mxu1 }
 0x1bc   : > { %v2323_v0 = vadd.f32 %v2284_v46, %v2041_v32  ;;  %v20326_v33 = vpop.f32.mrb[106].mxu1 }
 0x1bd   : > { %v2287_v40 = vpop.f32.mrb[107].mxu1 }
 0x1c2   : > { %v20329_v9 = vpop.f32.mrb[108].mxu1 }
 0x1c3   : > { %v23368_v49 = vadd.f32 %v20329_v9, %v2047_v50  ;;  %v2300_v6 = vpop.f32.mrb[109].mxu1 }
 0x1c4   : > { %v23370_v35 = vadd.f32 %v2300_v6, %v2045_v1  ;;  %v20330_v15 = vpop.f32.mrb[110].mxu1 }
 0x1c5   : > { %v2303_v41 = vpop.f32.mrb[111].mxu1 }
 0x1ca   : > { %v20335_v63 = vpop.f32.mrb[112].mxu1 }
 0x1cb   : > { %v2467_v34 = vadd.f32 %v20335_v63, %v2317_v28  ;;  %v2402_v43 = vpop.f32.mrb[113].mxu1  ;;  %v22259_v63 = vld [vmem:[%s27807_s3 + $0x68] sm:$0xff]  }
 0x1cc   : > { %v2465_v16 = vadd.f32 %v2402_v43, %v2315_v57  ;;  %v20336_v5 = vpop.f32.mrb[114].mxu1 }
 0x1cd   : > { %v2737_v38 = vadd.f32 %v23277_v3, %v2467_v34  ;;  %v2405_v8 = vpop.f32.mrb[115].mxu1 }
 0x1ce   : > { %v2735_v59 = vadd.f32 %v23279_v2, %v2465_v16 }
 0x1cf   : > { %v2760_v36 = vadd.f32 %v23375_v37, %v2737_v38 }
 0x1d0   : > { %v2758_v62 = vadd.f32 %v23375_v37, %v2735_v59 }
 0x1d1   : > { %v2776_v11 = vmax.f32 %v2760_v36, 0.0 }
 0x1d2   : > { %v2774_v14 = vmax.f32 %v2758_v62, 0.0  ;;  %v20339_v10 = vpop.f32.mrb[116].mxu1 }
 0x1d3   : > { %v2839_v27 = vpack.c.bf16 %v22553_v7, %v2776_v11  ;;  %v2471_v42 = vadd.f32 %v20339_v10, %v2321_v13  ;;  %v2418_v32 = vpop.f32.mrb[117].mxu1 }
 0x1d4   : > { %v2838_v60 = vpack.c.bf16 %v22553_v7, %v2774_v14  ;;  %v2469_v25 = vadd.f32 %v2418_v32, %v2319_v58  ;;  %v20340_v31 = vpop.f32.mrb[118].mxu1 }
 0x1d5   : > { %v2856_v3 = vrot.slane %v2839_v27, 4  ;;  %v2741_v2 = vadd.f32 %v23285_v12, %v2471_v42  ;;  %v2421_v50 = vpop.f32.mrb[119].mxu1  ;;  %v23439_v42 = vld [vmem:[#allocation2] sm:$0xf0]  ;;  %v22260_v31 = vld [vmem:[%s27807_s3 + $0x70] sm:$0xff]  }
 0x1d6   : > { %v2855_v24 = vrot.slane %v2838_v60, 4  ;;  %v2739_v1 = vadd.f32 %v23290_v18, %v2469_v25 }
 0x1d7   : > { %v2764_v22 = vadd.f32 %v23375_v37, %v2741_v2 }
 0x1d8   : > { %v2857_v39 = vsel %vm2854_vm8, %v2855_v24, %v2856_v3  ;;  %2879 = vst.msk [vmem:[#allocation2 + $0x10] sm:$0xf0] %vm445_vm5, %v2855_v24  ;;  %v2762_v48 = vadd.f32 %v23375_v37, %v2739_v1  ;;  %v3514_v1 = vshrl.u32 %v23439_v42, 16 }
 0x1d9   : > { %2880 = vst.msk [vmem:[#allocation2 + $0x18] sm:$0xff] %vm440_vm4, %v2857_v39  ;;  %v2780_v28 = vmax.f32 %v2764_v22, 0.0 }
 0x1da   : > { %v2778_v20 = vmax.f32 %v2762_v48, 0.0  ;;  %v20343_v57 = vpop.f32.mrb[120].mxu1 }
 0x1db   : > { %v2841_v23 = vpack.c.bf16 %v22553_v7, %v2780_v28  ;;  %v2475_v12 = vadd.f32 %v20343_v57, %v2325_v30  ;;  %v2434_v54 = vpop.f32.mrb[121].mxu1 }
 0x1dc   : > { %v2840_v61 = vpack.c.bf16 %v22553_v7, %v2778_v20  ;;  %v2473_v18 = vadd.f32 %v2434_v54, %v2323_v0  ;;  %v20344_v13 = vpop.f32.mrb[122].mxu1 }
 0x1dd   : > { %v2860_v45 = vrot.slane %v2841_v23, 4  ;;  %v2745_v58 = vadd.f32 %v23308_v52, %v2475_v12  ;;  %v2437_v56 = vpop.f32.mrb[123].mxu1  ;;  %v22262_v13 = vld [vmem:[%s27807_s3 + $0x78] sm:$0xff]  }
 0x1de   : > { %v2858_v26 = vrot.slane %v2840_v61, 4  ;;  %v2743_v17 = vadd.f32 %v23313_v29, %v2473_v18 }
 0x1df   : > { %v2768_v46 = vadd.f32 %v23375_v37, %v2745_v58  ;;  %v23395_v33 = vld [vmem:[#allocation2 + $0x10] sm:$0xff] }
 0x1e0   : > { %v2859_v40 = vsel %vm2854_vm8, %v2856_v3, %v2858_v26  ;;  %v2861_v30 = vsel %vm2854_vm8, %v2858_v26, %v2860_v45  ;;  %v2766_v9 = vadd.f32 %v23375_v37, %v2743_v17  ;;  %v23401_v0 = vrot.slane %v23395_v33, 3  ;;  %v23403_v6 = vld [vmem:[#allocation2 + $0x18] sm:$0xff]  ;;  %v22258_v26 = vld [vmem:[%s27807_s3 + $0x50] sm:$0xff]  }
 0x1e1   : > { %2881 = vst.msk [vmem:[#allocation2 + $0x20] sm:$0xff] %vm440_vm4, %v2859_v40  ;;  %2882 = vst.msk [vmem:[#allocation2 + $0x28] sm:$0xff] %vm440_vm4, %v2861_v30  ;;  %v2784_v52 = vmax.f32 %v2768_v46, 0.0  ;;  %v3155_v29 = vrot.slane %v23403_v6, 3  ;;  %v2933_v15 = vshrl.u32 %v23395_v33, 16  ;;  %v2936_v41 = vshll.u32 %v23395_v33, 16 }
 0x1e2   : > { %v2782_v34 = vmax.f32 %v2766_v9, 0.0  ;;  %v20347_v43 = vpop.f32.mrb[124].mxu1  ;;  %v3154_v16 = vsel %vm3149_vm7, %v3151_v44, %v23401_v0  ;;  %v2942_v5 = vshrl.u32 %v23403_v6, 16  ;;  %v2945_v38 = vshll.u32 %v23403_v6, 16 }
 0x1e3   : > { %v23420_v8 = vpack.c.bf16 %v22553_v7, %v2784_v52  ;;  %v2479_v59 = vadd.f32 %v20347_v43, %v23368_v49  ;;  %v2450_v36 = vpop.f32.mrb[125].mxu1  ;;  %20400 = vmatmul.mubr.msk.bf16.vlgmr.msra.gmra.mrb[16].mxu0 %vm440_vm4, %v3154_v16  ;;  %v23426_v62 = vsel %vm3149_vm7, %v23401_v0, %v3155_v29  ;;  %v2935_v11 = vrot.slane %v2933_v15, 3  ;;  %v22261_v16 = vld [vmem:[%s27807_s3 + $0x58] sm:$0xff]  }
 0x1e4   : > { %v2842_v44 = vpack.c.bf16 %v22553_v7, %v2782_v34  ;;  %v2477_v14 = vadd.f32 %v2450_v36, %v23370_v35  ;;  %v20348_v10 = vpop.f32.mrb[126].mxu1  ;;  %20403 = vmatprep.mubr.msk.bf16.mxu0 %vm440_vm4, %v23426_v62  ;;  %v2938_v49 = vrot.slane %v2936_v41, 4  ;;  %v2944_v27 = vrot.slane %v2942_v5, 3  ;;  %20440 = vmatpush3.bf16.msra.mxu0 %v23363_v21 }
 0x1e5   : > { %v2864_v32 = vrot.slane %v23420_v8, 4  ;;  %v2749_v60 = vadd.f32 %v23333_v55, %v2479_v59  ;;  %v2453_v25 = vpop.f32.mrb[127].mxu1  ;;  %v2947_v35 = vrot.slane %v2945_v38, 4  ;;  %20441 = vmatprep.subr.bf16.mxu0 %v22259_v63  ;;  %v22256_v55 = vld [vmem:[%s27807_s3 + $0x48] sm:$0xff]   ;;  %v3517_v34 = vshll.u32 %v23439_v42, 16  ;;  %v23516_v8 = vld [vmem:[%s27807_s3 + $0xa0] sm:$0xff]  }
 0x1e6   : > { %v2862_v3 = vrot.slane %v2842_v44, 4  ;;  %v2747_v2 = vadd.f32 %v23338_v19, %v2477_v14  ;;  %v23449_v50 = vor.u32 %v2938_v49, %v2935_v11  ;;  %v3516_v10 = vrot.slane %v3514_v1, 4 }
 0x1e7   : > { %v2772_v21 = vadd.f32 %v23375_v37, %v2749_v60  ;;  %v2948_v24 = vor.u32 %v2947_v35, %v2944_v27 }
 0x1e8   : > { %v2863_v22 = vsel %vm2854_vm8, %v2860_v45, %v2862_v3  ;;  %v2865_v39 = vsel %vm2854_vm8, %v2862_v3, %v2864_v32  ;;  %v2770_v48 = vadd.f32 %v23375_v37, %v2747_v2  ;;  %v2940_v19 = vsel %vm871_vm2, %v23343_v47, %v23449_v50  ;;  %v23462_v28 = vld [vmem:[#allocation2 + $0x20] sm:$0xff]  ;;  %v23464_v20 = vld [vmem:[#allocation2 + $0x28] sm:$0xff]  ;;  %20442 = vmatpush3.bf16.msra.mxu0 %v22259_v63 }
 0x1e9   : > { %2883 = vst.msk [vmem:[#allocation2 + $0x30] sm:$0xff] %vm440_vm4, %v2863_v22  ;;  %2884 = vst.msk [vmem:[#allocation2 + $0x38] sm:$0xff] %vm440_vm4, %v2865_v39  ;;  %v2788_v57 = vmax.f32 %v2772_v21, 0.0  ;;  %20376 = vmatmul.mubr.msk.bf16.vlgmr.msra.gmra.mrb[128].mxu1 %vm440_vm4, %v2940_v19  ;;  %v23471_v23 = vsel %vm871_vm2, %v23449_v50, %v2948_v24  ;;  %v3157_v37 = vrot.slane %v23462_v28, 3  ;;  %v3159_v47 = vrot.slane %v23464_v20, 3  ;;  %20443 = vmatprep.subr.bf16.mxu0 %v22260_v31 }
 0x1ea   : > { %v2786_v12 = vmax.f32 %v2770_v48, 0.0  ;;  %20379 = vmatprep.mubr.msk.bf16.mxu1 %vm440_vm4, %v23471_v23  ;;  %20416 = vmatpush3.bf16.msra.mxu1 %v23355_v53  ;;  %v2951_v54 = vshrl.u32 %v23462_v28, 16  ;;  %v2954_v61 = vshll.u32 %v23462_v28, 16  ;;  %v2960_v18 = vshrl.u32 %v23464_v20, 16 }
 0x1eb   : > { %v2845_v45 = vpack.c.bf16 %v22553_v7, %v2788_v57  ;;  %v23486_v58 = vsel %vm3149_vm7, %v3155_v29, %v3157_v37  ;;  %v23489_v56 = vsel %vm3149_vm7, %v3157_v37, %v3159_v47  ;;  %20417 = vmatprep.subr.bf16.mxu1 %v22256_v55  ;;  %v2963_v53 = vshll.u32 %v23464_v20, 16 }
 0x1ec   : > { %v2844_v17 = vpack.c.bf16 %v22553_v7, %v2786_v12  ;;  %20404 = vmatmul.mubr.msk.bf16.gmra.mrb[20].mxu0 %vm440_vm4, %v23486_v58  ;;  %v2953_v46 = vrot.slane %v2951_v54, 3  ;;  %v2956_v40 = vrot.slane %v2954_v61, 4  ;;  %v2962_v30 = vrot.slane %v2960_v18, 3 }
 0x1ed   : > { %v2868_v9 = vrot.slane %v2845_v45, 4  ;;  %20407 = vmatprep.mubr.msk.bf16.mxu0 %vm440_vm4, %v23489_v56  ;;  %v2965_v52 = vrot.slane %v2963_v53, 4  ;;  %20444 = vmatpush3.bf16.msra.mxu0 %v22260_v31  ;;  %v3519_v3 = vrot.slane %v3517_v34, 5  ;;  %v3529_v34 = vrot.slane %v2942_v5, 4  ;;  %v22267_v5 = vld [vmem:[%s27807_s3 + $0xa8] sm:$0xff]  }
 0x1ee   : > { %v2866_v29 = vrot.slane %v2844_v17, 4  ;;  %v2957_v63 = vor.u32 %v2956_v40, %v2953_v46  ;;  %20418 = vmatpush3.bf16.msra.mxu1 %v22256_v55  ;;  %20445 = vmatprep.subr.bf16.mxu0 %v22262_v13  ;;  %v22263_v55 = vld [vmem:[%s27807_s3 + $0x80] sm:$0xff]   ;;  %v3525_v40 = vrot.slane %v2933_v15, 4  ;;  %v3325_v15 = vrot.slane %v23325_v4, 4 }
 0x1ef   : > { %2887 = vst.msk [vmem:[#allocation2 + $0x50] sm:$0xf] %vm443_vm6, %v2868_v9  ;;  %v2966_v43 = vor.u32 %v2965_v52, %v2962_v30  ;;  %20419 = vmatprep.subr.bf16.mxu1 %v22258_v26  ;;  %v3520_v57 = vor.u32 %v3519_v3, %v3516_v10  ;;  %v3324_v30 = vrot.slane %v23439_v42, 4  ;;  %v3533_v10 = vrot.slane %v2951_v54, 4 }
 0x1f0   : > { %v2867_v59 = vsel %vm2854_vm8, %v2864_v32, %v2866_v29  ;;  %v2869_v36 = vsel %vm2854_vm8, %v2866_v29, %v2868_v9  ;;  %v23521_v11 = vsel %vm871_vm2, %v2948_v24, %v2957_v63  ;;  %v23523_v44 = vld [vmem:[#allocation2 + $0x30] sm:$0xff]  ;;  %v23525_v14 = vld [vmem:[#allocation2 + $0x38] sm:$0xff]  ;;  %v3329_v54 = vrot.slane %v23403_v6, 4 }
 0x1f1   : > { %2885 = vst.msk [vmem:[#allocation2 + $0x40] sm:$0xff] %vm440_vm4, %v2867_v59  ;;  %2886 = vst.msk [vmem:[#allocation2 + $0x48] sm:$0xff] %vm440_vm4, %v2869_v36  ;;  %20380 = vmatmul.mubr.msk.bf16.gmra.mrb[132].mxu1 %vm440_vm4, %v23521_v11  ;;  %v23532_v49 = vsel %vm871_vm2, %v2957_v63, %v2966_v43  ;;  %v3161_v27 = vrot.slane %v23523_v44, 3  ;;  %v23536_v32 = vrot.slane %v23525_v14, 3  ;;  %v2969_v60 = vshrl.u32 %v23523_v44, 16  ;;  %20446 = vmatpush3.bf16.msra.mxu0 %v22262_v13 }
 0x1f2   : > { %20383 = vmatprep.mubr.msk.bf16.mxu1 %vm440_vm4, %v23532_v49  ;;  %v2972_v25 = vshll.u32 %v23523_v44, 16  ;;  %20420 = vmatpush3.bf16.msra.mxu1 %v22258_v26  ;;  %v2978_v35 = vshrl.u32 %v23525_v14, 16  ;;  %v2981_v31 = vshll.u32 %v23525_v14, 16  ;;  %v3524_v46 = vsel %vm3512_vm9, %v3520_v57, %v23347_v51 }
 0x1f3   : > { %v23545_v2 = vsel %vm3149_vm7, %v3159_v47, %v3161_v27  ;;  %v23549_v21 = vsel %vm3149_vm7, %v3161_v27, %v23536_v32  ;;  %v2971_v24 = vrot.slane %v2969_v60, 3  ;;  %20421 = vmatprep.subr.bf16.mxu1 %v22261_v16  ;;  %20487 = vmatprep.subr.bf16.mxu0 %v23516_v8  ;;  %v3526_v63 = vrot.slane %v2936_v41, 5 }
 0x1f4   : > { %20408 = vmatmul.mubr.msk.bf16.gmra.mrb[24].mxu0 %vm440_vm4, %v23545_v2  ;;  %v2974_v1 = vrot.slane %v2972_v25, 4  ;;  %v2980_v22 = vrot.slane %v2978_v35, 3  ;;  %v2983_v39 = vrot.slane %v2981_v31, 4  ;;  %v3326_v41 = vsel %vm2854_vm8, %v3324_v30, %v3325_v15 }
 0x1f5   : > { %20411 = vmatprep.mubr.msk.bf16.mxu0 %vm440_vm4, %v23549_v21  ;;  %v23602_v59 = vor.u32 %v3526_v63, %v3525_v40  ;;  %v3534_v27 = vrot.slane %v2954_v61, 5  ;;  %v3333_v40 = vrot.slane %v23464_v20, 4 }
 0x1f6   : > { %v2975_v48 = vor.u32 %v2974_v1, %v2971_v24  ;;  %v23567_v19 = vor.u32 %v2983_v39, %v2980_v22  ;;  %20422 = vmatpush3.bf16.msra.mxu1 %v22261_v16  ;;  %v23623_v24 = vrot.slane %v23395_v33, 4  ;;  %v3537_v1 = vrot.slane %v2960_v18, 4  ;;  %v22264_v22 = vld [vmem:[%s27807_s3 + $0x88] sm:$0xff]   ;;  %v22268_v18 = vld [vmem:[%s27807_s3 + $0xb0] sm:$0xff]  }
 0x1f7   : > { %20463 = vmatprep.subr.bf16.mxu1 %v22263_v55  ;;  %v3535_v61 = vor.u32 %v3534_v27, %v3533_v10 }
 0x1f8   : > { %v23570_v37 = vsel %vm871_vm2, %v2966_v43, %v2975_v48  ;;  %v23574_v47 = vsel %vm871_vm2, %v2975_v48, %v23567_v19  ;;  %v2896_v12 = vld [vmem:[#allocation2 + $0x40] sm:$0x7]  ;;  %v3530_v43 = vrot.slane %v2945_v38, 5  ;;  %v3528_v38 = vsel %vm3512_vm9, %v23347_v51, %v23602_v59 }
 0x1f9   : > { %v23576_v13 = vld [vmem:[#allocation2 + $0x40] sm:$0xf]  ;;  %20384 = vmatmul.mubr.msk.bf16.gmra.mrb[136].mxu1 %vm440_vm4, %v23570_v37  ;;  %v3165_v45 = vrot.slane %v2896_v12, 3  ;;  %v3538_v51 = vrot.slane %v2963_v53, 5  ;;  %v3328_v53 = vsel %vm2854_vm8, %v3325_v15, %v23623_v24  ;;  %v23644_v48 = vsel %vm2854_vm8, %v23623_v24, %v3329_v54 }
 0x1fa   : > { %v2987_v26 = vshrl.u32 %v23576_v13, 16  ;;  %v2990_v17 = vshll.u32 %v23576_v13, 16  ;;  %20387 = vmatprep.mubr.msk.bf16.mxu1 %vm440_vm4, %v23574_v47  ;;  %v3531_v36 = vor.u32 %v3530_v43, %v3529_v34  ;;  %v3541_v12 = vrot.slane %v2969_v60, 4 }
 0x1fb   : > { %v3166_v9 = vsel %vm3149_vm7, %v23536_v32, %v3165_v45  ;;  %v3539_v39 = vor.u32 %v3538_v51, %v3537_v1  ;;  %v3542_v45 = vrot.slane %v2972_v25, 5  ;;  %v3546_v60 = vrot.slane %v2981_v31, 5  ;;  %v23671_v25 = vld [vmem:[#allocation2 + $0x40] sm:$0x1f]  ;;  %v3719_v51 = vld [vmem:[#allocation2] sm:$0xe0] }
 0x1fc   : > { %v2989_v52 = vrot.slane %v2987_v26, 3  ;;  %v2992_v29 = vrot.slane %v2990_v17, 4  ;;  %20412 = vmatmul.mubr.msk.bf16.gmra.mrb[28].mxu0 %vm440_vm4, %v3166_v9  ;;  %v23620_v3 = vsel %vm3512_vm9, %v23602_v59, %v3531_v36  ;;  %v23652_v57 = vsel %vm3512_vm9, %v3531_v36, %v3535_v61  ;;  %v22273_v31 = vld [vmem:[%s27807_s3 + $0xe0] sm:$0xff]  }
 0x1fd   : > { %20447 = vmatprep.mubr.msk.bf16.mxu0 %vm440_vm4, %v3524_v46  ;;  %v23664_v26 = vsel %vm3512_vm9, %v3535_v61, %v3539_v39  ;;  %v3331_v17 = vrot.slane %v23462_v28, 4  ;;  %v3545_v46 = vrot.slane %v2978_v35, 4  ;;  %v3543_v30 = vor.u32 %v3542_v45, %v3541_v12  ;;  %v22269_v35 = vld [vmem:[%s27807_s3 + $0x98] sm:$0xff]   ;;  %v22272_v45 = vld [vmem:[%s27807_s3 + $0xc8] sm:$0xff]  }
 0x1fe   : > { %v2993_v16 = vor.u32 %v2992_v29, %v2989_v52  ;;  %v3550_v9 = vshrl.u32 %v23671_v25, 16  ;;  %v3553_v52 = vshll.u32 %v23671_v25, 16  ;;  %v3335_v36 = vrot.slane %v23523_v44, 4 }
 0x1ff   : > { %v23685_v29 = vsel %vm2854_vm8, %v3329_v54, %v3331_v17  ;;  %v23687_v63 = vor.u32 %v3546_v60, %v3545_v46  ;;  %v23692_v34 = vsel %vm2854_vm8, %v3331_v17, %v3333_v40  ;;  %v23697_v43 = vsel %vm3512_vm9, %v3539_v39, %v3543_v30  ;;  %v23779_v60 = vld [vmem:[#allocation2 + $0x40] sm:$0xff] }
 0x200   : > { %v2994_v42 = vsel %vm871_vm2, %v23567_v19, %v2993_v16  ;;  %v3552_v16 = vrot.slane %v3550_v9, 4  ;;  %v3555_v15 = vrot.slane %v3553_v52, 5  ;;  %v23717_v27 = vsel %vm2854_vm8, %v3333_v40, %v3335_v36  ;;  %v22277_v40 = vld [vmem:[%s27807_s3 + $0xd8] sm:$0xff]  }
 0x201   : > { %20388 = vmatmul.mubr.msk.bf16.gmra.mrb[140].mxu1 %vm440_vm4, %v2994_v42  ;;  %v22271_v42 = vld [vmem:[%s27807_s3 + $0xc0] sm:$0xff]   ;;  %v3733_v39 = vrot.slane %v23325_v4, 5  ;;  %v3737_v4 = vrot.slane %v23403_v6, 5  ;;  %v22278_v6 = vld [vmem:[%s27807_s3 + $0xf8] sm:$0xff]   ;;  %v3739_v17 = vrot.slane %v23462_v28, 5  ;;  %v3741_v46 = vrot.slane %v23464_v20, 5 }
 0x202   : > { %20423 = vmatprep.mubr.msk.bf16.mxu1 %vm440_vm4, %v3326_v41  ;;  %v23706_v41 = vsel %vm3512_vm9, %v3543_v30, %v23687_v63  ;;  %v3556_v10 = vor.u32 %v3555_v15, %v3552_v16  ;;  %v22279_v30 = vld [vmem:[%s27807_s3 + $0x100] sm:$0xff]   ;;  %v3743_v52 = vrot.slane %v23523_v44, 5  ;;  %v23813_v16 = vld [vmem:[#allocation2 + $0x8] sm:$0xf0] }
 0x203   : > { %v23788_v28 = vsel %vm3731_vm10, %v3737_v4, %v3739_v17  ;;  %v23796_v20 = vsel %vm3731_vm10, %v3739_v17, %v3741_v46  ;;  %v4378_v44 = vrot.slane %v23813_v16, 4 }
 0x204   : > { %20448 = vmatmul.mubr.msk.bf16.vlgmr.msra.gmra.mrb[32].mxu0 %vm440_vm4, %v3528_v38  ;;  %v23714_v38 = vld [vmem:[#allocation2 + $0x8] sm:$0xf8]  ;;  %v3557_v61 = vsel %vm3512_vm9, %v23687_v63, %v3556_v10 }
 0x205   : > { %20451 = vmatprep.mubr.msk.bf16.mxu0 %vm440_vm4, %v23620_v3  ;;  %20488 = vmatpush3.bf16.msra.mxu0 %v23516_v8  ;;  %v22270_v8 = vld [vmem:[%s27807_s3 + $0xb8] sm:$0xff]   ;;  %v3937_v1 = vrot.slane %v23714_v38, 3  ;;  %v4126_v15 = vshrl.u32 %v23714_v38, 16 }
 0x206   : > { %20489 = vmatprep.subr.bf16.mxu0 %v22267_v5 }
 0x209   : > { %20424 = vmatmul.mubr.msk.bf16.vlgmr.msra.gmra.mrb[144].mxu1 %vm440_vm4, %v3328_v53  ;;  %20490 = vmatpush3.bf16.msra.mxu0 %v22267_v5  ;;  %v23712_v5 = vrot.slane %v23525_v14, 4  ;;  %v3339_v53 = vrot.slane %v23576_v13, 4  ;;  %v23747_v13 = vrot.slane %v23395_v33, 5 }
 0x20a   : > { %20464 = vmatpush3.bf16.msra.mxu1 %v22263_v55  ;;  %20427 = vmatprep.mubr.msk.bf16.mxu1 %vm440_vm4, %v23644_v48  ;;  %v22266_v55 = vld [vmem:[%s27807_s3 + $0x90] sm:$0xff]  }
 0x20b   : > { %20465 = vmatprep.subr.bf16.mxu1 %v22264_v22  ;;  %20491 = vmatprep.subr.bf16.mxu0 %v22268_v18  ;;  %v23724_v54 = vsel %vm2854_vm8, %v3335_v36, %v23712_v5  ;;  %v3340_v12 = vsel %vm2854_vm8, %v23712_v5, %v3339_v53  ;;  %v23763_v33 = vsel %vm3731_vm10, %v23747_v13, %v3737_v4  ;;  %v22283_v53 = vld [vmem:[%s27807_s3 + $0x128] sm:$0xff]  }
 0x20c   : > { %20452 = vmatmul.mubr.msk.bf16.gmra.mrb[36].mxu0 %vm440_vm4, %v23652_v57  ;;  %v23818_v36 = vsel %vm3731_vm10, %v3741_v46, %v3743_v52 }
 0x20d   : > { %20455 = vmatprep.mubr.msk.bf16.mxu0 %vm440_vm4, %v23664_v26  ;;  %20492 = vmatpush3.bf16.msra.mxu0 %v22268_v18  ;;  %v3939_v18 = vsel %vm3149_vm7, %v3937_v1, %v23401_v0  ;;  %v22275_v0 = vld [vmem:[%s27807_s3 + $0xe8] sm:$0xff]   ;;  %v4380_v1 = vsel %vm2854_vm8, %v4378_v44, %v23623_v24 }
 0x20e   : > { %20466 = vmatpush3.bf16.msra.mxu1 %v22264_v22  ;;  %20493 = vmatprep.subr.bf16.mxu0 %v22270_v8  ;;  %v3732_v22 = vrot.slane %v3719_v51, 5  ;;  %v3747_v51 = vrot.slane %v23671_v25, 5  ;;  %v22280_v24 = vld [vmem:[%s27807_s3 + $0x108] sm:$0xff]   ;;  %v23862_v25 = vld [vmem:[#allocation2 + $0x50] sm:$0xff] }
 0x20f   : > { %20467 = vmatprep.subr.bf16.mxu1 %v22266_v55 }
 0x211   : > { %20428 = vmatmul.mubr.msk.bf16.gmra.mrb[148].mxu1 %vm440_vm4, %v23685_v29  ;;  %20494 = vmatpush3.bf16.msra.mxu0 %v22270_v8  ;;  %v3734_v8 = vsel %vm3731_vm10, %v3732_v22, %v3733_v39 }
 0x212   : > { %20431 = vmatprep.mubr.msk.bf16.mxu1 %vm440_vm4, %v23692_v34  ;;  %20468 = vmatpush3.bf16.msra.mxu1 %v22266_v55  ;;  %v22276_v55 = vld [vmem:[%s27807_s3 + $0xf0] sm:$0xff]  }
 0x213   : > { %20469 = vmatprep.subr.bf16.mxu1 %v22269_v35  ;;  %20535 = vmatprep.subr.bf16.mxu0 %v22273_v31 }
 0x214   : > { %20456 = vmatmul.mubr.msk.bf16.gmra.mrb[40].mxu0 %vm440_vm4, %v23697_v43 }
 0x215   : > { %20459 = vmatprep.mubr.msk.bf16.mxu0 %vm440_vm4, %v23706_v41 }
 0x216   : > { %20470 = vmatpush3.bf16.msra.mxu1 %v22269_v35  ;;  %v3918_v35 = vld [vmem:[#allocation2 + $0x48] sm:$0x7] }
 0x217   : > { %20511 = vmatprep.subr.bf16.mxu1 %v22271_v42 }
 0x219   : > { %20432 = vmatmul.mubr.msk.bf16.gmra.mrb[152].mxu1 %vm440_vm4, %v23717_v27 }
 0x21a   : > { %20435 = vmatprep.mubr.msk.bf16.mxu1 %vm440_vm4, %v23724_v54 }
 0x21c   : > { %20460 = vmatmul.mubr.msk.bf16.gmra.mrb[44].mxu0 %vm440_vm4, %v3557_v61 }
 0x21d   : > { %20495 = vmatprep.mubr.msk.bf16.mxu0 %vm440_vm4, %v3939_v18 }
 0x221   : > { %20436 = vmatmul.mubr.msk.bf16.gmra.mrb[156].mxu1 %vm440_vm4, %v3340_v12 }
 0x222   : > { %20471 = vmatprep.mubr.msk.bf16.mxu1 %vm440_vm4, %v3734_v8  ;;  %v23876_v8 = vrot.slane %v23862_v25, 5 }
 0x224   : > { %20496 = vmatmul.mubr.msk.bf16.vlgmr.msra.gmra.mrb[48].mxu0 %vm440_vm4, %v23426_v62  ;;  %v3736_v62 = vsel %vm3731_vm10, %v3733_v39, %v23747_v13  ;;  %v22282_v39 = vld [vmem:[%s27807_s3 + $0x110] sm:$0xff]  }
 0x225   : > { %20499 = vmatprep.mubr.msk.bf16.mxu0 %vm440_vm4, %v23486_v58  ;;  %20536 = vmatpush3.bf16.msra.mxu0 %v22273_v31  ;;  %v22274_v58 = vld [vmem:[%s27807_s3 + $0xd0] sm:$0xff]   ;;  %v23811_v31 = vrot.slane %v23525_v14, 5 }
 0x226   : > { %20537 = vmatprep.subr.bf16.mxu0 %v22275_v0 }
 0x227   : > { %v23825_v14 = vsel %vm3731_vm10, %v3743_v52, %v23811_v31  ;;  %v3748_v22 = vsel %vm3731_vm10, %v23811_v31, %v3747_v51  ;;  %v4556_v51 = vld [vmem:[#allocation2 + $0x48] sm:$0x1f] }
 0x229   : > { %20472 = vmatmul.mubr.msk.bf16.vlgmr.msra.gmra.mrb[160].mxu1 %vm440_vm4, %v3736_v62  ;;  %20538 = vmatpush3.bf16.msra.mxu0 %v22275_v0  ;;  %v23886_v0 = vrot.slane %v23779_v60, 4 }
 0x22a   : > { %20512 = vmatpush3.bf16.msra.mxu1 %v22271_v42  ;;  %20475 = vmatprep.mubr.msk.bf16.mxu1 %vm440_vm4, %v23763_v33  ;;  %v4129_v42 = vshll.u32 %v23714_v38, 16 }
 0x22b   : > { %20513 = vmatprep.subr.bf16.mxu1 %v22272_v45  ;;  %20539 = vmatprep.subr.bf16.mxu0 %v22276_v55 }
 0x22c   : > { %20500 = vmatmul.mubr.msk.bf16.gmra.mrb[52].mxu0 %vm440_vm4, %v23489_v56  ;;  %v22281_v56 = vld [vmem:[%s27807_s3 + $0x120] sm:$0xff]   ;;  %v4131_v10 = vrot.slane %v4129_v42, 4 }
 0x22d   : > { %20503 = vmatprep.mubr.msk.bf16.mxu0 %vm440_vm4, %v23545_v2  ;;  %20540 = vmatpush3.bf16.msra.mxu0 %v22276_v55  ;;  %v23791_v2 = vrot.slane %v23779_v60, 3  ;;  %v4115_v55 = vld [vmem:[#allocation2 + $0x48] sm:$0xf] }
 0x22e   : > { %20514 = vmatpush3.bf16.msra.mxu1 %v22272_v45  ;;  %20541 = vmatprep.subr.bf16.mxu0 %v22278_v6  ;;  %v4200_v17 = vshll.u32 %v4115_v55, 16 }
 0x22f   : > { %20515 = vmatprep.subr.bf16.mxu1 %v22274_v58  ;;  %v3951_v9 = vsel %vm3149_vm7, %v23536_v32, %v23791_v2  ;;  %v4128_v32 = vrot.slane %v4126_v15, 3 }
 0x230   : > { %v4202_v52 = vrot.slane %v4200_v17, 4 }
 0x231   : > { %20476 = vmatmul.mubr.msk.bf16.gmra.mrb[164].mxu1 %vm440_vm4, %v23788_v28  ;;  %20542 = vmatpush3.bf16.msra.mxu0 %v22278_v6  ;;  %v4132_v61 = vor.u32 %v4131_v10, %v4128_v32  ;;  %v4392_v6 = vsel %vm2854_vm8, %v23712_v5, %v23886_v0  ;;  %v22291_v32 = vld [vmem:[%s27807_s3 + $0x168] sm:$0xff]   ;;  %v23958_v10 = vld [vmem:[#allocation2 + $0x10] sm:$0xf8] }
 0x232   : > { %20479 = vmatprep.mubr.msk.bf16.mxu1 %vm440_vm4, %v23796_v20  ;;  %20516 = vmatpush3.bf16.msra.mxu1 %v22274_v58  ;;  %v4197_v58 = vshrl.u32 %v4115_v55, 16 }
 0x233   : > { %20517 = vmatprep.subr.bf16.mxu1 %v22277_v40  ;;  %20583 = vmatprep.subr.bf16.mxu0 %v22281_v56  ;;  %v4141_v18 = vsel %vm871_vm2, %v4132_v61, %v23449_v50  ;;  %v22284_v50 = vld [vmem:[%s27807_s3 + $0x130] sm:$0xff]  }
 0x234   : > { %20504 = vmatmul.mubr.msk.bf16.gmra.mrb[56].mxu0 %vm440_vm4, %v23549_v21  ;;  %v3952_v21 = vrot.slane %v3918_v35, 3 }
 0x235   : > { %20507 = vmatprep.mubr.msk.bf16.mxu0 %vm440_vm4, %v3951_v9 }
 0x236   : > { %20518 = vmatpush3.bf16.msra.mxu1 %v22277_v40  ;;  %v3953_v38 = vsel %vm3149_vm7, %v23791_v2, %v3952_v21  ;;  %v4567_v40 = vshrl.u32 %v23813_v16, 16 }
 0x237   : > { %20559 = vmatprep.subr.bf16.mxu1 %v22279_v30 }
 0x238   : > { %v4569_v35 = vrot.slane %v4567_v40, 4 }
 0x239   : > { %20480 = vmatmul.mubr.msk.bf16.gmra.mrb[168].mxu1 %vm440_vm4, %v23818_v36 }
 0x23a   : > { %20483 = vmatprep.mubr.msk.bf16.mxu1 %vm440_vm4, %v23825_v14 }
 0x23c   : > { %20508 = vmatmul.mubr.msk.bf16.gmra.mrb[60].mxu0 %vm440_vm4, %v3953_v38  ;;  %v5181_v38 = vshll.u32 %v23958_v10, 16 }
 0x23d   : > { %20543 = vmatprep.mubr.msk.bf16.mxu0 %vm440_vm4, %v4380_v1  ;;  %v22293_v1 = vld [vmem:[%s27807_s3 + $0x158] sm:$0xff]  }
 0x241   : > { %20484 = vmatmul.mubr.msk.bf16.gmra.mrb[172].mxu1 %vm440_vm4, %v3748_v22 }
 0x242   : > { %20519 = vmatprep.mubr.msk.bf16.mxu1 %vm440_vm4, %v4141_v18 }
 0x244   : > { %20544 = vmatmul.mubr.msk.bf16.vlgmr.msra.gmra.mrb[64].mxu0 %vm440_vm4, %v23644_v48  ;;  %v22286_v48 = vld [vmem:[%s27807_s3 + $0x138] sm:$0xff]  }
 0x245   : > { %20547 = vmatprep.mubr.msk.bf16.mxu0 %vm440_vm4, %v23685_v29  ;;  %20584 = vmatpush3.bf16.msra.mxu0 %v22281_v56  ;;  %v23864_v29 = vld [vmem:[#allocation2 + $0x58] sm:$0xff]  ;;  %v4570_v56 = vshll.u32 %v23813_v16, 16 }
 0x246   : > { %20585 = vmatprep.subr.bf16.mxu0 %v22283_v53  ;;  %v7953_v12 = vrot.slane %v23864_v29, 5 }
 0x247   : > { %v4572_v15 = vrot.slane %v4570_v56, 5 }
 0x248   : > { %v23898_v62 = vsel %vm3731_vm10, %v23876_v8, %v7953_v12 }
 0x249   : > { %20520 = vmatmul.mubr.msk.bf16.vlgmr.msra.gmra.mrb[176].mxu1 %vm440_vm4, %v23471_v23  ;;  %20586 = vmatpush3.bf16.msra.mxu0 %v22283_v53  ;;  %v4188_v23 = vshrl.u32 %v23779_v60, 16 }
 0x24a   : > { %20560 = vmatpush3.bf16.msra.mxu1 %v22279_v30  ;;  %20523 = vmatprep.mubr.msk.bf16.mxu1 %vm440_vm4, %v23521_v11  ;;  %v4191_v11 = vshll.u32 %v23779_v60, 16  ;;  %v4393_v30 = vrot.slane %v4115_v55, 4 }
 0x24b   : > { %20561 = vmatprep.subr.bf16.mxu1 %v22280_v24  ;;  %20587 = vmatprep.subr.bf16.mxu0 %v22284_v50  ;;  %v4190_v4 = vrot.slane %v4188_v23, 3  ;;  %v4598_v18 = vrot.slane %v4188_v23, 4  ;;  %v4606_v23 = vshll.u32 %v4556_v51, 16 }
 0x24c   : > { %20548 = vmatmul.mubr.msk.bf16.gmra.mrb[68].mxu0 %vm440_vm4, %v23692_v34  ;;  %v22285_v34 = vld [vmem:[%s27807_s3 + $0x118] sm:$0xff]   ;;  %v4193_v45 = vrot.slane %v4191_v11, 4  ;;  %v4394_v16 = vsel %vm2854_vm8, %v23886_v0, %v4393_v30  ;;  %v4599_v53 = vrot.slane %v4191_v11, 5  ;;  %v24002_v11 = vld [vmem:[#allocation2 + $0x20] sm:$0xff] }
 0x24d   : > { %20551 = vmatprep.mubr.msk.bf16.mxu0 %vm440_vm4, %v23717_v27  ;;  %20588 = vmatpush3.bf16.msra.mxu0 %v22284_v50  ;;  %v22289_v27 = vld [vmem:[%s27807_s3 + $0x160] sm:$0xff]   ;;  %v5183_v50 = vrot.slane %v5181_v38, 4  ;;  %v5198_v55 = vshll.u32 %v24002_v11, 16  ;;  %v24065_v38 = vrot.slane %v24002_v11, 3 }
 0x24e   : > { %20562 = vmatpush3.bf16.msra.mxu1 %v22280_v24  ;;  %20589 = vmatprep.subr.bf16.mxu0 %v22286_v48  ;;  %v23911_v46 = vor.u32 %v4193_v45, %v4190_v4 }
 0x24f   : > { %20563 = vmatprep.subr.bf16.mxu1 %v22282_v39  ;;  %v5200_v30 = vrot.slane %v5198_v55, 4 }
 0x250   : > { %v4195_v5 = vsel %vm871_vm2, %v23567_v19, %v23911_v46 }
 0x251   : > { %20524 = vmatmul.mubr.msk.bf16.gmra.mrb[180].mxu1 %vm440_vm4, %v23532_v49  ;;  %20590 = vmatpush3.bf16.msra.mxu0 %v22286_v48  ;;  %v22287_v49 = vld [vmem:[%s27807_s3 + $0x140] sm:$0xff]   ;;  %v4603_v48 = vshrl.u32 %v4556_v51, 16 }
 0x252   : > { %20527 = vmatprep.mubr.msk.bf16.mxu1 %vm440_vm4, %v23570_v37  ;;  %20564 = vmatpush3.bf16.msra.mxu1 %v22282_v39  ;;  %v4772_v37 = vld [vmem:[#allocation2 + $0x8] sm:$0xe0]  ;;  %v23990_v39 = vld [vmem:[%s27807_s3 + $0x180] sm:$0xff]  }
 0x253   : > { %20565 = vmatprep.subr.bf16.mxu1 %v22285_v34  ;;  %20631 = vmatprep.subr.bf16.mxu0 %v22289_v27  ;;  %v4784_v9 = vrot.slane %v4772_v37, 5  ;;  %v4605_v45 = vrot.slane %v4603_v48, 4  ;;  %v22300_v48 = vld [vmem:[%s27807_s3 + $0x1b0] sm:$0xff]  }
 0x254   : > { %20552 = vmatmul.mubr.msk.bf16.gmra.mrb[72].mxu0 %vm440_vm4, %v23724_v54  ;;  %v4199_v54 = vrot.slane %v4197_v58, 3 }
 0x255   : > { %20555 = vmatprep.mubr.msk.bf16.mxu0 %vm440_vm4, %v4392_v6  ;;  %v4786_v42 = vsel %vm3731_vm10, %v4784_v9, %v23747_v13  ;;  %v22288_v13 = vld [vmem:[%s27807_s3 + $0x148] sm:$0xff]   ;;  %v4608_v6 = vrot.slane %v4606_v23, 5 }
 0x256   : > { %20566 = vmatpush3.bf16.msra.mxu1 %v22285_v34  ;;  %v4203_v21 = vor.u32 %v4202_v52, %v4199_v54  ;;  %v24005_v34 = vor.u32 %v4599_v53, %v4598_v18  ;;  %v24032_v52 = vld [vmem:[#allocation2 + $0x30] sm:$0xff]  ;;  %v24074_v53 = vld [vmem:[#allocation2 + $0x48] sm:$0xff] }
 0x257   : > { %20607 = vmatprep.subr.bf16.mxu1 %v22287_v49  ;;  %v5243_v23 = vshll.u32 %v24074_v53, 16 }
 0x258   : > { %v4204_v44 = vsel %vm871_vm2, %v23911_v46, %v4203_v21  ;;  %v4601_v37 = vsel %vm3512_vm9, %v23687_v63, %v24005_v34  ;;  %v5216_v21 = vshll.u32 %v24032_v52, 16 }
 0x259   : > { %20528 = vmatmul.mubr.msk.bf16.gmra.mrb[184].mxu1 %vm440_vm4, %v23574_v47  ;;  %v4573_v47 = vor.u32 %v4572_v15, %v4569_v35  ;;  %v24037_v15 = vld [vmem:[#allocation2 + $0x38] sm:$0xff] }
 0x25a   : > { %20531 = vmatprep.mubr.msk.bf16.mxu1 %vm440_vm4, %v4195_v5  ;;  %v4989_v5 = vrot.slane %v23958_v10, 3 }
 0x25b   : > { %v4577_v19 = vsel %vm3512_vm9, %v4573_v47, %v23602_v59  ;;  %v22292_v59 = vld [vmem:[%s27807_s3 + $0x170] sm:$0xff]  }
 0x25c   : > { %20556 = vmatmul.mubr.msk.bf16.gmra.mrb[76].mxu0 %vm440_vm4, %v4394_v16 }
 0x25d   : > { %20591 = vmatprep.mubr.msk.bf16.mxu0 %vm440_vm4, %v4786_v42  ;;  %v5213_v42 = vshrl.u32 %v24032_v52, 16 }
 0x261   : > { %20532 = vmatmul.mubr.msk.bf16.gmra.mrb[188].mxu1 %vm440_vm4, %v4204_v44 }
 0x262   : > { %20567 = vmatprep.mubr.msk.bf16.mxu1 %vm440_vm4, %v4577_v19  ;;  %v5222_v19 = vshrl.u32 %v24037_v15, 16 }
 0x264   : > { %20592 = vmatmul.mubr.msk.bf16.vlgmr.msra.gmra.mrb[80].mxu0 %vm440_vm4, %v23763_v33  ;;  %v22294_v33 = vld [vmem:[%s27807_s3 + $0x178] sm:$0xff]  }
 0x265   : > { %20595 = vmatprep.mubr.msk.bf16.mxu0 %vm440_vm4, %v23788_v28  ;;  %20632 = vmatpush3.bf16.msra.mxu0 %v22289_v27  ;;  %v22290_v28 = vld [vmem:[%s27807_s3 + $0x150] sm:$0xff]   ;;  %v24007_v27 = vld [vmem:[#allocation2 + $0x28] sm:$0xff] }
 0x266   : > { %20633 = vmatprep.subr.bf16.mxu0 %v22291_v32  ;;  %v5204_v58 = vshrl.u32 %v24007_v27, 16  ;;  %v5207_v17 = vshll.u32 %v24007_v27, 16  ;;  %v4994_v18 = vrot.slane %v24007_v27, 3 }
 0x268   : > { %v5206_v54 = vrot.slane %v5204_v58, 3  ;;  %v5209_v63 = vrot.slane %v5207_v17, 4 }
 0x269   : > { %20568 = vmatmul.mubr.msk.bf16.vlgmr.msra.gmra.mrb[192].mxu1 %vm440_vm4, %v23620_v3  ;;  %20634 = vmatpush3.bf16.msra.mxu0 %v22291_v32  ;;  %v23962_v3 = vld [vmem:[#allocation2 + $0x18] sm:$0xff]  ;;  %v5225_v32 = vshll.u32 %v24037_v15, 16 }
 0x26a   : > { %20608 = vmatpush3.bf16.msra.mxu1 %v22287_v49  ;;  %20571 = vmatprep.mubr.msk.bf16.mxu1 %vm440_vm4, %v23652_v57  ;;  %v5178_v57 = vshrl.u32 %v23958_v10, 16  ;;  %v5186_v61 = vshrl.u32 %v23962_v3, 16  ;;  %v5189_v22 = vshll.u32 %v23962_v3, 16  ;;  %v4990_v35 = vrot.slane %v23962_v3, 3 }
 0x26b   : > { %20609 = vmatprep.subr.bf16.mxu1 %v22288_v13  ;;  %20635 = vmatprep.subr.bf16.mxu0 %v22292_v59  ;;  %v5210_v44 = vor.u32 %v5209_v63, %v5206_v54  ;;  %v5218_v10 = vrot.slane %v5216_v21, 4 }
 0x26c   : > { %20596 = vmatmul.mubr.msk.bf16.gmra.mrb[84].mxu0 %vm440_vm4, %v23796_v20  ;;  %v23972_v20 = vld [vmem:[%s27807_s3 + $0x1a0] sm:$0xff]   ;;  %v5180_v24 = vrot.slane %v5178_v57, 3 }
 0x26d   : > { %20599 = vmatprep.mubr.msk.bf16.mxu0 %vm440_vm4, %v23818_v36  ;;  %20636 = vmatpush3.bf16.msra.mxu0 %v22292_v59  ;;  %v23975_v36 = vrot.slane %v23779_v60, 5  ;;  %v5191_v60 = vrot.slane %v5189_v22, 4  ;;  %v22299_v59 = vld [vmem:[%s27807_s3 + $0x1a8] sm:$0xff]  }
 0x26e   : > { %20610 = vmatpush3.bf16.msra.mxu1 %v22288_v13  ;;  %20637 = vmatprep.subr.bf16.mxu0 %v22294_v33  ;;  %v5184_v4 = vor.u32 %v5183_v50, %v5180_v24  ;;  %v4991_v13 = vsel %vm3149_vm7, %v4989_v5, %v4990_v35  ;;  %v22296_v50 = vld [vmem:[%s27807_s3 + $0x188] sm:$0xff]  }
 0x26f   : > { %20611 = vmatprep.subr.bf16.mxu1 %v22290_v28 }
 0x271   : > { %20572 = vmatmul.mubr.msk.bf16.gmra.mrb[196].mxu1 %vm440_vm4, %v23664_v26  ;;  %20638 = vmatpush3.bf16.msra.mxu0 %v22294_v33  ;;  %v4798_v26 = vsel %vm3731_vm10, %v23811_v31, %v23975_v36  ;;  %v5195_v31 = vshrl.u32 %v24002_v11, 16 }
 0x272   : > { %20575 = vmatprep.mubr.msk.bf16.mxu1 %vm440_vm4, %v23697_v43  ;;  %20612 = vmatpush3.bf16.msra.mxu1 %v22290_v28  ;;  %v5188_v43 = vrot.slane %v5186_v61, 3  ;;  %v5215_v28 = vrot.slane %v5213_v42, 3 }
 0x273   : > { %20613 = vmatprep.subr.bf16.mxu1 %v22293_v1  ;;  %20679 = vmatprep.subr.bf16.mxu0 %v23972_v20  ;;  %v5197_v56 = vrot.slane %v5195_v31, 3 }
 0x274   : > { %20600 = vmatmul.mubr.msk.bf16.gmra.mrb[88].mxu0 %vm440_vm4, %v23825_v14  ;;  %v4799_v14 = vrot.slane %v4556_v51, 5  ;;  %v5192_v49 = vor.u32 %v5191_v60, %v5188_v43  ;;  %v5227_v51 = vrot.slane %v5225_v32, 4  ;;  %v5219_v24 = vor.u32 %v5218_v10, %v5215_v28  ;;  %v22303_v28 = vld [vmem:[%s27807_s3 + $0x1c0] sm:$0xff]  }
 0x275   : > { %20603 = vmatprep.mubr.msk.bf16.mxu0 %vm440_vm4, %v4798_v26  ;;  %v24039_v16 = vor.u32 %v5200_v30, %v5197_v56  ;;  %v4993_v26 = vsel %vm3149_vm7, %v4990_v35, %v24065_v38  ;;  %v5240_v60 = vshrl.u32 %v24074_v53, 16  ;;  %v5418_v56 = vld [vmem:[#allocation2 + $0x10] sm:$0xf0]  ;;  %v24122_v30 = vld [vmem:[#allocation2 + $0x50] sm:$0xf] }
 0x276   : > { %20614 = vmatpush3.bf16.msra.mxu1 %v22293_v1  ;;  %v4800_v40 = vsel %vm3731_vm10, %v23975_v36, %v4799_v14  ;;  %v5193_v9 = vsel %vm871_vm2, %v5184_v4, %v5192_v49  ;;  %v5224_v1 = vrot.slane %v5222_v19, 3  ;;  %v22302_v14 = vld [vmem:[%s27807_s3 + $0x1b8] sm:$0xff]   ;;  %v24101_v4 = vsel %vm871_vm2, %v5210_v44, %v5219_v24 }
 0x277   : > { %20655 = vmatprep.subr.bf16.mxu1 %v23990_v39  ;;  %v5202_v33 = vsel %vm871_vm2, %v5192_v49, %v24039_v16  ;;  %v24062_v57 = vsel %vm871_vm2, %v24039_v16, %v5210_v44  ;;  %v4996_v49 = vrot.slane %v24032_v52, 3  ;;  %v5619_v5 = vshrl.u32 %v5418_v56, 16 }
 0x278   : > { %v24085_v43 = vor.u32 %v5227_v51, %v5224_v1  ;;  %v5622_v35 = vshll.u32 %v5418_v56, 16  ;;  %v5249_v44 = vshrl.u32 %v24122_v30, 16 }
 0x279   : > { %20576 = vmatmul.mubr.msk.bf16.gmra.mrb[200].mxu1 %vm440_vm4, %v23706_v41  ;;  %v4609_v41 = vor.u32 %v4608_v6, %v4605_v45  ;;  %v22298_v45 = vld [vmem:[%s27807_s3 + $0x190] sm:$0xff]   ;;  %v5242_v6 = vrot.slane %v5240_v60, 3  ;;  %v24133_v54 = vsel %vm3149_vm7, %v4994_v18, %v4996_v49  ;;  %v5621_v1 = vrot.slane %v5619_v5, 4 }
 0x27a   : > { %20579 = vmatprep.mubr.msk.bf16.mxu1 %vm440_vm4, %v4601_v37  ;;  %v5245_v37 = vrot.slane %v5243_v23, 4  ;;  %v5624_v51 = vrot.slane %v5622_v35, 5  ;;  %v5635_v5 = vrot.slane %v5207_v17, 5  ;;  %v5430_v35 = vrot.slane %v5418_v56, 4 }
 0x27b   : > { %v4610_v47 = vsel %vm3512_vm9, %v24005_v34, %v4609_v41  ;;  %v24130_v41 = vld [vmem:[%s27807_s3 + $0x1e0] sm:$0xff]   ;;  %v5638_v56 = vrot.slane %v5213_v42, 4  ;;  %v5435_v42 = vrot.slane %v24007_v27, 4 }
 0x27c   : > { %20604 = vmatmul.mubr.msk.bf16.gmra.mrb[92].mxu0 %vm440_vm4, %v4800_v40  ;;  %v24120_v40 = vrot.slane %v24037_v15, 3  ;;  %v24135_v63 = vor.u32 %v5245_v37, %v5242_v6  ;;  %v5630_v6 = vrot.slane %v5195_v31, 4  ;;  %v5631_v37 = vrot.slane %v5198_v55, 5 }
 0x27d   : > { %20639 = vmatprep.mubr.msk.bf16.mxu0 %vm440_vm4, %v5193_v9  ;;  %v22301_v9 = vld [vmem:[%s27807_s3 + $0x198] sm:$0xff]  }
 0x27e   : > { %v5247_v10 = vsel %vm871_vm2, %v23911_v46, %v24135_v63  ;;  %v24188_v31 = vor.u32 %v5631_v37, %v5630_v6  ;;  %v24260_v6 = vrot.slane %v24037_v15, 4  ;;  %v24262_v37 = vld [vmem:[#allocation2 + $0x50] sm:$0x1f] }
 0x281   : > { %20580 = vmatmul.mubr.msk.bf16.gmra.mrb[204].mxu1 %vm440_vm4, %v4610_v47  ;;  %v24141_v47 = vsel %vm3149_vm7, %v4996_v49, %v24120_v40  ;;  %v4970_v49 = vld [vmem:[#allocation2 + $0x50] sm:$0x7] }
 0x282   : > { %20615 = vmatprep.mubr.msk.bf16.mxu1 %vm440_vm4, %v4991_v13  ;;  %v5252_v13 = vshll.u32 %v24122_v30, 16 }
 0x284   : > { %20640 = vmatmul.mubr.msk.bf16.vlgmr.msra.gmra.mrb[96].mxu0 %vm440_vm4, %v5202_v33  ;;  %v5626_v33 = vrot.slane %v5186_v61, 4  ;;  %v24164_v61 = vrot.slane %v24074_v53, 3 }
 0x285   : > { %20643 = vmatprep.mubr.msk.bf16.mxu0 %vm440_vm4, %v24062_v57  ;;  %20680 = vmatpush3.bf16.msra.mxu0 %v23972_v20  ;;  %v24092_v20 = vsel %vm3149_vm7, %v24065_v38, %v4994_v18  ;;  %v5627_v18 = vrot.slane %v5189_v22, 5 }
 0x286   : > { %20681 = vmatprep.subr.bf16.mxu0 %v22299_v59  ;;  %v5003_v22 = vsel %vm3149_vm7, %v23791_v2, %v24164_v61 }
 0x289   : > { %20616 = vmatmul.mubr.msk.bf16.vlgmr.msra.gmra.mrb[208].mxu1 %vm440_vm4, %v4993_v26  ;;  %20682 = vmatpush3.bf16.msra.mxu0 %v22299_v59  ;;  %v5238_v59 = vsel %vm871_vm2, %v24085_v43, %v23911_v46  ;;  %v5625_v26 = vor.u32 %v5624_v51, %v5621_v1  ;;  %v5628_v46 = vor.u32 %v5627_v18, %v5626_v33  ;;  %v24210_v51 = vrot.slane %v24002_v11, 4 }
 0x28a   : > { %20656 = vmatpush3.bf16.msra.mxu1 %v23990_v39  ;;  %20619 = vmatprep.mubr.msk.bf16.mxu1 %vm440_vm4, %v24092_v20  ;;  %v24110_v39 = vsel %vm871_vm2, %v5219_v24, %v24085_v43  ;;  %v5251_v24 = vrot.slane %v5249_v44, 3  ;;  %v5431_v44 = vrot.slane %v23962_v3, 4  ;;  %v5642_v18 = vrot.slane %v5222_v19, 4  ;;  %v22308_v19 = vld [vmem:[%s27807_s3 + $0x1f0] sm:$0xff]  }
 0x28b   : > { %20657 = vmatprep.subr.bf16.mxu1 %v22296_v50  ;;  %20683 = vmatprep.subr.bf16.mxu0 %v22300_v48  ;;  %v5633_v17 = vsel %vm3512_vm9, %v5628_v46, %v24188_v31 }
 0x28c   : > { %20644 = vmatmul.mubr.msk.bf16.gmra.mrb[100].mxu0 %vm440_vm4, %v24101_v4  ;;  %v5432_v33 = vsel %vm2854_vm8, %v5430_v35, %v5431_v44  ;;  %v5655_v35 = vshrl.u32 %v24262_v37, 16 }
 0x28d   : > { %20647 = vmatprep.mubr.msk.bf16.mxu0 %vm440_vm4, %v24110_v39  ;;  %20684 = vmatpush3.bf16.msra.mxu0 %v22300_v48  ;;  %v5001_v48 = vsel %vm3149_vm7, %v24120_v40, %v23791_v2  ;;  %v5634_v2 = vrot.slane %v5204_v58, 4  ;;  %v22307_v58 = vld [vmem:[%s27807_s3 + $0x1e8] sm:$0xff]  }
 0x28e   : > { %20658 = vmatpush3.bf16.msra.mxu1 %v22296_v50  ;;  %20685 = vmatprep.subr.bf16.mxu0 %v22302_v14  ;;  %v5254_v50 = vrot.slane %v5252_v13, 4  ;;  %v5004_v13 = vrot.slane %v4970_v49, 3  ;;  %v5651_v49 = vrot.slane %v5243_v23, 5 }
 0x28f   : > { %20659 = vmatprep.subr.bf16.mxu1 %v22298_v45 }
 0x290   : > { %v5005_v55 = vsel %vm3149_vm7, %v24164_v61, %v5004_v13 }
 0x291   : > { %20620 = vmatmul.mubr.msk.bf16.gmra.mrb[212].mxu1 %vm440_vm4, %v24133_v54  ;;  %20686 = vmatpush3.bf16.msra.mxu0 %v22302_v14  ;;  %v5255_v14 = vor.u32 %v5254_v50, %v5251_v24  ;;  %v5643_v24 = vrot.slane %v5225_v32, 5  ;;  %v22304_v50 = vld [vmem:[%s27807_s3 + $0x1c8] sm:$0xff]   ;;  %v5434_v32 = vsel %vm2854_vm8, %v5431_v44, %v24210_v51  ;;  %v5658_v44 = vshll.u32 %v24262_v37, 16 }
 0x292   : > { %20623 = vmatprep.mubr.msk.bf16.mxu1 %vm440_vm4, %v24141_v47  ;;  %20660 = vmatpush3.bf16.msra.mxu1 %v22298_v45 }
 0x293   : > { %20661 = vmatprep.subr.bf16.mxu1 %v22301_v9  ;;  %20727 = vmatprep.subr.bf16.mxu0 %v24130_v41  ;;  %v5256_v45 = vsel %vm871_vm2, %v24135_v63, %v5255_v14  ;;  %v5437_v14 = vrot.slane %v24032_v52, 4 }
 0x294   : > { %20648 = vmatmul.mubr.msk.bf16.gmra.mrb[104].mxu0 %vm440_vm4, %v5238_v59  ;;  %v5636_v59 = vor.u32 %v5635_v5, %v5634_v2 }
 0x295   : > { %20651 = vmatprep.mubr.msk.bf16.mxu0 %vm440_vm4, %v5247_v10  ;;  %v5639_v10 = vrot.slane %v5216_v21, 5  ;;  %v24273_v23 = vsel %vm2854_vm8, %v5435_v42, %v5437_v14  ;;  %v24281_v5 = vsel %vm2854_vm8, %v5437_v14, %v24260_v6 }
 0x296   : > { %20662 = vmatpush3.bf16.msra.mxu1 %v22301_v9  ;;  %v5629_v9 = vsel %vm3512_vm9, %v5625_v26, %v5628_v46  ;;  %v24207_v1 = vsel %vm3512_vm9, %v24188_v31, %v5636_v59  ;;  %v22310_v26 = vld [vmem:[%s27807_s3 + $0x1f8] sm:$0xff]  }
 0x297   : > { %20703 = vmatprep.subr.bf16.mxu1 %v22303_v28  ;;  %v5640_v21 = vor.u32 %v5639_v10, %v5638_v56 }
 0x299   : > { %20624 = vmatmul.mubr.msk.bf16.gmra.mrb[216].mxu1 %vm440_vm4, %v5001_v48  ;;  %v24228_v48 = vor.u32 %v5643_v24, %v5642_v18  ;;  %v24241_v46 = vsel %vm3512_vm9, %v5636_v59, %v5640_v21  ;;  %v24304_v18 = vld [vmem:[#allocation2 + $0x18] sm:$0xf8] }
 0x29a   : > { %20627 = vmatprep.mubr.msk.bf16.mxu1 %vm440_vm4, %v5003_v22  ;;  %v22306_v22 = vld [vmem:[%s27807_s3 + $0x1d0] sm:$0xff]  }
 0x29b   : > { %v5649_v13 = vsel %vm3512_vm9, %v24228_v48, %v24005_v34 }
 0x29c   : > { %20652 = vmatmul.mubr.msk.bf16.gmra.mrb[108].mxu0 %vm440_vm4, %v5256_v45  ;;  %v5650_v45 = vrot.slane %v5240_v60, 4  ;;  %v24270_v60 = vld [vmem:[%s27807_s3 + $0x220] sm:$0xff]  }
 0x29d   : > { %20687 = vmatprep.mubr.msk.bf16.mxu0 %vm440_vm4, %v5629_v9  ;;  %v22309_v9 = vld [vmem:[%s27807_s3 + $0x1d8] sm:$0xff]  }
 0x29e   : > { %v24275_v2 = vor.u32 %v5651_v49, %v5650_v45 }
 0x2a0   : > { %v5653_v59 = vsel %vm3512_vm9, %v24005_v34, %v24275_v2 }
 0x2a1   : > { %20628 = vmatmul.mubr.msk.bf16.gmra.mrb[220].mxu1 %vm440_vm4, %v5005_v55  ;;  %v24293_v55 = vld [vmem:[%s27807_s3 + $0x200] sm:$0xff]  }
 0x2a2   : > { %20663 = vmatprep.mubr.msk.bf16.mxu1 %vm440_vm4, %v5432_v33  ;;  %v24302_v33 = vrot.slane %v24074_v53, 4 }
 0x2a4   : > { %20688 = vmatmul.mubr.msk.bf16.vlgmr.msra.gmra.mrb[112].mxu0 %vm440_vm4, %v5633_v17  ;;  %v5660_v17 = vrot.slane %v5658_v44, 5 }
 0x2a5   : > { %20691 = vmatprep.mubr.msk.bf16.mxu0 %vm440_vm4, %v24207_v1  ;;  %20728 = vmatpush3.bf16.msra.mxu0 %v24130_v41  ;;  %v24233_v41 = vsel %vm2854_vm8, %v24210_v51, %v5435_v42  ;;  %v5442_v42 = vsel %vm2854_vm8, %v24260_v6, %v23886_v0 }
 0x2a6   : > { %20729 = vmatprep.subr.bf16.mxu0 %v22307_v58 }
 0x2a9   : > { %20664 = vmatmul.mubr.msk.bf16.vlgmr.msra.gmra.mrb[224].mxu1 %vm440_vm4, %v5434_v32  ;;  %20730 = vmatpush3.bf16.msra.mxu0 %v22307_v58  ;;  %v5657_v58 = vrot.slane %v5655_v35, 4  ;;  %v5824_v32 = vld [vmem:[#allocation2 + $0x10] sm:$0xe0] }
 0x2aa   : > { %20704 = vmatpush3.bf16.msra.mxu1 %v22303_v28  ;;  %20667 = vmatprep.mubr.msk.bf16.mxu1 %vm440_vm4, %v24233_v41  ;;  %v24250_v28 = vsel %vm3512_vm9, %v5640_v21, %v24228_v48  ;;  %v5444_v21 = vsel %vm2854_vm8, %v23886_v0, %v24302_v33  ;;  %v5836_v0 = vrot.slane %v5824_v32, 5 }
 0x2ab   : > { %20705 = vmatprep.subr.bf16.mxu1 %v22304_v50  ;;  %20731 = vmatprep.subr.bf16.mxu0 %v22308_v19 }
 0x2ac   : > { %20692 = vmatmul.mubr.msk.bf16.gmra.mrb[116].mxu0 %vm440_vm4, %v24241_v46 }
 0x2ad   : > { %20695 = vmatprep.mubr.msk.bf16.mxu0 %vm440_vm4, %v24250_v28  ;;  %20732 = vmatpush3.bf16.msra.mxu0 %v22308_v19  ;;  %v6041_v19 = vrot.slane %v24304_v18, 3 }
 0x2ae   : > { %20706 = vmatpush3.bf16.msra.mxu1 %v22304_v50  ;;  %20733 = vmatprep.subr.bf16.mxu0 %v22310_v26  ;;  %v5661_v50 = vor.u32 %v5660_v17, %v5657_v58 }
 0x2af   : > { %20707 = vmatprep.subr.bf16.mxu1 %v22306_v22  ;;  %v6043_v14 = vsel %vm3149_vm7, %v6041_v19, %v24065_v38  ;;  %v24346_v19 = vld [vmem:[#allocation2 + $0x40] sm:$0xff] }
 0x2b1   : > { %20668 = vmatmul.mubr.msk.bf16.gmra.mrb[228].mxu1 %vm440_vm4, %v24273_v23  ;;  %20734 = vmatpush3.bf16.msra.mxu0 %v22310_v26  ;;  %v5662_v26 = vsel %vm3512_vm9, %v24275_v2, %v5661_v50  ;;  %v5841_v50 = vrot.slane %v24007_v27, 5 }
 0x2b2   : > { %20671 = vmatprep.mubr.msk.bf16.mxu1 %vm440_vm4, %v24281_v5  ;;  %20708 = vmatpush3.bf16.msra.mxu1 %v22306_v22 }
 0x2b3   : > { %20709 = vmatprep.subr.bf16.mxu1 %v22309_v9  ;;  %20775 = vmatprep.subr.bf16.mxu0 %v24270_v60 }
 0x2b4   : > { %20696 = vmatmul.mubr.msk.bf16.gmra.mrb[120].mxu0 %vm440_vm4, %v5649_v13  ;;  %v5445_v13 = vrot.slane %v24122_v30, 4  ;;  %v24339_v30 = vrot.slane %v24002_v11, 5  ;;  %v22312_v11 = vld [vmem:[%s27807_s3 + $0x208] sm:$0xff]  }
 0x2b5   : > { %20699 = vmatprep.mubr.msk.bf16.mxu0 %vm440_vm4, %v5653_v59 }
 0x2b6   : > { %v20401_v56 = vpop.f32.mrb[16].mxu0  ;;  %20710 = vmatpush3.bf16.msra.mxu1 %v22309_v9  ;;  %v5837_v9 = vrot.slane %v23962_v3, 5  ;;  %v22315_v3 = vld [vmem:[%s27807_s3 + $0x228] sm:$0xff]  }
 0x2b7   : > { %v3249_v10 = vpop.f32.mrb[17].mxu0  ;;  %20751 = vmatprep.subr.bf16.mxu1 %v24293_v55 }
 0x2b8   : > { %v20402_v24 = vpop.f32.mrb[18].mxu0  ;;  %v5840_v27 = vsel %vm3731_vm10, %v5837_v9, %v24339_v30 }
 0x2b9   : > { %20672 = vmatmul.mubr.msk.bf16.gmra.mrb[232].mxu1 %vm440_vm4, %v5442_v42  ;;  %v3252_v34 = vpop.f32.mrb[19].mxu0  ;;  %v5446_v24 = vsel %vm2854_vm8, %v24302_v33, %v5445_v13  ;;  %v22314_v13 = vld [vmem:[%s27807_s3 + $0x210] sm:$0xff]  }
 0x2ba   : > { %20675 = vmatprep.mubr.msk.bf16.mxu1 %vm440_vm4, %v5444_v21 }
 0x2bc   : > { %v20377_v22 = vpop.f32.mrb[128].mxu1  ;;  %20700 = vmatmul.mubr.msk.bf16.gmra.mrb[124].mxu0 %vm440_vm4, %v5662_v26 }
 0x2bd   : > { %v24321_v45 = vadd.f32 %v20401_v56, %v20377_v22  ;;  %v3077_v49 = vpop.f32.mrb[129].mxu1  ;;  %20735 = vmatprep.mubr.msk.bf16.mxu0 %vm440_vm4, %v6043_v14  ;;  %v5838_v56 = vsel %vm3731_vm10, %v5836_v0, %v5837_v9  ;;  %v24365_v0 = vsel %vm3731_vm10, %v24339_v30, %v5841_v50  ;;  %v22318_v9 = vld [vmem:[%s27807_s3 + $0x238] sm:$0xff]  }
 0x2be   : > { %v24325_v35 = vadd.f32 %v3249_v10, %v3077_v49  ;;  %v20378_v44 = vpop.f32.mrb[130].mxu1 }
 0x2bf   : > { %v3080_v59 = vpop.f32.mrb[131].mxu1  ;;  %v20405_v58 = vpop.f32.mrb[20].mxu0 }
 0x2c0   : > { %v3265_v17 = vpop.f32.mrb[21].mxu0 }
 0x2c1   : > { %20676 = vmatmul.mubr.msk.bf16.gmra.mrb[236].mxu1 %vm440_vm4, %v5446_v24  ;;  %v20406_v38 = vpop.f32.mrb[22].mxu0 }
 0x2c2   : > { %20711 = vmatprep.mubr.msk.bf16.mxu1 %vm440_vm4, %v5838_v56  ;;  %v3268_v42 = vpop.f32.mrb[23].mxu0  ;;  %v24386_v38 = vrot.slane %v24037_v15, 5 }
 0x2c4   : > { %v20381_v10 = vpop.f32.mrb[132].mxu1  ;;  %20736 = vmatmul.mubr.msk.bf16.vlgmr.msra.gmra.mrb[128].mxu0 %vm440_vm4, %v24092_v20 }
 0x2c5   : > { %v24341_v34 = vadd.f32 %v20405_v58, %v20381_v10  ;;  %v3093_v21 = vpop.f32.mrb[133].mxu1  ;;  %20739 = vmatprep.mubr.msk.bf16.mxu0 %vm440_vm4, %v24133_v54  ;;  %20776 = vmatpush3.bf16.msra.mxu0 %v24270_v60  ;;  %v22316_v54 = vld [vmem:[%s27807_s3 + $0x230] sm:$0xff]   ;;  %v24360_v60 = vrot.slane %v24346_v19, 3  ;;  %v5843_v58 = vrot.slane %v24032_v52, 5  ;;  %v22317_v52 = vld [vmem:[%s27807_s3 + $0x218] sm:$0xff]  }
 0x2c6   : > { %v24349_v32 = vadd.f32 %v3265_v17, %v3093_v21  ;;  %v20382_v26 = vpop.f32.mrb[134].mxu1  ;;  %20777 = vmatprep.subr.bf16.mxu0 %v22315_v3 }
 0x2c7   : > { %v3096_v20 = vpop.f32.mrb[135].mxu1  ;;  %v20409_v22 = vpop.f32.mrb[24].mxu0  ;;  %v24399_v10 = vsel %vm3731_vm10, %v5841_v50, %v5843_v58  ;;  %v24405_v26 = vsel %vm3731_vm10, %v5843_v58, %v24386_v38  ;;  %v6053_v50 = vsel %vm3149_vm7, %v24360_v60, %v24164_v61 }
 0x2c8   : > { %v3281_v14 = vpop.f32.mrb[25].mxu0 }
 0x2c9   : > { %20712 = vmatmul.mubr.msk.bf16.vlgmr.msra.gmra.mrb[240].mxu1 %vm440_vm4, %v5840_v27  ;;  %v20410_v49 = vpop.f32.mrb[26].mxu0  ;;  %20778 = vmatpush3.bf16.msra.mxu0 %v22315_v3 }
 0x2ca   : > { %20752 = vmatpush3.bf16.msra.mxu1 %v24293_v55  ;;  %20715 = vmatprep.mubr.msk.bf16.mxu1 %vm440_vm4, %v24365_v0  ;;  %v3284_v44 = vpop.f32.mrb[27].mxu0  ;;  %v6051_v55 = vsel %vm3149_vm7, %v24120_v40, %v24360_v60  ;;  %v24396_v40 = vld [vmem:[%s27807_s3 + $0x260] sm:$0xff]  }
 0x2cb   : > { %20753 = vmatprep.subr.bf16.mxu1 %v22312_v11  ;;  %20779 = vmatprep.subr.bf16.mxu0 %v22316_v54 }
 0x2cc   : > { %v20385_v59 = vpop.f32.mrb[136].mxu1  ;;  %20740 = vmatmul.mubr.msk.bf16.gmra.mrb[132].mxu0 %vm440_vm4, %v24141_v47 }
 0x2cd   : > { %v24382_v17 = vadd.f32 %v20409_v22, %v20385_v59  ;;  %v3109_v24 = vpop.f32.mrb[137].mxu1  ;;  %20743 = vmatprep.mubr.msk.bf16.mxu0 %vm440_vm4, %v6051_v55  ;;  %20780 = vmatpush3.bf16.msra.mxu0 %v22316_v54  ;;  %v24410_v22 = vrot.slane %v23862_v25, 3  ;;  %v24418_v54 = vld [vmem:[%s27807_s3 + $0x240] sm:$0xff]  }
 0x2ce   : > { %v24388_v56 = vadd.f32 %v3281_v14, %v3109_v24  ;;  %v20386_v42 = vpop.f32.mrb[138].mxu1  ;;  %20754 = vmatpush3.bf16.msra.mxu1 %v22312_v11  ;;  %20781 = vmatprep.subr.bf16.mxu0 %v22318_v9  ;;  %v6022_v11 = vld [vmem:[#allocation2 + $0x58] sm:$0x7] }
 0x2cf   : > { %v3112_v47 = vpop.f32.mrb[139].mxu1  ;;  %v20413_v3 = vpop.f32.mrb[28].mxu0  ;;  %20755 = vmatprep.subr.bf16.mxu1 %v22314_v13  ;;  %v6055_v27 = vsel %vm3149_vm7, %v24164_v61, %v24410_v22  ;;  %v6056_v55 = vrot.slane %v6022_v11, 3  ;;  %v24433_v42 = vld [vmem:[#allocation2 + $0x18] sm:$0xf0]  ;;  %v6233_v61 = vshll.u32 %v24304_v18, 16 }
 0x2d0   : > { %v3297_v15 = vpop.f32.mrb[29].mxu0  ;;  %v6230_v47 = vshrl.u32 %v24304_v18, 16 }
 0x2d1   : > { %20716 = vmatmul.mubr.msk.bf16.gmra.mrb[244].mxu1 %vm440_vm4, %v24399_v10  ;;  %v20414_v21 = vpop.f32.mrb[30].mxu0  ;;  %20782 = vmatpush3.bf16.msra.mxu0 %v22318_v9  ;;  %v24429_v9 = vrot.slane %v24074_v53, 5  ;;  %v5848_v53 = vsel %vm3731_vm10, %v24386_v38, %v23975_v36  ;;  %v6057_v18 = vsel %vm3149_vm7, %v24410_v22, %v6056_v55  ;;  %v6235_v11 = vrot.slane %v6233_v61, 4 }
 0x2d2   : > { %20719 = vmatprep.mubr.msk.bf16.mxu1 %vm440_vm4, %v24405_v26  ;;  %v3300_v20 = vpop.f32.mrb[31].mxu0  ;;  %20756 = vmatpush3.bf16.msra.mxu1 %v22314_v13 }
 0x2d3   : > { %20757 = vmatprep.subr.bf16.mxu1 %v22317_v52  ;;  %20823 = vmatprep.subr.bf16.mxu0 %v24396_v40  ;;  %v6482_v20 = vrot.slane %v24433_v42, 4 }
 0x2d4   : > { %v20389_v14 = vpop.f32.mrb[140].mxu1  ;;  %20744 = vmatmul.mubr.msk.bf16.gmra.mrb[136].mxu0 %vm440_vm4, %v6053_v50  ;;  %v6232_v50 = vrot.slane %v6230_v47, 3 }
 0x2d5   : > { %v24425_v49 = vadd.f32 %v20413_v3, %v20389_v14  ;;  %v3125_v44 = vpop.f32.mrb[141].mxu1  ;;  %20747 = vmatprep.mubr.msk.bf16.mxu0 %vm440_vm4, %v6055_v27  ;;  %v6484_v27 = vsel %vm2854_vm8, %v6482_v20, %v24210_v51 }
 0x2d6   : > { %v24431_v13 = vadd.f32 %v3297_v15, %v3125_v44  ;;  %v20390_v59 = vpop.f32.mrb[142].mxu1  ;;  %20758 = vmatpush3.bf16.msra.mxu1 %v22317_v52  ;;  %v5850_v52 = vsel %vm3731_vm10, %v23975_v36, %v24429_v9  ;;  %v6236_v47 = vor.u32 %v6235_v11, %v6232_v50  ;;  %v6274_v50 = vshrl.u32 %v24346_v19, 16 }
 0x2d7   : > { %v3128_v58 = vpop.f32.mrb[143].mxu1  ;;  %v20449_v24 = vpop.f32.mrb[32].mxu0  ;;  %20799 = vmatprep.subr.bf16.mxu1 %v24418_v54 }
 0x2d8   : > { %v3640_v3 = vpop.f32.mrb[33].mxu0 }
 0x2d9   : > { %20720 = vmatmul.mubr.msk.bf16.gmra.mrb[248].mxu1 %vm440_vm4, %v5848_v53  ;;  %v20450_v15 = vpop.f32.mrb[34].mxu0  ;;  %v5851_v53 = vrot.slane %v24262_v37, 5 }
 0x2da   : > { %20723 = vmatprep.mubr.msk.bf16.mxu1 %vm440_vm4, %v5850_v52  ;;  %v3643_v21 = vpop.f32.mrb[35].mxu0 }
 0x2db   : > { %v5852_v21 = vsel %vm3731_vm10, %v24429_v9, %v5851_v53 }
 0x2dc   : > { %v20425_v14 = vpop.f32.mrb[144].mxu1  ;;  %20748 = vmatmul.mubr.msk.bf16.gmra.mrb[140].mxu0 %vm440_vm4, %v6057_v18 }
 0x2dd   : > { %v3488_v44 = vadd.f32 %v20425_v14, %v24321_v45  ;;  %v3423_v59 = vpop.f32.mrb[145].mxu1  ;;  %20783 = vmatprep.mubr.msk.bf16.mxu0 %vm440_vm4, %v6484_v27 }
 0x2de   : > { %v3486_v36 = vadd.f32 %v3423_v59, %v24325_v35  ;;  %v20426_v58 = vpop.f32.mrb[146].mxu1  ;;  %v6245_v35 = vsel %vm871_vm2, %v6236_v47, %v24039_v16  ;;  %v6277_v16 = vshll.u32 %v24346_v19, 16 }
 0x2df   : > { %v3426_v15 = vpop.f32.mrb[147].mxu1  ;;  %v20453_v55 = vpop.f32.mrb[36].mxu0  ;;  %v24456_v61 = vadd.f32 %v20449_v24, %v3488_v44  ;;  %v22323_v24 = vld [vmem:[%s27807_s3 + $0x268] sm:$0xff]   ;;  %v6276_v58 = vrot.slane %v6274_v50, 3 }
 0x2e0   : > { %v3656_v52 = vpop.f32.mrb[37].mxu0  ;;  %v24460_v51 = vadd.f32 %v3640_v3, %v3486_v36  ;;  %v24487_v36 = vrot.slane %v24346_v19, 4  ;;  %v6279_v53 = vrot.slane %v6277_v16, 4 }
 0x2e1   : > { %20724 = vmatmul.mubr.msk.bf16.gmra.mrb[252].mxu1 %vm440_vm4, %v5852_v21  ;;  %v20454_v45 = vpop.f32.mrb[38].mxu0 }
 0x2e2   : > { %20759 = vmatprep.mubr.msk.bf16.mxu1 %vm440_vm4, %v6245_v35  ;;  %v3659_v37 = vpop.f32.mrb[39].mxu0  ;;  %v24513_v21 = vor.u32 %v6279_v53, %v6276_v58 }
 0x2e4   : > { %v20429_v20 = vpop.f32.mrb[148].mxu1  ;;  %20784 = vmatmul.mubr.msk.bf16.vlgmr.msra.gmra.mrb[144].mxu0 %vm440_vm4, %v24233_v41  ;;  %v22320_v41 = vld [vmem:[%s27807_s3 + $0x248] sm:$0xff]  }
 0x2e5   : > { %v3492_v3 = vadd.f32 %v20429_v20, %v24341_v34  ;;  %v3439_v18 = vpop.f32.mrb[149].mxu1  ;;  %20787 = vmatprep.mubr.msk.bf16.mxu0 %vm440_vm4, %v24273_v23  ;;  %20824 = vmatpush3.bf16.msra.mxu0 %v24396_v40  ;;  %v22324_v23 = vld [vmem:[%s27807_s3 + $0x270] sm:$0xff]  }
 0x2e6   : > { %v3490_v11 = vadd.f32 %v3439_v18, %v24349_v32  ;;  %v20430_v14 = vpop.f32.mrb[150].mxu1  ;;  %20825 = vmatprep.subr.bf16.mxu0 %v22323_v24 }
 0x2e7   : > { %v3442_v27 = vpop.f32.mrb[151].mxu1  ;;  %v20457_v44 = vpop.f32.mrb[40].mxu0  ;;  %v24484_v34 = vadd.f32 %v20453_v55, %v3492_v3  ;;  %v22326_v55 = vld [vmem:[%s27807_s3 + $0x278] sm:$0xff]   ;;  %v6281_v14 = vsel %vm871_vm2, %v24085_v43, %v24513_v21  ;;  %v24548_v43 = vld [vmem:[%s27807_s3 + $0x280] sm:$0xff]  }
 0x2e8   : > { %v3672_v59 = vpop.f32.mrb[41].mxu0  ;;  %v24489_v40 = vadd.f32 %v3656_v52, %v3490_v11  ;;  %v6219_v27 = vld [vmem:[#allocation2 + $0x58] sm:$0xf] }
 0x2e9   : > { %20760 = vmatmul.mubr.msk.bf16.vlgmr.msra.gmra.mrb[0].mxu1 %vm440_vm4, %v24062_v57  ;;  %v20458_v32 = vpop.f32.mrb[42].mxu0  ;;  %20826 = vmatpush3.bf16.msra.mxu0 %v22323_v24  ;;  %v22322_v57 = vld [vmem:[%s27807_s3 + $0x250] sm:$0xff]  }
 0x2ea   : > { %20800 = vmatpush3.bf16.msra.mxu1 %v24418_v54  ;;  %20763 = vmatprep.mubr.msk.bf16.mxu1 %vm440_vm4, %v24101_v4  ;;  %v3675_v15 = vpop.f32.mrb[43].mxu0  ;;  %v6492_v54 = vsel %vm2854_vm8, %v24260_v6, %v24487_v36  ;;  %v6295_v6 = vshll.u32 %v23862_v25, 16 }
 0x2eb   : > { %20801 = vmatprep.subr.bf16.mxu1 %v22320_v41  ;;  %20827 = vmatprep.subr.bf16.mxu0 %v22324_v23  ;;  %v6301_v15 = vshrl.u32 %v6219_v27, 16 }
 0x2ec   : > { %v20433_v47 = vpop.f32.mrb[152].mxu1  ;;  %20788 = vmatmul.mubr.msk.bf16.gmra.mrb[148].mxu0 %vm440_vm4, %v24281_v5  ;;  %v6292_v5 = vshrl.u32 %v23862_v25, 16  ;;  %v6297_v32 = vrot.slane %v6295_v6, 4  ;;  %v6902_v25 = vsel %vm3731_vm10, %v24429_v9, %v23876_v8 }
 0x2ed   : > { %v3496_v4 = vadd.f32 %v20433_v47, %v24382_v17  ;;  %v3455_v52 = vpop.f32.mrb[153].mxu1  ;;  %20791 = vmatprep.mubr.msk.bf16.mxu0 %vm440_vm4, %v6492_v54  ;;  %20828 = vmatpush3.bf16.msra.mxu0 %v22324_v23  ;;  %v22325_v17 = vld [vmem:[%s27807_s3 + $0x258] sm:$0xff]  }
 0x2ee   : > { %v3494_v45 = vadd.f32 %v3455_v52, %v24388_v56  ;;  %v20434_v35 = vpop.f32.mrb[154].mxu1  ;;  %20802 = vmatpush3.bf16.msra.mxu1 %v22320_v41  ;;  %20829 = vmatprep.subr.bf16.mxu0 %v22326_v55  ;;  %v24526_v56 = vld [vmem:[%s27807_s3 + $0x2a0] sm:$0xff]   ;;  %v22541_v41 = vld [vmem:[#allocation2 + $0x50] sm:$0xff]  ;;  %v6497_v52 = vrot.slane %v6219_v27, 4 }
 0x2ef   : > { %v3458_v37 = vpop.f32.mrb[155].mxu1  ;;  %v20461_v24 = vpop.f32.mrb[44].mxu0  ;;  %20803 = vmatprep.subr.bf16.mxu1 %v22322_v57  ;;  %v24521_v20 = vadd.f32 %v20457_v44, %v3496_v4  ;;  %v24536_v23 = vrot.slane %v22541_v41, 4 }
 0x2f0   : > { %v3688_v3 = vpop.f32.mrb[45].mxu0  ;;  %v24528_v18 = vadd.f32 %v3672_v59, %v3494_v45  ;;  %v6494_v59 = vsel %vm2854_vm8, %v24487_v36, %v24302_v33 }
 0x2f1   : > { %20764 = vmatmul.mubr.msk.bf16.gmra.mrb[4].mxu1 %vm440_vm4, %v24110_v39  ;;  %v20462_v11 = vpop.f32.mrb[46].mxu0  ;;  %20830 = vmatpush3.bf16.msra.mxu0 %v22326_v55  ;;  %v6294_v39 = vrot.slane %v6292_v5, 3  ;;  %v6496_v53 = vsel %vm2854_vm8, %v24302_v33, %v24536_v23  ;;  %v6304_v55 = vshll.u32 %v6219_v27, 16  ;;  %v6674_v33 = vshll.u32 %v24433_v42, 16 }
 0x2f2   : > { %20767 = vmatprep.mubr.msk.bf16.mxu1 %vm440_vm4, %v6281_v14  ;;  %v3691_v44 = vpop.f32.mrb[47].mxu0  ;;  %20804 = vmatpush3.bf16.msra.mxu1 %v22322_v57  ;;  %v6876_v11 = vld [vmem:[#allocation2 + $0x18] sm:$0xe0]  ;;  %v6671_v14 = vshrl.u32 %v24433_v42, 16  ;;  %v6303_v27 = vrot.slane %v6301_v15, 3 }
 0x2f3   : > { %20805 = vmatprep.subr.bf16.mxu1 %v22325_v17  ;;  %20871 = vmatprep.subr.bf16.mxu0 %v24526_v56  ;;  %v24558_v37 = vor.u32 %v6297_v32, %v6294_v39  ;;  %v6888_v39 = vrot.slane %v6876_v11, 5  ;;  %v6498_v32 = vsel %vm2854_vm8, %v24536_v23, %v6497_v52 }
 0x2f4   : > { %v20437_v58 = vpop.f32.mrb[156].mxu1  ;;  %20792 = vmatmul.mubr.msk.bf16.gmra.mrb[152].mxu0 %vm440_vm4, %v6494_v59 }
 0x2f5   : > { %v3500_v57 = vadd.f32 %v20437_v58, %v24425_v49  ;;  %v3471_v47 = vpop.f32.mrb[157].mxu1  ;;  %20795 = vmatprep.mubr.msk.bf16.mxu0 %vm440_vm4, %v6496_v53  ;;  %v6299_v42 = vsel %vm871_vm2, %v24135_v63, %v24558_v37  ;;  %v6673_v58 = vrot.slane %v6671_v14, 4  ;;  %v6676_v53 = vrot.slane %v6674_v33, 5 }
 0x2f6   : > { %v3498_v54 = vadd.f32 %v3471_v47, %v24431_v13  ;;  %v20438_v4 = vpop.f32.mrb[158].mxu1  ;;  %20806 = vmatpush3.bf16.msra.mxu1 %v22325_v17  ;;  %v6290_v13 = vsel %vm871_vm2, %v24513_v21, %v24135_v63  ;;  %v6306_v17 = vrot.slane %v6304_v55, 4 }
 0x2f7   : > { %v3474_v45 = vpop.f32.mrb[159].mxu1  ;;  %v20497_v35 = vpop.f32.mrb[48].mxu0  ;;  %20847 = vmatprep.subr.bf16.mxu1 %v24548_v43  ;;  %v24563_v49 = vadd.f32 %v20461_v24, %v3500_v57  ;;  %v6677_v52 = vor.u32 %v6676_v53, %v6673_v58  ;;  %v6694_v58 = vrot.slane %v6274_v50, 4  ;;  %v6695_v53 = vrot.slane %v6277_v16, 5 }
 0x2f8   : > { %v4036_v44 = vpop.f32.mrb[49].mxu0  ;;  %v24568_v41 = vadd.f32 %v3688_v3, %v3498_v54  ;;  %v6307_v55 = vor.u32 %v6306_v17, %v6303_v27  ;;  %v6890_v3 = vsel %vm3731_vm10, %v6888_v39, %v24339_v30  ;;  %v22328_v39 = vld [vmem:[%s27807_s3 + $0x288] sm:$0xff]  }
 0x2f9   : > { %20768 = vmatmul.mubr.msk.bf16.gmra.mrb[8].mxu1 %vm440_vm4, %v6290_v13  ;;  %v20498_v59 = vpop.f32.mrb[50].mxu0 }
 0x2fa   : > { %20771 = vmatprep.mubr.msk.bf16.mxu1 %vm440_vm4, %v6299_v42  ;;  %v4039_v24 = vpop.f32.mrb[51].mxu0  ;;  %v6308_v33 = vsel %vm871_vm2, %v24558_v37, %v6307_v55  ;;  %v22334_v55 = vld [vmem:[%s27807_s3 + $0x2b8] sm:$0xff]  }
 0x2fc   : > { %v20473_v15 = vpop.f32.mrb[160].mxu1  ;;  %20796 = vmatmul.mubr.msk.bf16.gmra.mrb[156].mxu0 %vm440_vm4, %v6498_v32 }
 0x2fd   : > { %v3896_v57 = vadd.f32 %v20473_v15, %v24456_v61  ;;  %v3831_v47 = vpop.f32.mrb[161].mxu1  ;;  %20831 = vmatprep.mubr.msk.bf16.mxu0 %vm440_vm4, %v6890_v3  ;;  %v6681_v61 = vsel %vm3512_vm9, %v6677_v52, %v24188_v31  ;;  %v24640_v3 = vor.u32 %v6695_v53, %v6694_v58 }
 0x2fe   : > { %v3894_v63 = vadd.f32 %v3831_v47, %v24460_v51  ;;  %v20474_v54 = vpop.f32.mrb[162].mxu1 }
 0x2ff   : > { %v3834_v4 = vpop.f32.mrb[163].mxu1  ;;  %v20501_v45 = vpop.f32.mrb[52].mxu0  ;;  %v24583_v11 = vadd.f32 %v20497_v35, %v3896_v57  ;;  %v22331_v35 = vld [vmem:[%s27807_s3 + $0x2a8] sm:$0xff]  }
 0x300   : > { %v4052_v14 = vpop.f32.mrb[53].mxu0  ;;  %v24587_v13 = vadd.f32 %v4036_v44, %v3894_v63  ;;  %v24642_v57 = vld [vmem:[#allocation2 + $0x28] sm:$0xff] }
 0x301   : > { %20772 = vmatmul.mubr.msk.bf16.gmra.mrb[12].mxu1 %vm440_vm4, %v6308_v33  ;;  %v20502_v30 = vpop.f32.mrb[54].mxu0  ;;  %v7290_v33 = vshrl.u32 %v24642_v57, 16 }
 0x302   : > { %20807 = vmatprep.mubr.msk.bf16.mxu1 %vm440_vm4, %v6681_v61  ;;  %v4055_v51 = vpop.f32.mrb[55].mxu0  ;;  %v7293_v30 = vshll.u32 %v24642_v57, 16 }
 0x304   : > { %v20477_v27 = vpop.f32.mrb[164].mxu1  ;;  %20832 = vmatmul.mubr.msk.bf16.vlgmr.msra.gmra.mrb[160].mxu0 %vm440_vm4, %v24365_v0  ;;  %v22332_v0 = vld [vmem:[%s27807_s3 + $0x2b0] sm:$0xff]  }
 0x305   : > { %v3900_v44 = vadd.f32 %v20477_v27, %v24484_v34  ;;  %v3847_v17 = vpop.f32.mrb[165].mxu1  ;;  %20835 = vmatprep.mubr.msk.bf16.mxu0 %vm440_vm4, %v24399_v10  ;;  %20872 = vmatpush3.bf16.msra.mxu0 %v24526_v56  ;;  %v24612_v10 = vrot.slane %v24346_v19, 5 }
 0x306   : > { %v3898_v31 = vadd.f32 %v3847_v17, %v24489_v40  ;;  %v20478_v59 = vpop.f32.mrb[166].mxu1  ;;  %20873 = vmatprep.subr.bf16.mxu0 %v22331_v35  ;;  %v6702_v17 = vrot.slane %v6292_v5, 4 }
 0x307   : > { %v3850_v42 = vpop.f32.mrb[167].mxu1  ;;  %v20505_v24 = vpop.f32.mrb[56].mxu0  ;;  %v24609_v34 = vadd.f32 %v20501_v45, %v3900_v44  ;;  %v6898_v19 = vsel %vm3731_vm10, %v24386_v38, %v24612_v10  ;;  %v22333_v45 = vld [vmem:[%s27807_s3 + $0x298] sm:$0xff]   ;;  %v6900_v59 = vsel %vm3731_vm10, %v24612_v10, %v24429_v9  ;;  %v6701_v9 = vsel %vm3512_vm9, %v24640_v3, %v24275_v2 }
 0x308   : > { %v4068_v32 = vpop.f32.mrb[57].mxu0  ;;  %v24614_v56 = vadd.f32 %v4052_v14, %v3898_v31  ;;  %v6703_v31 = vrot.slane %v6295_v6, 5  ;;  %v7292_v6 = vrot.slane %v7290_v33, 3 }
 0x309   : > { %20808 = vmatmul.mubr.msk.bf16.vlgmr.msra.gmra.mrb[16].mxu1 %vm440_vm4, %v24207_v1  ;;  %v20506_v40 = vpop.f32.mrb[58].mxu0  ;;  %20874 = vmatpush3.bf16.msra.mxu0 %v22331_v35  ;;  %v22330_v1 = vld [vmem:[%s27807_s3 + $0x290] sm:$0xff]   ;;  %v6697_v35 = vsel %vm3512_vm9, %v24228_v48, %v24640_v3 }
 0x30a   : > { %20848 = vmatpush3.bf16.msra.mxu1 %v24548_v43  ;;  %20811 = vmatprep.mubr.msk.bf16.mxu1 %vm440_vm4, %v24241_v46  ;;  %v4071_v15 = vpop.f32.mrb[59].mxu0  ;;  %v24636_v46 = vld [vmem:[#allocation2 + $0x20] sm:$0xf8] }
 0x30b   : > { %20849 = vmatprep.subr.bf16.mxu1 %v22328_v39  ;;  %20875 = vmatprep.subr.bf16.mxu0 %v22332_v0  ;;  %v7285_v4 = vshll.u32 %v24636_v46, 16  ;;  %v24697_v15 = vld [vmem:[#allocation2 + $0x38] sm:$0xff] }
 0x30c   : > { %v20481_v50 = vpop.f32.mrb[168].mxu1  ;;  %20836 = vmatmul.mubr.msk.bf16.gmra.mrb[164].mxu0 %vm440_vm4, %v24405_v26  ;;  %v24645_v26 = vld [vmem:[#allocation2 + $0x58] sm:$0x1f] }
 0x30d   : > { %v3904_v16 = vadd.f32 %v20481_v50, %v24521_v20  ;;  %v3863_v43 = vpop.f32.mrb[169].mxu1  ;;  %20839 = vmatprep.mubr.msk.bf16.mxu0 %vm440_vm4, %v6898_v19  ;;  %20876 = vmatpush3.bf16.msra.mxu0 %v22332_v0  ;;  %v7282_v20 = vshrl.u32 %v24636_v46, 16  ;;  %v6707_v27 = vshrl.u32 %v24645_v26, 16  ;;  %v7287_v42 = vrot.slane %v7285_v4, 4  ;;  %v24692_v0 = vld [vmem:[#allocation2 + $0x30] sm:$0xff] }
 0x30e   : > { %v3902_v47 = vadd.f32 %v3863_v43, %v24528_v18  ;;  %v20482_v63 = vpop.f32.mrb[170].mxu1  ;;  %20850 = vmatpush3.bf16.msra.mxu1 %v22328_v39  ;;  %20877 = vmatprep.subr.bf16.mxu0 %v22334_v55  ;;  %v24657_v18 = vld [vmem:[%s27807_s3 + $0x2e0] sm:$0xff]   ;;  %v7295_v39 = vrot.slane %v7293_v30, 4  ;;  %v6903_v53 = vrot.slane %v24645_v26, 5  ;;  %v24703_v50 = vor.u32 %v6703_v31, %v6702_v17 }
 0x30f   : > { %v3866_v38 = vpop.f32.mrb[171].mxu1  ;;  %v20509_v54 = vpop.f32.mrb[60].mxu0  ;;  %20851 = vmatprep.subr.bf16.mxu1 %v22330_v1  ;;  %v24652_v52 = vadd.f32 %v20505_v24, %v3904_v16  ;;  %v7284_v48 = vrot.slane %v7282_v20, 3  ;;  %v24681_v24 = vld [vmem:[%s27807_s3 + $0x2c0] sm:$0xff]   ;;  %v6709_v58 = vrot.slane %v6707_v27, 4  ;;  %v7302_v63 = vshll.u32 %v24692_v0, 16 }
 0x310   : > { %v4084_v14 = vpop.f32.mrb[61].mxu0  ;;  %v24661_v61 = vadd.f32 %v4068_v32, %v3902_v47  ;;  %v7299_v47 = vshrl.u32 %v24692_v0, 16  ;;  %v7296_v20 = vor.u32 %v7295_v39, %v7292_v6  ;;  %v7311_v4 = vshll.u32 %v24697_v15, 16  ;;  %v24735_v6 = vld [vmem:[#allocation2 + $0x48] sm:$0xff] }
 0x311   : > { %20812 = vmatmul.mubr.msk.bf16.gmra.mrb[20].mxu1 %vm440_vm4, %v24250_v28  ;;  %v20510_v51 = vpop.f32.mrb[62].mxu0  ;;  %20878 = vmatpush3.bf16.msra.mxu0 %v22334_v55  ;;  %v6710_v28 = vshll.u32 %v24645_v26, 16  ;;  %v7288_v43 = vor.u32 %v7287_v42, %v7284_v48 }
 0x312   : > { %20815 = vmatprep.mubr.msk.bf16.mxu1 %vm440_vm4, %v6697_v35  ;;  %v4087_v44 = vpop.f32.mrb[63].mxu0  ;;  %20852 = vmatpush3.bf16.msra.mxu1 %v22330_v1  ;;  %v6705_v35 = vsel %vm3512_vm9, %v24275_v2, %v24703_v50  ;;  %v7301_v17 = vrot.slane %v7299_v47, 3 }
 0x313   : > { %20853 = vmatprep.subr.bf16.mxu1 %v22333_v45  ;;  %20919 = vmatprep.subr.bf16.mxu0 %v24657_v18  ;;  %v6712_v19 = vrot.slane %v6710_v28, 5  ;;  %v6904_v44 = vsel %vm3731_vm10, %v23876_v8, %v6903_v53  ;;  %v7297_v28 = vsel %vm871_vm2, %v7288_v43, %v7296_v20 }
 0x314   : > { %v20485_v5 = vpop.f32.mrb[172].mxu1  ;;  %20840 = vmatmul.mubr.msk.bf16.gmra.mrb[168].mxu0 %vm440_vm4, %v6900_v59  ;;  %v7313_v59 = vrot.slane %v7311_v4, 4 }
 0x315   : > { %v3908_v32 = vadd.f32 %v20485_v5, %v24563_v49  ;;  %v3879_v40 = vpop.f32.mrb[173].mxu1  ;;  %20843 = vmatprep.mubr.msk.bf16.mxu0 %vm440_vm4, %v6902_v25  ;;  %v7093_v5 = vrot.slane %v24636_v46, 3  ;;  %v7094_v25 = vrot.slane %v24642_v57, 3  ;;  %v7329_v46 = vshll.u32 %v24735_v6, 16 }
 0x316   : > { %v3906_v55 = vadd.f32 %v3879_v40, %v24568_v41  ;;  %v20486_v1 = vpop.f32.mrb[174].mxu1  ;;  %20854 = vmatpush3.bf16.msra.mxu1 %v22333_v45  ;;  %v7308_v41 = vshrl.u32 %v24697_v15, 16 }
 0x317   : > { %v3882_v49 = vpop.f32.mrb[175].mxu1  ;;  %v20545_v16 = vpop.f32.mrb[64].mxu0  ;;  %20895 = vmatprep.subr.bf16.mxu1 %v24681_v24  ;;  %v24708_v26 = vadd.f32 %v20509_v54, %v3908_v32  ;;  %v6713_v54 = vor.u32 %v6712_v19, %v6709_v58  ;;  %v7326_v19 = vshrl.u32 %v24735_v6, 16  ;;  %v7095_v43 = vsel %vm3149_vm7, %v7093_v5, %v7094_v25  ;;  %v24768_v5 = vld [vmem:[#allocation2 + $0x58] sm:$0xff] }
 0x318   : > { %v4477_v38 = vpop.f32.mrb[65].mxu0  ;;  %v24712_v51 = vadd.f32 %v4084_v14, %v3906_v55  ;;  %v7304_v14 = vrot.slane %v7302_v63, 4  ;;  %v7310_v2 = vrot.slane %v7308_v41, 3 }
 0x319   : > { %20816 = vmatmul.mubr.msk.bf16.gmra.mrb[24].mxu1 %vm440_vm4, %v6701_v9  ;;  %v20546_v45 = vpop.f32.mrb[66].mxu0  ;;  %v6714_v53 = vsel %vm3512_vm9, %v24703_v50, %v6713_v54 }
 0x31a   : > { %20819 = vmatprep.mubr.msk.bf16.mxu1 %vm440_vm4, %v6705_v35  ;;  %v4480_v27 = vpop.f32.mrb[67].mxu0  ;;  %v7305_v9 = vor.u32 %v7304_v14, %v7301_v17  ;;  %v7314_v1 = vor.u32 %v7313_v59, %v7310_v2  ;;  %v7331_v17 = vrot.slane %v7329_v46, 4 }
 0x31b   : > { %v7096_v27 = vrot.slane %v24692_v0, 3 }
 0x31c   : > { %v20521_v31 = vpop.f32.mrb[176].mxu1  ;;  %20844 = vmatmul.mubr.msk.bf16.gmra.mrb[172].mxu0 %vm440_vm4, %v6904_v44  ;;  %v7306_v35 = vsel %vm871_vm2, %v7296_v20, %v7305_v9  ;;  %v7328_v44 = vrot.slane %v7326_v19, 3  ;;  %v7098_v20 = vrot.slane %v24697_v15, 3 }
 0x31d   : > { %v4352_v48 = vadd.f32 %v20521_v31, %v24583_v11  ;;  %v4287_v42 = vpop.f32.mrb[177].mxu1  ;;  %20879 = vmatprep.mubr.msk.bf16.mxu0 %vm440_vm4, %v7297_v28 }
 0x31e   : > { %v4350_v39 = vadd.f32 %v4287_v42, %v24587_v13  ;;  %v20522_v32 = vpop.f32.mrb[178].mxu1  ;;  %v22336_v42 = vld [vmem:[%s27807_s3 + $0x2c8] sm:$0xff]  }
 0x31f   : > { %v4290_v40 = vpop.f32.mrb[179].mxu1  ;;  %v20549_v58 = vpop.f32.mrb[68].mxu0  ;;  %v24740_v55 = vadd.f32 %v20545_v16, %v4352_v48  ;;  %v22339_v16 = vld [vmem:[%s27807_s3 + $0x2e8] sm:$0xff]  }
 0x320   : > { %v4493_v11 = vpop.f32.mrb[69].mxu0  ;;  %v24744_v49 = vadd.f32 %v4477_v38, %v4350_v39  ;;  %v7315_v38 = vsel %vm871_vm2, %v7305_v9, %v7314_v1  ;;  %v7347_v39 = vshll.u32 %v24768_v5, 16 }
 0x321   : > { %20820 = vmatmul.mubr.msk.bf16.gmra.mrb[28].mxu1 %vm440_vm4, %v6714_v53  ;;  %v20550_v13 = vpop.f32.mrb[70].mxu0  ;;  %v7332_v53 = vor.u32 %v7331_v17, %v7328_v44  ;;  %v7102_v44 = vrot.slane %v24735_v6, 3 }
 0x322   : > { %20855 = vmatprep.mubr.msk.bf16.mxu1 %vm440_vm4, %v7095_v43  ;;  %v4496_v45 = vpop.f32.mrb[71].mxu0  ;;  %v7099_v43 = vsel %vm3149_vm7, %v7096_v27, %v7098_v20 }
 0x324   : > { %v20525_v54 = vpop.f32.mrb[180].mxu1  ;;  %20880 = vmatmul.mubr.msk.bf16.vlgmr.msra.gmra.mrb[176].mxu0 %vm440_vm4, %v7306_v35  ;;  %v24784_v35 = vld [vmem:[#allocation2 + $0x60] sm:$0xf] }
 0x325   : > { %v4356_v14 = vadd.f32 %v20525_v54, %v24609_v34  ;;  %v4303_v31 = vpop.f32.mrb[181].mxu1  ;;  %20883 = vmatprep.mubr.msk.bf16.mxu0 %vm440_vm4, %v7315_v38  ;;  %20920 = vmatpush3.bf16.msra.mxu0 %v24657_v18  ;;  %v7344_v34 = vshrl.u32 %v24768_v5, 16  ;;  %v22340_v18 = vld [vmem:[%s27807_s3 + $0x2f0] sm:$0xff]   ;;  %v7333_v54 = vsel %vm871_vm2, %v24513_v21, %v7332_v53  ;;  %v7353_v17 = vshrl.u32 %v24784_v35, 16 }
 0x326   : > { %v4354_v28 = vadd.f32 %v4303_v31, %v24614_v56  ;;  %v20526_v2 = vpop.f32.mrb[182].mxu1  ;;  %20921 = vmatprep.subr.bf16.mxu0 %v22339_v16  ;;  %v7097_v56 = vsel %vm3149_vm7, %v7094_v25, %v7096_v27  ;;  %v22342_v25 = vld [vmem:[%s27807_s3 + $0x2f8] sm:$0xff]   ;;  %v24806_v31 = vld [vmem:[#allocation2 + $0x20] sm:$0xf0] }
 0x327   : > { %v4306_v59 = vpop.f32.mrb[183].mxu1  ;;  %v20553_v48 = vpop.f32.mrb[72].mxu0  ;;  %v24775_v32 = vadd.f32 %v20549_v58, %v4356_v14  ;;  %v7324_v58 = vsel %vm871_vm2, %v7314_v1, %v24513_v21  ;;  %v7356_v14 = vshll.u32 %v24784_v35, 16 }
 0x328   : > { %v4509_v40 = vpop.f32.mrb[73].mxu0  ;;  %v24778_v9 = vadd.f32 %v4493_v11, %v4354_v28  ;;  %v7346_v11 = vrot.slane %v7344_v34, 3 }
 0x329   : > { %20856 = vmatmul.mubr.msk.bf16.vlgmr.msra.gmra.mrb[32].mxu1 %vm440_vm4, %v7097_v56  ;;  %v20554_v13 = vpop.f32.mrb[74].mxu0  ;;  %20922 = vmatpush3.bf16.msra.mxu0 %v22339_v16  ;;  %v7349_v16 = vrot.slane %v7347_v39, 4  ;;  %v22341_v56 = vld [vmem:[%s27807_s3 + $0x2d8] sm:$0xff]  }
 0x32a   : > { %20896 = vmatpush3.bf16.msra.mxu1 %v24681_v24  ;;  %20859 = vmatprep.mubr.msk.bf16.mxu1 %vm440_vm4, %v7099_v43  ;;  %v4512_v45 = vpop.f32.mrb[75].mxu0  ;;  %v22338_v24 = vld [vmem:[%s27807_s3 + $0x2d0] sm:$0xff]  }
 0x32b   : > { %20897 = vmatprep.subr.bf16.mxu1 %v22336_v42  ;;  %20923 = vmatprep.subr.bf16.mxu0 %v22340_v18  ;;  %v7723_v45 = vshrl.u32 %v24806_v31, 16 }
 0x32c   : > { %v20529_v27 = vpop.f32.mrb[184].mxu1  ;;  %20884 = vmatmul.mubr.msk.bf16.gmra.mrb[180].mxu0 %vm440_vm4, %v7324_v58 }
 0x32d   : > { %v4360_v1 = vadd.f32 %v20529_v27, %v24652_v52  ;;  %v4319_v38 = vpop.f32.mrb[185].mxu1  ;;  %20887 = vmatprep.mubr.msk.bf16.mxu0 %vm440_vm4, %v7333_v54  ;;  %20924 = vmatpush3.bf16.msra.mxu0 %v22340_v18  ;;  %v7350_v52 = vor.u32 %v7349_v16, %v7346_v11  ;;  %v7101_v18 = vsel %vm3149_vm7, %v7098_v20, %v24360_v60  ;;  %v7355_v16 = vrot.slane %v7353_v17, 3  ;;  %v24831_v54 = vld [vmem:[%s27807_s3 + $0x300] sm:$0xff]  }
 0x32e   : > { %v4358_v28 = vadd.f32 %v4319_v38, %v24661_v61  ;;  %v20530_v2 = vpop.f32.mrb[186].mxu1  ;;  %20898 = vmatpush3.bf16.msra.mxu1 %v22336_v42  ;;  %20925 = vmatprep.subr.bf16.mxu0 %v22342_v25  ;;  %v7726_v61 = vshll.u32 %v24806_v31, 16  ;;  %v7103_v11 = vsel %vm3149_vm7, %v24360_v60, %v7102_v44  ;;  %v7358_v27 = vrot.slane %v7356_v14, 4 }
 0x32f   : > { %v4322_v21 = vpop.f32.mrb[187].mxu1  ;;  %v20557_v59 = vpop.f32.mrb[76].mxu0  ;;  %20899 = vmatprep.subr.bf16.mxu1 %v22338_v24  ;;  %v24812_v13 = vadd.f32 %v20553_v48, %v4360_v1  ;;  %v7342_v20 = vsel %vm871_vm2, %v7332_v53, %v24558_v37  ;;  %v7731_v53 = vrot.slane %v7293_v30, 5  ;;  %v7106_v17 = vrot.slane %v24768_v5, 3 }
 0x330   : > { %v4525_v43 = vpop.f32.mrb[77].mxu0  ;;  %v24818_v42 = vadd.f32 %v4509_v40, %v4358_v28  ;;  %v7351_v40 = vsel %vm871_vm2, %v24558_v37, %v7350_v52  ;;  %v7728_v1 = vrot.slane %v7726_v61, 5  ;;  %v7359_v14 = vor.u32 %v7358_v27, %v7355_v16 }
 0x331   : > { %20860 = vmatmul.mubr.msk.bf16.gmra.mrb[36].mxu1 %vm440_vm4, %v7101_v18  ;;  %v20558_v58 = vpop.f32.mrb[78].mxu0  ;;  %20926 = vmatpush3.bf16.msra.mxu0 %v22342_v25  ;;  %v7725_v25 = vrot.slane %v7723_v45, 4  ;;  %v7074_v45 = vld [vmem:[#allocation2 + $0x60] sm:$0x7]  ;;  %v7105_v30 = vsel %vm3149_vm7, %v7102_v44, %v24410_v22  ;;  %v7734_v44 = vrot.slane %v7299_v47, 4  ;;  %v7534_v47 = vrot.slane %v24806_v31, 4 }
 0x332   : > { %20863 = vmatprep.mubr.msk.bf16.mxu1 %vm440_vm4, %v7103_v11  ;;  %v4528_v48 = vpop.f32.mrb[79].mxu0  ;;  %20900 = vmatpush3.bf16.msra.mxu1 %v22338_v24  ;;  %v7730_v24 = vrot.slane %v7290_v33, 4  ;;  %v7360_v16 = vsel %vm871_vm2, %v7350_v52, %v7359_v14  ;;  %v7108_v27 = vrot.slane %v7074_v45, 3  ;;  %v7739_v52 = vrot.slane %v7311_v4, 5 }
 0x333   : > { %20901 = vmatprep.subr.bf16.mxu1 %v22341_v56  ;;  %v7729_v61 = vor.u32 %v7728_v1, %v7725_v25  ;;  %v7735_v48 = vrot.slane %v7302_v63, 5  ;;  %v7535_v63 = vrot.slane %v24642_v57, 4  ;;  %v7746_v45 = vrot.slane %v7326_v19, 4 }
 0x334   : > { %v20533_v60 = vpop.f32.mrb[188].mxu1  ;;  %20888 = vmatmul.mubr.msk.bf16.gmra.mrb[184].mxu0 %vm440_vm4, %v7342_v20  ;;  %v7732_v58 = vor.u32 %v7731_v53, %v7730_v24  ;;  %v7109_v25 = vsel %vm3149_vm7, %v7106_v17, %v7108_v27 }
 0x335   : > { %v4364_v38 = vadd.f32 %v20533_v60, %v24708_v26  ;;  %v4335_v37 = vpop.f32.mrb[189].mxu1  ;;  %20891 = vmatprep.mubr.msk.bf16.mxu0 %vm440_vm4, %v7351_v40  ;;  %v7536_v31 = vsel %vm2854_vm8, %v7534_v47, %v7535_v63 }
 0x336   : > { %v4362_v28 = vadd.f32 %v4335_v37, %v24712_v51  ;;  %v20534_v2 = vpop.f32.mrb[190].mxu1  ;;  %20902 = vmatpush3.bf16.msra.mxu1 %v22341_v56  ;;  %v7107_v56 = vsel %vm3149_vm7, %v24410_v22, %v7106_v17  ;;  %v7733_v20 = vsel %vm3512_vm9, %v7729_v61, %v7732_v58  ;;  %v7738_v22 = vrot.slane %v7308_v41, 4 }
 0x337   : > { %v4338_v21 = vpop.f32.mrb[191].mxu1  ;;  %v20593_v18 = vpop.f32.mrb[80].mxu0  ;;  %20943 = vmatprep.subr.bf16.mxu1 %v24831_v54  ;;  %v24843_v33 = vadd.f32 %v20557_v59, %v4364_v38  ;;  %v7736_v41 = vor.u32 %v7735_v48, %v7734_v44  ;;  %v7537_v2 = vrot.slane %v24692_v0, 4 }
 0x338   : > { %v4883_v26 = vpop.f32.mrb[81].mxu0  ;;  %v24847_v11 = vadd.f32 %v4525_v43, %v4362_v28  ;;  %v7740_v14 = vor.u32 %v7739_v52, %v7738_v22  ;;  %v24901_v22 = vld [vmem:[#allocation2 + $0x60] sm:$0x1f] }
 0x339   : > { %20864 = vmatmul.mubr.msk.bf16.gmra.mrb[40].mxu1 %vm440_vm4, %v7105_v30  ;;  %v20594_v51 = vpop.f32.mrb[82].mxu0  ;;  %v7747_v30 = vrot.slane %v7329_v46, 5  ;;  %v7538_v46 = vsel %vm2854_vm8, %v7535_v63, %v7537_v2  ;;  %v7755_v63 = vrot.slane %v7347_v39, 5  ;;  %v22346_v39 = vld [vmem:[%s27807_s3 + $0x318] sm:$0xff]  }
 0x33a   : > { %20867 = vmatprep.mubr.msk.bf16.mxu1 %vm440_vm4, %v7107_v56  ;;  %v4886_v59 = vpop.f32.mrb[83].mxu0  ;;  %v7745_v52 = vsel %vm3512_vm9, %v7740_v14, %v24640_v3 }
 0x33b   : > { %v22344_v59 = vld [vmem:[%s27807_s3 + $0x308] sm:$0xff]  }
 0x33c   : > { %v20569_v43 = vpop.f32.mrb[192].mxu1  ;;  %20892 = vmatmul.mubr.msk.bf16.gmra.mrb[188].mxu0 %vm440_vm4, %v7360_v16 }
 0x33d   : > { %v4758_v40 = vadd.f32 %v20569_v43, %v24740_v55  ;;  %v4693_v60 = vpop.f32.mrb[193].mxu1  ;;  %20927 = vmatprep.mubr.msk.bf16.mxu0 %vm440_vm4, %v7733_v20 }
 0x33e   : > { %v4756_v1 = vadd.f32 %v4693_v60, %v24744_v49  ;;  %v20570_v24 = vpop.f32.mrb[194].mxu1  ;;  %v7737_v49 = vsel %vm3512_vm9, %v7732_v58, %v7736_v41  ;;  %v7539_v58 = vrot.slane %v24697_v15, 4 }
 0x33f   : > { %v4696_v53 = vpop.f32.mrb[195].mxu1  ;;  %v20597_v38 = vpop.f32.mrb[84].mxu0  ;;  %v24870_v37 = vadd.f32 %v20593_v18, %v4758_v40  ;;  %v7741_v18 = vsel %vm3512_vm9, %v7736_v41, %v7740_v14  ;;  %v22345_v40 = vld [vmem:[%s27807_s3 + $0x310] sm:$0xff]   ;;  %v7543_v24 = vrot.slane %v24735_v6, 4 }
 0x340   : > { %v4899_v4 = vpop.f32.mrb[85].mxu0  ;;  %v24872_v55 = vadd.f32 %v4883_v26, %v4756_v1  ;;  %v7759_v53 = vshrl.u32 %v24901_v22, 16  ;;  %v7542_v14 = vsel %vm2854_vm8, %v7539_v58, %v24487_v36 }
 0x341   : > { %20868 = vmatmul.mubr.msk.bf16.gmra.mrb[44].mxu1 %vm440_vm4, %v7109_v25  ;;  %v20598_v28 = vpop.f32.mrb[86].mxu0 }
 0x342   : > { %20903 = vmatprep.mubr.msk.bf16.mxu1 %vm440_vm4, %v7536_v31  ;;  %v4902_v17 = vpop.f32.mrb[87].mxu0 }
 0x344   : > { %v20573_v21 = vpop.f32.mrb[196].mxu1  ;;  %20928 = vmatmul.mubr.msk.bf16.vlgmr.msra.gmra.mrb[192].mxu0 %vm440_vm4, %v7737_v49  ;;  %v7544_v49 = vsel %vm2854_vm8, %v24487_v36, %v7543_v24  ;;  %v7547_v36 = vrot.slane %v24768_v5, 4 }
 0x345   : > { %v4762_v26 = vadd.f32 %v20573_v21, %v24775_v32  ;;  %v4709_v61 = vpop.f32.mrb[197].mxu1  ;;  %20931 = vmatprep.mubr.msk.bf16.mxu0 %vm440_vm4, %v7741_v18  ;;  %v7748_v32 = vor.u32 %v7747_v30, %v7746_v45 }
 0x346   : > { %v4760_v51 = vadd.f32 %v4709_v61, %v24778_v9  ;;  %v20574_v56 = vpop.f32.mrb[198].mxu1  ;;  %v7540_v9 = vsel %vm2854_vm8, %v7537_v2, %v7539_v58  ;;  %v7761_v2 = vrot.slane %v7759_v53, 4  ;;  %v7548_v5 = vsel %vm2854_vm8, %v24536_v23, %v7547_v36 }
 0x347   : > { %v4712_v16 = vpop.f32.mrb[199].mxu1  ;;  %v20601_v27 = vpop.f32.mrb[88].mxu0  ;;  %v24892_v19 = vadd.f32 %v20597_v38, %v4762_v26  ;;  %v7749_v47 = vsel %vm3512_vm9, %v24640_v3, %v7748_v32  ;;  %v7762_v38 = vshll.u32 %v24901_v22, 16  ;;  %v7753_v45 = vsel %vm3512_vm9, %v7748_v32, %v24703_v50 }
 0x348   : > { %v4915_v44 = vpop.f32.mrb[89].mxu0  ;;  %v24895_v48 = vadd.f32 %v4899_v4, %v4760_v51 }
 0x349   : > { %20904 = vmatmul.mubr.msk.bf16.vlgmr.msra.gmra.mrb[48].mxu1 %vm440_vm4, %v7538_v46  ;;  %v20602_v43 = vpop.f32.mrb[90].mxu0  ;;  %v7764_v21 = vrot.slane %v7762_v38, 5 }
 0x34a   : > { %20944 = vmatpush3.bf16.msra.mxu1 %v24831_v54  ;;  %20907 = vmatprep.mubr.msk.bf16.mxu1 %vm440_vm4, %v7540_v9  ;;  %v4918_v20 = vpop.f32.mrb[91].mxu0  ;;  %v7754_v54 = vrot.slane %v7344_v34, 4  ;;  %v7549_v43 = vrot.slane %v24784_v35, 4 }
 0x34b   : > { %20945 = vmatprep.subr.bf16.mxu1 %v22344_v59  ;;  %v7765_v51 = vor.u32 %v7764_v21, %v7761_v2  ;;  %v7928_v20 = vld [vmem:[#allocation2 + $0x20] sm:$0xe0] }
 0x34c   : > { %v20577_v60 = vpop.f32.mrb[200].mxu1  ;;  %20932 = vmatmul.mubr.msk.bf16.gmra.mrb[196].mxu0 %vm440_vm4, %v7745_v52  ;;  %v7756_v31 = vor.u32 %v7755_v63, %v7754_v54  ;;  %v7941_v54 = vrot.slane %v24642_v57, 5  ;;  %v7550_v63 = vsel %vm2854_vm8, %v7547_v36, %v7549_v43  ;;  %v7943_v57 = vrot.slane %v24692_v0, 5 }
 0x34d   : > { %v4766_v25 = vadd.f32 %v20577_v60, %v24812_v13  ;;  %v4725_v1 = vpop.f32.mrb[201].mxu1  ;;  %20935 = vmatprep.mubr.msk.bf16.mxu0 %vm440_vm4, %v7749_v47  ;;  %v7940_v47 = vrot.slane %v7928_v20, 5 }
 0x34e   : > { %v4764_v41 = vadd.f32 %v4725_v1, %v24818_v42  ;;  %v20578_v3 = vpop.f32.mrb[202].mxu1  ;;  %20946 = vmatpush3.bf16.msra.mxu1 %v22344_v59  ;;  %v7757_v26 = vsel %vm3512_vm9, %v24703_v50, %v7756_v31  ;;  %v7944_v2 = vsel %vm3731_vm10, %v7941_v54, %v7943_v57 }
 0x34f   : > { %v4728_v4 = vpop.f32.mrb[203].mxu1  ;;  %v20605_v34 = vpop.f32.mrb[92].mxu0  ;;  %20947 = vmatprep.subr.bf16.mxu1 %v22345_v40  ;;  %v24924_v13 = vadd.f32 %v20601_v27, %v4766_v25  ;;  %v7942_v3 = vsel %vm3731_vm10, %v7940_v47, %v7941_v54  ;;  %v7955_v47 = vrot.slane %v24901_v22, 5 }
 0x350   : > { %v4931_v28 = vpop.f32.mrb[93].mxu0  ;;  %v24928_v17 = vadd.f32 %v4915_v44, %v4764_v41  ;;  %v7546_v44 = vsel %vm2854_vm8, %v7543_v24, %v24536_v23 }
 0x351   : > { %20908 = vmatmul.mubr.msk.bf16.gmra.mrb[52].mxu1 %vm440_vm4, %v7542_v14  ;;  %v20606_v42 = vpop.f32.mrb[94].mxu0 }
 0x352   : > { %20911 = vmatprep.mubr.msk.bf16.mxu1 %vm440_vm4, %v7544_v49  ;;  %v4934_v18 = vpop.f32.mrb[95].mxu0  ;;  %20948 = vmatpush3.bf16.msra.mxu1 %v22345_v40 }
 0x353   : > { %20949 = vmatprep.subr.bf16.mxu1 %v22346_v39 }
 0x354   : > { %v20581_v30 = vpop.f32.mrb[204].mxu1  ;;  %20936 = vmatmul.mubr.msk.bf16.gmra.mrb[200].mxu0 %vm440_vm4, %v7753_v45 }
 0x355   : > { %v4770_v61 = vadd.f32 %v20581_v30, %v24843_v33  ;;  %v4741_v58 = vpop.f32.mrb[205].mxu1  ;;  %20939 = vmatprep.mubr.msk.bf16.mxu0 %vm440_vm4, %v7757_v26  ;;  %v7949_v26 = vrot.slane %v24735_v6, 5 }
 0x356   : > { %v4768_v56 = vadd.f32 %v4741_v58, %v24847_v11  ;;  %v20582_v16 = vpop.f32.mrb[206].mxu1  ;;  %20950 = vmatpush3.bf16.msra.mxu1 %v22346_v39  ;;  %v7766_v11 = vsel %vm3512_vm9, %v7756_v31, %v7765_v51  ;;  %v7945_v39 = vrot.slane %v24697_v15, 5 }
 0x357   : > { %v4744_v27 = vpop.f32.mrb[207].mxu1  ;;  %v20641_v59 = vpop.f32.mrb[96].mxu0  ;;  %v24943_v46 = vadd.f32 %v20605_v34, %v4770_v61 }
 0x358   : > { %v5339_v50 = vpop.f32.mrb[97].mxu0  ;;  %v24947_v32 = vadd.f32 %v4931_v28, %v4768_v56  ;;  %v7946_v0 = vsel %vm3731_vm10, %v7943_v57, %v7945_v39  ;;  %v7948_v16 = vsel %vm3731_vm10, %v7945_v39, %v24612_v10 }
 0x359   : > { %20912 = vmatmul.mubr.msk.bf16.gmra.mrb[56].mxu1 %vm440_vm4, %v7546_v44  ;;  %v20642_v33 = vpop.f32.mrb[98].mxu0 }
 0x35a   : > { %20915 = vmatprep.mubr.msk.bf16.mxu1 %vm440_vm4, %v7548_v5  ;;  %v5342_v9 = vpop.f32.mrb[99].mxu0 }
 0x35c   : > { %v20617_v52 = vpop.f32.mrb[208].mxu1  ;;  %20940 = vmatmul.mubr.msk.bf16.gmra.mrb[204].mxu0 %vm440_vm4, %v7766_v11 }
 0x35d   : > { %v5153_v40 = vadd.f32 %v20617_v52, %v24870_v37  ;;  %v5088_v60 = vpop.f32.mrb[209].mxu1  ;;  %v7952_v52 = vsel %vm3731_vm10, %v7949_v26, %v23876_v8 }
 0x35e   : > { %v5151_v23 = vadd.f32 %v5088_v60, %v24872_v55  ;;  %v20618_v25 = vpop.f32.mrb[210].mxu1 }
 0x35f   : > { %v5091_v1 = vpop.f32.mrb[211].mxu1  ;;  %v20645_v35 = vpop.f32.mrb[100].mxu0  ;;  %v5404_v24 = vadd.f32 %v20641_v59, %v5153_v40 }
 0x360   : > { %v5355_v53 = vpop.f32.mrb[101].mxu0  ;;  %v5402_v38 = vadd.f32 %v5339_v50, %v5151_v23  ;;  %v7956_v23 = vsel %vm3731_vm10, %v7953_v12, %v7955_v47 }
 0x361   : > { %20916 = vmatmul.mubr.msk.bf16.gmra.mrb[60].mxu1 %vm440_vm4, %v7550_v63  ;;  %v20646_v41 = vpop.f32.mrb[102].mxu0 }
 0x362   : > { %20951 = vmatprep.mubr.msk.bf16.mxu1 %vm440_vm4, %v7942_v3  ;;  %v5358_v37 = vpop.f32.mrb[103].mxu0 }
 0x364   : > { %v20621_v4 = vpop.f32.mrb[212].mxu1 }
 0x365   : > { %v5157_v34 = vadd.f32 %v20621_v4, %v24892_v19  ;;  %v5104_v55 = vpop.f32.mrb[213].mxu1 }
 0x366   : > { %v5155_v14 = vadd.f32 %v5104_v55, %v24895_v48  ;;  %v20622_v28 = vpop.f32.mrb[214].mxu1 }
 0x367   : > { %v5107_v31 = vpop.f32.mrb[215].mxu1  ;;  %v20649_v42 = vpop.f32.mrb[104].mxu0  ;;  %v5408_v49 = vadd.f32 %v20645_v35, %v5157_v34 }
 0x368   : > { %v5371_v21 = vpop.f32.mrb[105].mxu0  ;;  %v5406_v18 = vadd.f32 %v5355_v53, %v5155_v14 }
 0x369   : > { %20952 = vmatmul.mubr.msk.bf16.vlgmr.msra.gmra.mrb[64].mxu1 %vm440_vm4, %v7944_v2  ;;  %v20650_v45 = vpop.f32.mrb[106].mxu0 }
 0x36a   : > { %20955 = vmatprep.mubr.msk.bf16.mxu1 %vm440_vm4, %v7946_v0  ;;  %v5374_v19 = vpop.f32.mrb[107].mxu0 }
 0x36c   : > { %v20625_v30 = vpop.f32.mrb[216].mxu1 }
 0x36d   : > { %v5161_v15 = vadd.f32 %v20625_v30, %v24924_v13  ;;  %v5120_v48 = vpop.f32.mrb[217].mxu1  ;;  %v7950_v13 = vsel %vm3731_vm10, %v24612_v10, %v7949_v26 }
 0x36e   : > { %v5159_v61 = vadd.f32 %v5120_v48, %v24928_v17  ;;  %v20626_v58 = vpop.f32.mrb[218].mxu1 }
 0x36f   : > { %v5123_v36 = vpop.f32.mrb[219].mxu1  ;;  %v20653_v51 = vpop.f32.mrb[108].mxu0  ;;  %v5412_v56 = vadd.f32 %v20649_v42, %v5161_v15 }
 0x370   : > { %v5387_v27 = vpop.f32.mrb[109].mxu0  ;;  %v5410_v59 = vadd.f32 %v5371_v21, %v5159_v61 }
 0x371   : > { %20956 = vmatmul.mubr.msk.bf16.gmra.mrb[68].mxu1 %vm440_vm4, %v7948_v16  ;;  %v20654_v44 = vpop.f32.mrb[110].mxu0 }
 0x372   : > { %20959 = vmatprep.mubr.msk.bf16.mxu1 %vm440_vm4, %v7950_v13  ;;  %v5390_v6 = vpop.f32.mrb[111].mxu0 }
 0x374   : > { %v20629_v50 = vpop.f32.mrb[220].mxu1 }
 0x375   : > { %v5165_v17 = vadd.f32 %v20629_v50, %v24943_v46  ;;  %v5136_v33 = vpop.f32.mrb[221].mxu1 }
 0x376   : > { %v5163_v5 = vadd.f32 %v5136_v33, %v24947_v32  ;;  %v20630_v11 = vpop.f32.mrb[222].mxu1 }
 0x377   : > { %v5139_v43 = vpop.f32.mrb[223].mxu1  ;;  %v20689_v9 = vpop.f32.mrb[112].mxu0  ;;  %v5416_v20 = vadd.f32 %v20653_v51, %v5165_v17 }
 0x378   : > { %v5745_v40 = vpop.f32.mrb[113].mxu0  ;;  %v5414_v60 = vadd.f32 %v5387_v27, %v5163_v5 }
 0x379   : > { %20960 = vmatmul.mubr.msk.bf16.gmra.mrb[72].mxu1 %vm440_vm4, %v7952_v52  ;;  %v20690_v10 = vpop.f32.mrb[114].mxu0 }
 0x37a   : > { %20963 = vmatprep.mubr.msk.bf16.mxu1 %vm440_vm4, %v23898_v62  ;;  %v5748_v46 = vpop.f32.mrb[115].mxu0 }
 0x37c   : > { %v20665_v54 = vpop.f32.mrb[224].mxu1 }
 0x37d   : > { %v5594_v32 = vadd.f32 %v20665_v54, %v5404_v24  ;;  %v5529_v63 = vpop.f32.mrb[225].mxu1 }
 0x37e   : > { %v5592_v25 = vadd.f32 %v5529_v63, %v5402_v38  ;;  %v20666_v8 = vpop.f32.mrb[226].mxu1 }
 0x37f   : > { %v5532_v1 = vpop.f32.mrb[227].mxu1  ;;  %v20693_v35 = vpop.f32.mrb[116].mxu0  ;;  %v5810_v53 = vadd.f32 %v20689_v9, %v5594_v32 }
 0x380   : > { %v5761_v41 = vpop.f32.mrb[117].mxu0  ;;  %v5808_v3 = vadd.f32 %v5745_v40, %v5592_v25 }
 0x381   : > { %20964 = vmatmul.mubr.msk.bf16.gmra.mrb[76].mxu1 %vm440_vm4, %v7956_v23  ;;  %v20694_v22 = vpop.f32.mrb[118].mxu0 }
 0x382   : > { %v5764_v37 = vpop.f32.mrb[119].mxu0 }
 0x384   : > { %v20669_v62 = vpop.f32.mrb[228].mxu1 }
 0x385   : > { %v5598_v57 = vadd.f32 %v20669_v62, %v5408_v49  ;;  %v5545_v4 = vpop.f32.mrb[229].mxu1 }
 0x386   : > { %v5596_v24 = vadd.f32 %v5545_v4, %v5406_v18  ;;  %v20670_v34 = vpop.f32.mrb[230].mxu1 }
 0x387   : > { %v5548_v55 = vpop.f32.mrb[231].mxu1  ;;  %v20697_v29 = vpop.f32.mrb[120].mxu0  ;;  %v5814_v39 = vadd.f32 %v20693_v35, %v5598_v57 }
 0x388   : > { %v5777_v12 = vpop.f32.mrb[121].mxu0  ;;  %v5812_v38 = vadd.f32 %v5761_v41, %v5596_v24 }
 0x389   : > { %v20698_v14 = vpop.f32.mrb[122].mxu0 }
 0x38a   : > { %v5780_v28 = vpop.f32.mrb[123].mxu0 }
 0x38c   : > { %v20673_v31 = vpop.f32.mrb[232].mxu1 }
 0x38d   : > { %v5602_v42 = vadd.f32 %v20673_v31, %v5412_v56  ;;  %v5561_v2 = vpop.f32.mrb[233].mxu1  ;;  %v22347_v31 = vld [vmem:[%s27809_s5 + $0x20] sm:$0xff]  }
 0x38e   : > { %v5600_v21 = vadd.f32 %v5561_v2, %v5410_v59  ;;  %v20674_v45 = vpop.f32.mrb[234].mxu1  ;;  %20967 = vmatprep.subr.bf16.mxu0 %v22347_v31 }
 0x38f   : > { %v5564_v0 = vpop.f32.mrb[235].mxu1  ;;  %v20701_v19 = vpop.f32.mrb[124].mxu0  ;;  %v5818_v30 = vadd.f32 %v20697_v29, %v5602_v42  ;;  %20968 = vmatpush3.bf16.msra.mxu0 %v22347_v31 }
 0x390   : > { %v5793_v15 = vpop.f32.mrb[125].mxu0  ;;  %v5816_v49 = vadd.f32 %v5777_v12, %v5600_v21 }
 0x391   : > { %v20702_v48 = vpop.f32.mrb[126].mxu0 }
 0x392   : > { %v5796_v18 = vpop.f32.mrb[127].mxu0 }
 0x394   : > { %v20677_v26 = vpop.f32.mrb[236].mxu1 }
 0x395   : > { %v5606_v61 = vadd.f32 %v20677_v26, %v5416_v20  ;;  %v5577_v58 = vpop.f32.mrb[237].mxu1 }
 0x396   : > { %v5604_v36 = vadd.f32 %v5577_v58, %v5414_v60  ;;  %v20678_v51 = vpop.f32.mrb[238].mxu1 }
 0x397   : > { %v5580_v16 = vpop.f32.mrb[239].mxu1  ;;  %v20737_v27 = vpop.f32.mrb[128].mxu0  ;;  %v5822_v44 = vadd.f32 %v20701_v19, %v5606_v61 }
 0x398   : > { %v6140_v13 = vpop.f32.mrb[129].mxu0  ;;  %v5820_v56 = vadd.f32 %v5793_v15, %v5604_v36 }
 0x399   : > { %v20738_v6 = vpop.f32.mrb[130].mxu0 }
 0x39a   : > { %v6143_v59 = vpop.f32.mrb[131].mxu0 }
 0x39c   : > { %v20713_v50 = vpop.f32.mrb[240].mxu1 }
 0x39d   : > { %v6000_v17 = vadd.f32 %v20713_v50, %v5810_v53  ;;  %v5935_v33 = vpop.f32.mrb[241].mxu1 }
 0x39e   : > { %v5998_v5 = vadd.f32 %v5935_v33, %v5808_v3  ;;  %v20714_v11 = vpop.f32.mrb[242].mxu1 }
 0x39f   : > { %v5938_v43 = vpop.f32.mrb[243].mxu1  ;;  %v20741_v9 = vpop.f32.mrb[132].mxu0  ;;  %v6205_v52 = vadd.f32 %v20737_v27, %v6000_v17  ;;  %v22348_v17 = vld [vmem:[%s27809_s5 + $0x28] sm:$0xff]  }
 0x3a0   : > { %v6156_v40 = vpop.f32.mrb[133].mxu0  ;;  %v6203_v20 = vadd.f32 %v6140_v13, %v5998_v5  ;;  %20969 = vmatprep.subr.bf16.mxu0 %v22348_v17 }
 0x3a1   : > { %v20742_v10 = vpop.f32.mrb[134].mxu0  ;;  %20970 = vmatpush3.bf16.msra.mxu0 %v22348_v17 }
 0x3a2   : > { %v6159_v60 = vpop.f32.mrb[135].mxu0 }
 0x3a4   : > { %v20717_v47 = vpop.f32.mrb[244].mxu1 }
 0x3a5   : > { %v6004_v46 = vadd.f32 %v20717_v47, %v5814_v39  ;;  %v5951_v54 = vpop.f32.mrb[245].mxu1 }
 0x3a6   : > { %v6002_v32 = vadd.f32 %v5951_v54, %v5812_v38  ;;  %v20718_v63 = vpop.f32.mrb[246].mxu1  ;;  %v22349_v54 = vld [vmem:[%s27809_s5 + $0x30] sm:$0xff]  }
 0x3a7   : > { %v5954_v23 = vpop.f32.mrb[247].mxu1  ;;  %v20745_v25 = vpop.f32.mrb[136].mxu0  ;;  %v6209_v8 = vadd.f32 %v20741_v9, %v6004_v46  ;;  %20971 = vmatprep.subr.bf16.mxu0 %v22349_v54 }
 0x3a8   : > { %v6172_v1 = vpop.f32.mrb[137].mxu0  ;;  %v6207_v35 = vadd.f32 %v6156_v40, %v6002_v32  ;;  %20972 = vmatpush3.bf16.msra.mxu0 %v22349_v54 }
 0x3a9   : > { %v20746_v53 = vpop.f32.mrb[138].mxu0 }
 0x3aa   : > { %v6175_v41 = vpop.f32.mrb[139].mxu0 }
 0x3ab   : > { %v22350_v41 = vld [vmem:[%s27809_s5] sm:$0xff]  }
 0x3ac   : > { %v20721_v3 = vpop.f32.mrb[248].mxu1  ;;  %20991 = vmatprep.subr.bf16.mxu1 %v22350_v41 }
 0x3ad   : > { %v6008_v22 = vadd.f32 %v20721_v3, %v5818_v30  ;;  %v5967_v37 = vpop.f32.mrb[249].mxu1  ;;  %20992 = vmatpush3.bf16.msra.mxu1 %v22350_v41 }
 0x3ae   : > { %v6006_v62 = vadd.f32 %v5967_v37, %v5816_v49  ;;  %v20722_v57 = vpop.f32.mrb[250].mxu1 }
 0x3af   : > { %v5970_v4 = vpop.f32.mrb[251].mxu1  ;;  %v20749_v24 = vpop.f32.mrb[140].mxu0  ;;  %v6213_v34 = vadd.f32 %v20745_v25, %v6008_v22  ;;  %v22351_v57 = vld [vmem:[%s27809_s5 + $0x38] sm:$0xff]  }
 0x3b0   : > { %v6188_v55 = vpop.f32.mrb[141].mxu0  ;;  %v6211_v29 = vadd.f32 %v6172_v1, %v6006_v62  ;;  %v22352_v4 = vld [vmem:[%s27809_s5 + $0x8] sm:$0xff]   ;;  %20973 = vmatprep.subr.bf16.mxu0 %v22351_v57 }
 0x3b1   : > { %v20750_v39 = vpop.f32.mrb[142].mxu0  ;;  %20993 = vmatprep.subr.bf16.mxu1 %v22352_v4  ;;  %20974 = vmatpush3.bf16.msra.mxu0 %v22351_v57 }
 0x3b2   : > { %v6191_v12 = vpop.f32.mrb[143].mxu0  ;;  %20994 = vmatpush3.bf16.msra.mxu1 %v22352_v4 }
 0x3b4   : > { %v20725_v38 = vpop.f32.mrb[252].mxu1 }
 0x3b5   : > { %v6012_v14 = vadd.f32 %v20725_v38, %v5822_v44  ;;  %v5983_v28 = vpop.f32.mrb[253].mxu1 }
 0x3b6   : > { %v6010_v42 = vadd.f32 %v5983_v28, %v5820_v56  ;;  %v20726_v2 = vpop.f32.mrb[254].mxu1  ;;  %v22353_v28 = vld [vmem:[%s27809_s5 + $0x10] sm:$0xff]  }
 0x3b7   : > { %v5986_v21 = vpop.f32.mrb[255].mxu1  ;;  %v20785_v45 = vpop.f32.mrb[144].mxu0  ;;  %v6217_v0 = vadd.f32 %v20749_v24, %v6012_v14  ;;  %20995 = vmatprep.subr.bf16.mxu1 %v22353_v28 }
 0x3b8   : > { %v6581_v19 = vpop.f32.mrb[145].mxu0  ;;  %v6215_v30 = vadd.f32 %v6188_v55, %v6010_v42  ;;  %20996 = vmatpush3.bf16.msra.mxu1 %v22353_v28 }
 0x3b9   : > { %v20786_v15 = vpop.f32.mrb[146].mxu0 }
 0x3ba   : > { %v6584_v49 = vpop.f32.mrb[147].mxu0 }
 0x3bb   : > { %v22354_v49 = vld [vmem:[%s27809_s5 + $0x18] sm:$0xff]  }
 0x3bc   : > { %v20761_v48 = vpop.f32.mrb[0].mxu1  ;;  %20997 = vmatprep.subr.bf16.mxu1 %v22354_v49 }
 0x3bd   : > { %v6456_v18 = vadd.f32 %v20761_v48, %v6205_v52  ;;  %v6391_v26 = vpop.f32.mrb[1].mxu1  ;;  %v25025_v48 = vld [vmem:[%s27809_s5 + $0x40] sm:$0xff]   ;;  %20998 = vmatpush3.bf16.msra.mxu1 %v22354_v49 }
 0x3be   : > { %v6454_v61 = vadd.f32 %v6391_v26, %v6203_v20  ;;  %v20762_v58 = vpop.f32.mrb[2].mxu1  ;;  %21015 = vmatprep.subr.bf16.mxu0 %v25025_v48 }
 0x3bf   : > { %v6394_v36 = vpop.f32.mrb[3].mxu1  ;;  %v20789_v51 = vpop.f32.mrb[148].mxu0  ;;  %v6646_v16 = vadd.f32 %v20785_v45, %v6456_v18 }
 0x3c0   : > { %v6597_v27 = vpop.f32.mrb[149].mxu0  ;;  %v6644_v44 = vadd.f32 %v6581_v19, %v6454_v61 }
 0x3c1   : > { %v20790_v13 = vpop.f32.mrb[150].mxu0 }
 0x3c2   : > { %v6600_v56 = vpop.f32.mrb[151].mxu0 }
 0x3c4   : > { %v20765_v6 = vpop.f32.mrb[4].mxu1 }
 0x3c5   : > { %v6460_v59 = vadd.f32 %v20765_v6, %v6209_v8  ;;  %v6407_v50 = vpop.f32.mrb[5].mxu1 }
 0x3c6   : > { %v6458_v33 = vadd.f32 %v6407_v50, %v6207_v35  ;;  %v20766_v5 = vpop.f32.mrb[6].mxu1 }
 0x3c7   : > { %v6410_v11 = vpop.f32.mrb[7].mxu1  ;;  %v20793_v43 = vpop.f32.mrb[152].mxu0  ;;  %v24998_v9 = vadd.f32 %v20789_v51, %v6460_v59  ;;  %v25033_v5 = vld [vmem:[%s27809_s5 + $0x60] sm:$0xff]  }
 0x3c8   : > { %v6613_v52 = vpop.f32.mrb[153].mxu0  ;;  %v25000_v40 = vadd.f32 %v6597_v27, %v6458_v33  ;;  %21039 = vmatprep.subr.bf16.mxu1 %v25033_v5 }
 0x3c9   : > { %v20794_v20 = vpop.f32.mrb[154].mxu0 }
 0x3ca   : > { %v6616_v10 = vpop.f32.mrb[155].mxu0 }
 0x3cc   : > { %v20769_v60 = vpop.f32.mrb[8].mxu1 }
 0x3cd   : > { %v6464_v47 = vadd.f32 %v20769_v60, %v6213_v34  ;;  %v6423_v46 = vpop.f32.mrb[9].mxu1 }
 0x3ce   : > { %v6462_v32 = vadd.f32 %v6423_v46, %v6211_v29  ;;  %v20770_v63 = vpop.f32.mrb[10].mxu1 }
 0x3cf   : > { %v6426_v23 = vpop.f32.mrb[11].mxu1  ;;  %v20797_v25 = vpop.f32.mrb[156].mxu0  ;;  %v25005_v8 = vadd.f32 %v20793_v43, %v6464_v47 }
 0x3d0   : > { %v6629_v1 = vpop.f32.mrb[157].mxu0  ;;  %v6652_v35 = vadd.f32 %v6613_v52, %v6462_v32 }
 0x3d1   : > { %v20798_v53 = vpop.f32.mrb[158].mxu0 }
 0x3d2   : > { %v6632_v3 = vpop.f32.mrb[159].mxu0 }
 0x3d4   : > { %v20773_v22 = vpop.f32.mrb[12].mxu1 }
 0x3d5   : > { %v6468_v37 = vadd.f32 %v20773_v22, %v6217_v0  ;;  %v6439_v62 = vpop.f32.mrb[13].mxu1 }
 0x3d6   : > { %v6466_v24 = vadd.f32 %v6439_v62, %v6215_v30  ;;  %v20774_v34 = vpop.f32.mrb[14].mxu1 }
 0x3d7   : > { %v6442_v55 = vpop.f32.mrb[15].mxu1  ;;  %v20833_v29 = vpop.f32.mrb[160].mxu0  ;;  %v6658_v39 = vadd.f32 %v20797_v25, %v6468_v37 }
 0x3d8   : > { %v6987_v12 = vpop.f32.mrb[161].mxu0  ;;  %v6656_v38 = vadd.f32 %v6629_v1, %v6466_v24 }
 0x3d9   : > { %v20834_v14 = vpop.f32.mrb[162].mxu0 }
 0x3da   : > { %v6990_v31 = vpop.f32.mrb[163].mxu0 }
 0x3dc   : > { %v20809_v42 = vpop.f32.mrb[16].mxu1 }
 0x3dd   : > { %v6862_v2 = vadd.f32 %v20809_v42, %v6646_v16  ;;  %v6797_v21 = vpop.f32.mrb[17].mxu1 }
 0x3de   : > { %v6860_v45 = vadd.f32 %v6797_v21, %v6644_v44  ;;  %v20810_v0 = vpop.f32.mrb[18].mxu1 }
 0x3df   : > { %v6800_v19 = vpop.f32.mrb[19].mxu1  ;;  %v20837_v30 = vpop.f32.mrb[164].mxu0  ;;  %v7052_v15 = vadd.f32 %v20833_v29, %v6862_v2 }
 0x3e0   : > { %v7003_v18 = vpop.f32.mrb[165].mxu0  ;;  %v7050_v26 = vadd.f32 %v6987_v12, %v6860_v45 }
 0x3e1   : > { %v20838_v61 = vpop.f32.mrb[166].mxu0 }
 0x3e2   : > { %v7006_v58 = vpop.f32.mrb[167].mxu0 }
 0x3e4   : > { %v20813_v36 = vpop.f32.mrb[20].mxu1 }
 0x3e5   : > { %v6866_v51 = vadd.f32 %v20813_v36, %v24998_v9  ;;  %v6813_v16 = vpop.f32.mrb[21].mxu1 }
 0x3e6   : > { %v6864_v27 = vadd.f32 %v6813_v16, %v25000_v40  ;;  %v20814_v44 = vpop.f32.mrb[22].mxu1 }
 0x3e7   : > { %v6816_v13 = vpop.f32.mrb[23].mxu1  ;;  %v20841_v56 = vpop.f32.mrb[168].mxu0  ;;  %v7056_v6 = vadd.f32 %v20837_v30, %v6866_v51 }
 0x3e8   : > { %v7019_v59 = vpop.f32.mrb[169].mxu0  ;;  %v7054_v50 = vadd.f32 %v7003_v18, %v6864_v27 }
 0x3e9   : > { %v20842_v17 = vpop.f32.mrb[170].mxu0 }
 0x3ea   : > { %v7022_v33 = vpop.f32.mrb[171].mxu0 }
 0x3ec   : > { %v20817_v11 = vpop.f32.mrb[24].mxu1 }
 0x3ed   : > { %v6870_v43 = vadd.f32 %v20817_v11, %v25005_v8  ;;  %v6829_v9 = vpop.f32.mrb[25].mxu1 }
 0x3ee   : > { %v6868_v52 = vadd.f32 %v6829_v9, %v6652_v35  ;;  %v20818_v40 = vpop.f32.mrb[26].mxu1 }
 0x3ef   : > { %v6832_v20 = vpop.f32.mrb[27].mxu1  ;;  %v20845_v10 = vpop.f32.mrb[172].mxu0  ;;  %v7060_v60 = vadd.f32 %v20841_v56, %v6870_v43 }
 0x3f0   : > { %v7035_v47 = vpop.f32.mrb[173].mxu0  ;;  %v7058_v46 = vadd.f32 %v7019_v59, %v6868_v52 }
 0x3f1   : > { %v20846_v54 = vpop.f32.mrb[174].mxu0 }
 0x3f2   : > { %v7038_v32 = vpop.f32.mrb[175].mxu0 }
 0x3f4   : > { %v20821_v63 = vpop.f32.mrb[28].mxu1 }
 0x3f5   : > { %v6874_v23 = vadd.f32 %v20821_v63, %v6658_v39  ;;  %v6845_v25 = vpop.f32.mrb[29].mxu1 }
 0x3f6   : > { %v6872_v1 = vadd.f32 %v6845_v25, %v6656_v38  ;;  %v20822_v53 = vpop.f32.mrb[30].mxu1 }
 0x3f7   : > { %v6848_v41 = vpop.f32.mrb[31].mxu1  ;;  %v20881_v3 = vpop.f32.mrb[176].mxu0  ;;  %v7064_v22 = vadd.f32 %v20845_v10, %v6874_v23 }
 0x3f8   : > { %v7443_v37 = vpop.f32.mrb[177].mxu0  ;;  %v7062_v8 = vadd.f32 %v7035_v47, %v6872_v1 }
 0x3f9   : > { %v20882_v62 = vpop.f32.mrb[178].mxu0 }
 0x3fa   : > { %v7446_v35 = vpop.f32.mrb[179].mxu0 }
 0x3fc   : > { %v20857_v57 = vpop.f32.mrb[32].mxu1 }
 0x3fd   : > { %v7257_v4 = vadd.f32 %v20857_v57, %v7052_v15  ;;  %v7192_v24 = vpop.f32.mrb[33].mxu1 }
 0x3fe   : > { %v7255_v34 = vadd.f32 %v7192_v24, %v7050_v26  ;;  %v20858_v55 = vpop.f32.mrb[34].mxu1 }
 0x3ff   : > { %v7195_v29 = vpop.f32.mrb[35].mxu1  ;;  %v20885_v12 = vpop.f32.mrb[180].mxu0  ;;  %v7508_v14 = vadd.f32 %v20881_v3, %v7257_v4 }
 0x400   : > { %v7459_v28 = vpop.f32.mrb[181].mxu0  ;;  %v7506_v39 = vadd.f32 %v7443_v37, %v7255_v34 }
 0x401   : > { %v20886_v31 = vpop.f32.mrb[182].mxu0 }
 0x402   : > { %v7462_v38 = vpop.f32.mrb[183].mxu0 }
 0x404   : > { %v20861_v42 = vpop.f32.mrb[36].mxu1 }
 0x405   : > { %v7261_v2 = vadd.f32 %v20861_v42, %v7056_v6  ;;  %v7208_v21 = vpop.f32.mrb[37].mxu1 }
 0x406   : > { %v7259_v45 = vadd.f32 %v7208_v21, %v7054_v50  ;;  %v20862_v0 = vpop.f32.mrb[38].mxu1 }
 0x407   : > { %v7211_v19 = vpop.f32.mrb[39].mxu1  ;;  %v20889_v30 = vpop.f32.mrb[184].mxu0  ;;  %v7512_v49 = vadd.f32 %v20885_v12, %v7261_v2 }
 0x408   : > { %v7475_v18 = vpop.f32.mrb[185].mxu0  ;;  %v7510_v15 = vadd.f32 %v7459_v28, %v7259_v45 }
 0x409   : > { %v20890_v61 = vpop.f32.mrb[186].mxu0 }
 0x40a   : > { %v7478_v26 = vpop.f32.mrb[187].mxu0 }
 0x40c   : > { %v20865_v58 = vpop.f32.mrb[40].mxu1 }
 0x40d   : > { %v7265_v36 = vadd.f32 %v20865_v58, %v7060_v60  ;;  %v7224_v51 = vpop.f32.mrb[41].mxu1 }
 0x40e   : > { %v7263_v16 = vadd.f32 %v7224_v51, %v7058_v46  ;;  %v20866_v27 = vpop.f32.mrb[42].mxu1 }
 0x40f   : > { %v7227_v44 = vpop.f32.mrb[43].mxu1  ;;  %v20893_v13 = vpop.f32.mrb[188].mxu0  ;;  %v7516_v56 = vadd.f32 %v20889_v30, %v7265_v36 }
 0x410   : > { %v7491_v59 = vpop.f32.mrb[189].mxu0  ;;  %v7514_v6 = vadd.f32 %v7475_v18, %v7263_v16 }
 0x411   : > { %v20894_v17 = vpop.f32.mrb[190].mxu0 }
 0x412   : > { %v7494_v50 = vpop.f32.mrb[191].mxu0 }
 0x414   : > { %v20869_v33 = vpop.f32.mrb[44].mxu1 }
 0x415   : > { %v7269_v11 = vadd.f32 %v20869_v33, %v7064_v22  ;;  %v7240_v43 = vpop.f32.mrb[45].mxu1 }
 0x416   : > { %v7267_v9 = vadd.f32 %v7240_v43, %v7062_v8  ;;  %v20870_v52 = vpop.f32.mrb[46].mxu1 }
 0x417   : > { %v7520_v40 = vadd.f32 %v20893_v13, %v7269_v11  ;;  %v7243_v20 = vpop.f32.mrb[47].mxu1  ;;  %v20929_v10 = vpop.f32.mrb[192].mxu0 }
 0x418   : > { %v7518_v47 = vadd.f32 %v7491_v59, %v7267_v9  ;;  %v7849_v60 = vpop.f32.mrb[193].mxu0  ;;  %v25044_v59 = vld [vmem:[%s27808_s4] ss:$0 sm:$0xff] }
 0x419   : > { %v20930_v54 = vpop.f32.mrb[194].mxu0 }
 0x41a   : > { %v7852_v46 = vpop.f32.mrb[195].mxu0 }
 0x41c   : > { %v20905_v32 = vpop.f32.mrb[48].mxu1 }
 0x41d   : > { %v7698_v63 = vadd.f32 %v20905_v32, %v7508_v14  ;;  %v7633_v23 = vpop.f32.mrb[49].mxu1 }
 0x41e   : > { %v7696_v25 = vadd.f32 %v7633_v23, %v7506_v39  ;;  %v20906_v1 = vpop.f32.mrb[50].mxu1 }
 0x41f   : > { %v7636_v53 = vpop.f32.mrb[51].mxu1  ;;  %v20933_v41 = vpop.f32.mrb[196].mxu0  ;;  %v7914_v3 = vadd.f32 %v20929_v10, %v7698_v63 }
 0x420   : > { %v7865_v37 = vpop.f32.mrb[197].mxu0  ;;  %v7912_v22 = vadd.f32 %v7849_v60, %v7696_v25  ;;  %v8222_v60 = vld [vmem:[#allocation2 + $0x8] sm:$0xf8] }
 0x421   : > { %v20934_v62 = vpop.f32.mrb[198].mxu0 }
 0x422   : > { %v7868_v8 = vpop.f32.mrb[199].mxu0 }
 0x424   : > { %v20909_v35 = vpop.f32.mrb[52].mxu1 }
 0x425   : > { %v7702_v57 = vadd.f32 %v20909_v35, %v7512_v49  ;;  %v7649_v4 = vpop.f32.mrb[53].mxu1 }
 0x426   : > { %v7700_v24 = vadd.f32 %v7649_v4, %v7510_v15  ;;  %v20910_v34 = vpop.f32.mrb[54].mxu1 }
 0x427   : > { %v7652_v55 = vpop.f32.mrb[55].mxu1  ;;  %v20937_v29 = vpop.f32.mrb[200].mxu0  ;;  %v7918_v12 = vadd.f32 %v20933_v41, %v7702_v57  ;;  %v8421_v41 = vshrl.u32 %v8222_v60, 16  ;;  %v25056_v57 = vld [vmem:[#allocation2 + $0x8] sm:$0xf0] }
 0x428   : > { %v7881_v28 = vpop.f32.mrb[201].mxu0  ;;  %v7916_v14 = vadd.f32 %v7865_v37, %v7700_v24 }
 0x429   : > { %v20938_v31 = vpop.f32.mrb[202].mxu0  ;;  %v8423_v4 = vrot.slane %v8421_v41, 3 }
 0x42a   : > { %v7884_v39 = vpop.f32.mrb[203].mxu0 }
 0x42c   : > { %v20913_v38 = vpop.f32.mrb[56].mxu1 }
 0x42d   : > { %v7706_v42 = vadd.f32 %v20913_v38, %v7516_v56  ;;  %v7665_v2 = vpop.f32.mrb[57].mxu1  ;;  %v8258_v38 = vrot.slane %v25056_v57, 4 }
 0x42e   : > { %v7704_v21 = vadd.f32 %v7665_v2, %v7514_v6  ;;  %v20914_v45 = vpop.f32.mrb[58].mxu1 }
 0x42f   : > { %v7668_v0 = vpop.f32.mrb[59].mxu1  ;;  %v20941_v19 = vpop.f32.mrb[204].mxu0  ;;  %v7922_v30 = vadd.f32 %v20937_v29, %v7706_v42 }
 0x430   : > { %v7897_v18 = vpop.f32.mrb[205].mxu0  ;;  %v7920_v49 = vadd.f32 %v7881_v28, %v7704_v21 }
 0x431   : > { %v20942_v61 = vpop.f32.mrb[206].mxu0 }
 0x432   : > { %v7900_v15 = vpop.f32.mrb[207].mxu0 }
 0x434   : > { %v20917_v26 = vpop.f32.mrb[60].mxu1 }
 0x435   : > { %v7710_v58 = vadd.f32 %v20917_v26, %v7520_v40  ;;  %v7681_v36 = vpop.f32.mrb[61].mxu1 }
 0x436   : > { %v7708_v51 = vadd.f32 %v7681_v36, %v7518_v47  ;;  %v20918_v16 = vpop.f32.mrb[62].mxu1 }
 0x437   : > { %v25037_v27 = vadd.f32 %v20941_v19, %v7710_v58  ;;  %v7684_v44 = vpop.f32.mrb[63].mxu1 }
 0x438   : > { %v25039_v13 = vadd.f32 %v7897_v18, %v7708_v51 }
 0x43c   : > { %v20953_v56 = vpop.f32.mrb[64].mxu1 }
 0x43d   : > { %v8104_v6 = vadd.f32 %v20953_v56, %v7914_v3  ;;  %v8039_v17 = vpop.f32.mrb[65].mxu1  ;;  %v8424_v3 = vshll.u32 %v8222_v60, 16  ;;  %v22356_v56 = vld [vmem:[%s27809_s5 + $0x48] sm:$0xff]  }
 0x43e   : > { %v8102_v50 = vadd.f32 %v8039_v17, %v7912_v22  ;;  %v20954_v33 = vpop.f32.mrb[66].mxu1 }
 0x43f   : > { %v8127_v11 = vadd.f32 %v25044_v59, %v8104_v6  ;;  %v8042_v43 = vpop.f32.mrb[67].mxu1  ;;  %v8426_v24 = vrot.slane %v8424_v3, 4 }
 0x440   : > { %v8125_v9 = vadd.f32 %v25044_v59, %v8102_v50 }
 0x441   : > { %v8143_v52 = vmax.f32 %v8127_v11, 0.0  ;;  %v8427_v45 = vor.u32 %v8426_v24, %v8423_v4 }
 0x442   : > { %v8141_v40 = vmax.f32 %v8125_v9, 0.0 }
 0x443   : > { %v8174_v20 = vpack.c.bf16 %v22553_v7, %v8143_v52 }
 0x444   : > { %v8173_v10 = vpack.c.bf16 %v22553_v7, %v8141_v40  ;;  %v20957_v47 = vpop.f32.mrb[68].mxu1 }
 0x445   : > { %v8190_v54 = vrot.slane %v8174_v20, 4  ;;  %v8108_v46 = vadd.f32 %v20957_v47, %v7918_v12  ;;  %v8055_v32 = vpop.f32.mrb[69].mxu1 }
 0x446   : > { %v8189_v63 = vrot.slane %v8173_v10, 4  ;;  %v8106_v23 = vadd.f32 %v8055_v32, %v7916_v14  ;;  %v20958_v25 = vpop.f32.mrb[70].mxu1 }
 0x447   : > { %v8131_v1 = vadd.f32 %v25044_v59, %v8108_v46  ;;  %v8058_v53 = vpop.f32.mrb[71].mxu1 }
 0x448   : > { %v8191_v37 = vsel %vm2854_vm8, %v8189_v63, %v8190_v54  ;;  %8213 = vst.msk [vmem:[#allocation2 + $0x10] sm:$0xf0] %vm445_vm5, %v8189_v63  ;;  %v8129_v22 = vadd.f32 %v25044_v59, %v8106_v23  ;;  %v22357_v63 = vld [vmem:[%s27809_s5 + $0x50] sm:$0xff]  }
 0x449   : > { %8214 = vst.msk [vmem:[#allocation2 + $0x18] sm:$0xff] %vm440_vm4, %v8191_v37  ;;  %v8147_v62 = vmax.f32 %v8131_v1, 0.0 }
 0x44a   : > { %v8145_v8 = vmax.f32 %v8129_v22, 0.0 }
 0x44b   : > { %v8176_v35 = vpack.c.bf16 %v22553_v7, %v8147_v62 }
 0x44c   : > { %v8175_v34 = vpack.c.bf16 %v22553_v7, %v8145_v8  ;;  %v20961_v55 = vpop.f32.mrb[72].mxu1 }
 0x44d   : > { %v8194_v29 = vrot.slane %v8176_v35, 4  ;;  %v8112_v12 = vadd.f32 %v20961_v55, %v7922_v30  ;;  %v8071_v28 = vpop.f32.mrb[73].mxu1 }
 0x44e   : > { %v8192_v14 = vrot.slane %v8175_v34, 4  ;;  %v8110_v31 = vadd.f32 %v8071_v28, %v7920_v49  ;;  %v20962_v39 = vpop.f32.mrb[74].mxu1 }
 0x44f   : > { %v8135_v42 = vadd.f32 %v25044_v59, %v8112_v12  ;;  %v8074_v2 = vpop.f32.mrb[75].mxu1  ;;  %v25061_v21 = vld [vmem:[#allocation2 + $0x10] sm:$0xff] }
 0x450   : > { %v8193_v0 = vsel %vm2854_vm8, %v8190_v54, %v8192_v14  ;;  %v8195_v19 = vsel %vm2854_vm8, %v8192_v14, %v8194_v29  ;;  %v8133_v18 = vadd.f32 %v25044_v59, %v8110_v31  ;;  %v8259_v30 = vrot.slane %v25061_v21, 4  ;;  %v25067_v61 = vld [vmem:[#allocation2 + $0x18] sm:$0xff] }
 0x451   : > { %8215 = vst.msk [vmem:[#allocation2 + $0x20] sm:$0xff] %vm440_vm4, %v8193_v0  ;;  %8216 = vst.msk [vmem:[#allocation2 + $0x28] sm:$0xff] %vm440_vm4, %v8195_v19  ;;  %v8151_v49 = vmax.f32 %v8135_v42, 0.0  ;;  %v25072_v15 = vrot.slane %v25067_v61, 4  ;;  %v8429_v26 = vshrl.u32 %v25061_v21, 16  ;;  %v8432_v58 = vshll.u32 %v25061_v21, 16 }
 0x452   : > { %v8149_v36 = vmax.f32 %v8133_v18, 0.0  ;;  %v8260_v51 = vsel %vm2854_vm8, %v8258_v38, %v8259_v30  ;;  %v8438_v16 = vshrl.u32 %v25067_v61, 16  ;;  %v8441_v44 = vshll.u32 %v25067_v61, 16  ;;  %v22359_v14 = vld [vmem:[%s27809_s5 + $0x58] sm:$0xff]  }
 0x453   : > { %v25083_v6 = vpack.c.bf16 %v22553_v7, %v8151_v49  ;;  %20975 = vmatprep.mubr.msk.bf16.mxu0 %vm440_vm4, %v8260_v51  ;;  %v8262_v17 = vsel %vm2854_vm8, %v8259_v30, %v25072_v15  ;;  %v8431_v50 = vrot.slane %v8429_v26, 3  ;;  %v8434_v33 = vrot.slane %v8432_v58, 4  ;;  %v25171_v49 = vld [vmem:[%s27809_s5 + $0x80] sm:$0xff]  }
 0x454   : > { %v8177_v11 = vpack.c.bf16 %v22553_v7, %v8149_v36  ;;  %v20965_v43 = vpop.f32.mrb[76].mxu1  ;;  %20976 = vmatmul.mubr.msk.bf16.vlgmr.msra.gmra.mrb[208].mxu0 %vm440_vm4, %v8262_v17  ;;  %v8440_v9 = vrot.slane %v8438_v16, 3  ;;  %v8443_v52 = vrot.slane %v8441_v44, 4  ;;  %v8659_v30 = vshll.u32 %v25056_v57, 16 }
 0x455   : > { %v8198_v40 = vrot.slane %v25083_v6, 4  ;;  %v8116_v20 = vadd.f32 %v20965_v43, %v25037_v27  ;;  %v8087_v10 = vpop.f32.mrb[77].mxu1  ;;  %21016 = vmatpush3.bf16.msra.mxu0 %v25025_v48  ;;  %v8435_v47 = vor.u32 %v8434_v33, %v8431_v50  ;;  %v22360_v48 = vld [vmem:[%s27809_s5 + $0x68] sm:$0xff]   ;;  %v22363_v50 = vld [vmem:[%s27809_s5 + $0x78] sm:$0xff]  }
 0x456   : > { %v8196_v60 = vrot.slane %v8177_v11, 4  ;;  %v8114_v54 = vadd.f32 %v8087_v10, %v25039_v13  ;;  %v20966_v46 = vpop.f32.mrb[78].mxu1  ;;  %v25102_v32 = vor.u32 %v8443_v52, %v8440_v9  ;;  %21017 = vmatprep.subr.bf16.mxu0 %v22356_v56  ;;  %v8661_v10 = vrot.slane %v8659_v30, 5 }
 0x457   : > { %v8139_v23 = vadd.f32 %v25044_v59, %v8116_v20  ;;  %v8090_v25 = vpop.f32.mrb[79].mxu1  ;;  %v8436_v27 = vsel %vm871_vm2, %v8427_v45, %v8435_v47  ;;  %v8656_v45 = vshrl.u32 %v25056_v57, 16 }
 0x458   : > { %v8197_v1 = vsel %vm2854_vm8, %v8194_v29, %v8196_v60  ;;  %v8199_v13 = vsel %vm2854_vm8, %v8196_v60, %v8198_v40  ;;  %v8137_v53 = vadd.f32 %v25044_v59, %v8114_v54  ;;  %v8445_v41 = vsel %vm871_vm2, %v8435_v47, %v25102_v32  ;;  %20999 = vmatprep.mubr.msk.bf16.mxu1 %vm440_vm4, %v8436_v27  ;;  %v25118_v3 = vld [vmem:[#allocation2 + $0x20] sm:$0xff]  ;;  %v25120_v37 = vld [vmem:[#allocation2 + $0x28] sm:$0xff] }
 0x459   : > { %8217 = vst.msk [vmem:[#allocation2 + $0x30] sm:$0xff] %vm440_vm4, %v8197_v1  ;;  %8218 = vst.msk [vmem:[#allocation2 + $0x38] sm:$0xff] %vm440_vm4, %v8199_v13  ;;  %v8155_v22 = vmax.f32 %v8139_v23, 0.0  ;;  %21000 = vmatmul.mubr.msk.bf16.vlgmr.msra.gmra.mrb[80].mxu1 %vm440_vm4, %v8445_v41  ;;  %v25126_v62 = vrot.slane %v25118_v3, 4  ;;  %v8265_v59 = vrot.slane %v25120_v37, 4  ;;  %v8456_v8 = vshrl.u32 %v25120_v37, 16  ;;  %21018 = vmatpush3.bf16.msra.mxu0 %v22356_v56 }
 0x45a   : > { %v8153_v35 = vmax.f32 %v8137_v53, 0.0  ;;  %v8459_v4 = vshll.u32 %v25120_v37, 16  ;;  %v8447_v24 = vshrl.u32 %v25118_v3, 16  ;;  %v8450_v34 = vshll.u32 %v25118_v3, 16  ;;  %21019 = vmatprep.subr.bf16.mxu0 %v22357_v63  ;;  %21040 = vmatpush3.bf16.msra.mxu1 %v25033_v5  ;;  %v22361_v5 = vld [vmem:[%s27809_s5 + $0x70] sm:$0xff]   ;;  %v25227_v1 = vld [vmem:[%s27809_s5 + $0xa0] sm:$0xff]  }
 0x45b   : > { %v8180_v55 = vpack.c.bf16 %v22553_v7, %v8155_v22  ;;  %v25138_v29 = vsel %vm2854_vm8, %v25072_v15, %v25126_v62  ;;  %v25142_v12 = vsel %vm2854_vm8, %v25126_v62, %v8265_v59  ;;  %v8458_v28 = vrot.slane %v8456_v8, 3  ;;  %21041 = vmatprep.subr.bf16.mxu1 %v22360_v48  ;;  %v22365_v37 = vld [vmem:[%s27809_s5 + $0x90] sm:$0xff]  }
 0x45c   : > { %v8179_v31 = vpack.c.bf16 %v22553_v7, %v8153_v35  ;;  %20979 = vmatprep.mubr.msk.bf16.mxu0 %vm440_vm4, %v25138_v29  ;;  %v8461_v39 = vrot.slane %v8459_v4, 4  ;;  %v8449_v38 = vrot.slane %v8447_v24, 3  ;;  %v8452_v42 = vrot.slane %v8450_v34, 4 }
 0x45d   : > { %v8202_v2 = vrot.slane %v8180_v55, 4  ;;  %20980 = vmatmul.mubr.msk.bf16.gmra.mrb[212].mxu0 %vm440_vm4, %v25142_v12  ;;  %v8658_v20 = vrot.slane %v8656_v45, 4  ;;  %v8663_v27 = vrot.slane %v8429_v26, 4 }
 0x45e   : > { %v8200_v0 = vrot.slane %v8179_v31, 4  ;;  %v25164_v19 = vor.u32 %v8452_v42, %v8449_v38  ;;  %v8462_v18 = vor.u32 %v8461_v39, %v8458_v28  ;;  %21020 = vmatpush3.bf16.msra.mxu0 %v22357_v63  ;;  %21042 = vmatpush3.bf16.msra.mxu1 %v22360_v48  ;;  %v8861_v63 = vld [vmem:[#allocation2 + $0x10] sm:$0xf8]  ;;  %v8664_v48 = vrot.slane %v8432_v58, 5 }
 0x45f   : > { %8221 = vst.msk [vmem:[#allocation2 + $0x50] sm:$0xf] %vm443_vm6, %v8202_v2  ;;  %21021 = vmatprep.subr.bf16.mxu0 %v22359_v14  ;;  %21043 = vmatprep.subr.bf16.mxu1 %v22361_v5  ;;  %v8880_v41 = vshrl.u32 %v8861_v63, 16  ;;  %v8883_v22 = vshll.u32 %v8861_v63, 16  ;;  %v8662_v35 = vor.u32 %v8661_v10, %v8658_v20  ;;  %v8671_v10 = vrot.slane %v8447_v24, 4 }
 0x460   : > { %v8201_v36 = vsel %vm2854_vm8, %v8198_v40, %v8200_v0  ;;  %v8203_v51 = vsel %vm2854_vm8, %v8200_v0, %v8202_v2  ;;  %v25178_v56 = vsel %vm871_vm2, %v25102_v32, %v25164_v19  ;;  %v25182_v57 = vsel %vm871_vm2, %v25164_v19, %v8462_v18  ;;  %v25184_v6 = vld [vmem:[#allocation2 + $0x30] sm:$0xff]  ;;  %v25186_v17 = vld [vmem:[#allocation2 + $0x38] sm:$0xff] }
 0x461   : > { %8219 = vst.msk [vmem:[#allocation2 + $0x40] sm:$0xff] %vm440_vm4, %v8201_v36  ;;  %8220 = vst.msk [vmem:[#allocation2 + $0x48] sm:$0xff] %vm440_vm4, %v8203_v51  ;;  %21003 = vmatprep.mubr.msk.bf16.mxu1 %vm440_vm4, %v25178_v56  ;;  %v8267_v33 = vrot.slane %v25184_v6, 4  ;;  %v8269_v11 = vrot.slane %v25186_v17, 4  ;;  %v8474_v43 = vshrl.u32 %v25186_v17, 16  ;;  %v8477_v9 = vshll.u32 %v25186_v17, 16 }
 0x462   : > { %21004 = vmatmul.mubr.msk.bf16.gmra.mrb[84].mxu1 %vm440_vm4, %v25182_v57  ;;  %v8465_v52 = vshrl.u32 %v25184_v6, 16  ;;  %v8468_v40 = vshll.u32 %v25184_v6, 16  ;;  %21022 = vmatpush3.bf16.msra.mxu0 %v22359_v14  ;;  %v8665_v55 = vor.u32 %v8664_v48, %v8663_v27  ;;  %v8882_v42 = vrot.slane %v8880_v41, 3  ;;  %v22367_v6 = vld [vmem:[%s27809_s5 + $0x98] sm:$0xff]  }
 0x463   : > { %v25204_v47 = vsel %vm2854_vm8, %v8265_v59, %v8267_v33  ;;  %v25207_v60 = vsel %vm2854_vm8, %v8267_v33, %v8269_v11  ;;  %v8476_v54 = vrot.slane %v8474_v43, 3  ;;  %v8479_v46 = vrot.slane %v8477_v9, 4  ;;  %21044 = vmatpush3.bf16.msra.mxu1 %v22361_v5  ;;  %21063 = vmatprep.subr.bf16.mxu0 %v25171_v49 }
 0x464   : > { %20983 = vmatprep.mubr.msk.bf16.mxu0 %vm440_vm4, %v25204_v47  ;;  %v8467_v23 = vrot.slane %v8465_v52, 3  ;;  %v8470_v25 = vrot.slane %v8468_v40, 4  ;;  %21045 = vmatprep.subr.bf16.mxu1 %v22363_v50  ;;  %v8885_v2 = vrot.slane %v8883_v22, 4  ;;  %v8668_v33 = vrot.slane %v8441_v44, 5 }
 0x465   : > { %20984 = vmatmul.mubr.msk.bf16.gmra.mrb[216].mxu0 %vm440_vm4, %v25207_v60  ;;  %v8480_v13 = vor.u32 %v8479_v46, %v8476_v54  ;;  %v8672_v54 = vrot.slane %v8450_v34, 5  ;;  %v22364_v34 = vld [vmem:[%s27809_s5 + $0x88] sm:$0xff]   ;;  %v8676_v27 = vrot.slane %v8459_v4, 5  ;;  %v8679_v48 = vrot.slane %v8465_v52, 4 }
 0x466   : > { %v8471_v53 = vor.u32 %v8470_v25, %v8467_v23  ;;  %v8886_v63 = vor.u32 %v8885_v2, %v8882_v42  ;;  %v8675_v25 = vrot.slane %v8456_v8, 4  ;;  %v9120_v42 = vld [vmem:[#allocation2 + $0x10] sm:$0xf0] }
 0x467   : > { %21046 = vmatpush3.bf16.msra.mxu1 %v22363_v50  ;;  %v8667_v50 = vrot.slane %v8438_v16, 4  ;;  %v25280_v24 = vor.u32 %v8672_v54, %v8671_v10 }
 0x468   : > { %v25232_v59 = vsel %vm871_vm2, %v8462_v18, %v8471_v53  ;;  %v25235_v21 = vsel %vm871_vm2, %v8471_v53, %v8480_v13  ;;  %v25237_v26 = vld [vmem:[#allocation2 + $0x40] sm:$0xff]  ;;  %v8230_v58 = vld [vmem:[#allocation2 + $0x48] sm:$0xf]  ;;  %21087 = vmatprep.subr.bf16.mxu1 %v25227_v1  ;;  %v8895_v3 = vsel %vm871_vm2, %v8886_v63, %v25102_v32  ;;  %v8677_v8 = vor.u32 %v8676_v27, %v8675_v25 }
 0x469   : > { %21007 = vmatprep.mubr.msk.bf16.mxu1 %vm440_vm4, %v25232_v59  ;;  %v25243_v28 = vrot.slane %v25237_v26, 4  ;;  %v8273_v14 = vrot.slane %v8230_v58, 4  ;;  %v8492_v5 = vshrl.u32 %v8230_v58, 16  ;;  %v8495_v31 = vshll.u32 %v8230_v58, 16  ;;  %v22368_v53 = vld [vmem:[%s27809_s5 + $0xa8] sm:$0xff]  }
 0x46a   : > { %21008 = vmatmul.mubr.msk.bf16.gmra.mrb[88].mxu1 %vm440_vm4, %v25235_v21  ;;  %v8483_v39 = vshrl.u32 %v25237_v26, 16  ;;  %v8486_v38 = vshll.u32 %v25237_v26, 16  ;;  %v25276_v44 = vor.u32 %v8668_v33, %v8667_v50  ;;  %v25325_v52 = vsel %vm3512_vm9, %v25280_v24, %v8677_v8  ;;  %v8645_v58 = vld [vmem:[#allocation2 + $0x48] sm:$0x1f] }
 0x46b   : > { %v25251_v45 = vsel %vm2854_vm8, %v8269_v11, %v25243_v28  ;;  %v8274_v0 = vsel %vm2854_vm8, %v25243_v28, %v8273_v14  ;;  %v8494_v18 = vrot.slane %v8492_v5, 3  ;;  %v8497_v30 = vrot.slane %v8495_v31, 4  ;;  %v22371_v31 = vld [vmem:[%s27809_s5 + $0xb8] sm:$0xff]  }
 0x46c   : > { %20987 = vmatprep.mubr.msk.bf16.mxu0 %vm440_vm4, %v25251_v45  ;;  %v8485_v36 = vrot.slane %v8483_v39, 3  ;;  %v8488_v51 = vrot.slane %v8486_v38, 4  ;;  %v8666_v11 = vsel %vm3512_vm9, %v8662_v35, %v8665_v55  ;;  %v8670_v23 = vsel %vm3512_vm9, %v8665_v55, %v25276_v44  ;;  %v22369_v35 = vld [vmem:[%s27809_s5 + $0xb0] sm:$0xff]  }
 0x46d   : > { %20988 = vmatmul.mubr.msk.bf16.gmra.mrb[220].mxu0 %vm440_vm4, %v8274_v0  ;;  %v8498_v20 = vor.u32 %v8497_v30, %v8494_v18  ;;  %v25299_v32 = vsel %vm3512_vm9, %v25276_v44, %v25280_v24  ;;  %v8687_v22 = vrot.slane %v8483_v39, 4  ;;  %v8688_v26 = vrot.slane %v8486_v38, 5  ;;  %v25363_v0 = vld [vmem:[#allocation2 + $0x50] sm:$0xf] }
 0x46e   : > { %21023 = vmatprep.mubr.msk.bf16.mxu0 %vm440_vm4, %v8666_v11  ;;  %v25268_v46 = vor.u32 %v8488_v51, %v8485_v36  ;;  %v8692_v55 = vshrl.u32 %v8645_v58, 16  ;;  %v8695_v14 = vshll.u32 %v8645_v58, 16  ;;  %v22374_v51 = vld [vmem:[%s27809_s5 + $0xe0] sm:$0xff]   ;;  %v9328_v33 = vshrl.u32 %v9120_v42, 16 }
 0x46f   : > { %v25347_v5 = vor.u32 %v8688_v26, %v8687_v22  ;;  %v9331_v11 = vshll.u32 %v9120_v42, 16  ;;  %v8954_v10 = vshll.u32 %v25363_v0, 16  ;;  %v9139_v63 = vrot.slane %v9120_v42, 4 }
 0x470   : > { %v25272_v61 = vsel %vm871_vm2, %v8480_v13, %v25268_v46  ;;  %v8499_v16 = vsel %vm871_vm2, %v25268_v46, %v8498_v20  ;;  %v8680_v13 = vrot.slane %v8468_v40, 5  ;;  %v8683_v40 = vrot.slane %v8474_v43, 4 }
 0x471   : > { %21011 = vmatprep.mubr.msk.bf16.mxu1 %vm440_vm4, %v25272_v61  ;;  %v8694_v18 = vrot.slane %v8692_v55, 4  ;;  %v8697_v30 = vrot.slane %v8695_v14, 5  ;;  %v8951_v20 = vshrl.u32 %v25363_v0, 16  ;;  %v8956_v25 = vrot.slane %v8954_v10, 4  ;;  %v9540_v10 = vld [vmem:[#allocation2 + $0x50] sm:$0xff] }
 0x472   : > { %21012 = vmatmul.mubr.msk.bf16.gmra.mrb[92].mxu1 %vm440_vm4, %v8499_v16  ;;  %v8681_v4 = vor.u32 %v8680_v13, %v8679_v48  ;;  %v9141_v48 = vsel %vm2854_vm8, %v9139_v63, %v25072_v15  ;;  %v22373_v15 = vld [vmem:[%s27809_s5 + $0xd0] sm:$0xff]  }
 0x473   : > { %21047 = vmatprep.mubr.msk.bf16.mxu1 %vm440_vm4, %v8895_v3  ;;  %v8698_v54 = vor.u32 %v8697_v30, %v8694_v18  ;;  %v9330_v3 = vrot.slane %v9328_v33, 4 }
 0x474   : > { %v25335_v41 = vsel %vm3512_vm9, %v8677_v8, %v8681_v4 }
 0x475   : > { %21024 = vmatmul.mubr.msk.bf16.vlgmr.msra.gmra.mrb[224].mxu0 %vm440_vm4, %v8670_v23  ;;  %v8953_v23 = vrot.slane %v8951_v20, 3  ;;  %v8699_v27 = vsel %vm3512_vm9, %v25347_v5, %v8698_v54  ;;  %v22380_v20 = vld [vmem:[%s27809_s5 + $0x108] sm:$0xff]   ;;  %v9541_v54 = vld [vmem:[#allocation2 + $0x58] sm:$0xf] }
 0x476   : > { %21064 = vmatpush3.bf16.msra.mxu0 %v25171_v49  ;;  %21027 = vmatprep.mubr.msk.bf16.mxu0 %vm440_vm4, %v25299_v32  ;;  %v25318_v49 = vld [vmem:[#allocation2 + $0x48] sm:$0xff] }
 0x477   : > { %21065 = vmatprep.subr.bf16.mxu0 %v22364_v34  ;;  %v8942_v17 = vshrl.u32 %v25318_v49, 16  ;;  %v8945_v43 = vshll.u32 %v25318_v49, 16 }
 0x479   : > { %v8944_v39 = vrot.slane %v8942_v17, 3  ;;  %v8947_v38 = vrot.slane %v8945_v43, 4  ;;  %v9359_v22 = vrot.slane %v8942_v17, 4  ;;  %v9360_v26 = vrot.slane %v8945_v43, 5 }
 0x47a   : > { %21048 = vmatmul.mubr.msk.bf16.vlgmr.msra.gmra.mrb[96].mxu1 %vm440_vm4, %v25178_v56  ;;  %21066 = vmatpush3.bf16.msra.mxu0 %v22364_v34  ;;  %v8684_v56 = vrot.slane %v8477_v9, 5  ;;  %v22370_v9 = vld [vmem:[%s27809_s5 + $0xc0] sm:$0xff]   ;;  %v9333_v34 = vrot.slane %v9331_v11, 5 }
 0x47b   : > { %21051 = vmatprep.mubr.msk.bf16.mxu1 %vm440_vm4, %v25182_v57  ;;  %21067 = vmatprep.subr.bf16.mxu0 %v22365_v37  ;;  %v25376_v50 = vor.u32 %v8947_v38, %v8944_v39 }
 0x47c   : > { %21088 = vmatpush3.bf16.msra.mxu1 %v25227_v1  ;;  %v8685_v1 = vor.u32 %v8684_v56, %v8683_v40  ;;  %v9334_v13 = vor.u32 %v9333_v34, %v9330_v3  ;;  %v25432_v40 = vrot.slane %v25318_v49, 4  ;;  %v22379_v56 = vld [vmem:[%s27809_s5 + $0xf8] sm:$0xff]   ;;  %v25454_v49 = vor.u32 %v9360_v26, %v9359_v22 }
 0x47d   : > { %21028 = vmatmul.mubr.msk.bf16.gmra.mrb[228].mxu0 %vm440_vm4, %v25325_v52  ;;  %21089 = vmatprep.subr.bf16.mxu1 %v22368_v53  ;;  %v25385_v16 = vsel %vm871_vm2, %v25268_v46, %v25376_v50  ;;  %v8957_v46 = vor.u32 %v8956_v25, %v8953_v23  ;;  %v9623_v3 = vshrl.u32 %v9541_v54, 16 }
 0x47e   : > { %21031 = vmatprep.mubr.msk.bf16.mxu0 %vm440_vm4, %v25335_v41  ;;  %21068 = vmatpush3.bf16.msra.mxu0 %v22365_v37  ;;  %v25361_v2 = vsel %vm3512_vm9, %v8681_v4, %v8685_v1  ;;  %v25369_v36 = vsel %vm3512_vm9, %v8685_v1, %v25347_v5  ;;  %v9338_v8 = vsel %vm3512_vm9, %v9334_v13, %v25276_v44  ;;  %v22372_v4 = vld [vmem:[%s27809_s5 + $0xc8] sm:$0xff]  }
 0x47f   : > { %21069 = vmatprep.subr.bf16.mxu0 %v22367_v6  ;;  %v8958_v37 = vsel %vm871_vm2, %v25376_v50, %v8957_v46  ;;  %v22376_v44 = vld [vmem:[%s27809_s5 + $0xe8] sm:$0xff]   ;;  %v25450_v1 = vsel %vm2854_vm8, %v25243_v28, %v25432_v40  ;;  %v9154_v28 = vrot.slane %v25363_v0, 4  ;;  %v9625_v25 = vrot.slane %v9623_v3, 3 }
 0x480   : > { %21090 = vmatpush3.bf16.msra.mxu1 %v22368_v53  ;;  %v22377_v53 = vld [vmem:[%s27809_s5 + $0xf0] sm:$0xff]   ;;  %v9824_v46 = vrot.slane %v9540_v10, 4 }
 0x481   : > { %21091 = vmatprep.subr.bf16.mxu1 %v22369_v35  ;;  %v9155_v18 = vsel %vm2854_vm8, %v25432_v40, %v9154_v28 }
 0x482   : > { %21052 = vmatmul.mubr.msk.bf16.gmra.mrb[100].mxu1 %vm440_vm4, %v25232_v59  ;;  %21070 = vmatpush3.bf16.msra.mxu0 %v22367_v6  ;;  %v9533_v6 = vld [vmem:[#allocation2 + $0x18] sm:$0xf8] }
 0x483   : > { %21055 = vmatprep.mubr.msk.bf16.mxu1 %vm440_vm4, %v25235_v21  ;;  %21111 = vmatprep.subr.bf16.mxu0 %v22370_v9  ;;  %v9552_v58 = vshrl.u32 %v9533_v6, 16 }
 0x484   : > { %21092 = vmatpush3.bf16.msra.mxu1 %v22369_v35  ;;  %v9555_v35 = vshll.u32 %v9533_v6, 16 }
 0x485   : > { %21032 = vmatmul.mubr.msk.bf16.gmra.mrb[232].mxu0 %vm440_vm4, %v25361_v2  ;;  %21093 = vmatprep.subr.bf16.mxu1 %v22371_v31  ;;  %v9554_v55 = vrot.slane %v9552_v58, 3 }
 0x486   : > { %21035 = vmatprep.mubr.msk.bf16.mxu0 %vm440_vm4, %v25369_v36  ;;  %v9557_v14 = vrot.slane %v9555_v35, 4 }
 0x488   : > { %21094 = vmatpush3.bf16.msra.mxu1 %v22371_v31  ;;  %v25461_v31 = vsel %vm3512_vm9, %v25347_v5, %v25454_v49  ;;  %v9558_v42 = vor.u32 %v9557_v14, %v9554_v55 }
 0x489   : > { %21135 = vmatprep.subr.bf16.mxu1 %v22374_v51 }
 0x48a   : > { %21056 = vmatmul.mubr.msk.bf16.gmra.mrb[104].mxu1 %vm440_vm4, %v25272_v61  ;;  %v9567_v30 = vsel %vm871_vm2, %v9558_v42, %v25164_v19  ;;  %v22381_v19 = vld [vmem:[%s27809_s5 + $0x110] sm:$0xff]   ;;  %v22385_v42 = vld [vmem:[%s27811_s7] sm:$0xff]  }
 0x48b   : > { %21059 = vmatprep.mubr.msk.bf16.mxu1 %vm440_vm4, %v25385_v16 }
 0x48d   : > { %21036 = vmatmul.mubr.msk.bf16.gmra.mrb[236].mxu0 %vm440_vm4, %v8699_v27 }
 0x48e   : > { %21071 = vmatprep.mubr.msk.bf16.mxu0 %vm440_vm4, %v9141_v48 }
 0x492   : > { %21060 = vmatmul.mubr.msk.bf16.gmra.mrb[108].mxu1 %vm440_vm4, %v8958_v37 }
 0x493   : > { %21095 = vmatprep.mubr.msk.bf16.mxu1 %vm440_vm4, %v9338_v8  ;;  %v9826_v8 = vrot.slane %v9541_v54, 4 }
 0x495   : > { %21072 = vmatmul.mubr.msk.bf16.vlgmr.msra.gmra.mrb[240].mxu0 %vm440_vm4, %v25138_v29  ;;  %v22375_v29 = vld [vmem:[%s27809_s5 + $0xd8] sm:$0xff]  }
 0x496   : > { %21112 = vmatpush3.bf16.msra.mxu0 %v22370_v9  ;;  %21075 = vmatprep.mubr.msk.bf16.mxu0 %vm440_vm4, %v25142_v12  ;;  %v9317_v9 = vld [vmem:[#allocation2 + $0x50] sm:$0x1f] }
 0x497   : > { %21113 = vmatprep.subr.bf16.mxu0 %v22372_v4  ;;  %v9364_v17 = vshrl.u32 %v9317_v9, 16  ;;  %v9367_v43 = vshll.u32 %v9317_v9, 16 }
 0x499   : > { %v9366_v39 = vrot.slane %v9364_v17, 4  ;;  %v9369_v38 = vrot.slane %v9367_v43, 5 }
 0x49a   : > { %21096 = vmatmul.mubr.msk.bf16.vlgmr.msra.gmra.mrb[112].mxu1 %vm440_vm4, %v25299_v32  ;;  %21114 = vmatpush3.bf16.msra.mxu0 %v22372_v4  ;;  %v22378_v32 = vld [vmem:[%s27809_s5 + $0x100] sm:$0xff]   ;;  %v9827_v4 = vsel %vm2854_vm8, %v9824_v46, %v9826_v8 }
 0x49b   : > { %21099 = vmatprep.mubr.msk.bf16.mxu1 %vm440_vm4, %v25325_v52  ;;  %21115 = vmatprep.subr.bf16.mxu0 %v22373_v15  ;;  %v9370_v5 = vor.u32 %v9369_v38, %v9366_v39  ;;  %v22384_v38 = vld [vmem:[%s27811_s7 + $0x28] sm:$0xff]  }
 0x49c   : > { %21136 = vmatpush3.bf16.msra.mxu1 %v22374_v51  ;;  %v9792_v51 = vld [vmem:[#allocation2 + $0x18] sm:$0xf0] }
 0x49d   : > { %21076 = vmatmul.mubr.msk.bf16.gmra.mrb[244].mxu0 %vm440_vm4, %v25204_v47  ;;  %21137 = vmatprep.subr.bf16.mxu1 %v22376_v44  ;;  %v9811_v33 = vrot.slane %v9792_v51, 4  ;;  %v9371_v0 = vsel %vm3512_vm9, %v25454_v49, %v9370_v5  ;;  %v10000_v23 = vshrl.u32 %v9792_v51, 16 }
 0x49e   : > { %21079 = vmatprep.mubr.msk.bf16.mxu0 %vm440_vm4, %v25207_v60  ;;  %21116 = vmatpush3.bf16.msra.mxu0 %v22373_v15  ;;  %v9989_v15 = vld [vmem:[#allocation2 + $0x58] sm:$0x1f] }
 0x49f   : > { %21117 = vmatprep.subr.bf16.mxu0 %v22375_v29  ;;  %v9813_v11 = vsel %vm2854_vm8, %v9811_v33, %v25126_v62  ;;  %v9614_v62 = vshrl.u32 %v9540_v10, 16  ;;  %v10002_v48 = vrot.slane %v10000_v23, 4 }
 0x4a0   : > { %21138 = vmatpush3.bf16.msra.mxu1 %v22376_v44 }
 0x4a1   : > { %21139 = vmatprep.subr.bf16.mxu1 %v22377_v53 }
 0x4a2   : > { %21100 = vmatmul.mubr.msk.bf16.gmra.mrb[116].mxu1 %vm440_vm4, %v25335_v41  ;;  %21118 = vmatpush3.bf16.msra.mxu0 %v22375_v29  ;;  %v10036_v29 = vshrl.u32 %v9989_v15, 16 }
 0x4a3   : > { %21103 = vmatprep.mubr.msk.bf16.mxu1 %vm440_vm4, %v25361_v2  ;;  %21159 = vmatprep.subr.bf16.mxu0 %v22378_v32 }
 0x4a4   : > { %21140 = vmatpush3.bf16.msra.mxu1 %v22377_v53  ;;  %v10039_v53 = vshll.u32 %v9989_v15, 16  ;;  %v10038_v6 = vrot.slane %v10036_v29, 4 }
 0x4a5   : > { %21080 = vmatmul.mubr.msk.bf16.gmra.mrb[248].mxu0 %vm440_vm4, %v25251_v45  ;;  %21141 = vmatprep.subr.bf16.mxu1 %v22379_v56 }
 0x4a6   : > { %21083 = vmatprep.mubr.msk.bf16.mxu0 %vm440_vm4, %v25450_v1 }
 0x4a8   : > { %21142 = vmatpush3.bf16.msra.mxu1 %v22379_v56 }
 0x4aa   : > { %21104 = vmatmul.mubr.msk.bf16.gmra.mrb[120].mxu1 %vm440_vm4, %v25369_v36 }
 0x4ab   : > { %21107 = vmatprep.mubr.msk.bf16.mxu1 %vm440_vm4, %v25461_v31 }
 0x4ad   : > { %21084 = vmatmul.mubr.msk.bf16.gmra.mrb[252].mxu0 %vm440_vm4, %v9155_v18 }
 0x4ae   : > { %21119 = vmatprep.mubr.msk.bf16.mxu0 %vm440_vm4, %v9567_v30 }
 0x4b2   : > { %21108 = vmatmul.mubr.msk.bf16.gmra.mrb[124].mxu1 %vm440_vm4, %v9371_v0 }
 0x4b3   : > { %21143 = vmatprep.mubr.msk.bf16.mxu1 %vm440_vm4, %v9813_v11 }
 0x4b5   : > { %21120 = vmatmul.mubr.msk.bf16.vlgmr.msra.gmra.mrb[0].mxu0 %vm440_vm4, %v25182_v57  ;;  %v9617_v57 = vshll.u32 %v9540_v10, 16 }
 0x4b6   : > { %21160 = vmatpush3.bf16.msra.mxu0 %v22378_v32  ;;  %21123 = vmatprep.mubr.msk.bf16.mxu0 %vm440_vm4, %v25232_v59  ;;  %v22382_v59 = vld [vmem:[%s27809_s5 + $0x118] sm:$0xff]  }
 0x4b7   : > { %21161 = vmatprep.subr.bf16.mxu0 %v22380_v20  ;;  %v9619_v63 = vrot.slane %v9617_v57, 4  ;;  %v10032_v44 = vrot.slane %v9617_v57, 5  ;;  %v22387_v57 = vld [vmem:[%s27811_s7 + $0x8] sm:$0xff]  }
 0x4ba   : > { %21144 = vmatmul.mubr.msk.bf16.vlgmr.msra.gmra.mrb[128].mxu1 %vm440_vm4, %v25142_v12  ;;  %21162 = vmatpush3.bf16.msra.mxu0 %v22380_v20  ;;  %v9616_v12 = vrot.slane %v9614_v62, 3 }
 0x4bb   : > { %21147 = vmatprep.mubr.msk.bf16.mxu1 %vm440_vm4, %v25204_v47  ;;  %21163 = vmatprep.subr.bf16.mxu0 %v22381_v19  ;;  %v9626_v47 = vshll.u32 %v9541_v54, 16 }
 0x4bc   : > { %v9620_v34 = vor.u32 %v9619_v63, %v9616_v12 }
 0x4bd   : > { %21124 = vmatmul.mubr.msk.bf16.gmra.mrb[4].mxu0 %vm440_vm4, %v25235_v21  ;;  %v10003_v21 = vshll.u32 %v9792_v51, 16  ;;  %v9628_v27 = vrot.slane %v9626_v47, 4 }
 0x4be   : > { %21127 = vmatprep.mubr.msk.bf16.mxu0 %vm440_vm4, %v25272_v61  ;;  %21164 = vmatpush3.bf16.msra.mxu0 %v22381_v19  ;;  %v9621_v61 = vsel %vm871_vm2, %v25376_v50, %v9620_v34 }
 0x4bf   : > { %21165 = vmatprep.subr.bf16.mxu0 %v22382_v59  ;;  %v10005_v13 = vrot.slane %v10003_v21, 5 }
 0x4c1   : > { %v10006_v37 = vor.u32 %v10005_v13, %v10002_v48  ;;  %v22390_v48 = vld [vmem:[%s27811_s7 + $0x18] sm:$0xff]   ;;  %v10309_v13 = vld [vmem:[#allocation2] sm:$0xf8] }
 0x4c2   : > { %21148 = vmatmul.mubr.msk.bf16.gmra.mrb[132].mxu1 %vm440_vm4, %v25207_v60  ;;  %21166 = vmatpush3.bf16.msra.mxu0 %v22382_v59  ;;  %v9629_v60 = vor.u32 %v9628_v27, %v9625_v25  ;;  %v22388_v59 = vld [vmem:[%s27811_s7 + $0x10] sm:$0xff]  }
 0x4c3   : > { %21151 = vmatprep.mubr.msk.bf16.mxu1 %vm440_vm4, %v25251_v45  ;;  %v9825_v45 = vsel %vm2854_vm8, %v25432_v40, %v9824_v46  ;;  %v10010_v50 = vsel %vm3512_vm9, %v10006_v37, %v25280_v24  ;;  %v10031_v24 = vrot.slane %v9614_v62, 4  ;;  %v10041_v40 = vrot.slane %v10039_v53, 5  ;;  %21207 = vmatprep.subr.bf16.mxu0 %v22385_v42  ;;  %v22386_v62 = vld [vmem:[%s27811_s7 + $0x30] sm:$0xff]  }
 0x4c4   : > { %v10570_v37 = vrot.slane %v10309_v13, 3 }
 0x4c5   : > { %21128 = vmatmul.mubr.msk.bf16.gmra.mrb[8].mxu0 %vm440_vm4, %v25385_v16  ;;  %v9630_v16 = vsel %vm871_vm2, %v9620_v34, %v9629_v60  ;;  %v10033_v32 = vor.u32 %v10032_v44, %v10031_v24 }
 0x4c6   : > { %21131 = vmatprep.mubr.msk.bf16.mxu0 %vm440_vm4, %v9621_v61  ;;  %v22389_v61 = vld [vmem:[%s27811_s7 + $0x38] sm:$0xff]  }
 0x4ca   : > { %21152 = vmatmul.mubr.msk.bf16.gmra.mrb[136].mxu1 %vm440_vm4, %v25450_v1 }
 0x4cb   : > { %21155 = vmatprep.mubr.msk.bf16.mxu1 %vm440_vm4, %v9825_v45  ;;  %v25571_v45 = vld [vmem:[#allocation2 + $0x8] sm:$0xff] }
 0x4cd   : > { %21132 = vmatmul.mubr.msk.bf16.gmra.mrb[12].mxu0 %vm440_vm4, %v9630_v16 }
 0x4ce   : > { %21167 = vmatprep.mubr.msk.bf16.mxu0 %vm440_vm4, %v10010_v50  ;;  %v10571_v50 = vrot.slane %v25571_v45, 3 }
 0x4d0   : > { %v10572_v29 = vsel %vm3149_vm7, %v10570_v37, %v10571_v50 }
 0x4d2   : > { %21156 = vmatmul.mubr.msk.bf16.gmra.mrb[140].mxu1 %vm440_vm4, %v9827_v4 }
 0x4d5   : > { %21168 = vmatmul.mubr.msk.bf16.vlgmr.msra.gmra.mrb[16].mxu0 %vm440_vm4, %v25325_v52  ;;  %v10034_v52 = vsel %vm3512_vm9, %v25454_v49, %v10033_v32 }
 0x4d6   : > { %21171 = vmatprep.mubr.msk.bf16.mxu0 %vm440_vm4, %v25335_v41  ;;  %v10042_v41 = vor.u32 %v10041_v40, %v10038_v6  ;;  %21208 = vmatpush3.bf16.msra.mxu0 %v22385_v42 }
 0x4d7   : > { %21209 = vmatprep.subr.bf16.mxu0 %v22387_v57 }
 0x4da   : > { %21210 = vmatpush3.bf16.msra.mxu0 %v22387_v57 }
 0x4db   : > { %21211 = vmatprep.subr.bf16.mxu0 %v22388_v59 }
 0x4dd   : > { %21172 = vmatmul.mubr.msk.bf16.gmra.mrb[20].mxu0 %vm440_vm4, %v25361_v2  ;;  %v10043_v2 = vsel %vm3512_vm9, %v10033_v32, %v10042_v41  ;;  %v10340_v41 = vshll.u32 %v10309_v13, 16 }
 0x4de   : > { %21175 = vmatprep.mubr.msk.bf16.mxu0 %vm440_vm4, %v25369_v36  ;;  %v22383_v36 = vld [vmem:[%s27811_s7 + $0x20] sm:$0xff]   ;;  %21212 = vmatpush3.bf16.msra.mxu0 %v22388_v59 }
 0x4df   : > { %21183 = vmatprep.subr.bf16.mxu1 %v22383_v36  ;;  %21213 = vmatprep.subr.bf16.mxu0 %v22390_v48 }
 0x4e0   : > { %21184 = vmatpush3.bf16.msra.mxu1 %v22383_v36  ;;  %v10348_v36 = vshll.u32 %v25571_v45, 16 }
 0x4e1   : > { %21185 = vmatprep.subr.bf16.mxu1 %v22384_v38 }
 0x4e2   : > { %21214 = vmatpush3.bf16.msra.mxu0 %v22390_v48 }
 0x4e4   : > { %21186 = vmatpush3.bf16.msra.mxu1 %v22384_v38 }
 0x4e5   : > { %21176 = vmatmul.mubr.msk.bf16.gmra.mrb[24].mxu0 %vm440_vm4, %v25461_v31  ;;  %21187 = vmatprep.subr.bf16.mxu1 %v22386_v62 }
 0x4e6   : > { %21179 = vmatprep.mubr.msk.bf16.mxu0 %vm440_vm4, %v10034_v52  ;;  %v10337_v52 = vshrl.u32 %v10309_v13, 16 }
 0x4e8   : > { %21188 = vmatpush3.bf16.msra.mxu1 %v22386_v62 }
 0x4e9   : > { %21189 = vmatprep.subr.bf16.mxu1 %v22389_v61 }
 0x4ec   : > { %21190 = vmatpush3.bf16.msra.mxu1 %v22389_v61 }
 0x4ed   : > { %21180 = vmatmul.mubr.msk.bf16.gmra.mrb[28].mxu0 %vm440_vm4, %v10043_v2  ;;  %v10345_v2 = vshrl.u32 %v25571_v45, 16 }
 0x4ee   : > { %21215 = vmatprep.mubr.msk.bf16.mxu0 %vm440_vm4, %v10572_v29 }
 0x527   : > { %v20977_v56 = vpop.f32.mrb[208].mxu0 }
 0x528   : > { %v8357_v22 = vpop.f32.mrb[209].mxu0 }
 0x529   : > { %v20978_v26 = vpop.f32.mrb[210].mxu0 }
 0x52a   : > { %v8360_v58 = vpop.f32.mrb[211].mxu0 }
 0x52c   : > { %v21001_v35 = vpop.f32.mrb[80].mxu1 }
 0x52d   : > { %v8591_v9 = vadd.f32 %v21001_v35, %v20977_v56  ;;  %v8582_v1 = vpop.f32.mrb[81].mxu1  ;;  %v25586_v56 = vld [vmem:[%s27811_s7 + $0x40] sm:$0xff]  }
 0x52e   : > { %v25538_v49 = vadd.f32 %v8582_v1, %v8357_v22  ;;  %v21002_v17 = vpop.f32.mrb[82].mxu1  ;;  %v10342_v1 = vrot.slane %v10340_v41, 4  ;;  %21231 = vmatprep.subr.bf16.mxu1 %v25586_v56 }
 0x52f   : > { %v8585_v43 = vpop.f32.mrb[83].mxu1 }
 0x530   : > { %v20981_v55 = vpop.f32.mrb[212].mxu0 }
 0x531   : > { %v8373_v14 = vpop.f32.mrb[213].mxu0 }
 0x532   : > { %v20982_v31 = vpop.f32.mrb[214].mxu0 }
 0x533   : > { %v8376_v28 = vpop.f32.mrb[215].mxu0 }
 0x535   : > { %v21005_v39 = vpop.f32.mrb[84].mxu1 }
 0x536   : > { %v25546_v18 = vadd.f32 %v21005_v39, %v20981_v55  ;;  %v8598_v30 = vpop.f32.mrb[85].mxu1  ;;  %v10350_v55 = vrot.slane %v10348_v36, 4 }
 0x537   : > { %v25548_v51 = vadd.f32 %v8598_v30, %v8373_v14  ;;  %v21006_v5 = vpop.f32.mrb[86].mxu1 }
 0x538   : > { %v8601_v33 = vpop.f32.mrb[87].mxu1  ;;  %v20985_v0 = vpop.f32.mrb[216].mxu0  ;;  %v25596_v5 = vld [vmem:[%s27811_s7 + $0x60] sm:$0xff]  }
 0x539   : > { %v8389_v11 = vpop.f32.mrb[217].mxu0  ;;  %21255 = vmatprep.subr.bf16.mxu0 %v25596_v5 }
 0x53a   : > { %v20986_v20 = vpop.f32.mrb[218].mxu0 }
 0x53b   : > { %v8392_v19 = vpop.f32.mrb[219].mxu0 }
 0x53d   : > { %v21009_v10 = vpop.f32.mrb[88].mxu1 }
 0x53e   : > { %v25559_v54 = vadd.f32 %v21009_v10, %v20985_v0  ;;  %v8614_v12 = vpop.f32.mrb[89].mxu1 }
 0x53f   : > { %v25561_v63 = vadd.f32 %v8614_v12, %v8389_v11  ;;  %v21010_v3 = vpop.f32.mrb[90].mxu1 }
 0x540   : > { %v8617_v47 = vpop.f32.mrb[91].mxu1  ;;  %v20989_v34 = vpop.f32.mrb[220].mxu0 }
 0x541   : > { %v8405_v23 = vpop.f32.mrb[221].mxu0  ;;  %v10940_v47 = vrot.slane %v10345_v2, 4 }
 0x542   : > { %v20990_v21 = vpop.f32.mrb[222].mxu0 }
 0x543   : > { %v8408_v25 = vpop.f32.mrb[223].mxu0 }
 0x545   : > { %v21013_v27 = vpop.f32.mrb[92].mxu1 }
 0x546   : > { %v25569_v60 = vadd.f32 %v21013_v27, %v20989_v34  ;;  %v8630_v46 = vpop.f32.mrb[93].mxu1  ;;  %v10941_v34 = vrot.slane %v10348_v36, 5 }
 0x547   : > { %v25573_v16 = vadd.f32 %v8630_v46, %v8405_v23  ;;  %v21014_v8 = vpop.f32.mrb[94].mxu1 }
 0x548   : > { %v8633_v4 = vpop.f32.mrb[95].mxu1  ;;  %v21025_v15 = vpop.f32.mrb[224].mxu0  ;;  %v25604_v27 = vor.u32 %v10941_v34, %v10940_v47 }
 0x549   : > { %v8782_v24 = vpop.f32.mrb[225].mxu0  ;;  %v8847_v44 = vadd.f32 %v21025_v15, %v8591_v9  ;;  %v10339_v9 = vrot.slane %v10337_v52, 3 }
 0x54a   : > { %v21026_v53 = vpop.f32.mrb[226].mxu0  ;;  %v8845_v32 = vadd.f32 %v8782_v24, %v25538_v49  ;;  %v10347_v49 = vrot.slane %v10345_v2, 3 }
 0x54b   : > { %v8785_v6 = vpop.f32.mrb[227].mxu0  ;;  %v10343_v28 = vor.u32 %v10342_v1, %v10339_v9 }
 0x54c   : > { %v25591_v42 = vor.u32 %v10350_v55, %v10347_v49 }
 0x54d   : > { %v21049_v40 = vpop.f32.mrb[96].mxu1 }
 0x54e   : > { %v9041_v22 = vpop.f32.mrb[97].mxu1  ;;  %v9106_v26 = vadd.f32 %v21049_v40, %v8847_v44  ;;  %v10352_v33 = vsel %vm871_vm2, %v10343_v28, %v25591_v42 }
 0x54f   : > { %v21050_v58 = vpop.f32.mrb[98].mxu1  ;;  %v9104_v35 = vadd.f32 %v9041_v22, %v8845_v32  ;;  %21191 = vmatprep.mubr.msk.bf16.mxu1 %vm440_vm4, %v10352_v33 }
 0x550   : > { %v9044_v17 = vpop.f32.mrb[99].mxu1  ;;  %v21029_v43 = vpop.f32.mrb[228].mxu0 }
 0x551   : > { %v8798_v14 = vpop.f32.mrb[229].mxu0  ;;  %v8851_v31 = vadd.f32 %v21029_v43, %v25546_v18 }
 0x552   : > { %v21030_v39 = vpop.f32.mrb[230].mxu0  ;;  %v8849_v38 = vadd.f32 %v8798_v14, %v25548_v51 }
 0x553   : > { %v8801_v30 = vpop.f32.mrb[231].mxu0 }
 0x555   : > { %v21053_v0 = vpop.f32.mrb[100].mxu1 }
 0x556   : > { %v9110_v18 = vadd.f32 %v21053_v0, %v8851_v31  ;;  %v9057_v11 = vpop.f32.mrb[101].mxu1 }
 0x557   : > { %v9108_v20 = vadd.f32 %v9057_v11, %v8849_v38  ;;  %v21054_v51 = vpop.f32.mrb[102].mxu1 }
 0x558   : > { %v9060_v19 = vpop.f32.mrb[103].mxu1  ;;  %v21033_v10 = vpop.f32.mrb[232].mxu0 }
 0x559   : > { %v8814_v62 = vpop.f32.mrb[233].mxu0  ;;  %v8855_v57 = vadd.f32 %v21033_v10, %v25559_v54 }
 0x55a   : > { %v21034_v59 = vpop.f32.mrb[234].mxu0  ;;  %v8853_v12 = vadd.f32 %v8814_v62, %v25561_v63 }
 0x55b   : > { %v8817_v3 = vpop.f32.mrb[235].mxu0 }
 0x55d   : > { %v21057_v23 = vpop.f32.mrb[104].mxu1 }
 0x55e   : > { %v9114_v21 = vadd.f32 %v21057_v23, %v8855_v57  ;;  %v9073_v25 = vpop.f32.mrb[105].mxu1 }
 0x55f   : > { %v9112_v61 = vadd.f32 %v9073_v25, %v8853_v12  ;;  %v21058_v48 = vpop.f32.mrb[106].mxu1 }
 0x560   : > { %v9076_v13 = vpop.f32.mrb[107].mxu1  ;;  %v21037_v46 = vpop.f32.mrb[236].mxu0 }
 0x561   : > { %v8830_v37 = vpop.f32.mrb[237].mxu0  ;;  %v8859_v8 = vadd.f32 %v21037_v46, %v25569_v60 }
 0x562   : > { %v21038_v4 = vpop.f32.mrb[238].mxu0  ;;  %v8857_v54 = vadd.f32 %v8830_v37, %v25573_v16 }
 0x563   : > { %v8833_v15 = vpop.f32.mrb[239].mxu0 }
 0x565   : > { %v21061_v63 = vpop.f32.mrb[108].mxu1 }
 0x566   : > { %v9118_v24 = vadd.f32 %v21061_v63, %v8859_v8  ;;  %v9089_v44 = vpop.f32.mrb[109].mxu1 }
 0x567   : > { %v9116_v29 = vadd.f32 %v9089_v44, %v8857_v54  ;;  %v21062_v53 = vpop.f32.mrb[110].mxu1 }
 0x568   : > { %v9092_v32 = vpop.f32.mrb[111].mxu1  ;;  %v21073_v6 = vpop.f32.mrb[240].mxu0 }
 0x569   : > { %v9303_v40 = vadd.f32 %v21073_v6, %v9106_v26  ;;  %v9238_v52 = vpop.f32.mrb[241].mxu0 }
 0x56a   : > { %v9301_v41 = vadd.f32 %v9238_v52, %v9104_v35  ;;  %v21074_v2 = vpop.f32.mrb[242].mxu0 }
 0x56b   : > { %v9241_v36 = vpop.f32.mrb[243].mxu0 }
 0x56d   : > { %v21097_v22 = vpop.f32.mrb[112].mxu1 }
 0x56e   : > { %v9519_v58 = vadd.f32 %v21097_v22, %v9303_v40  ;;  %v9454_v9 = vpop.f32.mrb[113].mxu1 }
 0x56f   : > { %v9517_v60 = vadd.f32 %v9454_v9, %v9301_v41  ;;  %v21098_v1 = vpop.f32.mrb[114].mxu1 }
 0x570   : > { %v9457_v49 = vpop.f32.mrb[115].mxu1  ;;  %v21077_v16 = vpop.f32.mrb[244].mxu0 }
 0x571   : > { %v9307_v17 = vadd.f32 %v21077_v16, %v9110_v18  ;;  %v9254_v43 = vpop.f32.mrb[245].mxu0 }
 0x572   : > { %v9305_v55 = vadd.f32 %v9254_v43, %v9108_v20  ;;  %v21078_v14 = vpop.f32.mrb[246].mxu0 }
 0x573   : > { %v9257_v31 = vpop.f32.mrb[247].mxu0 }
 0x575   : > { %v21101_v28 = vpop.f32.mrb[116].mxu1 }
 0x576   : > { %v9523_v39 = vadd.f32 %v21101_v28, %v9307_v17  ;;  %v9470_v38 = vpop.f32.mrb[117].mxu1 }
 0x577   : > { %v9521_v26 = vadd.f32 %v9470_v38, %v9305_v55  ;;  %v21102_v30 = vpop.f32.mrb[118].mxu1 }
 0x578   : > { %v9473_v35 = vpop.f32.mrb[119].mxu1  ;;  %v21081_v33 = vpop.f32.mrb[248].mxu0 }
 0x579   : > { %v9311_v0 = vadd.f32 %v21081_v33, %v9114_v21  ;;  %v9270_v11 = vpop.f32.mrb[249].mxu0 }
 0x57a   : > { %v9309_v51 = vadd.f32 %v9270_v11, %v9112_v61  ;;  %v21082_v19 = vpop.f32.mrb[250].mxu0 }
 0x57b   : > { %v9273_v10 = vpop.f32.mrb[251].mxu0 }
 0x57d   : > { %v21105_v62 = vpop.f32.mrb[120].mxu1 }
 0x57e   : > { %v9527_v57 = vadd.f32 %v21105_v62, %v9311_v0  ;;  %v9486_v59 = vpop.f32.mrb[121].mxu1 }
 0x57f   : > { %v9525_v18 = vadd.f32 %v9486_v59, %v9309_v51  ;;  %v21106_v12 = vpop.f32.mrb[122].mxu1 }
 0x580   : > { %v9489_v20 = vpop.f32.mrb[123].mxu1  ;;  %v21085_v3 = vpop.f32.mrb[252].mxu0 }
 0x581   : > { %v9315_v47 = vadd.f32 %v21085_v3, %v9118_v24  ;;  %v9286_v34 = vpop.f32.mrb[253].mxu0 }
 0x582   : > { %v9313_v23 = vadd.f32 %v9286_v34, %v9116_v29  ;;  %v21086_v25 = vpop.f32.mrb[254].mxu0 }
 0x583   : > { %v9289_v48 = vpop.f32.mrb[255].mxu0  ;;  %v25615_v25 = vld [vmem:[%s27810_s6] ss:$0 sm:$0xff] }
 0x585   : > { %v21109_v13 = vpop.f32.mrb[124].mxu1 }
 0x586   : > { %v9531_v46 = vadd.f32 %v21109_v13, %v9315_v47  ;;  %v9502_v37 = vpop.f32.mrb[125].mxu1 }
 0x587   : > { %v9529_v21 = vadd.f32 %v9502_v37, %v9313_v23  ;;  %v21110_v8 = vpop.f32.mrb[126].mxu1 }
 0x588   : > { %v9505_v61 = vpop.f32.mrb[127].mxu1  ;;  %v21121_v4 = vpop.f32.mrb[0].mxu0 }
 0x589   : > { %v9778_v54 = vadd.f32 %v21121_v4, %v9519_v58  ;;  %v9713_v15 = vpop.f32.mrb[1].mxu0 }
 0x58a   : > { %v9776_v63 = vadd.f32 %v9713_v15, %v9517_v60  ;;  %v21122_v44 = vpop.f32.mrb[2].mxu0 }
 0x58b   : > { %v9716_v53 = vpop.f32.mrb[3].mxu0 }
 0x58d   : > { %v21145_v32 = vpop.f32.mrb[128].mxu1 }
 0x58e   : > { %v9975_v6 = vadd.f32 %v21145_v32, %v9778_v54  ;;  %v9910_v40 = vpop.f32.mrb[129].mxu1 }
 0x58f   : > { %v9973_v24 = vadd.f32 %v9910_v40, %v9776_v63  ;;  %v21146_v52 = vpop.f32.mrb[130].mxu1 }
 0x590   : > { %v9913_v29 = vpop.f32.mrb[131].mxu1  ;;  %v21125_v41 = vpop.f32.mrb[4].mxu0 }
 0x591   : > { %v9782_v2 = vadd.f32 %v21125_v41, %v9523_v39  ;;  %v9729_v36 = vpop.f32.mrb[5].mxu0 }
 0x592   : > { %v9780_v22 = vadd.f32 %v9729_v36, %v9521_v26  ;;  %v21126_v9 = vpop.f32.mrb[6].mxu0 }
 0x593   : > { %v9732_v1 = vpop.f32.mrb[7].mxu0 }
 0x595   : > { %v21149_v49 = vpop.f32.mrb[132].mxu1 }
 0x596   : > { %v9979_v16 = vadd.f32 %v21149_v49, %v9782_v2  ;;  %v9926_v17 = vpop.f32.mrb[133].mxu1 }
 0x597   : > { %v9977_v58 = vadd.f32 %v9926_v17, %v9780_v22  ;;  %v21150_v43 = vpop.f32.mrb[134].mxu1 }
 0x598   : > { %v9929_v60 = vpop.f32.mrb[135].mxu1  ;;  %v21129_v55 = vpop.f32.mrb[8].mxu0 }
 0x599   : > { %v9786_v14 = vadd.f32 %v21129_v55, %v9527_v57  ;;  %v9745_v31 = vpop.f32.mrb[9].mxu0 }
 0x59a   : > { %v9784_v28 = vadd.f32 %v9745_v31, %v9525_v18  ;;  %v21130_v38 = vpop.f32.mrb[10].mxu0 }
 0x59b   : > { %v9748_v30 = vpop.f32.mrb[11].mxu0 }
 0x59d   : > { %v21153_v35 = vpop.f32.mrb[136].mxu1 }
 0x59e   : > { %v9983_v33 = vadd.f32 %v21153_v35, %v9786_v14  ;;  %v9942_v0 = vpop.f32.mrb[137].mxu1 }
 0x59f   : > { %v9981_v39 = vadd.f32 %v9942_v0, %v9784_v28  ;;  %v21154_v11 = vpop.f32.mrb[138].mxu1 }
 0x5a0   : > { %v9945_v26 = vpop.f32.mrb[139].mxu1  ;;  %v21133_v51 = vpop.f32.mrb[12].mxu0 }
 0x5a1   : > { %v9790_v19 = vadd.f32 %v21133_v51, %v9531_v46  ;;  %v9761_v10 = vpop.f32.mrb[13].mxu0 }
 0x5a2   : > { %v9788_v62 = vadd.f32 %v9761_v10, %v9529_v21  ;;  %v21134_v59 = vpop.f32.mrb[14].mxu0  ;;  %v22395_v10 = vld [vmem:[%s27811_s7 + $0x68] sm:$0xff]  }
 0x5a3   : > { %v9764_v12 = vpop.f32.mrb[15].mxu0 }
 0x5a5   : > { %v21157_v20 = vpop.f32.mrb[140].mxu1 }
 0x5a6   : > { %v25608_v3 = vadd.f32 %v21157_v20, %v9790_v19  ;;  %v9958_v57 = vpop.f32.mrb[141].mxu1 }
 0x5a7   : > { %v25610_v47 = vadd.f32 %v9958_v57, %v9788_v62  ;;  %v21158_v18 = vpop.f32.mrb[142].mxu1 }
 0x5a8   : > { %v9961_v34 = vpop.f32.mrb[143].mxu1  ;;  %v21169_v23 = vpop.f32.mrb[16].mxu0 }
 0x5a9   : > { %v10191_v48 = vadd.f32 %v21169_v23, %v9975_v6  ;;  %v10126_v13 = vpop.f32.mrb[17].mxu0 }
 0x5aa   : > { %v10189_v46 = vadd.f32 %v10126_v13, %v9973_v24  ;;  %v21170_v37 = vpop.f32.mrb[18].mxu0 }
 0x5ab   : > { %v10214_v21 = vadd.f32 %v25615_v25, %v10191_v48  ;;  %v10129_v8 = vpop.f32.mrb[19].mxu0 }
 0x5ac   : > { %v10212_v61 = vadd.f32 %v25615_v25, %v10189_v46 }
 0x5ad   : > { %v10230_v4 = vmax.f32 %v10214_v21, 0.0 }
 0x5ae   : > { %v10228_v54 = vmax.f32 %v10212_v61, 0.0 }
 0x5af   : > { %v10261_v15 = vpack.c.bf16 %v22553_v7, %v10230_v4 }
 0x5b0   : > { %v10260_v63 = vpack.c.bf16 %v22553_v7, %v10228_v54  ;;  %v21173_v44 = vpop.f32.mrb[20].mxu0 }
 0x5b1   : > { %v10277_v53 = vrot.slane %v10261_v15, 4  ;;  %v10195_v32 = vadd.f32 %v21173_v44, %v9979_v16  ;;  %v10142_v40 = vpop.f32.mrb[21].mxu0  ;;  %v22392_v44 = vld [vmem:[%s27811_s7 + $0x48] sm:$0xff]  }
 0x5b2   : > { %v10276_v52 = vrot.slane %v10260_v63, 4  ;;  %v10193_v6 = vadd.f32 %v10142_v40, %v9977_v58  ;;  %v21174_v29 = vpop.f32.mrb[22].mxu0 }
 0x5b3   : > { %v10218_v24 = vadd.f32 %v25615_v25, %v10195_v32  ;;  %v10145_v41 = vpop.f32.mrb[23].mxu0  ;;  %v22396_v32 = vld [vmem:[%s27811_s7 + $0x70] sm:$0xff]  }
 0x5b4   : > { %v10278_v2 = vsel %vm2854_vm8, %v10276_v52, %v10277_v53  ;;  %10300 = vst.msk [vmem:[#allocation2 + $0x10] sm:$0xf0] %vm445_vm5, %v10276_v52  ;;  %v10216_v36 = vadd.f32 %v25615_v25, %v10193_v6 }
 0x5b5   : > { %10301 = vst.msk [vmem:[#allocation2 + $0x18] sm:$0xff] %vm440_vm4, %v10278_v2  ;;  %v10234_v22 = vmax.f32 %v10218_v24, 0.0 }
 0x5b6   : > { %v10232_v9 = vmax.f32 %v10216_v36, 0.0 }
 0x5b7   : > { %v10263_v1 = vpack.c.bf16 %v22553_v7, %v10234_v22 }
 0x5b8   : > { %v10262_v49 = vpack.c.bf16 %v22553_v7, %v10232_v9  ;;  %v21177_v16 = vpop.f32.mrb[24].mxu0 }
 0x5b9   : > { %v10281_v17 = vrot.slane %v10263_v1, 4  ;;  %v10199_v58 = vadd.f32 %v21177_v16, %v9983_v33  ;;  %v10158_v43 = vpop.f32.mrb[25].mxu0 }
 0x5ba   : > { %v10279_v60 = vrot.slane %v10262_v49, 4  ;;  %v10197_v55 = vadd.f32 %v10158_v43, %v9981_v39  ;;  %v21178_v14 = vpop.f32.mrb[26].mxu0  ;;  %v22394_v49 = vld [vmem:[%s27811_s7 + $0x50] sm:$0xff]   ;;  %v22398_v43 = vld [vmem:[%s27811_s7 + $0x78] sm:$0xff]  }
 0x5bb   : > { %v10222_v31 = vadd.f32 %v25615_v25, %v10199_v58  ;;  %v10161_v28 = vpop.f32.mrb[27].mxu0  ;;  %v25629_v38 = vld [vmem:[#allocation2 + $0x10] sm:$0xff] }
 0x5bc   : > { %v10280_v30 = vsel %vm2854_vm8, %v10277_v53, %v10279_v60  ;;  %v10282_v35 = vsel %vm2854_vm8, %v10279_v60, %v10281_v17  ;;  %v10220_v0 = vadd.f32 %v25615_v25, %v10197_v55  ;;  %v25635_v11 = vrot.slane %v25629_v38, 3  ;;  %v25637_v26 = vld [vmem:[#allocation2 + $0x18] sm:$0xff]  ;;  %v25727_v60 = vld [vmem:[#allocation2] sm:$0xf0] }
 0x5bd   : > { %10302 = vst.msk [vmem:[#allocation2 + $0x20] sm:$0xff] %vm440_vm4, %v10280_v30  ;;  %10303 = vst.msk [vmem:[#allocation2 + $0x28] sm:$0xff] %vm440_vm4, %v10282_v35  ;;  %v10238_v33 = vmax.f32 %v10222_v31, 0.0  ;;  %v10575_v39 = vrot.slane %v25637_v26, 3  ;;  %v10354_v51 = vshrl.u32 %v25629_v38, 16  ;;  %v10357_v19 = vshll.u32 %v25629_v38, 16 }
 0x5be   : > { %v10236_v62 = vmax.f32 %v10220_v0, 0.0  ;;  %v10574_v59 = vsel %vm3149_vm7, %v10571_v50, %v25635_v11  ;;  %v10363_v12 = vshrl.u32 %v25637_v26, 16  ;;  %v10366_v20 = vshll.u32 %v25637_v26, 16 }
 0x5bf   : > { %v25654_v57 = vpack.c.bf16 %v22553_v7, %v10238_v33  ;;  %21216 = vmatmul.mubr.msk.bf16.vlgmr.msra.gmra.mrb[32].mxu0 %vm440_vm4, %v10574_v59  ;;  %v25659_v18 = vsel %vm3149_vm7, %v25635_v11, %v10575_v39  ;;  %v10356_v34 = vrot.slane %v10354_v51, 3  ;;  %v10359_v23 = vrot.slane %v10357_v19, 4 }
 0x5c0   : > { %v10264_v50 = vpack.c.bf16 %v22553_v7, %v10236_v62  ;;  %v21181_v48 = vpop.f32.mrb[28].mxu0  ;;  %21219 = vmatprep.mubr.msk.bf16.mxu0 %vm440_vm4, %v25659_v18  ;;  %v10365_v13 = vrot.slane %v10363_v12, 3  ;;  %v10368_v46 = vrot.slane %v10366_v20, 4  ;;  %21256 = vmatpush3.bf16.msra.mxu0 %v25596_v5  ;;  %v10936_v62 = vshll.u32 %v25727_v60, 16 }
 0x5c1   : > { %v10285_v37 = vrot.slane %v25654_v57, 4  ;;  %v10203_v21 = vadd.f32 %v21181_v48, %v25608_v3  ;;  %v10174_v8 = vpop.f32.mrb[29].mxu0  ;;  %v25675_v61 = vor.u32 %v10359_v23, %v10356_v34  ;;  %21257 = vmatprep.subr.bf16.mxu0 %v22395_v10  ;;  %v25753_v34 = vld [vmem:[%s27811_s7 + $0xa0] sm:$0xff]  }
 0x5c2   : > { %v10283_v4 = vrot.slane %v10264_v50, 4  ;;  %v10201_v54 = vadd.f32 %v10174_v8, %v25610_v47  ;;  %v21182_v15 = vpop.f32.mrb[30].mxu0  ;;  %v10369_v63 = vor.u32 %v10368_v46, %v10365_v13 }
 0x5c3   : > { %v10226_v53 = vadd.f32 %v25615_v25, %v10203_v21  ;;  %v10361_v5 = vsel %vm871_vm2, %v25591_v42, %v25675_v61  ;;  %v10177_v3 = vpop.f32.mrb[31].mxu0 }
 0x5c4   : > { %v10284_v40 = vsel %vm2854_vm8, %v10281_v17, %v10283_v4  ;;  %v10286_v47 = vsel %vm2854_vm8, %v10283_v4, %v10285_v37  ;;  %v25692_v52 = vld [vmem:[#allocation2 + $0x20] sm:$0xff]  ;;  %v10224_v6 = vadd.f32 %v25615_v25, %v10201_v54  ;;  %21192 = vmatmul.mubr.msk.bf16.vlgmr.msra.gmra.mrb[144].mxu1 %vm440_vm4, %v10361_v5  ;;  %v25698_v42 = vsel %vm871_vm2, %v25675_v61, %v10369_v63  ;;  %v25700_v29 = vld [vmem:[#allocation2 + $0x28] sm:$0xff] }
 0x5c5   : > { %10304 = vst.msk [vmem:[#allocation2 + $0x30] sm:$0xff] %vm440_vm4, %v10284_v40  ;;  %10305 = vst.msk [vmem:[#allocation2 + $0x38] sm:$0xff] %vm440_vm4, %v10286_v47  ;;  %v10242_v24 = vmax.f32 %v10226_v53, 0.0  ;;  %v10577_v41 = vrot.slane %v25692_v52, 3  ;;  %v10372_v2 = vshrl.u32 %v25692_v52, 16  ;;  %v10375_v36 = vshll.u32 %v25692_v52, 16  ;;  %21195 = vmatprep.mubr.msk.bf16.mxu1 %vm440_vm4, %v25698_v42  ;;  %21232 = vmatpush3.bf16.msra.mxu1 %v25586_v56 }
 0x5c6   : > { %v10240_v25 = vmax.f32 %v10224_v6, 0.0  ;;  %v10579_v22 = vrot.slane %v25700_v29, 3  ;;  %21233 = vmatprep.subr.bf16.mxu1 %v22392_v44  ;;  %v10381_v9 = vshrl.u32 %v25700_v29, 16  ;;  %v10384_v1 = vshll.u32 %v25700_v29, 16  ;;  %21258 = vmatpush3.bf16.msra.mxu0 %v22395_v10 }
 0x5c7   : > { %v10267_v16 = vpack.c.bf16 %v22553_v7, %v10242_v24  ;;  %v25718_v17 = vsel %vm3149_vm7, %v10575_v39, %v10577_v41  ;;  %v10374_v56 = vrot.slane %v10372_v2, 3  ;;  %v10377_v58 = vrot.slane %v10375_v36, 4  ;;  %21259 = vmatprep.subr.bf16.mxu0 %v22396_v32  ;;  %v22397_v39 = vld [vmem:[%s27811_s7 + $0x58] sm:$0xff]  }
 0x5c8   : > { %v10266_v55 = vpack.c.bf16 %v22553_v7, %v10240_v25  ;;  %21220 = vmatmul.mubr.msk.bf16.gmra.mrb[36].mxu0 %vm440_vm4, %v25718_v17  ;;  %v25733_v14 = vsel %vm3149_vm7, %v10577_v41, %v10579_v22  ;;  %v10383_v31 = vrot.slane %v10381_v9, 3  ;;  %v10386_v28 = vrot.slane %v10384_v1, 4 }
 0x5c9   : > { %v10289_v30 = vrot.slane %v10267_v16, 4  ;;  %v10378_v35 = vor.u32 %v10377_v58, %v10374_v56  ;;  %21223 = vmatprep.mubr.msk.bf16.mxu0 %vm440_vm4, %v25733_v14  ;;  %21234 = vmatpush3.bf16.msra.mxu1 %v22392_v44  ;;  %v10933_v10 = vshrl.u32 %v25727_v60, 16  ;;  %v25783_v44 = vld [vmem:[%s27811_s7 + $0x80] sm:$0xff]  }
 0x5ca   : > { %v10287_v0 = vrot.slane %v10266_v55, 4  ;;  %v10387_v33 = vor.u32 %v10386_v28, %v10383_v31  ;;  %21235 = vmatprep.subr.bf16.mxu1 %v22394_v49  ;;  %21260 = vmatpush3.bf16.msra.mxu0 %v22396_v32  ;;  %v10944_v31 = vrot.slane %v10354_v51, 4  ;;  %v10744_v28 = vrot.slane %v25727_v60, 4 }
 0x5cb   : > { %10308 = vst.msk [vmem:[#allocation2 + $0x50] sm:$0xf] %vm443_vm6, %v10289_v30  ;;  %v25748_v59 = vsel %vm871_vm2, %v10369_v63, %v10378_v35  ;;  %21261 = vmatprep.subr.bf16.mxu0 %v22398_v43  ;;  %v10935_v15 = vrot.slane %v10933_v10, 4  ;;  %v10938_v63 = vrot.slane %v10936_v62, 5  ;;  %v10949_v10 = vrot.slane %v10366_v20, 5 }
 0x5cc   : > { %v10288_v23 = vsel %vm2854_vm8, %v10285_v37, %v10287_v0  ;;  %v10290_v50 = vsel %vm2854_vm8, %v10287_v0, %v10289_v30  ;;  %v25759_v48 = vld [vmem:[#allocation2 + $0x30] sm:$0xff]  ;;  %21196 = vmatmul.mubr.msk.bf16.gmra.mrb[148].mxu1 %vm440_vm4, %v25748_v59  ;;  %v25764_v13 = vsel %vm871_vm2, %v10378_v35, %v10387_v33  ;;  %v25766_v46 = vld [vmem:[#allocation2 + $0x38] sm:$0xff]  ;;  %v10745_v51 = vrot.slane %v25571_v45, 4 }
 0x5cd   : > { %10306 = vst.msk [vmem:[#allocation2 + $0x40] sm:$0xff] %vm440_vm4, %v10288_v23  ;;  %10307 = vst.msk [vmem:[#allocation2 + $0x48] sm:$0xff] %vm440_vm4, %v10290_v50  ;;  %v10581_v57 = vrot.slane %v25759_v48, 3  ;;  %v10390_v37 = vshrl.u32 %v25759_v48, 16  ;;  %v10393_v21 = vshll.u32 %v25759_v48, 16  ;;  %21199 = vmatprep.mubr.msk.bf16.mxu1 %vm440_vm4, %v25764_v13  ;;  %v25776_v8 = vrot.slane %v25766_v46, 3  ;;  %21236 = vmatpush3.bf16.msra.mxu1 %v22394_v49 }
 0x5ce   : > { %v10399_v4 = vshrl.u32 %v25766_v46, 16  ;;  %v10402_v54 = vshll.u32 %v25766_v46, 16  ;;  %21237 = vmatprep.subr.bf16.mxu1 %v22397_v39  ;;  %21262 = vmatpush3.bf16.msra.mxu0 %v22398_v43  ;;  %v10939_v41 = vor.u32 %v10938_v63, %v10935_v15  ;;  %v10746_v60 = vsel %vm2854_vm8, %v10744_v28, %v10745_v51  ;;  %v22405_v28 = vld [vmem:[%s27811_s7 + $0x98] sm:$0xff]  }
 0x5cf   : > { %v25786_v53 = vsel %vm3149_vm7, %v10579_v22, %v10581_v57  ;;  %v10392_v5 = vrot.slane %v10390_v37, 3  ;;  %v10395_v3 = vrot.slane %v10393_v21, 4  ;;  %v25794_v32 = vsel %vm3149_vm7, %v10581_v57, %v25776_v8  ;;  %21303 = vmatprep.subr.bf16.mxu0 %v25753_v34 }
 0x5d0   : > { %21224 = vmatmul.mubr.msk.bf16.gmra.mrb[40].mxu0 %vm440_vm4, %v25786_v53  ;;  %v10401_v40 = vrot.slane %v10399_v4, 3  ;;  %v10404_v47 = vrot.slane %v10402_v54, 4  ;;  %v10943_v55 = vsel %vm3512_vm9, %v10939_v41, %v25604_v27  ;;  %v10952_v57 = vrot.slane %v10372_v2, 4 }
 0x5d1   : > { %v10396_v6 = vor.u32 %v10395_v3, %v10392_v5  ;;  %21227 = vmatprep.mubr.msk.bf16.mxu0 %vm440_vm4, %v25794_v32  ;;  %21238 = vmatpush3.bf16.msra.mxu1 %v22397_v39  ;;  %v10948_v39 = vrot.slane %v10363_v12, 4  ;;  %v22403_v12 = vld [vmem:[%s27811_s7 + $0xa8] sm:$0xff]   ;;  %v10953_v15 = vrot.slane %v10375_v36, 5  ;;  %v25857_v63 = vrot.slane %v25629_v38, 4 }
 0x5d2   : > { %v25805_v24 = vor.u32 %v10404_v47, %v10401_v40  ;;  %21279 = vmatprep.subr.bf16.mxu1 %v25783_v44  ;;  %v10749_v3 = vrot.slane %v25637_v26, 4  ;;  %v10957_v2 = vrot.slane %v10384_v1, 5  ;;  %v22400_v36 = vld [vmem:[%s27811_s7 + $0x88] sm:$0xff]  }
 0x5d3   : > { %v25809_v25 = vsel %vm871_vm2, %v10387_v33, %v10396_v6  ;;  %v10945_v33 = vrot.slane %v10357_v19, 5  ;;  %v10950_v19 = vor.u32 %v10949_v10, %v10948_v39  ;;  %v10954_v40 = vor.u32 %v10953_v15, %v10952_v57  ;;  %v22407_v10 = vld [vmem:[%s27811_s7 + $0xc0] sm:$0xff]  }
 0x5d4   : > { %v10317_v22 = vld [vmem:[#allocation2 + $0x40] sm:$0x7]  ;;  %21200 = vmatmul.mubr.msk.bf16.gmra.mrb[152].mxu1 %vm440_vm4, %v25809_v25  ;;  %v25817_v16 = vsel %vm871_vm2, %v10396_v6, %v25805_v24  ;;  %v10748_v47 = vsel %vm2854_vm8, %v10745_v51, %v25857_v63  ;;  %v25883_v1 = vsel %vm2854_vm8, %v25857_v63, %v10749_v3  ;;  %v22402_v6 = vld [vmem:[%s27811_s7 + $0x90] sm:$0xff]  }
 0x5d5   : > { %v25813_v49 = vld [vmem:[#allocation2 + $0x40] sm:$0xf]  ;;  %v10585_v56 = vrot.slane %v10317_v22, 3  ;;  %21203 = vmatprep.mubr.msk.bf16.mxu1 %vm440_vm4, %v25817_v16  ;;  %v25842_v50 = vor.u32 %v10945_v33, %v10944_v31  ;;  %v25892_v41 = vsel %vm3512_vm9, %v10950_v19, %v10954_v40  ;;  %v10751_v22 = vrot.slane %v25692_v52, 4 }
 0x5d6   : > { %v10408_v58 = vshrl.u32 %v25813_v49, 16  ;;  %v10411_v43 = vshll.u32 %v25813_v49, 16  ;;  %v25908_v31 = vld [vmem:[#allocation2 + $0x40] sm:$0x1f] }
 0x5d7   : > { %v10586_v30 = vsel %vm3149_vm7, %v25776_v8, %v10585_v56  ;;  %v10947_v20 = vsel %vm3512_vm9, %v25604_v27, %v25842_v50  ;;  %v25862_v5 = vsel %vm3512_vm9, %v25842_v50, %v10950_v19  ;;  %v10956_v27 = vrot.slane %v10381_v9, 4  ;;  %v22404_v9 = vld [vmem:[%s27811_s7 + $0xb0] sm:$0xff]  }
 0x5d8   : > { %v10410_v35 = vrot.slane %v10408_v58, 3  ;;  %v10413_v0 = vrot.slane %v10411_v43, 4  ;;  %21228 = vmatmul.mubr.msk.bf16.gmra.mrb[44].mxu0 %vm440_vm4, %v10586_v30  ;;  %v10960_v56 = vrot.slane %v10390_v37, 4  ;;  %v22406_v58 = vld [vmem:[%s27811_s7 + $0xb8] sm:$0xff]   ;;  %v10964_v37 = vrot.slane %v10399_v4, 4 }
 0x5d9   : > { %21263 = vmatprep.mubr.msk.bf16.mxu0 %vm440_vm4, %v10943_v55  ;;  %v10753_v55 = vrot.slane %v25700_v29, 4  ;;  %v25920_v30 = vsel %vm2854_vm8, %v10749_v3, %v10751_v22  ;;  %v10972_v4 = vshll.u32 %v25908_v31, 16  ;;  %v11138_v3 = vld [vmem:[#allocation2] sm:$0xe0] }
 0x5da   : > { %v10414_v62 = vor.u32 %v10413_v0, %v10410_v35  ;;  %v10969_v0 = vshrl.u32 %v25908_v31, 16 }
 0x5db   : > { %v25930_v33 = vsel %vm2854_vm8, %v10751_v22, %v10753_v55 }
 0x5dc   : > { %v10415_v23 = vsel %vm871_vm2, %v25805_v24, %v10414_v62  ;;  %v10755_v62 = vrot.slane %v25759_v48, 4 }
 0x5dd   : > { %21204 = vmatmul.mubr.msk.bf16.gmra.mrb[156].mxu1 %vm440_vm4, %v10415_v23  ;;  %v10974_v23 = vrot.slane %v10972_v4, 5 }
 0x5de   : > { %21239 = vmatprep.mubr.msk.bf16.mxu1 %vm440_vm4, %v10746_v60  ;;  %v10971_v60 = vrot.slane %v10969_v0, 4  ;;  %v25957_v57 = vsel %vm2854_vm8, %v10753_v55, %v10755_v62  ;;  %v11159_v55 = vrot.slane %v25700_v29, 5  ;;  %v22417_v29 = vld [vmem:[%s27811_s7 + $0x120] sm:$0xff]   ;;  %v11336_v0 = vld [vmem:[#allocation2 + $0x48] sm:$0x7] }
 0x5e0   : > { %21264 = vmatmul.mubr.msk.bf16.vlgmr.msra.gmra.mrb[48].mxu0 %vm440_vm4, %v10947_v20  ;;  %v25954_v20 = vld [vmem:[#allocation2 + $0x8] sm:$0xf8]  ;;  %v10975_v15 = vor.u32 %v10974_v23, %v10971_v60 }
 0x5e1   : > { %21267 = vmatprep.mubr.msk.bf16.mxu0 %vm440_vm4, %v25862_v5  ;;  %21304 = vmatpush3.bf16.msra.mxu0 %v25753_v34  ;;  %v10958_v34 = vor.u32 %v10957_v2, %v10956_v27  ;;  %v11355_v2 = vrot.slane %v25954_v20, 3  ;;  %v26055_v60 = vld [vmem:[#allocation2 + $0x8] sm:$0xf0] }
 0x5e2   : > { %21305 = vmatprep.subr.bf16.mxu0 %v22403_v12 }
 0x5e3   : > { %v25905_v43 = vsel %vm3512_vm9, %v10954_v40, %v10958_v34 }
 0x5e5   : > { %21240 = vmatmul.mubr.msk.bf16.vlgmr.msra.gmra.mrb[160].mxu1 %vm440_vm4, %v10748_v47  ;;  %21306 = vmatpush3.bf16.msra.mxu0 %v22403_v12  ;;  %v25950_v12 = vrot.slane %v25766_v46, 4  ;;  %v10759_v47 = vrot.slane %v25813_v49, 4  ;;  %v22411_v49 = vld [vmem:[%s27811_s7 + $0xe8] sm:$0xff]  }
 0x5e6   : > { %21280 = vmatpush3.bf16.msra.mxu1 %v25783_v44  ;;  %21243 = vmatprep.mubr.msk.bf16.mxu1 %vm440_vm4, %v25883_v1  ;;  %v10961_v44 = vrot.slane %v10393_v21, 5  ;;  %v10965_v21 = vrot.slane %v10402_v54, 5  ;;  %v22409_v54 = vld [vmem:[%s27811_s7 + $0xe0] sm:$0xff]  }
 0x5e7   : > { %21281 = vmatprep.subr.bf16.mxu1 %v22400_v36  ;;  %21307 = vmatprep.subr.bf16.mxu0 %v22404_v9  ;;  %v25963_v27 = vsel %vm2854_vm8, %v10755_v62, %v25950_v12  ;;  %v10760_v22 = vsel %vm2854_vm8, %v25950_v12, %v10759_v47  ;;  %v11547_v62 = vshll.u32 %v25954_v20, 16 }
 0x5e8   : > { %21268 = vmatmul.mubr.msk.bf16.gmra.mrb[52].mxu0 %vm440_vm4, %v25892_v41  ;;  %v10962_v35 = vor.u32 %v10961_v44, %v10960_v56  ;;  %v25932_v39 = vor.u32 %v10965_v21, %v10964_v37  ;;  %v25985_v56 = vrot.slane %v25629_v38, 5  ;;  %v22412_v38 = vld [vmem:[%s27811_s7 + $0xf0] sm:$0xff]   ;;  %v26019_v37 = vld [vmem:[#allocation2 + $0x40] sm:$0xff] }
 0x5e9   : > { %21271 = vmatprep.mubr.msk.bf16.mxu0 %vm440_vm4, %v25905_v43  ;;  %21308 = vmatpush3.bf16.msra.mxu0 %v22404_v9  ;;  %v11357_v9 = vsel %vm3149_vm7, %v11355_v2, %v25635_v11  ;;  %v22408_v11 = vld [vmem:[%s27811_s7 + $0xc8] sm:$0xff]  }
 0x5ea   : > { %21282 = vmatpush3.bf16.msra.mxu1 %v22400_v36  ;;  %21309 = vmatprep.subr.bf16.mxu0 %v22406_v58  ;;  %v25940_v51 = vsel %vm3512_vm9, %v10958_v34, %v10962_v35  ;;  %v25947_v19 = vsel %vm3512_vm9, %v10962_v35, %v25932_v39  ;;  %v11150_v36 = vrot.slane %v11138_v3, 5  ;;  %v10976_v40 = vsel %vm3512_vm9, %v25932_v39, %v10975_v15 }
 0x5eb   : > { %21283 = vmatprep.subr.bf16.mxu1 %v22402_v6  ;;  %v11151_v34 = vrot.slane %v25571_v45, 5  ;;  %v11155_v45 = vrot.slane %v25637_v26, 5  ;;  %v11161_v35 = vrot.slane %v25759_v48, 5  ;;  %v11165_v3 = vrot.slane %v25908_v31, 5  ;;  %v22419_v31 = vld [vmem:[%s27811_s7 + $0x128] sm:$0xff]  }
 0x5ed   : > { %21244 = vmatmul.mubr.msk.bf16.gmra.mrb[164].mxu1 %vm440_vm4, %v25920_v30  ;;  %21310 = vmatpush3.bf16.msra.mxu0 %v22406_v58  ;;  %v11154_v44 = vsel %vm3731_vm10, %v11151_v34, %v25985_v56  ;;  %v26003_v26 = vsel %vm3731_vm10, %v25985_v56, %v11155_v45  ;;  %v22414_v58 = vld [vmem:[%s27811_s7 + $0xf8] sm:$0xff]   ;;  %v26058_v48 = vsel %vm3731_vm10, %v11159_v55, %v11161_v35 }
 0x5ee   : > { %21247 = vmatprep.mubr.msk.bf16.mxu1 %vm440_vm4, %v25930_v33  ;;  %21284 = vmatpush3.bf16.msra.mxu1 %v22402_v6  ;;  %v11152_v6 = vsel %vm3731_vm10, %v11150_v36, %v11151_v34  ;;  %v22425_v34 = vld [vmem:[%s27811_s7 + $0x160] sm:$0xff]  }
 0x5ef   : > { %21285 = vmatprep.subr.bf16.mxu1 %v22405_v28  ;;  %21351 = vmatprep.subr.bf16.mxu0 %v22409_v54 }
 0x5f0   : > { %21272 = vmatmul.mubr.msk.bf16.gmra.mrb[56].mxu0 %vm440_vm4, %v25940_v51 }
 0x5f1   : > { %21275 = vmatprep.mubr.msk.bf16.mxu0 %vm440_vm4, %v25947_v19 }
 0x5f2   : > { %21286 = vmatpush3.bf16.msra.mxu1 %v22405_v28  ;;  %v22415_v28 = vld [vmem:[%s27811_s7 + $0x100] sm:$0xff]  }
 0x5f3   : > { %21327 = vmatprep.subr.bf16.mxu1 %v22407_v10 }
 0x5f5   : > { %21248 = vmatmul.mubr.msk.bf16.gmra.mrb[168].mxu1 %vm440_vm4, %v25957_v57 }
 0x5f6   : > { %21251 = vmatprep.mubr.msk.bf16.mxu1 %vm440_vm4, %v25963_v27 }
 0x5f8   : > { %21276 = vmatmul.mubr.msk.bf16.gmra.mrb[60].mxu0 %vm440_vm4, %v10976_v40 }
 0x5f9   : > { %21311 = vmatprep.mubr.msk.bf16.mxu0 %vm440_vm4, %v11357_v9  ;;  %v11609_v9 = vshll.u32 %v26019_v37, 16 }
 0x5fd   : > { %21252 = vmatmul.mubr.msk.bf16.gmra.mrb[172].mxu1 %vm440_vm4, %v10760_v22  ;;  %v11611_v22 = vrot.slane %v11609_v9, 4 }
 0x5fe   : > { %21287 = vmatprep.mubr.msk.bf16.mxu1 %vm440_vm4, %v11152_v6  ;;  %v26120_v6 = vrot.slane %v26019_v37, 4 }
 0x600   : > { %21312 = vmatmul.mubr.msk.bf16.vlgmr.msra.gmra.mrb[64].mxu0 %vm440_vm4, %v25659_v18  ;;  %v22410_v18 = vld [vmem:[%s27811_s7 + $0xd0] sm:$0xff]  }
 0x601   : > { %21315 = vmatprep.mubr.msk.bf16.mxu0 %vm440_vm4, %v25718_v17  ;;  %21352 = vmatpush3.bf16.msra.mxu0 %v22409_v54  ;;  %v11157_v17 = vrot.slane %v25692_v52, 5  ;;  %v22413_v52 = vld [vmem:[%s27811_s7 + $0xd8] sm:$0xff]   ;;  %v26050_v54 = vrot.slane %v25766_v46, 5 }
 0x602   : > { %21353 = vmatprep.subr.bf16.mxu0 %v22411_v49 }
 0x603   : > { %v26025_v21 = vsel %vm3731_vm10, %v11155_v45, %v11157_v17  ;;  %v26064_v46 = vsel %vm3731_vm10, %v11161_v35, %v26050_v54  ;;  %v11166_v40 = vsel %vm3731_vm10, %v26050_v54, %v11165_v3  ;;  %v26208_v3 = vrot.slane %v26019_v37, 5 }
 0x605   : > { %21288 = vmatmul.mubr.msk.bf16.vlgmr.msra.gmra.mrb[176].mxu1 %vm440_vm4, %v11154_v44  ;;  %21354 = vmatpush3.bf16.msra.mxu0 %v22411_v49  ;;  %v26131_v49 = vld [vmem:[#allocation2 + $0x50] sm:$0xff]  ;;  %v11810_v44 = vsel %vm2854_vm8, %v25950_v12, %v26120_v6 }
 0x606   : > { %21328 = vmatpush3.bf16.msra.mxu1 %v22407_v10  ;;  %21291 = vmatprep.mubr.msk.bf16.mxu1 %vm440_vm4, %v26003_v26  ;;  %v11544_v10 = vshrl.u32 %v25954_v20, 16  ;;  %v11549_v20 = vrot.slane %v11547_v62, 4 }
 0x607   : > { %21329 = vmatprep.subr.bf16.mxu1 %v22408_v11  ;;  %21355 = vmatprep.subr.bf16.mxu0 %v22412_v38 }
 0x608   : > { %21316 = vmatmul.mubr.msk.bf16.gmra.mrb[68].mxu0 %vm440_vm4, %v25733_v14  ;;  %v26033_v14 = vsel %vm3731_vm10, %v11157_v17, %v11159_v55  ;;  %v11546_v23 = vrot.slane %v11544_v10, 3  ;;  %v26142_v17 = vld [vmem:[#allocation2 + $0x58] sm:$0xff]  ;;  %v26146_v55 = vrot.slane %v26131_v49, 5 }
 0x609   : > { %21319 = vmatprep.mubr.msk.bf16.mxu0 %vm440_vm4, %v25786_v53  ;;  %21356 = vmatpush3.bf16.msra.mxu0 %v22412_v38  ;;  %v26036_v53 = vrot.slane %v26019_v37, 3  ;;  %v11985_v38 = vshrl.u32 %v26055_v60, 16  ;;  %v15371_v12 = vrot.slane %v26142_v17, 5 }
 0x60a   : > { %21330 = vmatpush3.bf16.msra.mxu1 %v22408_v11  ;;  %21357 = vmatprep.subr.bf16.mxu0 %v22414_v58  ;;  %v11550_v36 = vor.u32 %v11549_v20, %v11546_v23  ;;  %v22427_v23 = vld [vmem:[%s27811_s7 + $0x168] sm:$0xff]   ;;  %v22429_v20 = vld [vmem:[%s27811_s7 + $0x158] sm:$0xff]  }
 0x60b   : > { %21331 = vmatprep.subr.bf16.mxu1 %v22410_v18  ;;  %v11369_v4 = vsel %vm3149_vm7, %v25776_v8, %v26036_v53  ;;  %v11796_v8 = vrot.slane %v26055_v60, 4  ;;  %v26159_v10 = vsel %vm3731_vm10, %v26146_v55, %v15371_v12 }
 0x60c   : > { %v11559_v47 = vsel %vm871_vm2, %v11550_v36, %v25675_v61  ;;  %v22420_v61 = vld [vmem:[%s27811_s7 + $0x130] sm:$0xff]  }
 0x60d   : > { %21292 = vmatmul.mubr.msk.bf16.gmra.mrb[180].mxu1 %vm440_vm4, %v26025_v21  ;;  %21358 = vmatpush3.bf16.msra.mxu0 %v22414_v58  ;;  %v11798_v2 = vsel %vm2854_vm8, %v11796_v8, %v25857_v63  ;;  %v22416_v63 = vld [vmem:[%s27811_s7 + $0x108] sm:$0xff]  }
 0x60e   : > { %21295 = vmatprep.mubr.msk.bf16.mxu1 %vm440_vm4, %v26033_v14  ;;  %21332 = vmatpush3.bf16.msra.mxu1 %v22410_v18  ;;  %v11988_v18 = vshll.u32 %v26055_v60, 16  ;;  %v12190_v58 = vld [vmem:[#allocation2 + $0x8] sm:$0xe0] }
 0x60f   : > { %21333 = vmatprep.subr.bf16.mxu1 %v22413_v52  ;;  %21399 = vmatprep.subr.bf16.mxu0 %v22417_v29  ;;  %v12202_v35 = vrot.slane %v12190_v58, 5 }
 0x610   : > { %21320 = vmatmul.mubr.msk.bf16.gmra.mrb[72].mxu0 %vm440_vm4, %v25794_v32  ;;  %v11370_v32 = vrot.slane %v11336_v0, 3  ;;  %v11987_v0 = vrot.slane %v11985_v38, 4 }
 0x611   : > { %21323 = vmatprep.mubr.msk.bf16.mxu0 %vm440_vm4, %v11369_v4  ;;  %v11990_v4 = vrot.slane %v11988_v18, 5 }
 0x612   : > { %21334 = vmatpush3.bf16.msra.mxu1 %v22413_v52  ;;  %v11371_v15 = vsel %vm3149_vm7, %v26036_v53, %v11370_v32 }
 0x613   : > { %21375 = vmatprep.subr.bf16.mxu1 %v22415_v28 }
 0x615   : > { %21296 = vmatmul.mubr.msk.bf16.gmra.mrb[184].mxu1 %vm440_vm4, %v26058_v48 }
 0x616   : > { %21299 = vmatprep.mubr.msk.bf16.mxu1 %vm440_vm4, %v26064_v46 }
 0x618   : > { %21324 = vmatmul.mubr.msk.bf16.gmra.mrb[76].mxu0 %vm440_vm4, %v11371_v15  ;;  %v11974_v15 = vld [vmem:[#allocation2 + $0x48] sm:$0x1f] }
 0x619   : > { %21359 = vmatprep.mubr.msk.bf16.mxu0 %vm440_vm4, %v11798_v2  ;;  %v26217_v2 = vld [vmem:[%s27811_s7 + $0x1a0] sm:$0xff]  }
 0x61d   : > { %21300 = vmatmul.mubr.msk.bf16.gmra.mrb[188].mxu1 %vm440_vm4, %v11166_v40 }
 0x61e   : > { %21335 = vmatprep.mubr.msk.bf16.mxu1 %vm440_vm4, %v11559_v47 }
 0x620   : > { %21360 = vmatmul.mubr.msk.bf16.vlgmr.msra.gmra.mrb[80].mxu0 %vm440_vm4, %v25883_v1  ;;  %v22418_v1 = vld [vmem:[%s27811_s7 + $0x110] sm:$0xff]  }
 0x621   : > { %21363 = vmatprep.mubr.msk.bf16.mxu0 %vm440_vm4, %v25920_v30  ;;  %21400 = vmatpush3.bf16.msra.mxu0 %v22417_v29  ;;  %v22422_v30 = vld [vmem:[%s27811_s7 + $0x138] sm:$0xff]  }
 0x622   : > { %21401 = vmatprep.subr.bf16.mxu0 %v22419_v31 }
 0x625   : > { %21336 = vmatmul.mubr.msk.bf16.vlgmr.msra.gmra.mrb[192].mxu1 %vm440_vm4, %v25698_v42  ;;  %21402 = vmatpush3.bf16.msra.mxu0 %v22419_v31  ;;  %v11606_v42 = vshrl.u32 %v26019_v37, 16  ;;  %v12021_v37 = vshrl.u32 %v11974_v15, 16 }
 0x626   : > { %21376 = vmatpush3.bf16.msra.mxu1 %v22415_v28  ;;  %21339 = vmatprep.mubr.msk.bf16.mxu1 %vm440_vm4, %v25748_v59  ;;  %v22421_v59 = vld [vmem:[%s27811_s7 + $0x118] sm:$0xff]  }
 0x627   : > { %21377 = vmatprep.subr.bf16.mxu1 %v22416_v63  ;;  %21403 = vmatprep.subr.bf16.mxu0 %v22420_v61 }
 0x628   : > { %21364 = vmatmul.mubr.msk.bf16.gmra.mrb[84].mxu0 %vm440_vm4, %v25930_v33  ;;  %v11533_v33 = vld [vmem:[#allocation2 + $0x48] sm:$0xf] }
 0x629   : > { %21367 = vmatprep.mubr.msk.bf16.mxu0 %vm440_vm4, %v25957_v57  ;;  %21404 = vmatpush3.bf16.msra.mxu0 %v22420_v61  ;;  %v11608_v57 = vrot.slane %v11606_v42, 3  ;;  %v11615_v45 = vshrl.u32 %v11533_v33, 16  ;;  %v11618_v11 = vshll.u32 %v11533_v33, 16 }
 0x62a   : > { %21378 = vmatpush3.bf16.msra.mxu1 %v22416_v63  ;;  %21405 = vmatprep.subr.bf16.mxu0 %v22422_v30  ;;  %v26230_v63 = vld [vmem:[%s27811_s7 + $0x180] sm:$0xff]  }
 0x62b   : > { %21379 = vmatprep.subr.bf16.mxu1 %v22418_v1  ;;  %v11617_v52 = vrot.slane %v11615_v45, 3  ;;  %v11620_v29 = vrot.slane %v11618_v11, 4 }
 0x62d   : > { %21340 = vmatmul.mubr.msk.bf16.gmra.mrb[196].mxu1 %vm440_vm4, %v25764_v13  ;;  %21406 = vmatpush3.bf16.msra.mxu0 %v22422_v30  ;;  %v22423_v13 = vld [vmem:[%s27811_s7 + $0x140] sm:$0xff]   ;;  %v11621_v60 = vor.u32 %v11620_v29, %v11617_v52 }
 0x62e   : > { %21343 = vmatprep.mubr.msk.bf16.mxu1 %vm440_vm4, %v25809_v25  ;;  %21380 = vmatpush3.bf16.msra.mxu1 %v22418_v1  ;;  %v26138_v25 = vor.u32 %v11611_v22, %v11608_v57  ;;  %v12024_v1 = vshll.u32 %v11974_v15, 16 }
 0x62f   : > { %21381 = vmatprep.subr.bf16.mxu1 %v22421_v59  ;;  %21447 = vmatprep.subr.bf16.mxu0 %v22425_v34 }
 0x630   : > { %21368 = vmatmul.mubr.msk.bf16.gmra.mrb[88].mxu0 %vm440_vm4, %v25963_v27  ;;  %v11811_v27 = vrot.slane %v11533_v33, 4  ;;  %v11613_v28 = vsel %vm871_vm2, %v25805_v24, %v26138_v25  ;;  %v12204_v24 = vsel %vm3731_vm10, %v12202_v35, %v25985_v56  ;;  %v11622_v32 = vsel %vm871_vm2, %v26138_v25, %v11621_v60  ;;  %v22424_v56 = vld [vmem:[%s27811_s7 + $0x148] sm:$0xff]  }
 0x631   : > { %21371 = vmatprep.mubr.msk.bf16.mxu0 %vm440_vm4, %v11810_v44  ;;  %v12023_v33 = vrot.slane %v12021_v37, 4  ;;  %v12026_v57 = vrot.slane %v12024_v1, 5  ;;  %v22432_v37 = vld [vmem:[%s27811_s7 + $0x188] sm:$0xff]  }
 0x632   : > { %21382 = vmatpush3.bf16.msra.mxu1 %v22421_v59  ;;  %v11812_v62 = vsel %vm2854_vm8, %v26120_v6, %v11811_v27 }
 0x633   : > { %21423 = vmatprep.subr.bf16.mxu1 %v22423_v13 }
 0x635   : > { %21344 = vmatmul.mubr.msk.bf16.gmra.mrb[200].mxu1 %vm440_vm4, %v25817_v16  ;;  %v11991_v16 = vor.u32 %v11990_v4, %v11987_v0  ;;  %v26277_v4 = vld [vmem:[#allocation2 + $0x38] sm:$0xff] }
 0x636   : > { %21347 = vmatprep.mubr.msk.bf16.mxu1 %vm440_vm4, %v11613_v28  ;;  %v26270_v28 = vld [vmem:[#allocation2 + $0x30] sm:$0xff] }
 0x637   : > { %v11995_v8 = vsel %vm3512_vm9, %v11991_v16, %v25842_v50  ;;  %v22428_v50 = vld [vmem:[%s27811_s7 + $0x170] sm:$0xff]   ;;  %v12634_v16 = vshll.u32 %v26270_v28, 16 }
 0x638   : > { %21372 = vmatmul.mubr.msk.bf16.gmra.mrb[92].mxu0 %vm440_vm4, %v11812_v62 }
 0x639   : > { %21407 = vmatprep.mubr.msk.bf16.mxu0 %vm440_vm4, %v12204_v24  ;;  %v12631_v24 = vshrl.u32 %v26270_v28, 16 }
 0x63d   : > { %21348 = vmatmul.mubr.msk.bf16.gmra.mrb[204].mxu1 %vm440_vm4, %v11622_v32 }
 0x63e   : > { %21383 = vmatprep.mubr.msk.bf16.mxu1 %vm440_vm4, %v11995_v8 }
 0x640   : > { %21408 = vmatmul.mubr.msk.bf16.vlgmr.msra.gmra.mrb[96].mxu0 %vm440_vm4, %v26003_v26  ;;  %v22426_v26 = vld [vmem:[%s27811_s7 + $0x150] sm:$0xff]  }
 0x641   : > { %21411 = vmatprep.mubr.msk.bf16.mxu0 %vm440_vm4, %v26025_v21  ;;  %21448 = vmatpush3.bf16.msra.mxu0 %v22425_v34  ;;  %v22430_v21 = vld [vmem:[%s27811_s7 + $0x178] sm:$0xff]   ;;  %v12217_v34 = vrot.slane %v11974_v15, 5 }
 0x642   : > { %21449 = vmatprep.subr.bf16.mxu0 %v22427_v23 }
 0x643   : > { %v12218_v18 = vsel %vm3731_vm10, %v26208_v3, %v12217_v34  ;;  %v22434_v34 = vld [vmem:[%s27811_s7 + $0x190] sm:$0xff]  }
 0x645   : > { %21384 = vmatmul.mubr.msk.bf16.vlgmr.msra.gmra.mrb[208].mxu1 %vm440_vm4, %v25862_v5  ;;  %21450 = vmatpush3.bf16.msra.mxu0 %v22427_v23  ;;  %v26200_v5 = vld [vmem:[#allocation2 + $0x10] sm:$0xf8]  ;;  %v12640_v23 = vshrl.u32 %v26277_v4, 16 }
 0x646   : > { %21424 = vmatpush3.bf16.msra.mxu1 %v22423_v13  ;;  %21387 = vmatprep.mubr.msk.bf16.mxu1 %vm440_vm4, %v25892_v41  ;;  %v26202_v41 = vld [vmem:[#allocation2 + $0x18] sm:$0xff]  ;;  %v12596_v36 = vshrl.u32 %v26200_v5, 16  ;;  %v12599_v40 = vshll.u32 %v26200_v5, 16 }
 0x647   : > { %21425 = vmatprep.subr.bf16.mxu1 %v22424_v56  ;;  %21451 = vmatprep.subr.bf16.mxu0 %v22428_v50  ;;  %v12604_v47 = vshrl.u32 %v26202_v41, 16  ;;  %v12607_v31 = vshll.u32 %v26202_v41, 16  ;;  %v12408_v29 = vrot.slane %v26202_v41, 3 }
 0x648   : > { %21412 = vmatmul.mubr.msk.bf16.gmra.mrb[100].mxu0 %vm440_vm4, %v26033_v14  ;;  %v12016_v14 = vrot.slane %v11606_v42, 4  ;;  %v12598_v30 = vrot.slane %v12596_v36, 3  ;;  %v12601_v42 = vrot.slane %v12599_v40, 4  ;;  %v26314_v40 = vld [vmem:[#allocation2 + $0x48] sm:$0xff] }
 0x649   : > { %21415 = vmatprep.mubr.msk.bf16.mxu0 %vm440_vm4, %v26058_v48  ;;  %21452 = vmatpush3.bf16.msra.mxu0 %v22428_v50  ;;  %v12017_v48 = vrot.slane %v11609_v9, 5  ;;  %v12606_v9 = vrot.slane %v12604_v47, 3  ;;  %v12609_v59 = vrot.slane %v12607_v31, 4  ;;  %v22435_v50 = vld [vmem:[%s27811_s7 + $0x1a8] sm:$0xff]  }
 0x64a   : > { %21426 = vmatpush3.bf16.msra.mxu1 %v22424_v56  ;;  %21453 = vmatprep.subr.bf16.mxu0 %v22430_v21  ;;  %v12602_v45 = vor.u32 %v12601_v42, %v12598_v30  ;;  %v12643_v56 = vshll.u32 %v26277_v4, 16  ;;  %v22436_v30 = vld [vmem:[%s27811_s7 + $0x1b0] sm:$0xff]  }
 0x64b   : > { %21427 = vmatprep.subr.bf16.mxu1 %v22426_v26  ;;  %v26235_v61 = vor.u32 %v12017_v48, %v12016_v14  ;;  %v12610_v11 = vor.u32 %v12609_v59, %v12606_v9  ;;  %v12642_v48 = vrot.slane %v12640_v23, 3  ;;  %v12658_v9 = vshrl.u32 %v26314_v40, 16 }
 0x64c   : > { %v12645_v36 = vrot.slane %v12643_v56, 4  ;;  %v12661_v59 = vshll.u32 %v26314_v40, 16 }
 0x64d   : > { %21388 = vmatmul.mubr.msk.bf16.gmra.mrb[212].mxu1 %vm440_vm4, %v25905_v43  ;;  %21454 = vmatpush3.bf16.msra.mxu0 %v22430_v21  ;;  %v12216_v43 = vsel %vm3731_vm10, %v26050_v54, %v26208_v3  ;;  %v26247_v54 = vld [vmem:[#allocation2 + $0x28] sm:$0xff]  ;;  %v12611_v52 = vsel %vm871_vm2, %v12602_v45, %v12610_v11  ;;  %v26354_v45 = vrot.slane %v26277_v4, 3 }
 0x64e   : > { %21391 = vmatprep.mubr.msk.bf16.mxu1 %vm440_vm4, %v25940_v51  ;;  %21428 = vmatpush3.bf16.msra.mxu1 %v22426_v26  ;;  %v26240_v51 = vld [vmem:[#allocation2 + $0x20] sm:$0xff]  ;;  %v12622_v44 = vshrl.u32 %v26247_v54, 16  ;;  %v12625_v38 = vshll.u32 %v26247_v54, 16  ;;  %v12412_v14 = vrot.slane %v26247_v54, 3 }
 0x64f   : > { %21429 = vmatprep.subr.bf16.mxu1 %v22429_v20  ;;  %21495 = vmatprep.subr.bf16.mxu0 %v26217_v2  ;;  %v12613_v22 = vshrl.u32 %v26240_v51, 16  ;;  %v12616_v13 = vshll.u32 %v26240_v51, 16  ;;  %v26296_v21 = vrot.slane %v26240_v51, 3 }
 0x650   : > { %21416 = vmatmul.mubr.msk.bf16.gmra.mrb[104].mxu0 %vm440_vm4, %v26064_v46  ;;  %v12019_v46 = vsel %vm3512_vm9, %v25932_v39, %v26235_v61  ;;  %v12027_v39 = vor.u32 %v12026_v57, %v12023_v33  ;;  %v12624_v35 = vrot.slane %v12622_v44, 3  ;;  %v12627_v0 = vrot.slane %v12625_v38, 4  ;;  %v22438_v57 = vld [vmem:[%s27811_s7 + $0x1b8] sm:$0xff]  }
 0x651   : > { %21419 = vmatprep.mubr.msk.bf16.mxu0 %vm440_vm4, %v12216_v43  ;;  %v12615_v58 = vrot.slane %v12613_v22, 3  ;;  %v12618_v27 = vrot.slane %v12616_v13, 4  ;;  %v12411_v43 = vsel %vm3149_vm7, %v12408_v29, %v26296_v21  ;;  %v26328_v42 = vsel %vm3149_vm7, %v26296_v21, %v12412_v14 }
 0x652   : > { %21430 = vmatpush3.bf16.msra.mxu1 %v22429_v20  ;;  %v12028_v62 = vsel %vm3512_vm9, %v26235_v61, %v12027_v39  ;;  %v12628_v8 = vor.u32 %v12627_v0, %v12624_v35  ;;  %v12636_v20 = vrot.slane %v12634_v16, 4  ;;  %v12836_v39 = vld [vmem:[#allocation2 + $0x10] sm:$0xf0] }
 0x653   : > { %21471 = vmatprep.subr.bf16.mxu1 %v26230_v63  ;;  %v26281_v60 = vor.u32 %v12618_v27, %v12615_v58  ;;  %v26362_v58 = vld [vmem:[#allocation2 + $0x50] sm:$0xf]  ;;  %v22437_v27 = vld [vmem:[%s27811_s7 + $0x198] sm:$0xff]  }
 0x655   : > { %21392 = vmatmul.mubr.msk.bf16.gmra.mrb[216].mxu1 %vm440_vm4, %v25947_v19  ;;  %v12407_v19 = vrot.slane %v26200_v5, 3  ;;  %v12620_v26 = vsel %vm871_vm2, %v12610_v11, %v26281_v60  ;;  %v12633_v5 = vrot.slane %v12631_v24, 3  ;;  %v26305_v15 = vsel %vm871_vm2, %v26281_v60, %v12628_v8 }
 0x656   : > { %21395 = vmatprep.mubr.msk.bf16.mxu1 %vm440_vm4, %v12019_v46  ;;  %v12414_v46 = vrot.slane %v26270_v28, 3  ;;  %v12660_v11 = vrot.slane %v12658_v9, 3 }
 0x657   : > { %v12409_v32 = vsel %vm3149_vm7, %v12407_v19, %v12408_v29  ;;  %v12637_v1 = vor.u32 %v12636_v20, %v12633_v5  ;;  %v22441_v29 = vld [vmem:[%s27811_s7 + $0x1e0] sm:$0xff]   ;;  %v26392_v5 = vrot.slane %v26314_v40, 3 }
 0x658   : > { %21420 = vmatmul.mubr.msk.bf16.gmra.mrb[108].mxu0 %vm440_vm4, %v12218_v18  ;;  %v12663_v18 = vrot.slane %v12661_v59, 4  ;;  %v26368_v19 = vsel %vm3149_vm7, %v12412_v14, %v12414_v46  ;;  %v26377_v35 = vsel %vm3149_vm7, %v12414_v46, %v26354_v45 }
 0x659   : > { %21455 = vmatprep.mubr.msk.bf16.mxu0 %vm440_vm4, %v12611_v52  ;;  %v26341_v33 = vsel %vm871_vm2, %v12628_v8, %v12637_v1  ;;  %v13037_v52 = vshrl.u32 %v12836_v39, 16  ;;  %v12670_v8 = vshll.u32 %v26362_v58, 16 }
 0x65a   : > { %v26379_v0 = vor.u32 %v12663_v18, %v12660_v11  ;;  %v13048_v11 = vrot.slane %v12613_v22, 4  ;;  %v13049_v18 = vrot.slane %v12616_v13, 5 }
 0x65b   : > { %v13039_v20 = vrot.slane %v13037_v52, 4  ;;  %v12849_v52 = vrot.slane %v26202_v41, 4 }
 0x65c   : > { %v12665_v14 = vsel %vm871_vm2, %v26138_v25, %v26379_v0  ;;  %v26427_v13 = vor.u32 %v13049_v18, %v13048_v11  ;;  %v13069_v11 = vrot.slane %v12661_v59, 5  ;;  %v26498_v18 = vld [vmem:[#allocation2 + $0x50] sm:$0x1f] }
 0x65d   : > { %21396 = vmatmul.mubr.msk.bf16.gmra.mrb[220].mxu1 %vm440_vm4, %v12028_v62  ;;  %v13040_v62 = vshll.u32 %v12836_v39, 16 }
 0x65e   : > { %21431 = vmatprep.mubr.msk.bf16.mxu1 %vm440_vm4, %v12409_v32  ;;  %v12667_v32 = vshrl.u32 %v26362_v58, 16 }
 0x660   : > { %21456 = vmatmul.mubr.msk.bf16.vlgmr.msra.gmra.mrb[112].mxu0 %vm440_vm4, %v12620_v26 }
 0x661   : > { %21459 = vmatprep.mubr.msk.bf16.mxu0 %vm440_vm4, %v26305_v15  ;;  %21496 = vmatpush3.bf16.msra.mxu0 %v26217_v2  ;;  %v26330_v2 = vor.u32 %v12645_v36, %v12642_v48  ;;  %v13042_v48 = vrot.slane %v13040_v62, 5  ;;  %v13044_v36 = vrot.slane %v12604_v47, 4  ;;  %v13052_v62 = vrot.slane %v12622_v44, 4  ;;  %v22443_v44 = vld [vmem:[%s27811_s7 + $0x1e8] sm:$0xff]  }
 0x662   : > { %21497 = vmatprep.subr.bf16.mxu0 %v22435_v50 }
 0x663   : > { %v12656_v26 = vsel %vm871_vm2, %v26330_v2, %v26138_v25  ;;  %v12421_v25 = vsel %vm3149_vm7, %v26036_v53, %v26392_v5  ;;  %v13043_v47 = vor.u32 %v13042_v48, %v13039_v20  ;;  %v26438_v20 = vrot.slane %v26240_v51, 4 }
 0x664   : > { %v13057_v48 = vrot.slane %v12634_v16, 5 }
 0x665   : > { %21432 = vmatmul.mubr.msk.bf16.vlgmr.msra.gmra.mrb[224].mxu1 %vm440_vm4, %v12411_v43  ;;  %21498 = vmatpush3.bf16.msra.mxu0 %v22435_v50  ;;  %v22439_v50 = vld [vmem:[%s27811_s7 + $0x1c0] sm:$0xff]   ;;  %v12669_v43 = vrot.slane %v12667_v32, 3  ;;  %v13053_v32 = vrot.slane %v12625_v38, 5  ;;  %v12852_v16 = vsel %vm2854_vm8, %v12849_v52, %v26438_v20 }
 0x666   : > { %21472 = vmatpush3.bf16.msra.mxu1 %v26230_v63  ;;  %21435 = vmatprep.mubr.msk.bf16.mxu1 %vm440_vm4, %v26328_v42  ;;  %v26351_v63 = vsel %vm871_vm2, %v12637_v1, %v26330_v2  ;;  %v12672_v1 = vrot.slane %v12670_v8, 4 }
 0x667   : > { %21473 = vmatprep.subr.bf16.mxu1 %v22432_v37  ;;  %21499 = vmatprep.subr.bf16.mxu0 %v22436_v30 }
 0x668   : > { %21460 = vmatmul.mubr.msk.bf16.gmra.mrb[116].mxu0 %vm440_vm4, %v26341_v33  ;;  %v12673_v46 = vor.u32 %v12672_v1, %v12669_v43  ;;  %v13060_v43 = vrot.slane %v12640_v23, 4  ;;  %v13061_v1 = vrot.slane %v12643_v56, 5  ;;  %v22444_v23 = vld [vmem:[%s27811_s7 + $0x1f0] sm:$0xff]  }
 0x669   : > { %21463 = vmatprep.mubr.msk.bf16.mxu0 %vm440_vm4, %v26351_v63  ;;  %21500 = vmatpush3.bf16.msra.mxu0 %v22436_v30  ;;  %v12419_v30 = vsel %vm3149_vm7, %v26354_v45, %v26036_v53 }
 0x66a   : > { %21474 = vmatpush3.bf16.msra.mxu1 %v22432_v37  ;;  %21501 = vmatprep.subr.bf16.mxu0 %v22438_v57  ;;  %v13045_v37 = vrot.slane %v12607_v31, 5  ;;  %v12388_v31 = vld [vmem:[#allocation2 + $0x50] sm:$0x7] }
 0x66b   : > { %21475 = vmatprep.subr.bf16.mxu1 %v22434_v34  ;;  %v12422_v8 = vrot.slane %v12388_v31, 3  ;;  %v26490_v31 = vrot.slane %v26277_v4, 4 }
 0x66d   : > { %21436 = vmatmul.mubr.msk.bf16.gmra.mrb[228].mxu1 %vm440_vm4, %v26368_v19  ;;  %21502 = vmatpush3.bf16.msra.mxu0 %v22438_v57  ;;  %v12674_v57 = vsel %vm871_vm2, %v26379_v0, %v12673_v46  ;;  %v12423_v22 = vsel %vm3149_vm7, %v26392_v5, %v12422_v8  ;;  %v22446_v46 = vld [vmem:[%s27811_s7 + $0x1f8] sm:$0xff]   ;;  %v26526_v8 = vld [vmem:[%s27811_s7 + $0x200] sm:$0xff]  }
 0x66e   : > { %21439 = vmatprep.mubr.msk.bf16.mxu1 %vm440_vm4, %v26377_v35  ;;  %21476 = vmatpush3.bf16.msra.mxu1 %v22434_v34  ;;  %v13046_v34 = vor.u32 %v13045_v37, %v13044_v36  ;;  %v12853_v37 = vrot.slane %v26247_v54, 4 }
 0x66f   : > { %21477 = vmatprep.subr.bf16.mxu1 %v22437_v27  ;;  %21543 = vmatprep.subr.bf16.mxu0 %v22441_v29 }
 0x670   : > { %21464 = vmatmul.mubr.msk.bf16.gmra.mrb[120].mxu0 %vm440_vm4, %v12656_v26  ;;  %v13047_v53 = vsel %vm3512_vm9, %v13043_v47, %v13046_v34  ;;  %v13054_v26 = vor.u32 %v13053_v32, %v13052_v62  ;;  %v13051_v38 = vsel %vm3512_vm9, %v13046_v34, %v26427_v13  ;;  %v26467_v56 = vsel %vm2854_vm8, %v26438_v20, %v12853_v37 }
 0x671   : > { %21467 = vmatprep.mubr.msk.bf16.mxu0 %vm440_vm4, %v12665_v14  ;;  %v13056_v14 = vrot.slane %v12631_v24, 4  ;;  %v22440_v24 = vld [vmem:[%s27811_s7 + $0x1c8] sm:$0xff]   ;;  %v12855_v34 = vrot.slane %v26270_v28, 4  ;;  %v13073_v62 = vshrl.u32 %v26498_v18, 16  ;;  %v13076_v32 = vshll.u32 %v26498_v18, 16 }
 0x672   : > { %21478 = vmatpush3.bf16.msra.mxu1 %v22437_v27  ;;  %v12848_v27 = vrot.slane %v12836_v39, 4  ;;  %v26447_v36 = vsel %vm3512_vm9, %v26427_v13, %v13054_v26 }
 0x673   : > { %21519 = vmatprep.subr.bf16.mxu1 %v22439_v50  ;;  %v26515_v59 = vsel %vm2854_vm8, %v12855_v34, %v26490_v31 }
 0x674   : > { %v12850_v39 = vsel %vm2854_vm8, %v12848_v27, %v12849_v52  ;;  %v22445_v27 = vld [vmem:[%s27811_s7 + $0x1d8] sm:$0xff]  }
 0x675   : > { %21440 = vmatmul.mubr.msk.bf16.gmra.mrb[232].mxu1 %vm440_vm4, %v12419_v30  ;;  %v13058_v30 = vor.u32 %v13057_v48, %v13056_v14  ;;  %v12860_v48 = vsel %vm2854_vm8, %v26490_v31, %v26120_v6 }
 0x676   : > { %21443 = vmatprep.mubr.msk.bf16.mxu1 %vm440_vm4, %v12421_v25  ;;  %v22442_v25 = vld [vmem:[%s27811_s7 + $0x1d0] sm:$0xff]  }
 0x677   : > { %v26477_v47 = vsel %vm3512_vm9, %v13054_v26, %v13058_v30  ;;  %v26537_v26 = vrot.slane %v26314_v40, 4 }
 0x678   : > { %21468 = vmatmul.mubr.msk.bf16.gmra.mrb[124].mxu0 %vm440_vm4, %v12674_v57  ;;  %v13068_v57 = vrot.slane %v12658_v9, 4  ;;  %v26509_v9 = vld [vmem:[%s27811_s7 + $0x220] sm:$0xff]  }
 0x679   : > { %21503 = vmatprep.mubr.msk.bf16.mxu0 %vm440_vm4, %v13047_v53  ;;  %v26504_v53 = vsel %vm2854_vm8, %v12853_v37, %v12855_v34 }
 0x67a   : > { %v26517_v52 = vor.u32 %v13069_v11, %v13068_v57 }
 0x67d   : > { %21444 = vmatmul.mubr.msk.bf16.gmra.mrb[236].mxu1 %vm440_vm4, %v12423_v22 }
 0x67e   : > { %21479 = vmatprep.mubr.msk.bf16.mxu1 %vm440_vm4, %v12850_v39  ;;  %v13071_v39 = vsel %vm3512_vm9, %v26235_v61, %v26517_v52 }
 0x680   : > { %21504 = vmatmul.mubr.msk.bf16.vlgmr.msra.gmra.mrb[128].mxu0 %vm440_vm4, %v13051_v38  ;;  %v13078_v38 = vrot.slane %v13076_v32, 5 }
 0x681   : > { %21507 = vmatprep.mubr.msk.bf16.mxu0 %vm440_vm4, %v26447_v36  ;;  %21544 = vmatpush3.bf16.msra.mxu0 %v22441_v29  ;;  %v26469_v29 = vor.u32 %v13061_v1, %v13060_v43  ;;  %v26544_v43 = vld [vmem:[#allocation2 + $0x18] sm:$0xf8] }
 0x682   : > { %21545 = vmatprep.subr.bf16.mxu0 %v22443_v44 }
 0x683   : > { %v13067_v22 = vsel %vm3512_vm9, %v26469_v29, %v26235_v61  ;;  %v12862_v61 = vsel %vm2854_vm8, %v26120_v6, %v26537_v26 }
 0x685   : > { %21480 = vmatmul.mubr.msk.bf16.vlgmr.msra.gmra.mrb[240].mxu1 %vm440_vm4, %v12852_v16  ;;  %21546 = vmatpush3.bf16.msra.mxu0 %v22443_v44  ;;  %v13075_v44 = vrot.slane %v13073_v62, 4  ;;  %v12863_v62 = vrot.slane %v26362_v58, 4  ;;  %v22451_v58 = vld [vmem:[%s27811_s7 + $0x228] sm:$0xff]  }
 0x686   : > { %21520 = vmatpush3.bf16.msra.mxu1 %v22439_v50  ;;  %21483 = vmatprep.mubr.msk.bf16.mxu1 %vm440_vm4, %v26467_v56  ;;  %v26487_v50 = vsel %vm3512_vm9, %v13058_v30, %v26469_v29  ;;  %v13242_v30 = vld [vmem:[#allocation2 + $0x10] sm:$0xe0] }
 0x687   : > { %21521 = vmatprep.subr.bf16.mxu1 %v22440_v24  ;;  %21547 = vmatprep.subr.bf16.mxu0 %v22444_v23  ;;  %v13254_v6 = vrot.slane %v13242_v30, 5 }
 0x688   : > { %21508 = vmatmul.mubr.msk.bf16.gmra.mrb[132].mxu0 %vm440_vm4, %v26477_v47 }
 0x689   : > { %21511 = vmatprep.mubr.msk.bf16.mxu0 %vm440_vm4, %v26487_v50  ;;  %21548 = vmatpush3.bf16.msra.mxu0 %v22444_v23  ;;  %v13459_v23 = vrot.slane %v26544_v43, 3 }
 0x68a   : > { %21522 = vmatpush3.bf16.msra.mxu1 %v22440_v24  ;;  %21549 = vmatprep.subr.bf16.mxu0 %v22446_v46  ;;  %v13079_v24 = vor.u32 %v13078_v38, %v13075_v44  ;;  %v12864_v44 = vsel %vm2854_vm8, %v26537_v26, %v12863_v62  ;;  %v22450_v62 = vld [vmem:[%s27811_s7 + $0x210] sm:$0xff]  }
 0x68b   : > { %21523 = vmatprep.subr.bf16.mxu1 %v22442_v25  ;;  %v13461_v11 = vsel %vm3149_vm7, %v13459_v23, %v26296_v21 }
 0x68d   : > { %21484 = vmatmul.mubr.msk.bf16.gmra.mrb[244].mxu1 %vm440_vm4, %v26504_v53  ;;  %21550 = vmatpush3.bf16.msra.mxu0 %v22446_v46 }
 0x68e   : > { %21487 = vmatprep.mubr.msk.bf16.mxu1 %vm440_vm4, %v26515_v59  ;;  %21524 = vmatpush3.bf16.msra.mxu1 %v22442_v25  ;;  %v13080_v25 = vsel %vm3512_vm9, %v26517_v52, %v13079_v24 }
 0x68f   : > { %21525 = vmatprep.subr.bf16.mxu1 %v22445_v27  ;;  %21591 = vmatprep.subr.bf16.mxu0 %v26509_v9 }
 0x690   : > { %21512 = vmatmul.mubr.msk.bf16.gmra.mrb[136].mxu0 %vm440_vm4, %v13067_v22 }
 0x691   : > { %21515 = vmatprep.mubr.msk.bf16.mxu0 %vm440_vm4, %v13071_v39 }
 0x692   : > { %21526 = vmatpush3.bf16.msra.mxu1 %v22445_v27  ;;  %v21217_v14 = vpop.f32.mrb[32].mxu0  ;;  %v13255_v27 = vrot.slane %v26202_v41, 5 }
 0x693   : > { %21567 = vmatprep.subr.bf16.mxu1 %v26526_v8  ;;  %v10669_v37 = vpop.f32.mrb[33].mxu0 }
 0x694   : > { %v21218_v1 = vpop.f32.mrb[34].mxu0  ;;  %v13256_v21 = vsel %vm3731_vm10, %v13254_v6, %v13255_v27 }
 0x695   : > { %21488 = vmatmul.mubr.msk.bf16.gmra.mrb[248].mxu1 %vm440_vm4, %v12860_v48  ;;  %v10672_v16 = vpop.f32.mrb[35].mxu0 }
 0x696   : > { %21491 = vmatprep.mubr.msk.bf16.mxu1 %vm440_vm4, %v12862_v61  ;;  %v13259_v16 = vrot.slane %v26247_v54, 5 }
 0x697   : > { %v21193_v34 = vpop.f32.mrb[144].mxu1 }
 0x698   : > { %v26554_v46 = vadd.f32 %v21217_v14, %v21193_v34  ;;  %v10498_v57 = vpop.f32.mrb[145].mxu1  ;;  %21516 = vmatmul.mubr.msk.bf16.gmra.mrb[140].mxu0 %vm440_vm4, %v13080_v25  ;;  %v26584_v25 = vld [vmem:[#allocation2 + $0x40] sm:$0xff]  ;;  %v22448_v34 = vld [vmem:[%s27811_s7 + $0x208] sm:$0xff]  }
 0x699   : > { %v26561_v32 = vadd.f32 %v10669_v37, %v10498_v57  ;;  %v21194_v22 = vpop.f32.mrb[146].mxu1  ;;  %21551 = vmatprep.mubr.msk.bf16.mxu0 %vm440_vm4, %v13461_v11  ;;  %v26573_v37 = vrot.slane %v26240_v51, 5  ;;  %v22452_v57 = vld [vmem:[%s27811_s7 + $0x230] sm:$0xff]  }
 0x69a   : > { %v10501_v39 = vpop.f32.mrb[147].mxu1  ;;  %v13261_v22 = vrot.slane %v26270_v28, 5 }
 0x69b   : > { %v21221_v38 = vpop.f32.mrb[36].mxu0 }
 0x69c   : > { %v10685_v14 = vpop.f32.mrb[37].mxu0 }
 0x69d   : > { %21492 = vmatmul.mubr.msk.bf16.gmra.mrb[252].mxu1 %vm440_vm4, %v12864_v44  ;;  %v21222_v48 = vpop.f32.mrb[38].mxu0  ;;  %v22454_v44 = vld [vmem:[%s27811_s7 + $0x238] sm:$0xff]  }
 0x69e   : > { %21527 = vmatprep.mubr.msk.bf16.mxu1 %vm440_vm4, %v13256_v21  ;;  %v10688_v41 = vpop.f32.mrb[39].mxu0  ;;  %v26621_v21 = vrot.slane %v26277_v4, 5  ;;  %v26635_v4 = vld [vmem:[%s27811_s7 + $0x260] sm:$0xff]  }
 0x69f   : > { %v21197_v1 = vpop.f32.mrb[148].mxu1 }
 0x6a0   : > { %v26575_v61 = vadd.f32 %v21221_v38, %v21197_v1  ;;  %v10514_v24 = vpop.f32.mrb[149].mxu1  ;;  %21552 = vmatmul.mubr.msk.bf16.vlgmr.msra.gmra.mrb[144].mxu0 %vm440_vm4, %v26328_v42  ;;  %v13258_v42 = vsel %vm3731_vm10, %v13255_v27, %v26573_v37 }
 0x6a1   : > { %v26580_v30 = vadd.f32 %v10685_v14, %v10514_v24  ;;  %v21198_v23 = vpop.f32.mrb[150].mxu1  ;;  %21555 = vmatprep.mubr.msk.bf16.mxu0 %vm440_vm4, %v26368_v19  ;;  %21592 = vmatpush3.bf16.msra.mxu0 %v26509_v9  ;;  %v26598_v19 = vsel %vm3731_vm10, %v26573_v37, %v13259_v16  ;;  %v26601_v9 = vrot.slane %v26584_v25, 3  ;;  %v26641_v24 = vsel %vm3731_vm10, %v13261_v22, %v26621_v21 }
 0x6a2   : > { %v10517_v51 = vpop.f32.mrb[151].mxu1  ;;  %21593 = vmatprep.subr.bf16.mxu0 %v22451_v58 }
 0x6a3   : > { %v21225_v54 = vpop.f32.mrb[40].mxu0  ;;  %v13469_v14 = vsel %vm3149_vm7, %v26354_v45, %v26601_v9  ;;  %v26646_v51 = vrot.slane %v26131_v49, 3 }
 0x6a4   : > { %v10701_v11 = vpop.f32.mrb[41].mxu0 }
 0x6a5   : > { %21528 = vmatmul.mubr.msk.bf16.vlgmr.msra.gmra.mrb[0].mxu1 %vm440_vm4, %v13258_v42  ;;  %v21226_v6 = vpop.f32.mrb[42].mxu0  ;;  %21594 = vmatpush3.bf16.msra.mxu0 %v22451_v58  ;;  %v26630_v58 = vsel %vm3731_vm10, %v13259_v16, %v13261_v22  ;;  %v13471_v42 = vsel %vm3149_vm7, %v26601_v9, %v26392_v5 }
 0x6a6   : > { %21568 = vmatpush3.bf16.msra.mxu1 %v26526_v8  ;;  %21531 = vmatprep.mubr.msk.bf16.mxu1 %vm440_vm4, %v26598_v19  ;;  %v10704_v27 = vpop.f32.mrb[43].mxu0  ;;  %v13440_v6 = vld [vmem:[#allocation2 + $0x58] sm:$0x7] }
 0x6a7   : > { %21569 = vmatprep.subr.bf16.mxu1 %v22448_v34  ;;  %v21201_v39 = vpop.f32.mrb[152].mxu1  ;;  %21595 = vmatprep.subr.bf16.mxu0 %v22452_v57  ;;  %v13473_v27 = vsel %vm3149_vm7, %v26392_v5, %v26646_v51  ;;  %v13266_v5 = vsel %vm3731_vm10, %v26621_v21, %v26208_v3 }
 0x6a8   : > { %v26613_v8 = vadd.f32 %v21225_v54, %v21201_v39  ;;  %v10530_v38 = vpop.f32.mrb[153].mxu1  ;;  %21556 = vmatmul.mubr.msk.bf16.gmra.mrb[148].mxu0 %vm440_vm4, %v26377_v35  ;;  %v22453_v35 = vld [vmem:[%s27811_s7 + $0x218] sm:$0xff]  }
 0x6a9   : > { %v26623_v28 = vadd.f32 %v10701_v11, %v10530_v38  ;;  %v21202_v48 = vpop.f32.mrb[154].mxu1  ;;  %21559 = vmatprep.mubr.msk.bf16.mxu0 %vm440_vm4, %v13469_v14  ;;  %21596 = vmatpush3.bf16.msra.mxu0 %v22452_v57  ;;  %v13648_v38 = vshrl.u32 %v26544_v43, 16  ;;  %v13651_v14 = vshll.u32 %v26544_v43, 16 }
 0x6aa   : > { %21570 = vmatpush3.bf16.msra.mxu1 %v22448_v34  ;;  %v10533_v41 = vpop.f32.mrb[155].mxu1  ;;  %21597 = vmatprep.subr.bf16.mxu0 %v22454_v44  ;;  %v26651_v34 = vld [vmem:[%s27811_s7 + $0x240] sm:$0xff]   ;;  %v13474_v48 = vrot.slane %v13440_v6, 3 }
 0x6ab   : > { %21571 = vmatprep.subr.bf16.mxu1 %v22450_v62  ;;  %v21229_v45 = vpop.f32.mrb[44].mxu0  ;;  %v26675_v41 = vld [vmem:[#allocation2 + $0x18] sm:$0xf0] }
 0x6ac   : > { %v10717_v1 = vpop.f32.mrb[45].mxu0 }
 0x6ad   : > { %21532 = vmatmul.mubr.msk.bf16.gmra.mrb[4].mxu1 %vm440_vm4, %v26630_v58  ;;  %v21230_v23 = vpop.f32.mrb[46].mxu0  ;;  %21598 = vmatpush3.bf16.msra.mxu0 %v22454_v44 }
 0x6ae   : > { %21535 = vmatprep.mubr.msk.bf16.mxu1 %vm440_vm4, %v26641_v24  ;;  %21572 = vmatpush3.bf16.msra.mxu1 %v22450_v62  ;;  %v10720_v16 = vpop.f32.mrb[47].mxu0  ;;  %v26664_v62 = vrot.slane %v26314_v40, 5  ;;  %v13900_v23 = vrot.slane %v26675_v41, 4 }
 0x6af   : > { %21573 = vmatprep.subr.bf16.mxu1 %v22453_v35  ;;  %21639 = vmatprep.subr.bf16.mxu0 %v26635_v4  ;;  %v13650_v16 = vrot.slane %v13648_v38, 3 }
 0x6b0   : > { %v21205_v54 = vpop.f32.mrb[156].mxu1  ;;  %21560 = vmatmul.mubr.msk.bf16.gmra.mrb[152].mxu0 %vm440_vm4, %v13471_v42  ;;  %v13653_v42 = vrot.slane %v13651_v14, 4 }
 0x6b1   : > { %v26657_v57 = vadd.f32 %v21229_v45, %v21205_v54  ;;  %v10546_v11 = vpop.f32.mrb[157].mxu1  ;;  %21563 = vmatprep.mubr.msk.bf16.mxu0 %vm440_vm4, %v13473_v27  ;;  %v13475_v54 = vsel %vm3149_vm7, %v26646_v51, %v13474_v48 }
 0x6b2   : > { %v26666_v22 = vadd.f32 %v10717_v1, %v10546_v11  ;;  %v21206_v39 = vpop.f32.mrb[158].mxu1  ;;  %21574 = vmatpush3.bf16.msra.mxu1 %v22453_v35  ;;  %v13268_v35 = vsel %vm3731_vm10, %v26208_v3, %v26664_v62  ;;  %v13902_v3 = vsel %vm2854_vm8, %v13900_v23, %v26438_v20  ;;  %v13654_v14 = vor.u32 %v13653_v42, %v13650_v16 }
 0x6b3   : > { %v10549_v44 = vpop.f32.mrb[159].mxu1  ;;  %21615 = vmatprep.subr.bf16.mxu1 %v26651_v34  ;;  %v21265_v40 = vpop.f32.mrb[48].mxu0  ;;  %v13269_v39 = vrot.slane %v26498_v18, 5 }
 0x6b4   : > { %v11059_v45 = vpop.f32.mrb[49].mxu0  ;;  %v13663_v20 = vsel %vm871_vm2, %v13654_v14, %v26281_v60 }
 0x6b5   : > { %21536 = vmatmul.mubr.msk.bf16.gmra.mrb[8].mxu1 %vm440_vm4, %v13266_v5  ;;  %v21266_v1 = vpop.f32.mrb[50].mxu0 }
 0x6b6   : > { %21539 = vmatprep.mubr.msk.bf16.mxu1 %vm440_vm4, %v13268_v35  ;;  %v11062_v43 = vpop.f32.mrb[51].mxu0 }
 0x6b8   : > { %v21241_v11 = vpop.f32.mrb[160].mxu1  ;;  %21564 = vmatmul.mubr.msk.bf16.gmra.mrb[156].mxu0 %vm440_vm4, %v13475_v54  ;;  %v13695_v54 = vshll.u32 %v26584_v25, 16 }
 0x6b9   : > { %v10908_v6 = vadd.f32 %v21241_v11, %v26554_v46  ;;  %v10843_v27 = vpop.f32.mrb[161].mxu1  ;;  %21599 = vmatprep.mubr.msk.bf16.mxu0 %vm440_vm4, %v13902_v3  ;;  %v13270_v46 = vsel %vm3731_vm10, %v26664_v62, %v13269_v39  ;;  %v22460_v3 = vld [vmem:[%s27811_s7 + $0x270] sm:$0xff]  }
 0x6ba   : > { %v10906_v44 = vadd.f32 %v10843_v27, %v26561_v32  ;;  %v21242_v5 = vpop.f32.mrb[162].mxu1 }
 0x6bb   : > { %v10846_v38 = vpop.f32.mrb[163].mxu1  ;;  %v26692_v35 = vadd.f32 %v21265_v40, %v10908_v6  ;;  %v21269_v48 = vpop.f32.mrb[52].mxu0  ;;  %v22459_v40 = vld [vmem:[%s27811_s7 + $0x268] sm:$0xff]  }
 0x6bc   : > { %v26696_v1 = vadd.f32 %v11059_v45, %v10906_v44  ;;  %v11075_v43 = vpop.f32.mrb[53].mxu0  ;;  %v13692_v45 = vshrl.u32 %v26584_v25, 16  ;;  %v13697_v44 = vrot.slane %v13695_v54, 4 }
 0x6bd   : > { %21540 = vmatmul.mubr.msk.bf16.gmra.mrb[12].mxu1 %vm440_vm4, %v13270_v46  ;;  %v21270_v18 = vpop.f32.mrb[54].mxu0  ;;  %v22462_v46 = vld [vmem:[%s27811_s7 + $0x278] sm:$0xff]  }
 0x6be   : > { %21575 = vmatprep.mubr.msk.bf16.mxu1 %vm440_vm4, %v13663_v20  ;;  %v11078_v32 = vpop.f32.mrb[55].mxu0 }
 0x6c0   : > { %v21245_v23 = vpop.f32.mrb[164].mxu1  ;;  %21600 = vmatmul.mubr.msk.bf16.vlgmr.msra.gmra.mrb[160].mxu0 %vm440_vm4, %v26467_v56 }
 0x6c1   : > { %v10912_v16 = vadd.f32 %v21245_v23, %v26575_v61  ;;  %v10859_v42 = vpop.f32.mrb[165].mxu1  ;;  %21603 = vmatprep.mubr.msk.bf16.mxu0 %vm440_vm4, %v26504_v53  ;;  %21640 = vmatpush3.bf16.msra.mxu0 %v26635_v4  ;;  %v22456_v61 = vld [vmem:[%s27811_s7 + $0x248] sm:$0xff]   ;;  %v26727_v53 = vrot.slane %v26584_v25, 4  ;;  %v13694_v4 = vrot.slane %v13692_v45, 3 }
 0x6c2   : > { %v10910_v60 = vadd.f32 %v10859_v42, %v26580_v30  ;;  %v21246_v11 = vpop.f32.mrb[166].mxu1  ;;  %21641 = vmatprep.subr.bf16.mxu0 %v22459_v40 }
 0x6c3   : > { %v10862_v6 = vpop.f32.mrb[167].mxu1  ;;  %v26717_v27 = vadd.f32 %v21269_v48, %v10912_v16  ;;  %v21273_v56 = vpop.f32.mrb[56].mxu0  ;;  %v26764_v16 = vld [vmem:[%s27811_s7 + $0x2a0] sm:$0xff]   ;;  %v13637_v11 = vld [vmem:[#allocation2 + $0x58] sm:$0xf] }
 0x6c4   : > { %v26722_v30 = vadd.f32 %v11075_v43, %v10910_v60  ;;  %v11091_v39 = vpop.f32.mrb[57].mxu0  ;;  %v26748_v43 = vor.u32 %v13697_v44, %v13694_v4  ;;  %v13719_v44 = vshrl.u32 %v13637_v11, 16 }
 0x6c5   : > { %21576 = vmatmul.mubr.msk.bf16.vlgmr.msra.gmra.mrb[16].mxu1 %vm440_vm4, %v26305_v15  ;;  %v21274_v5 = vpop.f32.mrb[58].mxu0  ;;  %v22458_v15 = vld [vmem:[%s27811_s7 + $0x250] sm:$0xff]   ;;  %21642 = vmatpush3.bf16.msra.mxu0 %v22459_v40  ;;  %v13713_v40 = vshll.u32 %v26131_v49, 16 }
 0x6c6   : > { %21616 = vmatpush3.bf16.msra.mxu1 %v26651_v34  ;;  %21579 = vmatprep.mubr.msk.bf16.mxu1 %vm440_vm4, %v26341_v33  ;;  %v11094_v38 = vpop.f32.mrb[59].mxu0  ;;  %v13910_v33 = vsel %vm2854_vm8, %v26490_v31, %v26727_v53  ;;  %v13699_v60 = vsel %vm871_vm2, %v26330_v2, %v26748_v43  ;;  %v26782_v2 = vld [vmem:[%s27811_s7 + $0x280] sm:$0xff]   ;;  %v13722_v5 = vshll.u32 %v13637_v11, 16 }
 0x6c7   : > { %21617 = vmatprep.subr.bf16.mxu1 %v22456_v61  ;;  %21643 = vmatprep.subr.bf16.mxu0 %v22460_v3 }
 0x6c8   : > { %v21249_v14 = vpop.f32.mrb[168].mxu1  ;;  %21604 = vmatmul.mubr.msk.bf16.gmra.mrb[164].mxu0 %vm440_vm4, %v26515_v59  ;;  %v22461_v59 = vld [vmem:[%s27811_s7 + $0x258] sm:$0xff]  }
 0x6c9   : > { %v10916_v48 = vadd.f32 %v21249_v14, %v26613_v8  ;;  %v10875_v34 = vpop.f32.mrb[169].mxu1  ;;  %21607 = vmatprep.mubr.msk.bf16.mxu0 %vm440_vm4, %v13910_v33  ;;  %v13710_v8 = vshrl.u32 %v26131_v49, 16  ;;  %21644 = vmatpush3.bf16.msra.mxu0 %v22460_v3 }
 0x6ca   : > { %v10914_v20 = vadd.f32 %v10875_v34, %v26623_v28  ;;  %v21250_v18 = vpop.f32.mrb[170].mxu1  ;;  %21618 = vmatpush3.bf16.msra.mxu1 %v22456_v61  ;;  %21645 = vmatprep.subr.bf16.mxu0 %v22462_v46  ;;  %v13915_v34 = vrot.slane %v13637_v11, 4  ;;  %v13724_v11 = vrot.slane %v13722_v5, 4 }
 0x6cb   : > { %v10878_v32 = vpop.f32.mrb[171].mxu1  ;;  %21619 = vmatprep.subr.bf16.mxu1 %v22458_v15  ;;  %v26757_v31 = vadd.f32 %v21273_v56, %v10916_v48  ;;  %v21277_v23 = vpop.f32.mrb[60].mxu0  ;;  %v26773_v56 = vrot.slane %v26131_v49, 4  ;;  %v13712_v3 = vrot.slane %v13710_v8, 3  ;;  %v14089_v18 = vshrl.u32 %v26675_v41, 16 }
 0x6cc   : > { %v26759_v28 = vadd.f32 %v11091_v39, %v10914_v20  ;;  %v11107_v42 = vpop.f32.mrb[61].mxu0  ;;  %v13715_v39 = vrot.slane %v13713_v40, 4  ;;  %v14320_v49 = vsel %vm3731_vm10, %v26664_v62, %v26146_v55 }
 0x6cd   : > { %21580 = vmatmul.mubr.msk.bf16.gmra.mrb[20].mxu1 %vm440_vm4, %v26351_v63  ;;  %v21278_v6 = vpop.f32.mrb[62].mxu0  ;;  %21646 = vmatpush3.bf16.msra.mxu0 %v22462_v46  ;;  %v13912_v63 = vsel %vm2854_vm8, %v26727_v53, %v26537_v26  ;;  %v13914_v14 = vsel %vm2854_vm8, %v26537_v26, %v26773_v56  ;;  %v13708_v26 = vsel %vm871_vm2, %v26748_v43, %v26379_v0 }
 0x6ce   : > { %21583 = vmatprep.mubr.msk.bf16.mxu1 %vm440_vm4, %v13699_v60  ;;  %21620 = vmatpush3.bf16.msra.mxu1 %v22458_v15  ;;  %v11110_v61 = vpop.f32.mrb[63].mxu0  ;;  %v26795_v20 = vor.u32 %v13715_v39, %v13712_v3  ;;  %v13721_v60 = vrot.slane %v13719_v44, 3  ;;  %v14294_v6 = vld [vmem:[#allocation2 + $0x18] sm:$0xe0]  ;;  %v13916_v44 = vsel %vm2854_vm8, %v26773_v56, %v13915_v34 }
 0x6cf   : > { %21621 = vmatprep.subr.bf16.mxu1 %v22461_v59  ;;  %21687 = vmatprep.subr.bf16.mxu0 %v26764_v16  ;;  %v14306_v39 = vrot.slane %v14294_v6, 5 }
 0x6d0   : > { %v21253_v4 = vpop.f32.mrb[172].mxu1  ;;  %21608 = vmatmul.mubr.msk.bf16.gmra.mrb[168].mxu0 %vm440_vm4, %v13912_v63  ;;  %v14091_v63 = vrot.slane %v14089_v18, 4  ;;  %v13725_v5 = vor.u32 %v13724_v11, %v13721_v60 }
 0x6d1   : > { %v10920_v38 = vadd.f32 %v21253_v4, %v26657_v57  ;;  %v10891_v15 = vpop.f32.mrb[173].mxu1  ;;  %21611 = vmatprep.mubr.msk.bf16.mxu0 %vm440_vm4, %v13914_v14  ;;  %v14092_v57 = vshll.u32 %v26675_v41, 16  ;;  %v13717_v41 = vsel %vm871_vm2, %v26379_v0, %v26795_v20  ;;  %v14308_v0 = vsel %vm3731_vm10, %v14306_v39, %v26573_v37 }
 0x6d2   : > { %v10918_v46 = vadd.f32 %v10891_v15, %v26666_v22  ;;  %v21254_v48 = vpop.f32.mrb[174].mxu1  ;;  %21622 = vmatpush3.bf16.msra.mxu1 %v22461_v59  ;;  %v13726_v34 = vsel %vm871_vm2, %v26795_v20, %v13725_v5 }
 0x6d3   : > { %v10894_v33 = vpop.f32.mrb[175].mxu1  ;;  %21663 = vmatprep.subr.bf16.mxu1 %v26782_v2  ;;  %v26800_v32 = vadd.f32 %v21277_v23, %v10920_v38  ;;  %v21313_v22 = vpop.f32.mrb[64].mxu0  ;;  %v14094_v4 = vrot.slane %v14092_v57, 5 }
 0x6d4   : > { %v26805_v59 = vadd.f32 %v11107_v42, %v10918_v46  ;;  %v11454_v61 = vpop.f32.mrb[65].mxu0 }
 0x6d5   : > { %21584 = vmatmul.mubr.msk.bf16.gmra.mrb[24].mxu1 %vm440_vm4, %v13708_v26  ;;  %v21314_v3 = vpop.f32.mrb[66].mxu0  ;;  %v14095_v33 = vor.u32 %v14094_v4, %v14091_v63  ;;  %v14113_v4 = vrot.slane %v13695_v54, 5 }
 0x6d6   : > { %21587 = vmatprep.mubr.msk.bf16.mxu1 %vm440_vm4, %v13717_v41  ;;  %v11457_v23 = vpop.f32.mrb[67].mxu0 }
 0x6d7   : > { %v14099_v37 = vsel %vm3512_vm9, %v14095_v33, %v26427_v13  ;;  %v22464_v23 = vld [vmem:[%s27811_s7 + $0x288] sm:$0xff]  }
 0x6d8   : > { %v21289_v42 = vpop.f32.mrb[176].mxu1  ;;  %21612 = vmatmul.mubr.msk.bf16.gmra.mrb[172].mxu0 %vm440_vm4, %v13916_v44 }
 0x6d9   : > { %v11314_v38 = vadd.f32 %v21289_v42, %v26692_v35  ;;  %v11249_v15 = vpop.f32.mrb[177].mxu1  ;;  %21647 = vmatprep.mubr.msk.bf16.mxu0 %vm440_vm4, %v14308_v0 }
 0x6da   : > { %v11312_v14 = vadd.f32 %v11249_v15, %v26696_v1  ;;  %v21290_v46 = vpop.f32.mrb[178].mxu1 }
 0x6db   : > { %v11252_v48 = vpop.f32.mrb[179].mxu1  ;;  %v26820_v18 = vadd.f32 %v21313_v22, %v11314_v38  ;;  %v21317_v57 = vpop.f32.mrb[68].mxu0  ;;  %v22467_v22 = vld [vmem:[%s27811_s7 + $0x2a8] sm:$0xff]   ;;  %v26876_v38 = vld [vmem:[#allocation2 + $0x20] sm:$0xf8] }
 0x6dc   : > { %v26824_v35 = vadd.f32 %v11454_v61, %v11312_v14  ;;  %v11470_v26 = vpop.f32.mrb[69].mxu0  ;;  %v26880_v14 = vld [vmem:[#allocation2 + $0x28] sm:$0xff]  ;;  %v14078_v48 = vld [vmem:[#allocation2 + $0x58] sm:$0x1f]  ;;  %v14700_v33 = vshrl.u32 %v26876_v38, 16 }
 0x6dd   : > { %21588 = vmatmul.mubr.msk.bf16.gmra.mrb[28].mxu1 %vm440_vm4, %v13726_v34  ;;  %v21318_v1 = vpop.f32.mrb[70].mxu0  ;;  %v26893_v34 = vld [vmem:[%s27811_s7 + $0x2e0] sm:$0xff]  }
 0x6de   : > { %21623 = vmatprep.mubr.msk.bf16.mxu1 %vm440_vm4, %v14099_v37  ;;  %v11473_v60 = vpop.f32.mrb[71].mxu0  ;;  %v14703_v37 = vshll.u32 %v26876_v38, 16  ;;  %v14708_v1 = vshrl.u32 %v26880_v14, 16 }
 0x6df   : > { %v14711_v60 = vshll.u32 %v26880_v14, 16 }
 0x6e0   : > { %v21293_v11 = vpop.f32.mrb[180].mxu1  ;;  %21648 = vmatmul.mubr.msk.bf16.vlgmr.msra.gmra.mrb[176].mxu0 %vm440_vm4, %v26598_v19  ;;  %v22468_v19 = vld [vmem:[%s27811_s7 + $0x2b0] sm:$0xff]  }
 0x6e1   : > { %v11318_v6 = vadd.f32 %v21293_v11, %v26717_v27  ;;  %v11265_v41 = vpop.f32.mrb[181].mxu1  ;;  %21651 = vmatprep.mubr.msk.bf16.mxu0 %vm440_vm4, %v26630_v58  ;;  %21688 = vmatpush3.bf16.msra.mxu0 %v26764_v16  ;;  %v26853_v58 = vrot.slane %v26584_v25, 5  ;;  %v14112_v16 = vrot.slane %v13692_v45, 4  ;;  %v22470_v25 = vld [vmem:[%s27811_s7 + $0x2b8] sm:$0xff]   ;;  %v14120_v11 = vrot.slane %v13710_v8, 4 }
 0x6e2   : > { %v11316_v61 = vadd.f32 %v11265_v41, %v26722_v30  ;;  %v21294_v3 = vpop.f32.mrb[182].mxu1  ;;  %21689 = vmatprep.subr.bf16.mxu0 %v22467_v22  ;;  %v14125_v41 = vshrl.u32 %v14078_v48, 16  ;;  %v14702_v8 = vrot.slane %v14700_v33, 3 }
 0x6e3   : > { %v11268_v13 = vpop.f32.mrb[183].mxu1  ;;  %v26843_v39 = vadd.f32 %v21317_v57, %v11318_v6  ;;  %v21321_v27 = vpop.f32.mrb[72].mxu0  ;;  %v14318_v3 = vsel %vm3731_vm10, %v26853_v58, %v26664_v62 }
 0x6e4   : > { %v26848_v30 = vadd.f32 %v11470_v26, %v11316_v61  ;;  %v11486_v63 = vpop.f32.mrb[73].mxu0  ;;  %v14128_v61 = vshll.u32 %v14078_v48, 16 }
 0x6e5   : > { %21624 = vmatmul.mubr.msk.bf16.vlgmr.msra.gmra.mrb[32].mxu1 %vm440_vm4, %v26447_v36  ;;  %v21322_v44 = vpop.f32.mrb[74].mxu0  ;;  %v22466_v36 = vld [vmem:[%s27811_s7 + $0x290] sm:$0xff]   ;;  %21690 = vmatpush3.bf16.msra.mxu0 %v22467_v22 }
 0x6e6   : > { %21664 = vmatpush3.bf16.msra.mxu1 %v26782_v2  ;;  %21627 = vmatprep.mubr.msk.bf16.mxu1 %vm440_vm4, %v26477_v47  ;;  %v11489_v5 = vpop.f32.mrb[75].mxu0  ;;  %v14316_v47 = vsel %vm3731_vm10, %v26621_v21, %v26853_v58  ;;  %v26874_v2 = vor.u32 %v14113_v4, %v14112_v16  ;;  %v14713_v16 = vrot.slane %v14711_v60, 4  ;;  %v14321_v44 = vrot.slane %v14078_v48, 5 }
 0x6e7   : > { %21665 = vmatprep.subr.bf16.mxu1 %v22464_v23  ;;  %21691 = vmatprep.subr.bf16.mxu0 %v22468_v19 }
 0x6e8   : > { %v21297_v42 = vpop.f32.mrb[184].mxu1  ;;  %21652 = vmatmul.mubr.msk.bf16.gmra.mrb[180].mxu0 %vm440_vm4, %v26641_v24  ;;  %v22469_v24 = vld [vmem:[%s27811_s7 + $0x298] sm:$0xff]   ;;  %v14115_v26 = vsel %vm3512_vm9, %v26469_v29, %v26874_v2  ;;  %v26911_v29 = vld [vmem:[%s27811_s7 + $0x2c0] sm:$0xff]  }
 0x6e9   : > { %v11322_v45 = vadd.f32 %v21297_v42, %v26757_v31  ;;  %v11281_v54 = vpop.f32.mrb[185].mxu1  ;;  %21655 = vmatprep.mubr.msk.bf16.mxu0 %vm440_vm4, %v14316_v47  ;;  %21692 = vmatpush3.bf16.msra.mxu0 %v22468_v19  ;;  %v14705_v19 = vrot.slane %v14703_v37, 4 }
 0x6ea   : > { %v11320_v15 = vadd.f32 %v11281_v54, %v26759_v28  ;;  %v21298_v0 = vpop.f32.mrb[186].mxu1  ;;  %21666 = vmatpush3.bf16.msra.mxu1 %v22464_v23  ;;  %21693 = vmatprep.subr.bf16.mxu0 %v22470_v25 }
 0x6eb   : > { %v11284_v31 = vpop.f32.mrb[187].mxu1  ;;  %21667 = vmatprep.subr.bf16.mxu1 %v22466_v36  ;;  %v26885_v21 = vadd.f32 %v21321_v27, %v11322_v45  ;;  %v21325_v46 = vpop.f32.mrb[76].mxu0  ;;  %v26922_v27 = vld [vmem:[#allocation2 + $0x30] sm:$0xff]  ;;  %v14130_v45 = vrot.slane %v14128_v61, 5  ;;  %v14706_v48 = vor.u32 %v14705_v19, %v14702_v8  ;;  %v14512_v61 = vrot.slane %v26880_v14, 3 }
 0x6ec   : > { %v26888_v28 = vadd.f32 %v11486_v63, %v11320_v15  ;;  %v11502_v57 = vpop.f32.mrb[77].mxu0  ;;  %v14710_v63 = vrot.slane %v14708_v1, 3  ;;  %v14717_v15 = vshrl.u32 %v26922_v27, 16  ;;  %v14720_v0 = vshll.u32 %v26922_v27, 16 }
 0x6ed   : > { %21628 = vmatmul.mubr.msk.bf16.gmra.mrb[36].mxu1 %vm440_vm4, %v26487_v50  ;;  %v21326_v22 = vpop.f32.mrb[78].mxu0  ;;  %v14121_v50 = vrot.slane %v13713_v40, 5  ;;  %21694 = vmatpush3.bf16.msra.mxu0 %v22470_v25  ;;  %v14127_v25 = vrot.slane %v14125_v41, 4  ;;  %v14511_v41 = vrot.slane %v26876_v38, 3  ;;  %v26968_v38 = vld [vmem:[#allocation2 + $0x48] sm:$0xff] }
 0x6ee   : > { %21631 = vmatprep.mubr.msk.bf16.mxu1 %vm440_vm4, %v14115_v26  ;;  %21668 = vmatpush3.bf16.msra.mxu1 %v22466_v36  ;;  %v11505_v6 = vpop.f32.mrb[79].mxu0  ;;  %v14119_v36 = vsel %vm3512_vm9, %v26874_v2, %v26517_v52  ;;  %v14714_v33 = vor.u32 %v14713_v16, %v14710_v63 }
 0x6ef   : > { %21669 = vmatprep.subr.bf16.mxu1 %v22469_v24  ;;  %21735 = vmatprep.subr.bf16.mxu0 %v26893_v34  ;;  %v26930_v5 = vor.u32 %v14121_v50, %v14120_v11  ;;  %v14131_v22 = vor.u32 %v14130_v45, %v14127_v25  ;;  %v14722_v6 = vrot.slane %v14720_v0, 4  ;;  %v14744_v25 = vshrl.u32 %v26968_v38, 16 }
 0x6f0   : > { %v21301_v13 = vpop.f32.mrb[188].mxu1  ;;  %21656 = vmatmul.mubr.msk.bf16.gmra.mrb[184].mxu0 %vm440_vm4, %v14318_v3  ;;  %v14747_v45 = vshll.u32 %v26968_v38, 16 }
 0x6f1   : > { %v11326_v40 = vadd.f32 %v21301_v13, %v26800_v32  ;;  %v11297_v23 = vpop.f32.mrb[189].mxu1  ;;  %21659 = vmatprep.mubr.msk.bf16.mxu0 %vm440_vm4, %v14320_v49  ;;  %v26932_v32 = vld [vmem:[#allocation2 + $0x38] sm:$0xff]  ;;  %v14123_v47 = vsel %vm3512_vm9, %v26517_v52, %v26930_v5  ;;  %v14322_v52 = vsel %vm3731_vm10, %v26146_v55, %v14321_v44  ;;  %v14715_v49 = vsel %vm871_vm2, %v14706_v48, %v14714_v33  ;;  %v22475_v48 = vld [vmem:[%s27811_s7 + $0x2e8] sm:$0xff]  }
 0x6f2   : > { %v11324_v4 = vadd.f32 %v11297_v23, %v26805_v59  ;;  %v21302_v62 = vpop.f32.mrb[190].mxu1  ;;  %21670 = vmatpush3.bf16.msra.mxu1 %v22469_v24  ;;  %v14726_v26 = vshrl.u32 %v26932_v32, 16  ;;  %v14132_v16 = vsel %vm3512_vm9, %v26930_v5, %v14131_v22  ;;  %v14516_v22 = vrot.slane %v26932_v32, 3 }
 0x6f3   : > { %v11300_v42 = vpop.f32.mrb[191].mxu1  ;;  %21711 = vmatprep.subr.bf16.mxu1 %v26911_v29  ;;  %v26938_v54 = vadd.f32 %v21325_v46, %v11326_v40  ;;  %v21361_v59 = vpop.f32.mrb[80].mxu0  ;;  %v14729_v46 = vshll.u32 %v26932_v32, 16 }
 0x6f4   : > { %v26945_v31 = vadd.f32 %v11502_v57, %v11324_v4  ;;  %v11895_v24 = vpop.f32.mrb[81].mxu0  ;;  %v14719_v57 = vrot.slane %v14717_v15, 3  ;;  %v14728_v8 = vrot.slane %v14726_v26, 3 }
 0x6f5   : > { %21632 = vmatmul.mubr.msk.bf16.gmra.mrb[40].mxu1 %vm440_vm4, %v14119_v36  ;;  %v21362_v37 = vpop.f32.mrb[82].mxu0  ;;  %v14731_v40 = vrot.slane %v14729_v46, 4 }
 0x6f6   : > { %21635 = vmatprep.mubr.msk.bf16.mxu1 %vm440_vm4, %v14123_v47  ;;  %v11898_v11 = vpop.f32.mrb[83].mxu0  ;;  %v14723_v4 = vor.u32 %v14722_v6, %v14719_v57  ;;  %v14514_v37 = vrot.slane %v26922_v27, 3  ;;  %v14746_v6 = vrot.slane %v14744_v25, 3 }
 0x6f7   : > { %v14732_v42 = vor.u32 %v14731_v40, %v14728_v8 }
 0x6f8   : > { %v21337_v50 = vpop.f32.mrb[192].mxu1  ;;  %21660 = vmatmul.mubr.msk.bf16.gmra.mrb[188].mxu0 %vm440_vm4, %v14322_v52  ;;  %v14515_v8 = vsel %vm3149_vm7, %v14512_v61, %v14514_v37 }
 0x6f9   : > { %v11770_v3 = vadd.f32 %v21337_v50, %v26820_v18  ;;  %v11705_v13 = vpop.f32.mrb[193].mxu1  ;;  %21695 = vmatprep.mubr.msk.bf16.mxu0 %vm440_vm4, %v14715_v49  ;;  %v14733_v57 = vsel %vm871_vm2, %v14723_v4, %v14732_v42 }
 0x6fa   : > { %v11768_v23 = vadd.f32 %v11705_v13, %v26824_v35  ;;  %v21338_v19 = vpop.f32.mrb[194].mxu1  ;;  %v14513_v35 = vsel %vm3149_vm7, %v14511_v41, %v14512_v61  ;;  %v14749_v41 = vrot.slane %v14747_v45, 4 }
 0x6fb   : > { %v11708_v63 = vpop.f32.mrb[195].mxu1  ;;  %v26970_v18 = vadd.f32 %v21361_v59, %v11770_v3  ;;  %v21365_v62 = vpop.f32.mrb[84].mxu0 }
 0x6fc   : > { %v26974_v44 = vadd.f32 %v11895_v24, %v11768_v23  ;;  %v11911_v36 = vpop.f32.mrb[85].mxu0  ;;  %v14724_v24 = vsel %vm871_vm2, %v14714_v33, %v14723_v4  ;;  %v14750_v63 = vor.u32 %v14749_v41, %v14746_v6 }
 0x6fd   : > { %21636 = vmatmul.mubr.msk.bf16.gmra.mrb[44].mxu1 %vm440_vm4, %v14132_v16  ;;  %v21366_v47 = vpop.f32.mrb[86].mxu0  ;;  %v27010_v16 = vld [vmem:[#allocation2 + $0x58] sm:$0xff] }
 0x6fe   : > { %21671 = vmatprep.mubr.msk.bf16.mxu1 %vm440_vm4, %v14513_v35  ;;  %v11914_v59 = vpop.f32.mrb[87].mxu0  ;;  %v14762_v4 = vshrl.u32 %v27010_v16, 16  ;;  %v22474_v47 = vld [vmem:[%s27811_s7 + $0x2d0] sm:$0xff]  }
 0x6ff   : > { %v14742_v59 = vsel %vm871_vm2, %v14732_v42, %v26748_v43 }
 0x700   : > { %v21341_v52 = vpop.f32.mrb[196].mxu1  ;;  %21696 = vmatmul.mubr.msk.bf16.vlgmr.msra.gmra.mrb[192].mxu0 %vm440_vm4, %v14724_v24 }
 0x701   : > { %v11774_v11 = vadd.f32 %v21341_v52, %v26843_v39  ;;  %v11721_v50 = vpop.f32.mrb[197].mxu1  ;;  %21699 = vmatprep.mubr.msk.bf16.mxu0 %vm440_vm4, %v14733_v57  ;;  %21736 = vmatpush3.bf16.msra.mxu0 %v26893_v34  ;;  %v22472_v39 = vld [vmem:[%s27811_s7 + $0x2c8] sm:$0xff]   ;;  %v14517_v34 = vsel %vm3149_vm7, %v14514_v37, %v14516_v22  ;;  %v14520_v37 = vrot.slane %v26968_v38, 3  ;;  %v27035_v57 = vld [vmem:[#allocation2 + $0x20] sm:$0xf0] }
 0x702   : > { %v11772_v33 = vadd.f32 %v11721_v50, %v26848_v30  ;;  %v21342_v3 = vpop.f32.mrb[198].mxu1  ;;  %21737 = vmatprep.subr.bf16.mxu0 %v22475_v48  ;;  %v22476_v30 = vld [vmem:[%s27811_s7 + $0x2f0] sm:$0xff]   ;;  %v14751_v50 = vsel %vm871_vm2, %v26748_v43, %v14750_v63  ;;  %v22477_v43 = vld [vmem:[%s27811_s7 + $0x2d8] sm:$0xff]  }
 0x703   : > { %v11724_v13 = vpop.f32.mrb[199].mxu1  ;;  %v27000_v49 = vadd.f32 %v21365_v62, %v11774_v11  ;;  %v21369_v40 = vpop.f32.mrb[88].mxu0  ;;  %v14765_v62 = vshll.u32 %v27010_v16, 16 }
 0x704   : > { %v27006_v23 = vadd.f32 %v11911_v36, %v11772_v33  ;;  %v11927_v19 = vpop.f32.mrb[89].mxu0  ;;  %v27016_v36 = vld [vmem:[#allocation2 + $0x60] sm:$0xf] }
 0x705   : > { %21672 = vmatmul.mubr.msk.bf16.vlgmr.msra.gmra.mrb[48].mxu1 %vm440_vm4, %v14515_v8  ;;  %v21370_v61 = vpop.f32.mrb[90].mxu0  ;;  %21738 = vmatpush3.bf16.msra.mxu0 %v22475_v48  ;;  %v14764_v48 = vrot.slane %v14762_v4, 3  ;;  %v14767_v42 = vrot.slane %v14765_v62, 4  ;;  %v14774_v33 = vshll.u32 %v27016_v36, 16 }
 0x706   : > { %21712 = vmatpush3.bf16.msra.mxu1 %v26911_v29  ;;  %21675 = vmatprep.mubr.msk.bf16.mxu1 %vm440_vm4, %v14517_v34  ;;  %v11930_v35 = vpop.f32.mrb[91].mxu0  ;;  %v22478_v29 = vld [vmem:[%s27811_s7 + $0x2f8] sm:$0xff]   ;;  %v15141_v34 = vshrl.u32 %v27035_v57, 16 }
 0x707   : > { %21713 = vmatprep.subr.bf16.mxu1 %v22472_v39  ;;  %21739 = vmatprep.subr.bf16.mxu0 %v22476_v30 }
 0x708   : > { %v21345_v24 = vpop.f32.mrb[200].mxu1  ;;  %21700 = vmatmul.mubr.msk.bf16.gmra.mrb[196].mxu0 %vm440_vm4, %v14742_v59  ;;  %v14768_v59 = vor.u32 %v14767_v42, %v14764_v48  ;;  %v15143_v48 = vrot.slane %v15141_v34, 4 }
 0x709   : > { %v11778_v52 = vadd.f32 %v21345_v24, %v26885_v21  ;;  %v11737_v11 = vpop.f32.mrb[201].mxu1  ;;  %21703 = vmatprep.mubr.msk.bf16.mxu0 %vm440_vm4, %v14751_v50  ;;  %v14771_v21 = vshrl.u32 %v27016_v36, 16  ;;  %21740 = vmatpush3.bf16.msra.mxu0 %v22476_v30  ;;  %v14521_v30 = vsel %vm3149_vm7, %v26601_v9, %v14520_v37 }
 0x70a   : > { %v11776_v6 = vadd.f32 %v11737_v11, %v26888_v28  ;;  %v21346_v41 = vpop.f32.mrb[202].mxu1  ;;  %21714 = vmatpush3.bf16.msra.mxu1 %v22472_v39  ;;  %v14519_v28 = vsel %vm3149_vm7, %v14516_v22, %v26601_v9  ;;  %v15144_v39 = vshll.u32 %v27035_v57, 16  ;;  %21741 = vmatprep.subr.bf16.mxu0 %v22478_v29  ;;  %v14776_v22 = vrot.slane %v14774_v33, 4 }
 0x70b   : > { %v11740_v3 = vpop.f32.mrb[203].mxu1  ;;  %21715 = vmatprep.subr.bf16.mxu1 %v22474_v47  ;;  %v27044_v13 = vadd.f32 %v21369_v40, %v11778_v52  ;;  %v21373_v8 = vpop.f32.mrb[92].mxu0  ;;  %v14773_v24 = vrot.slane %v14771_v21, 3  ;;  %v14760_v11 = vsel %vm871_vm2, %v14750_v63, %v26795_v20  ;;  %v14524_v9 = vrot.slane %v27010_v16, 3 }
 0x70c   : > { %v27050_v61 = vadd.f32 %v11927_v19, %v11776_v6  ;;  %v11943_v35 = vpop.f32.mrb[93].mxu0  ;;  %v27059_v19 = vld [vmem:[%s27811_s7 + $0x300] sm:$0xff]   ;;  %v15146_v42 = vrot.slane %v15144_v39, 5  ;;  %v15149_v21 = vrot.slane %v14711_v60, 5 }
 0x70d   : > { %21676 = vmatmul.mubr.msk.bf16.gmra.mrb[52].mxu1 %vm440_vm4, %v14519_v28  ;;  %v21374_v40 = vpop.f32.mrb[94].mxu0  ;;  %21742 = vmatpush3.bf16.msra.mxu0 %v22478_v29  ;;  %v15148_v29 = vrot.slane %v14708_v1, 4  ;;  %v14777_v3 = vor.u32 %v14776_v22, %v14773_v24  ;;  %v14492_v28 = vld [vmem:[#allocation2 + $0x60] sm:$0x7] }
 0x70e   : > { %21679 = vmatprep.mubr.msk.bf16.mxu1 %vm440_vm4, %v14521_v30  ;;  %21716 = vmatpush3.bf16.msra.mxu1 %v22474_v47  ;;  %v11946_v52 = vpop.f32.mrb[95].mxu0  ;;  %v14769_v47 = vsel %vm871_vm2, %v26795_v20, %v14768_v59  ;;  %v14523_v20 = vsel %vm3149_vm7, %v14520_v37, %v26646_v51  ;;  %v15147_v30 = vor.u32 %v15146_v42, %v15143_v48  ;;  %v14526_v22 = vrot.slane %v14492_v28, 3 }
 0x70f   : > { %21717 = vmatprep.subr.bf16.mxu1 %v22477_v43  ;;  %v14778_v40 = vsel %vm871_vm2, %v14768_v59, %v14777_v3  ;;  %v15152_v37 = vrot.slane %v14717_v15, 4  ;;  %v15156_v42 = vrot.slane %v14726_v26, 4  ;;  %v15157_v15 = vrot.slane %v14729_v46, 5 }
 0x710   : > { %v21349_v50 = vpop.f32.mrb[204].mxu1  ;;  %21704 = vmatmul.mubr.msk.bf16.gmra.mrb[200].mxu0 %vm440_vm4, %v14760_v11  ;;  %v14952_v11 = vrot.slane %v27035_v57, 4  ;;  %v14955_v3 = vrot.slane %v26922_v27, 4  ;;  %v14957_v28 = vrot.slane %v26932_v32, 4 }
 0x711   : > { %v11782_v6 = vadd.f32 %v21349_v50, %v26938_v54  ;;  %v11753_v41 = vpop.f32.mrb[205].mxu1  ;;  %21707 = vmatprep.mubr.msk.bf16.mxu0 %vm440_vm4, %v14769_v47  ;;  %v15158_v46 = vor.u32 %v15157_v15, %v15156_v42  ;;  %v14961_v42 = vrot.slane %v26968_v38, 4 }
 0x712   : > { %v11780_v63 = vadd.f32 %v11753_v41, %v26945_v31  ;;  %v21350_v33 = vpop.f32.mrb[206].mxu1  ;;  %21718 = vmatpush3.bf16.msra.mxu1 %v22477_v43  ;;  %v14525_v31 = vsel %vm3149_vm7, %v26646_v51, %v14524_v9  ;;  %v15150_v43 = vor.u32 %v15149_v21, %v15148_v29  ;;  %v14953_v51 = vrot.slane %v26880_v14, 4 }
 0x713   : > { %v11756_v54 = vpop.f32.mrb[207].mxu1  ;;  %21759 = vmatprep.subr.bf16.mxu1 %v27059_v19  ;;  %v27075_v34 = vadd.f32 %v21373_v8, %v11782_v6  ;;  %v21409_v1 = vpop.f32.mrb[96].mxu0  ;;  %v14527_v6 = vsel %vm3149_vm7, %v14524_v9, %v14526_v22 }
 0x714   : > { %v27079_v39 = vadd.f32 %v11943_v35, %v11780_v63  ;;  %v12301_v60 = vpop.f32.mrb[97].mxu0  ;;  %v15153_v35 = vrot.slane %v14720_v0, 5  ;;  %v15151_v59 = vsel %vm3512_vm9, %v15147_v30, %v15150_v43  ;;  %v14954_v26 = vsel %vm2854_vm8, %v14952_v11, %v14953_v51 }
 0x715   : > { %21680 = vmatmul.mubr.msk.bf16.gmra.mrb[56].mxu1 %vm440_vm4, %v14523_v20  ;;  %v21410_v24 = vpop.f32.mrb[98].mxu0  ;;  %v15165_v30 = vrot.slane %v14747_v45, 5  ;;  %v14958_v45 = vsel %vm2854_vm8, %v14955_v3, %v14957_v28 }
 0x716   : > { %21683 = vmatprep.mubr.msk.bf16.mxu1 %vm440_vm4, %v14525_v31  ;;  %v12304_v8 = vpop.f32.mrb[99].mxu0  ;;  %v15154_v47 = vor.u32 %v15153_v35, %v15152_v37  ;;  %v15164_v31 = vrot.slane %v14744_v25, 4 }
 0x717   : > { %v14956_v8 = vsel %vm2854_vm8, %v14953_v51, %v14955_v3  ;;  %v22481_v51 = vld [vmem:[%s27811_s7 + $0x310] sm:$0xff]  }
 0x718   : > { %v21385_v52 = vpop.f32.mrb[208].mxu1  ;;  %21708 = vmatmul.mubr.msk.bf16.gmra.mrb[204].mxu0 %vm440_vm4, %v14778_v40  ;;  %v15155_v9 = vsel %vm3512_vm9, %v15150_v43, %v15154_v47 }
 0x719   : > { %v12176_v50 = vadd.f32 %v21385_v52, %v26970_v18  ;;  %v12111_v48 = vpop.f32.mrb[209].mxu1  ;;  %21743 = vmatprep.mubr.msk.bf16.mxu0 %vm440_vm4, %v15151_v59 }
 0x71a   : > { %v12174_v0 = vadd.f32 %v12111_v48, %v26974_v44  ;;  %v21386_v57 = vpop.f32.mrb[210].mxu1  ;;  %v15163_v48 = vsel %vm3512_vm9, %v15158_v46, %v26874_v2 }
 0x71b   : > { %v12114_v41 = vpop.f32.mrb[211].mxu1  ;;  %v27102_v18 = vadd.f32 %v21409_v1, %v12176_v50  ;;  %v21413_v29 = vpop.f32.mrb[100].mxu0  ;;  %v27133_v50 = vld [vmem:[#allocation2 + $0x60] sm:$0x1f]  ;;  %v15173_v57 = vrot.slane %v14765_v62, 5  ;;  %v14960_v62 = vsel %vm2854_vm8, %v14957_v28, %v26727_v53 }
 0x71c   : > { %v27104_v21 = vadd.f32 %v12301_v60, %v12174_v0  ;;  %v12317_v63 = vpop.f32.mrb[101].mxu0  ;;  %v15159_v60 = vsel %vm3512_vm9, %v15154_v47, %v15158_v46  ;;  %v15172_v0 = vrot.slane %v14762_v4, 4 }
 0x71d   : > { %21684 = vmatmul.mubr.msk.bf16.gmra.mrb[60].mxu1 %vm440_vm4, %v14527_v6  ;;  %v21414_v33 = vpop.f32.mrb[102].mxu0 }
 0x71e   : > { %21719 = vmatprep.mubr.msk.bf16.mxu1 %vm440_vm4, %v14954_v26  ;;  %v12320_v44 = vpop.f32.mrb[103].mxu0  ;;  %v14962_v33 = vsel %vm2854_vm8, %v26727_v53, %v14961_v42 }
 0x71f   : > { %v15174_v44 = vor.u32 %v15173_v57, %v15172_v0 }
 0x720   : > { %v21389_v54 = vpop.f32.mrb[212].mxu1  ;;  %21744 = vmatmul.mubr.msk.bf16.vlgmr.msra.gmra.mrb[208].mxu0 %vm440_vm4, %v15155_v9 }
 0x721   : > { %v12180_v20 = vadd.f32 %v21389_v54, %v27000_v49  ;;  %v12127_v1 = vpop.f32.mrb[213].mxu1  ;;  %21747 = vmatprep.mubr.msk.bf16.mxu0 %vm440_vm4, %v15159_v60  ;;  %v22480_v49 = vld [vmem:[%s27811_s7 + $0x308] sm:$0xff]   ;;  %v15175_v53 = vsel %vm3512_vm9, %v26930_v5, %v15174_v44 }
 0x722   : > { %v12178_v43 = vadd.f32 %v12127_v1, %v27006_v23  ;;  %v21390_v40 = vpop.f32.mrb[214].mxu1  ;;  %v15166_v23 = vor.u32 %v15165_v30, %v15164_v31  ;;  %v14965_v30 = vrot.slane %v27010_v16, 4 }
 0x723   : > { %v12130_v24 = vpop.f32.mrb[215].mxu1  ;;  %v27124_v22 = vadd.f32 %v21413_v29, %v12180_v20  ;;  %v21417_v52 = vpop.f32.mrb[104].mxu0  ;;  %v15180_v29 = vshll.u32 %v27133_v50, 16 }
 0x724   : > { %v27127_v37 = vadd.f32 %v12317_v63, %v12178_v43  ;;  %v12333_v25 = vpop.f32.mrb[105].mxu0  ;;  %v15167_v6 = vsel %vm3512_vm9, %v26874_v2, %v15166_v23  ;;  %v22482_v2 = vld [vmem:[%s27811_s7 + $0x318] sm:$0xff]   ;;  %v15171_v28 = vsel %vm3512_vm9, %v15166_v23, %v26930_v5  ;;  %v14966_v16 = vsel %vm2854_vm8, %v26773_v56, %v14965_v30 }
 0x725   : > { %21720 = vmatmul.mubr.msk.bf16.vlgmr.msra.gmra.mrb[64].mxu1 %vm440_vm4, %v14956_v8  ;;  %v21418_v35 = vpop.f32.mrb[106].mxu0  ;;  %v15182_v54 = vrot.slane %v15180_v29, 5  ;;  %v14967_v23 = vrot.slane %v27016_v36, 4  ;;  %v15361_v29 = vrot.slane %v26922_v27, 5 }
 0x726   : > { %21760 = vmatpush3.bf16.msra.mxu1 %v27059_v19  ;;  %21723 = vmatprep.mubr.msk.bf16.mxu1 %vm440_vm4, %v14958_v45  ;;  %v12336_v11 = vpop.f32.mrb[107].mxu0  ;;  %v15346_v35 = vld [vmem:[#allocation2 + $0x20] sm:$0xe0] }
 0x727   : > { %21761 = vmatprep.subr.bf16.mxu1 %v22480_v49 }
 0x728   : > { %v21393_v59 = vpop.f32.mrb[216].mxu1  ;;  %21748 = vmatmul.mubr.msk.bf16.gmra.mrb[212].mxu0 %vm440_vm4, %v15163_v48 }
 0x729   : > { %v12184_v15 = vadd.f32 %v21393_v59, %v27044_v13  ;;  %v12143_v19 = vpop.f32.mrb[217].mxu1  ;;  %21751 = vmatprep.mubr.msk.bf16.mxu0 %vm440_vm4, %v15167_v6  ;;  %v15177_v13 = vshrl.u32 %v27133_v50, 16 }
 0x72a   : > { %v12182_v41 = vadd.f32 %v12143_v19, %v27050_v61  ;;  %v21394_v47 = vpop.f32.mrb[218].mxu1  ;;  %21762 = vmatpush3.bf16.msra.mxu1 %v22480_v49 }
 0x72b   : > { %v12146_v63 = vpop.f32.mrb[219].mxu1  ;;  %21763 = vmatprep.subr.bf16.mxu1 %v22481_v51  ;;  %v27156_v4 = vadd.f32 %v21417_v52, %v12184_v15  ;;  %v21421_v61 = vpop.f32.mrb[108].mxu0  ;;  %v15179_v3 = vrot.slane %v15177_v13, 4  ;;  %v15359_v15 = vrot.slane %v26880_v14, 5 }
 0x72c   : > { %v27160_v26 = vadd.f32 %v12333_v25, %v12182_v41  ;;  %v12349_v46 = vpop.f32.mrb[109].mxu0 }
 0x72d   : > { %21724 = vmatmul.mubr.msk.bf16.gmra.mrb[68].mxu1 %vm440_vm4, %v14960_v62  ;;  %v21422_v9 = vpop.f32.mrb[110].mxu0  ;;  %v15183_v24 = vor.u32 %v15182_v54, %v15179_v3  ;;  %v15363_v62 = vrot.slane %v26932_v32, 5 }
 0x72e   : > { %21727 = vmatprep.mubr.msk.bf16.mxu1 %vm440_vm4, %v14962_v33  ;;  %21764 = vmatpush3.bf16.msra.mxu1 %v22481_v51  ;;  %v12352_v20 = vpop.f32.mrb[111].mxu0  ;;  %v15362_v9 = vsel %vm3731_vm10, %v15359_v15, %v15361_v29 }
 0x72f   : > { %21765 = vmatprep.subr.bf16.mxu1 %v22482_v2  ;;  %v15364_v27 = vsel %vm3731_vm10, %v15361_v29, %v15363_v62 }
 0x730   : > { %v21397_v1 = vpop.f32.mrb[220].mxu1  ;;  %21752 = vmatmul.mubr.msk.bf16.gmra.mrb[216].mxu0 %vm440_vm4, %v15171_v28 }
 0x731   : > { %v12188_v60 = vadd.f32 %v21397_v1, %v27075_v34  ;;  %v12159_v31 = vpop.f32.mrb[221].mxu1  ;;  %21755 = vmatprep.mubr.msk.bf16.mxu0 %vm440_vm4, %v15175_v53  ;;  %v14964_v34 = vsel %vm2854_vm8, %v14961_v42, %v26773_v56  ;;  %v15358_v42 = vrot.slane %v15346_v35, 5  ;;  %v14968_v56 = vsel %vm2854_vm8, %v14965_v30, %v14967_v23 }
 0x732   : > { %v12186_v43 = vadd.f32 %v12159_v31, %v27079_v39  ;;  %v21398_v40 = vpop.f32.mrb[222].mxu1  ;;  %21766 = vmatpush3.bf16.msra.mxu1 %v22482_v2  ;;  %v15184_v39 = vsel %vm3512_vm9, %v15174_v44, %v15183_v24 }
 0x733   : > { %v12162_v49 = vpop.f32.mrb[223].mxu1  ;;  %v27175_v8 = vadd.f32 %v21421_v61, %v12188_v60  ;;  %21999 = vmatprep.subr.bf16.mxu1 %v22553_v7  ;;  %v21457_v52 = vpop.f32.mrb[112].mxu0  ;;  %v15367_v60 = vrot.slane %v26968_v38, 5  ;;  %v15366_v40 = vsel %vm3731_vm10, %v15363_v62, %v26853_v58 }
 0x734   : > { %v27180_v25 = vadd.f32 %v12349_v46, %v12186_v43  ;;  %v12757_v5 = vpop.f32.mrb[113].mxu0 }
 0x735   : > { %21728 = vmatmul.mubr.msk.bf16.gmra.mrb[72].mxu1 %vm440_vm4, %v14964_v34  ;;  %v21458_v45 = vpop.f32.mrb[114].mxu0 }
 0x736   : > { %21731 = vmatprep.mubr.msk.bf16.mxu1 %vm440_vm4, %v14966_v16  ;;  %v12760_v11 = vpop.f32.mrb[115].mxu0 }
 0x737   : > { %v15370_v11 = vsel %vm3731_vm10, %v15367_v60, %v26146_v55 }
 0x738   : > { %v21433_v51 = vpop.f32.mrb[224].mxu1  ;;  %21756 = vmatmul.mubr.msk.bf16.gmra.mrb[220].mxu0 %vm440_vm4, %v15184_v39 }
 0x739   : > { %v12571_v48 = vadd.f32 %v21433_v51, %v27102_v18  ;;  %v12506_v59 = vpop.f32.mrb[225].mxu1  ;;  %v15360_v18 = vsel %vm3731_vm10, %v15358_v42, %v15359_v15  ;;  %v15373_v42 = vrot.slane %v27133_v50, 5 }
 0x73a   : > { %v12569_v19 = vadd.f32 %v12506_v59, %v27104_v21  ;;  %v21434_v6 = vpop.f32.mrb[226].mxu1 }
 0x73b   : > { %v12509_v0 = vpop.f32.mrb[227].mxu1  ;;  %v12822_v36 = vadd.f32 %v21457_v52, %v12571_v48  ;;  %v21461_v57 = vpop.f32.mrb[116].mxu0  ;;  %v15368_v52 = vsel %vm3731_vm10, %v26853_v58, %v15367_v60 }
 0x73c   : > { %v27193_v41 = vadd.f32 %v12757_v5, %v12569_v19  ;;  %v12773_v47 = vpop.f32.mrb[117].mxu0  ;;  %v15374_v19 = vsel %vm3731_vm10, %v15371_v12, %v15373_v42 }
 0x73d   : > { %21732 = vmatmul.mubr.msk.bf16.gmra.mrb[76].mxu1 %vm440_vm4, %v14968_v56  ;;  %v21462_v13 = vpop.f32.mrb[118].mxu0 }
 0x73e   : > { %21767 = vmatprep.mubr.msk.bf16.mxu1 %vm440_vm4, %v15360_v18  ;;  %v12776_v14 = vpop.f32.mrb[119].mxu0 }
 0x740   : > { %v21437_v63 = vpop.f32.mrb[228].mxu1 }
 0x741   : > { %v12575_v21 = vadd.f32 %v21437_v63, %v27124_v22  ;;  %v12522_v2 = vpop.f32.mrb[229].mxu1 }
 0x742   : > { %v12573_v61 = vadd.f32 %v12522_v2, %v27127_v37  ;;  %v21438_v46 = vpop.f32.mrb[230].mxu1 }
 0x743   : > { %v12525_v33 = vpop.f32.mrb[231].mxu1  ;;  %v12826_v44 = vadd.f32 %v21461_v57, %v12575_v21  ;;  %v21465_v3 = vpop.f32.mrb[120].mxu0 }
 0x744   : > { %v12824_v54 = vadd.f32 %v12773_v47, %v12573_v61  ;;  %v12789_v20 = vpop.f32.mrb[121].mxu0 }
 0x745   : > { %21768 = vmatmul.mubr.msk.bf16.vlgmr.msra.gmra.mrb[80].mxu1 %vm440_vm4, %v15362_v9  ;;  %v21466_v28 = vpop.f32.mrb[122].mxu0 }
 0x746   : > { %21771 = vmatprep.mubr.msk.bf16.mxu1 %vm440_vm4, %v15364_v27  ;;  %v12792_v22 = vpop.f32.mrb[123].mxu0 }
 0x748   : > { %v21441_v1 = vpop.f32.mrb[232].mxu1 }
 0x749   : > { %v12579_v32 = vadd.f32 %v21441_v1, %v27156_v4  ;;  %v12538_v37 = vpop.f32.mrb[233].mxu1 }
 0x74a   : > { %v12577_v31 = vadd.f32 %v12538_v37, %v27160_v26  ;;  %v21442_v53 = vpop.f32.mrb[234].mxu1 }
 0x74b   : > { %v12541_v30 = vpop.f32.mrb[235].mxu1  ;;  %v12830_v43 = vadd.f32 %v21465_v3, %v12579_v32  ;;  %v21469_v24 = vpop.f32.mrb[124].mxu0 }
 0x74c   : > { %v12828_v49 = vadd.f32 %v12789_v20, %v12577_v31  ;;  %v12805_v34 = vpop.f32.mrb[125].mxu0 }
 0x74d   : > { %21772 = vmatmul.mubr.msk.bf16.gmra.mrb[84].mxu1 %vm440_vm4, %v15366_v40  ;;  %v21470_v4 = vpop.f32.mrb[126].mxu0 }
 0x74e   : > { %21775 = vmatprep.mubr.msk.bf16.mxu1 %vm440_vm4, %v15368_v52  ;;  %v12808_v38 = vpop.f32.mrb[127].mxu0 }
 0x750   : > { %v21445_v5 = vpop.f32.mrb[236].mxu1 }
 0x751   : > { %v12583_v26 = vadd.f32 %v21445_v5, %v27175_v8  ;;  %v12554_v16 = vpop.f32.mrb[237].mxu1 }
 0x752   : > { %v12581_v39 = vadd.f32 %v12554_v16, %v27180_v25  ;;  %v21446_v45 = vpop.f32.mrb[238].mxu1 }
 0x753   : > { %v12557_v23 = vpop.f32.mrb[239].mxu1  ;;  %v12834_v35 = vadd.f32 %v21469_v24, %v12583_v26  ;;  %v21505_v51 = vpop.f32.mrb[128].mxu0 }
 0x754   : > { %v12832_v48 = vadd.f32 %v12805_v34, %v12581_v39  ;;  %v13163_v59 = vpop.f32.mrb[129].mxu0 }
 0x755   : > { %21776 = vmatmul.mubr.msk.bf16.gmra.mrb[88].mxu1 %vm440_vm4, %v15370_v11  ;;  %v21506_v58 = vpop.f32.mrb[130].mxu0 }
 0x756   : > { %21779 = vmatprep.mubr.msk.bf16.mxu1 %vm440_vm4, %v26159_v10  ;;  %v13166_v8 = vpop.f32.mrb[131].mxu0 }
 0x758   : > { %v21481_v15 = vpop.f32.mrb[240].mxu1 }
 0x759   : > { %v13012_v25 = vadd.f32 %v21481_v15, %v12822_v36  ;;  %v12947_v56 = vpop.f32.mrb[241].mxu1 }
 0x75a   : > { %v13010_v55 = vadd.f32 %v12947_v56, %v27193_v41  ;;  %v21482_v6 = vpop.f32.mrb[242].mxu1 }
 0x75b   : > { %v12950_v0 = vpop.f32.mrb[243].mxu1  ;;  %v13228_v57 = vadd.f32 %v21505_v51, %v13012_v25  ;;  %v21509_v47 = vpop.f32.mrb[132].mxu0 }
 0x75c   : > { %v13226_v18 = vadd.f32 %v13163_v59, %v13010_v55  ;;  %v13179_v13 = vpop.f32.mrb[133].mxu0 }
 0x75d   : > { %21780 = vmatmul.mubr.msk.bf16.gmra.mrb[92].mxu1 %vm440_vm4, %v15374_v19  ;;  %v21510_v50 = vpop.f32.mrb[134].mxu0 }
 0x75e   : > { %v13182_v10 = vpop.f32.mrb[135].mxu0  ;;  %22015 = vmatprep.mubr.msk.bf16.mxu1 %vm22554_vm11, %v22553_v7 }
 0x760   : > { %v21485_v14 = vpop.f32.mrb[244].mxu1 }
 0x761   : > { %v13016_v29 = vadd.f32 %v21485_v14, %v12826_v44  ;;  %v12963_v36 = vpop.f32.mrb[245].mxu1 }
 0x762   : > { %v13014_v63 = vadd.f32 %v12963_v36, %v12824_v54  ;;  %v21486_v21 = vpop.f32.mrb[246].mxu1 }
 0x763   : > { %v12966_v17 = vpop.f32.mrb[247].mxu1  ;;  %v13232_v2 = vadd.f32 %v21509_v47, %v13016_v29  ;;  %v21513_v12 = vpop.f32.mrb[136].mxu0 }
 0x764   : > { %v13230_v62 = vadd.f32 %v13179_v13, %v13014_v63  ;;  %v13195_v41 = vpop.f32.mrb[137].mxu0 }
 0x765   : > { %v21514_v61 = vpop.f32.mrb[138].mxu0 }
 0x766   : > { %v13198_v46 = vpop.f32.mrb[139].mxu0 }
 0x768   : > { %v21489_v33 = vpop.f32.mrb[248].mxu1 }
 0x769   : > { %v13020_v9 = vadd.f32 %v21489_v33, %v12830_v43  ;;  %v12979_v3 = vpop.f32.mrb[249].mxu1  ;;  %v22483_v33 = vld [vmem:[%s27813_s9 + $0x20] sm:$0xff]  }
 0x76a   : > { %v13018_v20 = vadd.f32 %v12979_v3, %v12828_v49  ;;  %v21490_v27 = vpop.f32.mrb[250].mxu1  ;;  %21783 = vmatprep.subr.bf16.mxu0 %v22483_v33 }
 0x76b   : > { %v12982_v28 = vpop.f32.mrb[251].mxu1  ;;  %v13236_v22 = vadd.f32 %v21513_v12, %v13020_v9  ;;  %v21517_v1 = vpop.f32.mrb[140].mxu0  ;;  %21784 = vmatpush3.bf16.msra.mxu0 %v22483_v33 }
 0x76c   : > { %v13234_v32 = vadd.f32 %v13195_v41, %v13018_v20  ;;  %v13211_v44 = vpop.f32.mrb[141].mxu0 }
 0x76d   : > { %v21518_v37 = vpop.f32.mrb[142].mxu0 }
 0x76e   : > { %v13214_v54 = vpop.f32.mrb[143].mxu0 }
 0x770   : > { %v21493_v60 = vpop.f32.mrb[252].mxu1 }
 0x771   : > { %v13024_v31 = vadd.f32 %v21493_v60, %v12834_v35  ;;  %v12995_v53 = vpop.f32.mrb[253].mxu1 }
 0x772   : > { %v13022_v30 = vadd.f32 %v12995_v53, %v12832_v48  ;;  %v21494_v40 = vpop.f32.mrb[254].mxu1 }
 0x773   : > { %v12998_v24 = vpop.f32.mrb[255].mxu1  ;;  %v13240_v34 = vadd.f32 %v21517_v1, %v13024_v31  ;;  %v21553_v52 = vpop.f32.mrb[144].mxu0 }
 0x774   : > { %v13238_v4 = vadd.f32 %v13211_v44, %v13022_v30  ;;  %v13558_v43 = vpop.f32.mrb[145].mxu0 }
 0x775   : > { %v21554_v38 = vpop.f32.mrb[146].mxu0 }
 0x776   : > { %v13561_v49 = vpop.f32.mrb[147].mxu0 }
 0x778   : > { %v21529_v5 = vpop.f32.mrb[0].mxu1 }
 0x779   : > { %v13418_v26 = vadd.f32 %v21529_v5, %v13228_v57  ;;  %v13353_v16 = vpop.f32.mrb[1].mxu1 }
 0x77a   : > { %v13416_v39 = vadd.f32 %v13353_v16, %v13226_v18  ;;  %v21530_v45 = vpop.f32.mrb[2].mxu1 }
 0x77b   : > { %v13356_v23 = vpop.f32.mrb[3].mxu1  ;;  %v13623_v11 = vadd.f32 %v21553_v52, %v13418_v26  ;;  %v21557_v51 = vpop.f32.mrb[148].mxu0  ;;  %v22484_v26 = vld [vmem:[%s27813_s9 + $0x28] sm:$0xff]  }
 0x77c   : > { %v13621_v59 = vadd.f32 %v13558_v43, %v13416_v39  ;;  %v13574_v35 = vpop.f32.mrb[149].mxu0  ;;  %21785 = vmatprep.subr.bf16.mxu0 %v22484_v26 }
 0x77d   : > { %v21558_v58 = vpop.f32.mrb[150].mxu0  ;;  %21786 = vmatpush3.bf16.msra.mxu0 %v22484_v26 }
 0x77e   : > { %v13577_v48 = vpop.f32.mrb[151].mxu0 }
 0x780   : > { %v21533_v42 = vpop.f32.mrb[4].mxu1 }
 0x781   : > { %v13422_v8 = vadd.f32 %v21533_v42, %v13232_v2  ;;  %v13369_v15 = vpop.f32.mrb[5].mxu1 }
 0x782   : > { %v13420_v25 = vadd.f32 %v13369_v15, %v13230_v62  ;;  %v21534_v56 = vpop.f32.mrb[6].mxu1  ;;  %v22485_v15 = vld [vmem:[%s27813_s9 + $0x30] sm:$0xff]  }
 0x783   : > { %v13372_v19 = vpop.f32.mrb[7].mxu1  ;;  %v13627_v55 = vadd.f32 %v21557_v51, %v13422_v8  ;;  %v21561_v6 = vpop.f32.mrb[152].mxu0  ;;  %21787 = vmatprep.subr.bf16.mxu0 %v22485_v15 }
 0x784   : > { %v13625_v0 = vadd.f32 %v13574_v35, %v13420_v25  ;;  %v13590_v57 = vpop.f32.mrb[153].mxu0  ;;  %21788 = vmatpush3.bf16.msra.mxu0 %v22485_v15 }
 0x785   : > { %v21562_v47 = vpop.f32.mrb[154].mxu0 }
 0x786   : > { %v13593_v18 = vpop.f32.mrb[155].mxu0 }
 0x788   : > { %v21537_v13 = vpop.f32.mrb[8].mxu1 }
 0x789   : > { %v13426_v50 = vadd.f32 %v21537_v13, %v13236_v22  ;;  %v13385_v10 = vpop.f32.mrb[9].mxu1 }
 0x78a   : > { %v13424_v14 = vadd.f32 %v13385_v10, %v13234_v32  ;;  %v21538_v29 = vpop.f32.mrb[10].mxu1 }
 0x78b   : > { %v13388_v36 = vpop.f32.mrb[11].mxu1  ;;  %v13631_v63 = vadd.f32 %v21561_v6, %v13426_v50  ;;  %v21565_v21 = vpop.f32.mrb[156].mxu0 }
 0x78c   : > { %v13629_v17 = vadd.f32 %v13590_v57, %v13424_v14  ;;  %v13606_v2 = vpop.f32.mrb[157].mxu0  ;;  %v22486_v14 = vld [vmem:[%s27813_s9 + $0x38] sm:$0xff]  }
 0x78d   : > { %v21566_v12 = vpop.f32.mrb[158].mxu0  ;;  %21789 = vmatprep.subr.bf16.mxu0 %v22486_v14 }
 0x78e   : > { %v13609_v62 = vpop.f32.mrb[159].mxu0  ;;  %21790 = vmatpush3.bf16.msra.mxu0 %v22486_v14 }
 0x790   : > { %v21541_v41 = vpop.f32.mrb[12].mxu1 }
 0x791   : > { %v13430_v61 = vadd.f32 %v21541_v41, %v13240_v34  ;;  %v13401_v46 = vpop.f32.mrb[13].mxu1 }
 0x792   : > { %v13428_v9 = vadd.f32 %v13401_v46, %v13238_v4  ;;  %v21542_v3 = vpop.f32.mrb[14].mxu1 }
 0x793   : > { %v13404_v20 = vpop.f32.mrb[15].mxu1  ;;  %v13635_v27 = vadd.f32 %v21565_v21, %v13430_v61  ;;  %v21601_v28 = vpop.f32.mrb[160].mxu0 }
 0x794   : > { %v13633_v22 = vadd.f32 %v13606_v2, %v13428_v9  ;;  %v13999_v1 = vpop.f32.mrb[161].mxu0 }
 0x795   : > { %v21602_v32 = vpop.f32.mrb[162].mxu0 }
 0x796   : > { %v14002_v44 = vpop.f32.mrb[163].mxu0 }
 0x798   : > { %v21577_v37 = vpop.f32.mrb[16].mxu1 }
 0x799   : > { %v13874_v54 = vadd.f32 %v21577_v37, %v13623_v11  ;;  %v13809_v60 = vpop.f32.mrb[17].mxu1 }
 0x79a   : > { %v13872_v31 = vadd.f32 %v13809_v60, %v13621_v59  ;;  %v21578_v53 = vpop.f32.mrb[18].mxu1 }
 0x79b   : > { %v13812_v30 = vpop.f32.mrb[19].mxu1  ;;  %v14064_v40 = vadd.f32 %v21601_v28, %v13874_v54  ;;  %v21605_v24 = vpop.f32.mrb[164].mxu0  ;;  %v27243_v28 = vld [vmem:[%s27813_s9] sm:$0xff]  }
 0x79c   : > { %v14062_v34 = vadd.f32 %v13999_v1, %v13872_v31  ;;  %v14015_v52 = vpop.f32.mrb[165].mxu0  ;;  %21807 = vmatprep.subr.bf16.mxu0 %v27243_v28 }
 0x79d   : > { %v21606_v4 = vpop.f32.mrb[166].mxu0 }
 0x79e   : > { %v14018_v43 = vpop.f32.mrb[167].mxu0 }
 0x7a0   : > { %v21581_v38 = vpop.f32.mrb[20].mxu1 }
 0x7a1   : > { %v13878_v49 = vadd.f32 %v21581_v38, %v13627_v55  ;;  %v13825_v5 = vpop.f32.mrb[21].mxu1 }
 0x7a2   : > { %v13876_v16 = vadd.f32 %v13825_v5, %v13625_v0  ;;  %v21582_v39 = vpop.f32.mrb[22].mxu1 }
 0x7a3   : > { %v13828_v45 = vpop.f32.mrb[23].mxu1  ;;  %v14068_v23 = vadd.f32 %v21605_v24, %v13878_v49  ;;  %v21609_v11 = vpop.f32.mrb[168].mxu0 }
 0x7a4   : > { %v14066_v51 = vadd.f32 %v14015_v52, %v13876_v16  ;;  %v14031_v59 = vpop.f32.mrb[169].mxu0 }
 0x7a5   : > { %v21610_v35 = vpop.f32.mrb[170].mxu0 }
 0x7a6   : > { %v14034_v58 = vpop.f32.mrb[171].mxu0 }
 0x7a8   : > { %v21585_v48 = vpop.f32.mrb[24].mxu1 }
 0x7a9   : > { %v13882_v42 = vadd.f32 %v21585_v48, %v13631_v63  ;;  %v13841_v8 = vpop.f32.mrb[25].mxu1 }
 0x7aa   : > { %v13880_v25 = vadd.f32 %v13841_v8, %v13629_v17  ;;  %v21586_v56 = vpop.f32.mrb[26].mxu1 }
 0x7ab   : > { %v13844_v19 = vpop.f32.mrb[27].mxu1  ;;  %v14072_v55 = vadd.f32 %v21609_v11, %v13882_v42  ;;  %v21613_v6 = vpop.f32.mrb[172].mxu0 }
 0x7ac   : > { %v14070_v0 = vadd.f32 %v14031_v59, %v13880_v25  ;;  %v14047_v57 = vpop.f32.mrb[173].mxu0 }
 0x7ad   : > { %v21614_v47 = vpop.f32.mrb[174].mxu0 }
 0x7ae   : > { %v14050_v18 = vpop.f32.mrb[175].mxu0 }
 0x7b0   : > { %v21589_v13 = vpop.f32.mrb[28].mxu1 }
 0x7b1   : > { %v13886_v50 = vadd.f32 %v21589_v13, %v13635_v27  ;;  %v13857_v10 = vpop.f32.mrb[29].mxu1 }
 0x7b2   : > { %v13884_v29 = vadd.f32 %v13857_v10, %v13633_v22  ;;  %v21590_v36 = vpop.f32.mrb[30].mxu1 }
 0x7b3   : > { %v13860_v63 = vpop.f32.mrb[31].mxu1  ;;  %v14076_v21 = vadd.f32 %v21613_v6, %v13886_v50  ;;  %v21649_v17 = vpop.f32.mrb[176].mxu0 }
 0x7b4   : > { %v14074_v2 = vadd.f32 %v14047_v57, %v13884_v29  ;;  %v14405_v12 = vpop.f32.mrb[177].mxu0 }
 0x7b5   : > { %v21650_v62 = vpop.f32.mrb[178].mxu0 }
 0x7b6   : > { %v14408_v41 = vpop.f32.mrb[179].mxu0 }
 0x7b8   : > { %v21625_v61 = vpop.f32.mrb[32].mxu1 }
 0x7b9   : > { %v14280_v46 = vadd.f32 %v21625_v61, %v14064_v40  ;;  %v14215_v33 = vpop.f32.mrb[33].mxu1 }
 0x7ba   : > { %v14278_v9 = vadd.f32 %v14215_v33, %v14062_v34  ;;  %v21626_v3 = vpop.f32.mrb[34].mxu1 }
 0x7bb   : > { %v14218_v20 = vpop.f32.mrb[35].mxu1  ;;  %v14470_v27 = vadd.f32 %v21649_v17, %v14280_v46  ;;  %v21653_v22 = vpop.f32.mrb[180].mxu0 }
 0x7bc   : > { %v14468_v1 = vadd.f32 %v14405_v12, %v14278_v9  ;;  %v14421_v32 = vpop.f32.mrb[181].mxu0 }
 0x7bd   : > { %v21654_v44 = vpop.f32.mrb[182].mxu0 }
 0x7be   : > { %v14424_v37 = vpop.f32.mrb[183].mxu0 }
 0x7c0   : > { %v21629_v54 = vpop.f32.mrb[36].mxu1 }
 0x7c1   : > { %v14284_v60 = vadd.f32 %v21629_v54, %v14068_v23  ;;  %v14231_v31 = vpop.f32.mrb[37].mxu1 }
 0x7c2   : > { %v14282_v53 = vadd.f32 %v14231_v31, %v14066_v51  ;;  %v21630_v30 = vpop.f32.mrb[38].mxu1 }
 0x7c3   : > { %v14234_v40 = vpop.f32.mrb[39].mxu1  ;;  %v14474_v24 = vadd.f32 %v21653_v22, %v14284_v60  ;;  %v21657_v34 = vpop.f32.mrb[184].mxu0 }
 0x7c4   : > { %v14472_v52 = vadd.f32 %v14421_v32, %v14282_v53  ;;  %v14437_v4 = vpop.f32.mrb[185].mxu0 }
 0x7c5   : > { %v21658_v43 = vpop.f32.mrb[186].mxu0 }
 0x7c6   : > { %v14440_v38 = vpop.f32.mrb[187].mxu0 }
 0x7c8   : > { %v21633_v49 = vpop.f32.mrb[40].mxu1 }
 0x7c9   : > { %v14288_v5 = vadd.f32 %v21633_v49, %v14072_v55  ;;  %v14247_v26 = vpop.f32.mrb[41].mxu1 }
 0x7ca   : > { %v14286_v16 = vadd.f32 %v14247_v26, %v14070_v0  ;;  %v21634_v39 = vpop.f32.mrb[42].mxu1 }
 0x7cb   : > { %v14250_v45 = vpop.f32.mrb[43].mxu1  ;;  %v14478_v11 = vadd.f32 %v21657_v34, %v14288_v5  ;;  %v21661_v59 = vpop.f32.mrb[188].mxu0 }
 0x7cc   : > { %v14476_v35 = vadd.f32 %v14437_v4, %v14286_v16  ;;  %v14453_v23 = vpop.f32.mrb[189].mxu0 }
 0x7cd   : > { %v21662_v58 = vpop.f32.mrb[190].mxu0 }
 0x7ce   : > { %v14456_v51 = vpop.f32.mrb[191].mxu0 }
 0x7d0   : > { %v21637_v48 = vpop.f32.mrb[44].mxu1 }
 0x7d1   : > { %v14292_v42 = vadd.f32 %v21637_v48, %v14076_v21  ;;  %v14263_v8 = vpop.f32.mrb[45].mxu1 }
 0x7d2   : > { %v14290_v15 = vadd.f32 %v14263_v8, %v14074_v2  ;;  %v21638_v25 = vpop.f32.mrb[46].mxu1 }
 0x7d3   : > { %v14266_v56 = vpop.f32.mrb[47].mxu1  ;;  %v14482_v19 = vadd.f32 %v21661_v59, %v14292_v42  ;;  %v21697_v6 = vpop.f32.mrb[192].mxu0 }
 0x7d4   : > { %v14480_v57 = vadd.f32 %v14453_v23, %v14290_v15  ;;  %v14861_v55 = vpop.f32.mrb[193].mxu0 }
 0x7d5   : > { %v21698_v47 = vpop.f32.mrb[194].mxu0 }
 0x7d6   : > { %v14864_v0 = vpop.f32.mrb[195].mxu0 }
 0x7d8   : > { %v21673_v18 = vpop.f32.mrb[48].mxu1 }
 0x7d9   : > { %v14675_v13 = vadd.f32 %v21673_v18, %v14470_v27  ;;  %v14610_v50 = vpop.f32.mrb[49].mxu1 }
 0x7da   : > { %v14673_v10 = vadd.f32 %v14610_v50, %v14468_v1  ;;  %v21674_v14 = vpop.f32.mrb[50].mxu1 }
 0x7db   : > { %v14613_v29 = vpop.f32.mrb[51].mxu1  ;;  %v14926_v36 = vadd.f32 %v21697_v6, %v14675_v13  ;;  %v21701_v63 = vpop.f32.mrb[196].mxu0 }
 0x7dc   : > { %v14924_v17 = vadd.f32 %v14861_v55, %v14673_v10  ;;  %v14877_v21 = vpop.f32.mrb[197].mxu0 }
 0x7dd   : > { %v21702_v12 = vpop.f32.mrb[198].mxu0 }
 0x7de   : > { %v14880_v2 = vpop.f32.mrb[199].mxu0 }
 0x7e0   : > { %v21677_v62 = vpop.f32.mrb[52].mxu1 }
 0x7e1   : > { %v14679_v41 = vadd.f32 %v21677_v62, %v14474_v24  ;;  %v14626_v61 = vpop.f32.mrb[53].mxu1 }
 0x7e2   : > { %v14677_v46 = vadd.f32 %v14626_v61, %v14472_v52  ;;  %v21678_v33 = vpop.f32.mrb[54].mxu1 }
 0x7e3   : > { %v14629_v9 = vpop.f32.mrb[55].mxu1  ;;  %v14930_v3 = vadd.f32 %v21701_v63, %v14679_v41  ;;  %v21705_v20 = vpop.f32.mrb[200].mxu0 }
 0x7e4   : > { %v14928_v22 = vadd.f32 %v14877_v21, %v14677_v46  ;;  %v14893_v27 = vpop.f32.mrb[201].mxu0 }
 0x7e5   : > { %v21706_v32 = vpop.f32.mrb[202].mxu0 }
 0x7e6   : > { %v14896_v1 = vpop.f32.mrb[203].mxu0 }
 0x7e8   : > { %v21681_v44 = vpop.f32.mrb[56].mxu1 }
 0x7e9   : > { %v14683_v37 = vadd.f32 %v21681_v44, %v14478_v11  ;;  %v14642_v54 = vpop.f32.mrb[57].mxu1 }
 0x7ea   : > { %v14681_v60 = vadd.f32 %v14642_v54, %v14476_v35  ;;  %v21682_v31 = vpop.f32.mrb[58].mxu1 }
 0x7eb   : > { %v14645_v53 = vpop.f32.mrb[59].mxu1  ;;  %v14934_v30 = vadd.f32 %v21705_v20, %v14683_v37  ;;  %v21709_v40 = vpop.f32.mrb[204].mxu0 }
 0x7ec   : > { %v14932_v34 = vadd.f32 %v14893_v27, %v14681_v60  ;;  %v14909_v24 = vpop.f32.mrb[205].mxu0 }
 0x7ed   : > { %v21710_v4 = vpop.f32.mrb[206].mxu0 }
 0x7ee   : > { %v14912_v52 = vpop.f32.mrb[207].mxu0 }
 0x7f0   : > { %v21685_v43 = vpop.f32.mrb[60].mxu1 }
 0x7f1   : > { %v14687_v38 = vadd.f32 %v21685_v43, %v14482_v19  ;;  %v14658_v49 = vpop.f32.mrb[61].mxu1 }
 0x7f2   : > { %v14685_v5 = vadd.f32 %v14658_v49, %v14480_v57  ;;  %v21686_v26 = vpop.f32.mrb[62].mxu1 }
 0x7f3   : > { %v14938_v16 = vadd.f32 %v21709_v40, %v14687_v38  ;;  %v14661_v39 = vpop.f32.mrb[63].mxu1  ;;  %v21745_v59 = vpop.f32.mrb[208].mxu0  ;;  %v27253_v40 = vld [vmem:[%s27812_s8] ss:$0 sm:$0xff] }
 0x7f4   : > { %v14936_v45 = vadd.f32 %v14909_v24, %v14685_v5  ;;  %v15267_v11 = vpop.f32.mrb[209].mxu0 }
 0x7f5   : > { %v21746_v23 = vpop.f32.mrb[210].mxu0 }
 0x7f6   : > { %v15270_v35 = vpop.f32.mrb[211].mxu0 }
 0x7f8   : > { %v21721_v58 = vpop.f32.mrb[64].mxu1 }
 0x7f9   : > { %v15116_v51 = vadd.f32 %v21721_v58, %v14926_v36  ;;  %v15051_v48 = vpop.f32.mrb[65].mxu1 }
 0x7fa   : > { %v15114_v42 = vadd.f32 %v15051_v48, %v14924_v17  ;;  %v21722_v8 = vpop.f32.mrb[66].mxu1 }
 0x7fb   : > { %v15054_v15 = vpop.f32.mrb[67].mxu1  ;;  %v15332_v25 = vadd.f32 %v21745_v59, %v15116_v51  ;;  %v21749_v56 = vpop.f32.mrb[212].mxu0 }
 0x7fc   : > { %v15330_v6 = vadd.f32 %v15267_v11, %v15114_v42  ;;  %v15283_v19 = vpop.f32.mrb[213].mxu0 }
 0x7fd   : > { %v21750_v55 = vpop.f32.mrb[214].mxu0 }
 0x7fe   : > { %v15286_v57 = vpop.f32.mrb[215].mxu0 }
 0x800   : > { %v21725_v47 = vpop.f32.mrb[68].mxu1 }
 0x801   : > { %v15120_v0 = vadd.f32 %v21725_v47, %v14930_v3  ;;  %v15067_v18 = vpop.f32.mrb[69].mxu1 }
 0x802   : > { %v15118_v13 = vadd.f32 %v15067_v18, %v14928_v22  ;;  %v21726_v50 = vpop.f32.mrb[70].mxu1 }
 0x803   : > { %v15070_v10 = vpop.f32.mrb[71].mxu1  ;;  %v15336_v14 = vadd.f32 %v21749_v56, %v15120_v0  ;;  %v21753_v29 = vpop.f32.mrb[216].mxu0 }
 0x804   : > { %v15334_v63 = vadd.f32 %v15283_v19, %v15118_v13  ;;  %v15299_v36 = vpop.f32.mrb[217].mxu0  ;;  %v27265_v19 = vld [vmem:[#allocation2 + $0x8] sm:$0xf0] }
 0x805   : > { %v21754_v21 = vpop.f32.mrb[218].mxu0 }
 0x806   : > { %v15302_v17 = vpop.f32.mrb[219].mxu0 }
 0x808   : > { %v21729_v12 = vpop.f32.mrb[72].mxu1 }
 0x809   : > { %v15124_v2 = vadd.f32 %v21729_v12, %v14934_v30  ;;  %v15083_v62 = vpop.f32.mrb[73].mxu1 }
 0x80a   : > { %v15122_v41 = vadd.f32 %v15083_v62, %v14932_v34  ;;  %v21730_v61 = vpop.f32.mrb[74].mxu1 }
 0x80b   : > { %v15086_v46 = vpop.f32.mrb[75].mxu1  ;;  %v15340_v33 = vadd.f32 %v21753_v29, %v15124_v2  ;;  %v21757_v9 = vpop.f32.mrb[220].mxu0 }
 0x80c   : > { %v15338_v20 = vadd.f32 %v15299_v36, %v15122_v41  ;;  %v15315_v3 = vpop.f32.mrb[221].mxu0 }
 0x80d   : > { %v21758_v27 = vpop.f32.mrb[222].mxu0 }
 0x80e   : > { %v15318_v22 = vpop.f32.mrb[223].mxu0 }
 0x810   : > { %v21733_v32 = vpop.f32.mrb[76].mxu1 }
 0x811   : > { %v15128_v1 = vadd.f32 %v21733_v32, %v14938_v16  ;;  %v15099_v44 = vpop.f32.mrb[77].mxu1 }
 0x812   : > { %v15126_v37 = vadd.f32 %v15099_v44, %v14936_v45  ;;  %v21734_v54 = vpop.f32.mrb[78].mxu1 }
 0x813   : > { %v27246_v60 = vadd.f32 %v21757_v9, %v15128_v1  ;;  %v15102_v31 = vpop.f32.mrb[79].mxu1  ;;  %v22488_v9 = vld [vmem:[%s27813_s9 + $0x8] sm:$0xff]  }
 0x814   : > { %v27248_v53 = vadd.f32 %v15315_v3, %v15126_v37 }
 0x818   : > { %v21769_v30 = vpop.f32.mrb[80].mxu1 }
 0x819   : > { %v15522_v34 = vadd.f32 %v21769_v30, %v15332_v25  ;;  %v15457_v24 = vpop.f32.mrb[81].mxu1  ;;  %v22489_v30 = vld [vmem:[%s27813_s9 + $0x10] sm:$0xff]  }
 0x81a   : > { %v15520_v4 = vadd.f32 %v15457_v24, %v15330_v6  ;;  %v21770_v52 = vpop.f32.mrb[82].mxu1 }
 0x81b   : > { %v15545_v43 = vadd.f32 %v27253_v40, %v15522_v34  ;;  %v15460_v38 = vpop.f32.mrb[83].mxu1 }
 0x81c   : > { %v15543_v49 = vadd.f32 %v27253_v40, %v15520_v4 }
 0x81d   : > { %v15561_v5 = vmax.f32 %v15545_v43, 0.0 }
 0x81e   : > { %v15559_v26 = vmax.f32 %v15543_v49, 0.0 }
 0x81f   : > { %v15592_v16 = vpack.c.bf16 %v22553_v7, %v15561_v5 }
 0x820   : > { %v15591_v39 = vpack.c.bf16 %v22553_v7, %v15559_v26  ;;  %v21773_v45 = vpop.f32.mrb[84].mxu1 }
 0x821   : > { %v15608_v59 = vrot.slane %v15592_v16, 4  ;;  %v15526_v11 = vadd.f32 %v21773_v45, %v15336_v14  ;;  %v15473_v23 = vpop.f32.mrb[85].mxu1  ;;  %v15676_v14 = vrot.slane %v27265_v19, 4 }
 0x822   : > { %v15607_v35 = vrot.slane %v15591_v39, 4  ;;  %v15524_v58 = vadd.f32 %v15473_v23, %v15334_v63  ;;  %v21774_v51 = vpop.f32.mrb[86].mxu1  ;;  %v22490_v39 = vld [vmem:[%s27813_s9 + $0x18] sm:$0xff]  }
 0x823   : > { %v15549_v48 = vadd.f32 %v27253_v40, %v15526_v11  ;;  %v15476_v42 = vpop.f32.mrb[87].mxu1  ;;  %v15640_v11 = vld [vmem:[#allocation2 + $0x8] sm:$0xf8] }
 0x824   : > { %v15609_v8 = vsel %vm2854_vm8, %v15607_v35, %v15608_v59  ;;  %15631 = vst.msk [vmem:[#allocation2 + $0x10] sm:$0xf0] %vm445_vm5, %v15607_v35  ;;  %v15547_v15 = vadd.f32 %v27253_v40, %v15524_v58  ;;  %v27335_v35 = vld [vmem:[%s27813_s9 + $0x40] sm:$0xff]  }
 0x825   : > { %15632 = vst.msk [vmem:[#allocation2 + $0x18] sm:$0xff] %vm440_vm4, %v15609_v8  ;;  %v15565_v25 = vmax.f32 %v15549_v48, 0.0  ;;  %v15839_v8 = vshrl.u32 %v15640_v11, 16 }
 0x826   : > { %v15563_v56 = vmax.f32 %v15547_v15, 0.0  ;;  %v15842_v15 = vshll.u32 %v15640_v11, 16 }
 0x827   : > { %v15594_v6 = vpack.c.bf16 %v22553_v7, %v15565_v25 }
 0x828   : > { %v15593_v55 = vpack.c.bf16 %v22553_v7, %v15563_v56  ;;  %v21777_v57 = vpop.f32.mrb[88].mxu1 }
 0x829   : > { %v15612_v47 = vrot.slane %v15594_v6, 4  ;;  %v15530_v0 = vadd.f32 %v21777_v57, %v15340_v33  ;;  %v15489_v18 = vpop.f32.mrb[89].mxu1 }
 0x82a   : > { %v15610_v13 = vrot.slane %v15593_v55, 4  ;;  %v15528_v50 = vadd.f32 %v15489_v18, %v15338_v20  ;;  %v21778_v10 = vpop.f32.mrb[90].mxu1  ;;  %v15844_v18 = vrot.slane %v15842_v15, 4  ;;  %v22493_v15 = vld [vmem:[%s27813_s9 + $0x50] sm:$0xff]  }
 0x82b   : > { %v15553_v29 = vadd.f32 %v27253_v40, %v15530_v0  ;;  %v15492_v63 = vpop.f32.mrb[91].mxu1  ;;  %v27270_v36 = vld [vmem:[#allocation2 + $0x10] sm:$0xff]  ;;  %v15841_v0 = vrot.slane %v15839_v8, 3 }
 0x82c   : > { %v15611_v21 = vsel %vm2854_vm8, %v15608_v59, %v15610_v13  ;;  %v15613_v17 = vsel %vm2854_vm8, %v15610_v13, %v15612_v47  ;;  %v15551_v12 = vadd.f32 %v27253_v40, %v15528_v50  ;;  %v27275_v2 = vld [vmem:[#allocation2 + $0x18] sm:$0xff]  ;;  %v15677_v62 = vrot.slane %v27270_v36, 4 }
 0x82d   : > { %15634 = vst.msk [vmem:[#allocation2 + $0x28] sm:$0xff] %vm440_vm4, %v15613_v17  ;;  %15633 = vst.msk [vmem:[#allocation2 + $0x20] sm:$0xff] %vm440_vm4, %v15611_v21  ;;  %v15569_v41 = vmax.f32 %v15553_v29, 0.0  ;;  %v27281_v61 = vrot.slane %v27275_v2, 4  ;;  %v15847_v6 = vshrl.u32 %v27270_v36, 16  ;;  %v15850_v55 = vshll.u32 %v27270_v36, 16 }
 0x82e   : > { %v15567_v46 = vmax.f32 %v15551_v12, 0.0  ;;  %v15678_v33 = vsel %vm2854_vm8, %v15676_v14, %v15677_v62  ;;  %v15856_v10 = vshrl.u32 %v27275_v2, 16  ;;  %v15859_v14 = vshll.u32 %v27275_v2, 16  ;;  %v22496_v2 = vld [vmem:[%s27813_s9 + $0x68] sm:$0xff]  }
 0x82f   : > { %v15596_v20 = vpack.c.bf16 %v22553_v7, %v15569_v41  ;;  %v15680_v3 = vsel %vm2854_vm8, %v15677_v62, %v27281_v61  ;;  %21791 = vmatprep.mubr.msk.bf16.mxu0 %vm440_vm4, %v15678_v33  ;;  %v15849_v13 = vrot.slane %v15847_v6, 3  ;;  %v15852_v50 = vrot.slane %v15850_v55, 4 }
 0x830   : > { %v15595_v27 = vpack.c.bf16 %v22553_v7, %v15567_v46  ;;  %v21781_v22 = vpop.f32.mrb[92].mxu1  ;;  %21792 = vmatmul.mubr.msk.bf16.vlgmr.msra.gmra.mrb[224].mxu0 %vm440_vm4, %v15680_v3  ;;  %v15845_v41 = vor.u32 %v15844_v18, %v15841_v0  ;;  %v15861_v3 = vrot.slane %v15859_v14, 4 }
 0x831   : > { %v15616_v32 = vrot.slane %v15596_v20, 4  ;;  %v15534_v1 = vadd.f32 %v21781_v22, %v27246_v60  ;;  %v15505_v44 = vpop.f32.mrb[93].mxu1  ;;  %21808 = vmatpush3.bf16.msra.mxu0 %v27243_v28  ;;  %v15853_v46 = vor.u32 %v15852_v50, %v15849_v13  ;;  %v15858_v20 = vrot.slane %v15856_v10, 3 }
 0x832   : > { %v15614_v37 = vrot.slane %v15595_v27, 4  ;;  %v15532_v54 = vadd.f32 %v15505_v44, %v27248_v53  ;;  %v21782_v31 = vpop.f32.mrb[94].mxu1  ;;  %21809 = vmatprep.subr.bf16.mxu0 %v22488_v9 }
 0x833   : > { %v15557_v34 = vadd.f32 %v27253_v40, %v15534_v1  ;;  %v15508_v24 = vpop.f32.mrb[95].mxu1 }
 0x834   : > { %v15615_v4 = vsel %vm2854_vm8, %v15612_v47, %v15614_v37  ;;  %v15617_v52 = vsel %vm2854_vm8, %v15614_v37, %v15616_v32  ;;  %v15555_v60 = vadd.f32 %v27253_v40, %v15532_v54  ;;  %v27303_v43 = vld [vmem:[#allocation2 + $0x20] sm:$0xff]  ;;  %v27305_v28 = vld [vmem:[#allocation2 + $0x28] sm:$0xff]  ;;  %v27399_v54 = vor.u32 %v15861_v3, %v15858_v20 }
 0x835   : > { %15635 = vst.msk [vmem:[#allocation2 + $0x30] sm:$0xff] %vm440_vm4, %v15615_v4  ;;  %15636 = vst.msk [vmem:[#allocation2 + $0x38] sm:$0xff] %vm440_vm4, %v15617_v52  ;;  %v15573_v53 = vmax.f32 %v15557_v34, 0.0  ;;  %v27310_v38 = vrot.slane %v27303_v43, 4  ;;  %v15683_v49 = vrot.slane %v27305_v28, 4  ;;  %21810 = vmatpush3.bf16.msra.mxu0 %v22488_v9  ;;  %v15865_v21 = vshrl.u32 %v27303_v43, 16 }
 0x836   : > { %v15571_v5 = vmax.f32 %v15555_v60, 0.0  ;;  %21811 = vmatprep.subr.bf16.mxu0 %v22489_v30  ;;  %v15868_v17 = vshll.u32 %v27303_v43, 16  ;;  %v15874_v31 = vshrl.u32 %v27305_v28, 16  ;;  %v15877_v34 = vshll.u32 %v27305_v28, 16  ;;  %v22497_v28 = vld [vmem:[%s27813_s9 + $0x70] sm:$0xff]  }
 0x837   : > { %v15598_v26 = vpack.c.bf16 %v22553_v7, %v15573_v53  ;;  %v27317_v40 = vsel %vm2854_vm8, %v27281_v61, %v27310_v38  ;;  %v27321_v16 = vsel %vm2854_vm8, %v27310_v38, %v15683_v49  ;;  %v15867_v27 = vrot.slane %v15865_v21, 3 }
 0x838   : > { %v15597_v45 = vpack.c.bf16 %v22553_v7, %v15571_v5  ;;  %21795 = vmatprep.mubr.msk.bf16.mxu0 %vm440_vm4, %v27317_v40  ;;  %v15870_v22 = vrot.slane %v15868_v17, 4  ;;  %v15863_v5 = vsel %vm871_vm2, %v15853_v46, %v27399_v54  ;;  %v16094_v43 = vrot.slane %v15877_v34, 5 }
 0x839   : > { %v15620_v59 = vrot.slane %v15598_v26, 4  ;;  %21796 = vmatmul.mubr.msk.bf16.gmra.mrb[228].mxu0 %vm440_vm4, %v27321_v16  ;;  %v22492_v26 = vld [vmem:[%s27813_s9 + $0x48] sm:$0xff]  }
 0x83a   : > { %v15618_v23 = vrot.slane %v15597_v45, 4  ;;  %21812 = vmatpush3.bf16.msra.mxu0 %v22489_v30  ;;  %v27402_v30 = vor.u32 %v15870_v22, %v15867_v27  ;;  %v15876_v45 = vrot.slane %v15874_v31, 3 }
 0x83b   : > { %15639 = vst.msk [vmem:[#allocation2 + $0x50] sm:$0xf] %vm443_vm6, %v15620_v59  ;;  %21813 = vmatprep.subr.bf16.mxu0 %v22490_v39 }
 0x83c   : > { %v15619_v58 = vsel %vm2854_vm8, %v15616_v32, %v15618_v23  ;;  %v15621_v51 = vsel %vm2854_vm8, %v15618_v23, %v15620_v59  ;;  %v27339_v48 = vld [vmem:[#allocation2 + $0x30] sm:$0xff]  ;;  %v27341_v42 = vld [vmem:[#allocation2 + $0x38] sm:$0xff]  ;;  %v15854_v32 = vsel %vm871_vm2, %v15845_v41, %v15853_v46  ;;  %v15879_v59 = vrot.slane %v15877_v34, 4 }
 0x83d   : > { %15637 = vst.msk [vmem:[#allocation2 + $0x40] sm:$0xff] %vm440_vm4, %v15619_v58  ;;  %15638 = vst.msk [vmem:[#allocation2 + $0x48] sm:$0xff] %vm440_vm4, %v15621_v51  ;;  %v15685_v25 = vrot.slane %v27339_v48, 4  ;;  %v15687_v56 = vrot.slane %v27341_v42, 4  ;;  %v15883_v24 = vshrl.u32 %v27339_v48, 16  ;;  %v15886_v4 = vshll.u32 %v27339_v48, 16 }
 0x83e   : > { %21814 = vmatpush3.bf16.msra.mxu0 %v22490_v39  ;;  %v27417_v39 = vsel %vm871_vm2, %v27399_v54, %v27402_v30  ;;  %v15880_v0 = vor.u32 %v15879_v59, %v15876_v45  ;;  %v15892_v18 = vshrl.u32 %v27341_v42, 16  ;;  %v15895_v13 = vshll.u32 %v27341_v42, 16 }
 0x83f   : > { %v27350_v57 = vsel %vm2854_vm8, %v15683_v49, %v15685_v25  ;;  %v27353_v47 = vsel %vm2854_vm8, %v15685_v25, %v15687_v56  ;;  %21831 = vmatprep.subr.bf16.mxu0 %v27335_v35  ;;  %v15885_v11 = vrot.slane %v15883_v24, 3  ;;  %v15888_v23 = vrot.slane %v15886_v4, 4 }
 0x840   : > { %21799 = vmatprep.mubr.msk.bf16.mxu0 %vm440_vm4, %v27350_v57  ;;  %v27458_v46 = vsel %vm871_vm2, %v27402_v30, %v15880_v0  ;;  %v15897_v20 = vrot.slane %v15895_v13, 4  ;;  %v16077_v59 = vshll.u32 %v27265_v19, 16 }
 0x841   : > { %21800 = vmatmul.mubr.msk.bf16.gmra.mrb[232].mxu0 %vm440_vm4, %v27353_v47  ;;  %v15889_v50 = vor.u32 %v15888_v23, %v15885_v11 }
 0x843   : > { %v27467_v3 = vsel %vm871_vm2, %v15880_v0, %v15889_v50  ;;  %v16079_v0 = vrot.slane %v16077_v59, 5 }
 0x844   : > { %v27366_v29 = vld [vmem:[#allocation2 + $0x40] sm:$0xff]  ;;  %v27368_v63 = vld [vmem:[#allocation2 + $0x48] sm:$0xf] }
 0x845   : > { %v27373_v12 = vrot.slane %v27366_v29, 4  ;;  %v15691_v62 = vrot.slane %v27368_v63, 4  ;;  %v15901_v1 = vshrl.u32 %v27366_v29, 16  ;;  %v15904_v44 = vshll.u32 %v27366_v29, 16  ;;  %v27397_v37 = vld [vmem:[#allocation2 + $0x48] sm:$0xff] }
 0x846   : > { %v16360_v53 = vshrl.u32 %v27397_v37, 16  ;;  %v16363_v49 = vshll.u32 %v27397_v37, 16  ;;  %v16063_v59 = vld [vmem:[#allocation2 + $0x48] sm:$0x1f] }
 0x847   : > { %v27378_v33 = vsel %vm2854_vm8, %v15687_v56, %v27373_v12  ;;  %v15692_v9 = vsel %vm2854_vm8, %v27373_v12, %v15691_v62  ;;  %v16105_v52 = vrot.slane %v15901_v1, 4  ;;  %v16106_v60 = vrot.slane %v15904_v44, 5  ;;  %v27442_v56 = vld [vmem:[#allocation2 + $0x50] sm:$0xff]  ;;  %v22494_v62 = vld [vmem:[%s27813_s9 + $0x58] sm:$0xff]  }
 0x848   : > { %21803 = vmatprep.mubr.msk.bf16.mxu0 %vm440_vm4, %v27378_v33  ;;  %v16777_v51 = vrot.slane %v16360_v53, 4  ;;  %v16778_v8 = vrot.slane %v16363_v49, 5  ;;  %v17032_v29 = vshrl.u32 %v27442_v56, 16  ;;  %v17035_v41 = vshll.u32 %v27442_v56, 16 }
 0x849   : > { %21804 = vmatmul.mubr.msk.bf16.gmra.mrb[236].mxu0 %vm440_vm4, %v15692_v9  ;;  %v27428_v58 = vor.u32 %v16106_v60, %v16105_v52  ;;  %v15894_v9 = vrot.slane %v15892_v18, 3  ;;  %v15903_v27 = vrot.slane %v15901_v1, 3  ;;  %v15906_v22 = vrot.slane %v15904_v44, 4  ;;  %v22495_v52 = vld [vmem:[%s27813_s9 + $0x60] sm:$0xff]  }
 0x84a   : > { %21815 = vmatprep.mubr.msk.bf16.mxu0 %vm440_vm4, %v15854_v32  ;;  %v27440_v25 = vor.u32 %v16778_v8, %v16777_v51  ;;  %v17449_v32 = vrot.slane %v17032_v29, 4  ;;  %v17450_v60 = vrot.slane %v17035_v41, 5  ;;  %v15913_v1 = vshll.u32 %v27368_v63, 16 }
 0x84b   : > { %v16074_v44 = vshrl.u32 %v27265_v19, 16  ;;  %v27481_v45 = vor.u32 %v15906_v22, %v15903_v27  ;;  %v16110_v42 = vshrl.u32 %v16063_v59, 16 }
 0x84c   : > { %v27484_v11 = vor.u32 %v17450_v60, %v17449_v32  ;;  %v16085_v32 = vrot.slane %v15856_v10, 4  ;;  %v16086_v60 = vrot.slane %v15859_v14, 5  ;;  %v16093_v14 = vrot.slane %v15874_v31, 4 }
 0x84e   : > { %v27489_v23 = vsel %vm3512_vm9, %v27440_v25, %v27484_v11  ;;  %v16095_v31 = vor.u32 %v16094_v43, %v16093_v14  ;;  %v22503_v14 = vld [vmem:[%s27813_s9 + $0xa0] sm:$0xff]  }
 0x851   : > { %21816 = vmatmul.mubr.msk.bf16.vlgmr.msra.gmra.mrb[224].mxu0 %vm440_vm4, %v15863_v5  ;;  %v15898_v5 = vor.u32 %v15897_v20, %v15894_v9  ;;  %v16082_v9 = vrot.slane %v15850_v55, 5  ;;  %v16090_v55 = vrot.slane %v15868_v17, 5  ;;  %v16097_v17 = vrot.slane %v15883_v24, 4  ;;  %v22498_v24 = vld [vmem:[%s27813_s9 + $0x78] sm:$0xff]  }
 0x852   : > { %21832 = vmatpush3.bf16.msra.mxu0 %v27335_v35  ;;  %21819 = vmatprep.mubr.msk.bf16.mxu0 %vm440_vm4, %v27417_v39  ;;  %v27449_v35 = vsel %vm3512_vm9, %v27428_v58, %v27440_v25 }
 0x853   : > { %21833 = vmatprep.subr.bf16.mxu0 %v22492_v26  ;;  %v27492_v51 = vsel %vm871_vm2, %v15889_v50, %v15898_v5  ;;  %v27498_v19 = vsel %vm871_vm2, %v15898_v5, %v27481_v45  ;;  %v27519_v5 = vor.u32 %v16086_v60, %v16085_v32 }
 0x856   : > { %21834 = vmatpush3.bf16.msra.mxu0 %v22492_v26  ;;  %v15910_v26 = vshrl.u32 %v27368_v63, 16  ;;  %v15915_v63 = vrot.slane %v15913_v1, 4  ;;  %v16098_v1 = vrot.slane %v15886_v4, 5  ;;  %v16101_v4 = vrot.slane %v15892_v18, 4  ;;  %v22499_v18 = vld [vmem:[%s27813_s9 + $0x80] sm:$0xff]  }
 0x857   : > { %21835 = vmatprep.subr.bf16.mxu0 %v22493_v15 }
 0x858   : > { %v15912_v8 = vrot.slane %v15910_v26, 3  ;;  %v16099_v34 = vor.u32 %v16098_v1, %v16097_v17 }
 0x859   : > { %21820 = vmatmul.mubr.msk.bf16.gmra.mrb[228].mxu0 %vm440_vm4, %v27458_v46 }
 0x85a   : > { %21823 = vmatprep.mubr.msk.bf16.mxu0 %vm440_vm4, %v27467_v3  ;;  %21836 = vmatpush3.bf16.msra.mxu0 %v22493_v15  ;;  %v16076_v15 = vrot.slane %v16074_v44, 4  ;;  %v15916_v50 = vor.u32 %v15915_v63, %v15912_v8  ;;  %v27561_v44 = vsel %vm3512_vm9, %v16095_v31, %v16099_v34  ;;  %v16279_v8 = vld [vmem:[#allocation2 + $0x10] sm:$0xf8] }
 0x85b   : > { %21837 = vmatprep.subr.bf16.mxu0 %v22494_v62 }
 0x85c   : > { %v16080_v20 = vor.u32 %v16079_v0, %v16076_v15  ;;  %v15917_v22 = vsel %vm871_vm2, %v27481_v45, %v15916_v50  ;;  %v16298_v15 = vshrl.u32 %v16279_v8, 16  ;;  %v16301_v0 = vshll.u32 %v16279_v8, 16 }
 0x85d   : > { %v27647_v8 = vrot.slane %v27397_v37, 4 }
 0x85e   : > { %21838 = vmatpush3.bf16.msra.mxu0 %v22494_v62  ;;  %v16081_v62 = vrot.slane %v15847_v6, 4  ;;  %v16089_v6 = vrot.slane %v15865_v21, 4 }
 0x85f   : > { %21855 = vmatprep.subr.bf16.mxu0 %v22495_v52 }
 0x860   : > { %v16083_v27 = vor.u32 %v16082_v9, %v16081_v62  ;;  %v27521_v26 = vor.u32 %v16090_v55, %v16089_v6  ;;  %v16112_v9 = vrot.slane %v16110_v42, 4  ;;  %v22500_v55 = vld [vmem:[%s27813_s9 + $0x88] sm:$0xff]   ;;  %v27654_v42 = vsel %vm2854_vm8, %v27373_v12, %v27647_v8 }
 0x861   : > { %21824 = vmatmul.mubr.msk.bf16.gmra.mrb[232].mxu0 %vm440_vm4, %v27492_v51  ;;  %v22508_v12 = vld [vmem:[%s27813_s9 + $0xc8] sm:$0xff]  }
 0x862   : > { %21827 = vmatprep.mubr.msk.bf16.mxu0 %vm440_vm4, %v27498_v19  ;;  %v16084_v36 = vsel %vm3512_vm9, %v16080_v20, %v16083_v27  ;;  %v16088_v10 = vsel %vm3512_vm9, %v16083_v27, %v27519_v5  ;;  %v27536_v21 = vsel %vm3512_vm9, %v27519_v5, %v27521_v26  ;;  %v27552_v48 = vsel %vm3512_vm9, %v27521_v26, %v16095_v31  ;;  %v16538_v31 = vld [vmem:[#allocation2 + $0x10] sm:$0xf0] }
 0x863   : > { %v16300_v27 = vrot.slane %v16298_v15, 3 }
 0x869   : > { %21828 = vmatmul.mubr.msk.bf16.gmra.mrb[236].mxu0 %vm440_vm4, %v15917_v22  ;;  %v16303_v22 = vrot.slane %v16301_v0, 4 }
 0x86a   : > { %21839 = vmatprep.mubr.msk.bf16.mxu0 %vm440_vm4, %v16084_v36 }
 0x86b   : > { %v16304_v60 = vor.u32 %v16303_v22, %v16300_v27  ;;  %v22509_v27 = vld [vmem:[%s27813_s9 + $0xd0] sm:$0xff]   ;;  %v22511_v22 = vld [vmem:[%s27813_s9 + $0xe0] sm:$0xff]  }
 0x86d   : > { %v16313_v6 = vsel %vm871_vm2, %v16304_v60, %v27399_v54  ;;  %v22502_v54 = vld [vmem:[%s27813_s9 + $0x98] sm:$0xff]  }
 0x871   : > { %21840 = vmatmul.mubr.msk.bf16.vlgmr.msra.gmra.mrb[224].mxu0 %vm440_vm4, %v16088_v10  ;;  %v16287_v10 = vld [vmem:[#allocation2 + $0x50] sm:$0xf] }
 0x872   : > { %21856 = vmatpush3.bf16.msra.mxu0 %v22495_v52  ;;  %21843 = vmatprep.mubr.msk.bf16.mxu0 %vm440_vm4, %v27536_v21  ;;  %v16102_v52 = vrot.slane %v15895_v13, 5  ;;  %v16113_v13 = vshll.u32 %v16063_v59, 16  ;;  %v16369_v17 = vshrl.u32 %v16287_v10, 16  ;;  %v16372_v1 = vshll.u32 %v16287_v10, 16  ;;  %v22505_v59 = vld [vmem:[%s27813_s9 + $0xb0] sm:$0xff]  }
 0x873   : > { %21857 = vmatprep.subr.bf16.mxu0 %v22496_v2  ;;  %v16572_v37 = vrot.slane %v16287_v10, 4 }
 0x874   : > { %v16103_v63 = vor.u32 %v16102_v52, %v16101_v4  ;;  %v16115_v50 = vrot.slane %v16113_v13, 5 }
 0x876   : > { %21858 = vmatpush3.bf16.msra.mxu0 %v22496_v2  ;;  %v27569_v62 = vsel %vm3512_vm9, %v16099_v34, %v16103_v63  ;;  %v27575_v20 = vsel %vm3512_vm9, %v16103_v63, %v27428_v58  ;;  %v16116_v32 = vor.u32 %v16115_v50, %v16112_v9  ;;  %v16365_v2 = vrot.slane %v16363_v49, 4 }
 0x877   : > { %21859 = vmatprep.subr.bf16.mxu0 %v22497_v28  ;;  %v16371_v49 = vrot.slane %v16369_v17, 3  ;;  %v16557_v34 = vrot.slane %v16538_v31, 4  ;;  %v16749_v63 = vshll.u32 %v16538_v31, 16  ;;  %v16573_v9 = vsel %vm2854_vm8, %v27647_v8, %v16572_v37 }
 0x878   : > { %v16117_v36 = vsel %vm3512_vm9, %v27428_v58, %v16116_v32  ;;  %v22501_v58 = vld [vmem:[%s27813_s9 + $0x90] sm:$0xff]   ;;  %v16951_v32 = vld [vmem:[#allocation2 + $0x18] sm:$0xf8] }
 0x879   : > { %21844 = vmatmul.mubr.msk.bf16.gmra.mrb[228].mxu0 %vm440_vm4, %v27552_v48  ;;  %v16559_v52 = vsel %vm2854_vm8, %v16557_v34, %v27281_v61  ;;  %v22506_v61 = vld [vmem:[%s27813_s9 + $0xb8] sm:$0xff]   ;;  %v16751_v15 = vrot.slane %v16749_v63, 5 }
 0x87a   : > { %21847 = vmatprep.mubr.msk.bf16.mxu0 %vm440_vm4, %v27561_v44  ;;  %21860 = vmatpush3.bf16.msra.mxu0 %v22497_v28  ;;  %v16374_v28 = vrot.slane %v16372_v1, 4 }
 0x87b   : > { %21861 = vmatprep.subr.bf16.mxu0 %v22498_v24 }
 0x87e   : > { %21862 = vmatpush3.bf16.msra.mxu0 %v22498_v24  ;;  %v16375_v24 = vor.u32 %v16374_v28, %v16371_v49  ;;  %v22512_v49 = vld [vmem:[%s27813_s9 + $0xe8] sm:$0xff]   ;;  %v16959_v28 = vld [vmem:[#allocation2 + $0x58] sm:$0xf] }
 0x87f   : > { %21879 = vmatprep.subr.bf16.mxu0 %v22499_v18  ;;  %v17041_v34 = vshrl.u32 %v16959_v28, 16 }
 0x881   : > { %21848 = vmatmul.mubr.msk.bf16.gmra.mrb[232].mxu0 %vm440_vm4, %v27569_v62 }
 0x882   : > { %21851 = vmatprep.mubr.msk.bf16.mxu0 %vm440_vm4, %v27575_v20 }
 0x889   : > { %21852 = vmatmul.mubr.msk.bf16.gmra.mrb[236].mxu0 %vm440_vm4, %v16117_v36 }
 0x88a   : > { %21863 = vmatprep.mubr.msk.bf16.mxu0 %vm440_vm4, %v16313_v6  ;;  %v16970_v6 = vshrl.u32 %v16951_v32, 16 }
 0x891   : > { %21864 = vmatmul.mubr.msk.bf16.vlgmr.msra.gmra.mrb[224].mxu0 %vm440_vm4, %v27417_v39  ;;  %v16362_v39 = vrot.slane %v16360_v53, 3 }
 0x892   : > { %21880 = vmatpush3.bf16.msra.mxu0 %v22499_v18  ;;  %21867 = vmatprep.mubr.msk.bf16.mxu0 %vm440_vm4, %v27458_v46  ;;  %v16746_v18 = vshrl.u32 %v16538_v31, 16  ;;  %v22515_v31 = vld [vmem:[%s27813_s9 + $0x100] sm:$0xff]  }
 0x893   : > { %21881 = vmatprep.subr.bf16.mxu0 %v22500_v55  ;;  %v27609_v43 = vor.u32 %v16365_v2, %v16362_v39  ;;  %v16972_v39 = vrot.slane %v16970_v6, 3 }
 0x894   : > { %v16748_v13 = vrot.slane %v16746_v18, 4 }
 0x895   : > { %v27616_v53 = vsel %vm871_vm2, %v27481_v45, %v27609_v43  ;;  %v16376_v4 = vsel %vm871_vm2, %v27609_v43, %v16375_v24  ;;  %v22504_v45 = vld [vmem:[%s27813_s9 + $0xa8] sm:$0xff]   ;;  %v17044_v24 = vshll.u32 %v16959_v28, 16 }
 0x896   : > { %21882 = vmatpush3.bf16.msra.mxu0 %v22500_v55  ;;  %v16752_v0 = vor.u32 %v16751_v15, %v16748_v13  ;;  %v16973_v55 = vshll.u32 %v16951_v32, 16  ;;  %v17244_v13 = vrot.slane %v16959_v28, 4 }
 0x897   : > { %21883 = vmatprep.subr.bf16.mxu0 %v22501_v58 }
 0x898   : > { %v16756_v50 = vsel %vm3512_vm9, %v16752_v0, %v27519_v5  ;;  %v22510_v5 = vld [vmem:[%s27813_s9 + $0xd8] sm:$0xff]   ;;  %v16975_v2 = vrot.slane %v16973_v55, 4 }
 0x899   : > { %21868 = vmatmul.mubr.msk.bf16.gmra.mrb[228].mxu0 %vm440_vm4, %v27467_v3 }
 0x89a   : > { %21871 = vmatprep.mubr.msk.bf16.mxu0 %vm440_vm4, %v27492_v51  ;;  %21884 = vmatpush3.bf16.msra.mxu0 %v22501_v58 }
 0x89b   : > { %21885 = vmatprep.subr.bf16.mxu0 %v22502_v54 }
 0x89e   : > { %21886 = vmatpush3.bf16.msra.mxu0 %v22502_v54 }
 0x89f   : > { %21903 = vmatprep.subr.bf16.mxu0 %v22503_v14 }
 0x8a1   : > { %21872 = vmatmul.mubr.msk.bf16.gmra.mrb[232].mxu0 %vm440_vm4, %v27498_v19 }
 0x8a2   : > { %21875 = vmatprep.mubr.msk.bf16.mxu0 %vm440_vm4, %v27616_v53 }
 0x8a9   : > { %21876 = vmatmul.mubr.msk.bf16.gmra.mrb[236].mxu0 %vm440_vm4, %v16376_v4  ;;  %v17043_v4 = vrot.slane %v17041_v34, 3 }
 0x8aa   : > { %21887 = vmatprep.mubr.msk.bf16.mxu0 %vm440_vm4, %v16559_v52  ;;  %v17046_v52 = vrot.slane %v17044_v24, 4 }
 0x8b1   : > { %21888 = vmatmul.mubr.msk.bf16.vlgmr.msra.gmra.mrb[224].mxu0 %vm440_vm4, %v27317_v40  ;;  %v22507_v40 = vld [vmem:[%s27813_s9 + $0xc0] sm:$0xff]  }
 0x8b2   : > { %21904 = vmatpush3.bf16.msra.mxu0 %v22503_v14  ;;  %21891 = vmatprep.mubr.msk.bf16.mxu0 %vm440_vm4, %v27321_v16  ;;  %v16976_v14 = vor.u32 %v16975_v2, %v16972_v39 }
 0x8b3   : > { %21905 = vmatprep.subr.bf16.mxu0 %v22504_v45 }
 0x8b4   : > { %v16985_v1 = vsel %vm871_vm2, %v16976_v14, %v27402_v30  ;;  %v22514_v30 = vld [vmem:[%s27813_s9 + $0xf8] sm:$0xff]  }
 0x8b6   : > { %21906 = vmatpush3.bf16.msra.mxu0 %v22504_v45 }
 0x8b7   : > { %21907 = vmatprep.subr.bf16.mxu0 %v22505_v59 }
 0x8b9   : > { %21892 = vmatmul.mubr.msk.bf16.gmra.mrb[228].mxu0 %vm440_vm4, %v27350_v57 }
 0x8ba   : > { %21895 = vmatprep.mubr.msk.bf16.mxu0 %vm440_vm4, %v27353_v47  ;;  %21908 = vmatpush3.bf16.msra.mxu0 %v22505_v59 }
 0x8bb   : > { %21909 = vmatprep.subr.bf16.mxu0 %v22506_v61 }
 0x8be   : > { %21910 = vmatpush3.bf16.msra.mxu0 %v22506_v61 }
 0x8bf   : > { %21927 = vmatprep.subr.bf16.mxu0 %v22507_v40 }
 0x8c1   : > { %21896 = vmatmul.mubr.msk.bf16.gmra.mrb[232].mxu0 %vm440_vm4, %v27378_v33 }
 0x8c2   : > { %21899 = vmatprep.mubr.msk.bf16.mxu0 %vm440_vm4, %v27654_v42 }
 0x8c9   : > { %21900 = vmatmul.mubr.msk.bf16.gmra.mrb[236].mxu0 %vm440_vm4, %v16573_v9 }
 0x8ca   : > { %21911 = vmatprep.mubr.msk.bf16.mxu0 %vm440_vm4, %v16756_v50 }
 0x8d1   : > { %21912 = vmatmul.mubr.msk.bf16.vlgmr.msra.gmra.mrb[224].mxu0 %vm440_vm4, %v27536_v21  ;;  %v16735_v21 = vld [vmem:[#allocation2 + $0x50] sm:$0x1f] }
 0x8d2   : > { %21928 = vmatpush3.bf16.msra.mxu0 %v22507_v40  ;;  %21915 = vmatprep.mubr.msk.bf16.mxu0 %vm440_vm4, %v27552_v48  ;;  %v16782_v60 = vshrl.u32 %v16735_v21, 16  ;;  %v16785_v36 = vshll.u32 %v16735_v21, 16 }
 0x8d3   : > { %21929 = vmatprep.subr.bf16.mxu0 %v22508_v12 }
 0x8d4   : > { %v16784_v58 = vrot.slane %v16782_v60, 4  ;;  %v16787_v54 = vrot.slane %v16785_v36, 5 }
 0x8d6   : > { %21930 = vmatpush3.bf16.msra.mxu0 %v22508_v12  ;;  %v16788_v10 = vor.u32 %v16787_v54, %v16784_v58 }
 0x8d7   : > { %21931 = vmatprep.subr.bf16.mxu0 %v22509_v27 }
 0x8d8   : > { %v16789_v17 = vsel %vm3512_vm9, %v27440_v25, %v16788_v10  ;;  %v22513_v25 = vld [vmem:[%s27813_s9 + $0xf0] sm:$0xff]  }
 0x8d9   : > { %21916 = vmatmul.mubr.msk.bf16.gmra.mrb[228].mxu0 %vm440_vm4, %v27561_v44 }
 0x8da   : > { %21919 = vmatprep.mubr.msk.bf16.mxu0 %vm440_vm4, %v27569_v62  ;;  %21932 = vmatpush3.bf16.msra.mxu0 %v22509_v27 }
 0x8db   : > { %21933 = vmatprep.subr.bf16.mxu0 %v22510_v5 }
 0x8de   : > { %21934 = vmatpush3.bf16.msra.mxu0 %v22510_v5 }
 0x8df   : > { %21951 = vmatprep.subr.bf16.mxu0 %v22511_v22 }
 0x8e1   : > { %21920 = vmatmul.mubr.msk.bf16.gmra.mrb[232].mxu0 %vm440_vm4, %v27575_v20 }
 0x8e2   : > { %21923 = vmatprep.mubr.msk.bf16.mxu0 %vm440_vm4, %v27449_v35 }
 0x8e9   : > { %21924 = vmatmul.mubr.msk.bf16.gmra.mrb[236].mxu0 %vm440_vm4, %v16789_v17 }
 0x8ea   : > { %21935 = vmatprep.mubr.msk.bf16.mxu0 %vm440_vm4, %v16985_v1 }
 0x8f1   : > { %21936 = vmatmul.mubr.msk.bf16.vlgmr.msra.gmra.mrb[224].mxu0 %vm440_vm4, %v27458_v46  ;;  %v17034_v46 = vrot.slane %v17032_v29, 3 }
 0x8f2   : > { %21952 = vmatpush3.bf16.msra.mxu0 %v22511_v22  ;;  %21939 = vmatprep.mubr.msk.bf16.mxu0 %vm440_vm4, %v27467_v3  ;;  %v17037_v3 = vrot.slane %v17035_v41, 4  ;;  %v17047_v41 = vor.u32 %v17046_v52, %v17043_v4 }
 0x8f3   : > { %21953 = vmatprep.subr.bf16.mxu0 %v22512_v49 }
 0x8f6   : > { %21954 = vmatpush3.bf16.msra.mxu0 %v22512_v49 }
 0x8f7   : > { %21955 = vmatprep.subr.bf16.mxu0 %v22513_v25 }
 0x8f9   : > { %21940 = vmatmul.mubr.msk.bf16.gmra.mrb[228].mxu0 %vm440_vm4, %v27492_v51  ;;  %v17038_v51 = vor.u32 %v17037_v3, %v17034_v46 }
 0x8fa   : > { %21943 = vmatprep.mubr.msk.bf16.mxu0 %vm440_vm4, %v27498_v19  ;;  %21956 = vmatpush3.bf16.msra.mxu0 %v22513_v25  ;;  %v17210_v19 = vld [vmem:[#allocation2 + $0x18] sm:$0xf0] }
 0x8fb   : > { %21957 = vmatprep.subr.bf16.mxu0 %v22514_v30  ;;  %v17039_v29 = vsel %vm871_vm2, %v27609_v43, %v17038_v51  ;;  %v17229_v45 = vrot.slane %v17210_v19, 4  ;;  %v17048_v59 = vsel %vm871_vm2, %v17038_v51, %v17047_v41  ;;  %v22517_v43 = vld [vmem:[%s27813_s9 + $0x110] sm:$0xff]   ;;  %v17421_v40 = vshll.u32 %v17210_v19, 16 }
 0x8fd   : > { %v17231_v61 = vsel %vm2854_vm8, %v17229_v45, %v27310_v38  ;;  %v22518_v38 = vld [vmem:[%s27813_s9 + $0x118] sm:$0xff]  }
 0x8fe   : > { %21958 = vmatpush3.bf16.msra.mxu0 %v22514_v30 }
 0x8ff   : > { %21975 = vmatprep.subr.bf16.mxu0 %v22515_v31 }
 0x901   : > { %21944 = vmatmul.mubr.msk.bf16.gmra.mrb[232].mxu0 %vm440_vm4, %v27616_v53  ;;  %v22516_v53 = vld [vmem:[%s27813_s9 + $0x108] sm:$0xff]  }
 0x902   : > { %21947 = vmatprep.mubr.msk.bf16.mxu0 %vm440_vm4, %v17039_v29 }
 0x909   : > { %21948 = vmatmul.mubr.msk.bf16.gmra.mrb[236].mxu0 %vm440_vm4, %v17048_v59 }
 0x90a   : > { %21959 = vmatprep.mubr.msk.bf16.mxu0 %vm440_vm4, %v17231_v61 }
 0x911   : > { %21960 = vmatmul.mubr.msk.bf16.vlgmr.msra.gmra.mrb[224].mxu0 %vm440_vm4, %v27321_v16  ;;  %v17242_v16 = vrot.slane %v27442_v56, 4 }
 0x912   : > { %21976 = vmatpush3.bf16.msra.mxu0 %v22515_v31  ;;  %21963 = vmatprep.mubr.msk.bf16.mxu0 %vm440_vm4, %v27350_v57  ;;  %v17418_v57 = vshrl.u32 %v17210_v19, 16 }
 0x913   : > { %21977 = vmatprep.subr.bf16.mxu0 %v22516_v53  ;;  %v17243_v18 = vsel %vm2854_vm8, %v27647_v8, %v17242_v16  ;;  %v17407_v8 = vld [vmem:[#allocation2 + $0x58] sm:$0x1f] }
 0x914   : > { %v17420_v63 = vrot.slane %v17418_v57, 4  ;;  %v17457_v0 = vshll.u32 %v17407_v8, 16 }
 0x916   : > { %21978 = vmatpush3.bf16.msra.mxu0 %v22516_v53  ;;  %v17459_v9 = vrot.slane %v17457_v0, 5 }
 0x917   : > { %21979 = vmatprep.subr.bf16.mxu0 %v22517_v43 }
 0x919   : > { %21964 = vmatmul.mubr.msk.bf16.gmra.mrb[228].mxu0 %vm440_vm4, %v27353_v47  ;;  %v17423_v47 = vrot.slane %v17421_v40, 5 }
 0x91a   : > { %21967 = vmatprep.mubr.msk.bf16.mxu0 %vm440_vm4, %v27378_v33  ;;  %21980 = vmatpush3.bf16.msra.mxu0 %v22517_v43  ;;  %v17245_v33 = vsel %vm2854_vm8, %v17242_v16, %v17244_v13 }
 0x91b   : > { %21981 = vmatprep.subr.bf16.mxu0 %v22518_v38  ;;  %v17424_v15 = vor.u32 %v17423_v47, %v17420_v63 }
 0x91d   : > { %v17428_v56 = vsel %vm3512_vm9, %v17424_v15, %v27521_v26 }
 0x91e   : > { %21982 = vmatpush3.bf16.msra.mxu0 %v22518_v38 }
 0x921   : > { %21968 = vmatmul.mubr.msk.bf16.gmra.mrb[232].mxu0 %vm440_vm4, %v27654_v42  ;;  %v17454_v42 = vshrl.u32 %v17407_v8, 16 }
 0x922   : > { %21971 = vmatprep.mubr.msk.bf16.mxu0 %vm440_vm4, %v17243_v18 }
 0x923   : > { %v17456_v37 = vrot.slane %v17454_v42, 4 }
 0x925   : > { %v17460_v26 = vor.u32 %v17459_v9, %v17456_v37 }
 0x929   : > { %21972 = vmatmul.mubr.msk.bf16.gmra.mrb[236].mxu0 %vm440_vm4, %v17245_v33 }
 0x92a   : > { %21983 = vmatprep.mubr.msk.bf16.mxu0 %vm440_vm4, %v17428_v56 }
 0x931   : > { %21984 = vmatmul.mubr.msk.bf16.vlgmr.msra.gmra.mrb[224].mxu0 %vm440_vm4, %v27552_v48  ;;  %v17461_v48 = vsel %vm3512_vm9, %v27484_v11, %v17460_v26 }
 0x932   : > { %21987 = vmatprep.mubr.msk.bf16.mxu0 %vm440_vm4, %v27561_v44  ;;  %v17671_v44 = vld [vmem:[%s27816_s12] sm:$0xf] }
 0x933   : > { %17674 = vperm.xlu0 %22168, %v17671_v44  }
 0x939   : > { %21988 = vmatmul.mubr.msk.bf16.gmra.mrb[228].mxu0 %vm440_vm4, %v27569_v62 }
 0x93a   : > { %21991 = vmatprep.mubr.msk.bf16.mxu0 %vm440_vm4, %v27575_v20 }
 0x941   : > { %21992 = vmatmul.mubr.msk.bf16.gmra.mrb[232].mxu0 %vm440_vm4, %v27449_v35  ;;  %v19295_v35 = vld [vmem:[%s27814_s10] ss:$0 sm:$0xff] }
 0x942   : > { %21995 = vmatprep.mubr.msk.bf16.mxu0 %vm440_vm4, %v27489_v23 }
 0x949   : > { %21996 = vmatmul.mubr.msk.bf16.gmra.mrb[236].mxu0 %vm440_vm4, %v17461_v48 }
 0xa04   : > { %v21985_v62 = vpop.f32.mrb[224].mxu0 }
 0xa05   : > { %v17632_v23 = vadd.f32 %v21985_v62, %v19295_v35  ;;  %v17544_v20 = vpop.f32.mrb[225].mxu0 }
 0xa06   : > { %v17630_v50 = vadd.f32 %v19295_v35, %v17544_v20  ;;  %v21986_v12 = vpop.f32.mrb[226].mxu0  ;;  %v17675_v20 = vpop.permute.xlu0 %17674 }
 0xa07   : > { %v17633_v11 = vadd.f32 %v21986_v12, %v19295_v35  ;;  %v17547_v27 = vpop.f32.mrb[227].mxu0  ;;  %v17648_v21 = vmax.f32 %v17632_v23, 0.0  ;;  %v17662_v23 = vld [vmem:[%s27815_s11] sm:$0x3] }
 0xa08   : > { %v17631_v5 = vadd.f32 %v19295_v35, %v17547_v27  ;;  %v17646_v32 = vmax.f32 %v17630_v50, 0.0 }
 0xa09   : > { %v17649_v22 = vmax.f32 %v17633_v11, 0.0 }
 0xa0a   : > { %v17647_v60 = vmax.f32 %v17631_v5, 0.0 }
 0xa0b   : > { %v17664_v36 = vpack.c.bf16 %v17649_v22, %v17648_v21 }
 0xa0c   : > { %v17663_v6 = vpack.c.bf16 %v17647_v60, %v17646_v32  ;;  %v21989_v55 = vpop.f32.mrb[228].mxu0 }
 0xa0d   : > { %v17636_v58 = vadd.f32 %v21989_v55, %v19295_v35  ;;  %v17560_v54 = vpop.f32.mrb[229].mxu0  ;;  %v17684_v52 = vsel %vm440_vm4, %v17664_v36, 0 }
 0xa0e   : > { %v17634_v39 = vadd.f32 %v19295_v35, %v17560_v54  ;;  %v21990_v2 = vpop.f32.mrb[230].mxu0  ;;  %v17681_v10 = vsel %vm440_vm4, %v17663_v6, 0 }
 0xa0f   : > { %v17637_v14 = vadd.f32 %v21990_v2, %v19295_v35  ;;  %v17563_v17 = vpop.f32.mrb[231].mxu0  ;;  %22000 = vmatpush3.bf16.xpose.msra.mxu1 %v17681_v10  ;;  %v17652_v49 = vmax.f32 %v17636_v58, 0.0 }
 0xa10   : > { %v17635_v1 = vadd.f32 %v19295_v35, %v17563_v17  ;;  %22001 = vmatprep.subr.bf16.mxu1 %v22553_v7  ;;  %v17650_v30 = vmax.f32 %v17634_v39, 0.0 }
 0xa11   : > { %v17653_v25 = vmax.f32 %v17637_v14, 0.0 }
 0xa12   : > { %v17651_v28 = vmax.f32 %v17635_v1, 0.0 }
 0xa13   : > { %v17666_v46 = vpack.c.bf16 %v17653_v25, %v17652_v49 }
 0xa14   : > { %v17665_v3 = vpack.c.bf16 %v17651_v28, %v17650_v30  ;;  %v21993_v31 = vpop.f32.mrb[232].mxu0 }
 0xa15   : > { %v17640_v34 = vadd.f32 %v21993_v31, %v19295_v35  ;;  %v17576_v24 = vpop.f32.mrb[233].mxu0  ;;  %v17690_v26 = vsel %vm440_vm4, %v17666_v46, 0 }
 0xa16   : > { %v17638_v51 = vadd.f32 %v19295_v35, %v17576_v24  ;;  %v21994_v4 = vpop.f32.mrb[234].mxu0  ;;  %v17687_v47 = vsel %vm440_vm4, %v17665_v3, 0 }
 0xa17   : > { %v17641_v29 = vadd.f32 %v21994_v4, %v19295_v35  ;;  %v17579_v41 = vpop.f32.mrb[235].mxu0  ;;  %22002 = vmatpush3.bf16.xpose.msra.mxu1 %v17684_v52  ;;  %v17656_v45 = vmax.f32 %v17640_v34, 0.0 }
 0xa18   : > { %v17639_v19 = vadd.f32 %v19295_v35, %v17579_v41  ;;  %22003 = vmatprep.subr.bf16.mxu1 %v22553_v7  ;;  %v17654_v61 = vmax.f32 %v17638_v51, 0.0 }
 0xa19   : > { %v17657_v59 = vmax.f32 %v17641_v29, 0.0 }
 0xa1a   : > { %v17655_v53 = vmax.f32 %v17639_v19, 0.0 }
 0xa1b   : > { %v17668_v43 = vpack.c.bf16 %v17657_v59, %v17656_v45 }
 0xa1c   : > { %v17667_v38 = vpack.c.bf16 %v17655_v53, %v17654_v61  ;;  %v21997_v16 = vpop.f32.mrb[236].mxu0 }
 0xa1d   : > { %v17644_v57 = vadd.f32 %v21997_v16, %v19295_v35  ;;  %v17592_v40 = vpop.f32.mrb[237].mxu0  ;;  %v17696_v44 = vsel %vm440_vm4, %v17668_v43, 0 }
 0xa1e   : > { %v17642_v18 = vadd.f32 %v19295_v35, %v17592_v40  ;;  %v21998_v63 = vpop.f32.mrb[238].mxu0  ;;  %v17693_v48 = vsel %vm440_vm4, %v17667_v38, 0 }
 0xa1f   : > { %v17645_v13 = vadd.f32 %v21998_v63, %v19295_v35  ;;  %v17595_v15 = vpop.f32.mrb[239].mxu0  ;;  %22004 = vmatpush3.bf16.xpose.msra.mxu1 %v17687_v47  ;;  %v17660_v56 = vmax.f32 %v17644_v57, 0.0 }
 0xa20   : > { %v17643_v33 = vadd.f32 %v19295_v35, %v17595_v15  ;;  %22005 = vmatprep.subr.bf16.mxu1 %v22553_v7  ;;  %v17658_v42 = vmax.f32 %v17642_v18, 0.0 }
 0xa21   : > { %v17661_v8 = vmax.f32 %v17645_v13, 0.0 }
 0xa22   : > { %v17659_v0 = vmax.f32 %v17643_v33, 0.0 }
 0xa23   : > { %v17670_v37 = vpack.c.bf16 %v17661_v8, %v17660_v56 }
 0xa24   : > { %v17669_v9 = vpack.c.bf16 %v17659_v0, %v17658_v42 }
 0xa25   : > { %v17702_v62 = vsel %vm440_vm4, %v17670_v37, 0 }
 0xa26   : > { %v17699_v35 = vsel %vm440_vm4, %v17669_v9, 0 }
 0xa27   : > { %22006 = vmatpush3.bf16.xpose.msra.mxu1 %v17690_v26 }
 0xa28   : > { %22007 = vmatprep.subr.bf16.mxu1 %v22553_v7 }
 0xa2f   : > { %22008 = vmatpush3.bf16.xpose.msra.mxu1 %v17693_v48 }
 0xa30   : > { %22009 = vmatprep.subr.bf16.mxu1 %v22553_v7 }
 0xa37   : > { %22010 = vmatpush3.bf16.xpose.msra.mxu1 %v17696_v44 }
 0xa38   : > { %22011 = vmatprep.subr.bf16.mxu1 %v22553_v7 }
 0xa3f   : > { %22012 = vmatpush3.bf16.xpose.msra.mxu1 %v17699_v35 }
 0xa40   : > { %22013 = vmatprep.subr.bf16.mxu1 %v22553_v7 }
 0xa47   : > { %22014 = vmatpush3.bf16.xpose.msra.mxu1 %v17702_v62 }
 0xa4e   : > { %22016 = vmatmul.mubr.msk.bf16.vlgmr.msra.gmra.mrb[96].mxu1 %vm440_vm4, %v17662_v23 }
 0xb21   : > { %v17738_v50 = vpop.f32.mrb[96].mxu1 }
 0xb22   : > { %v17739_v12 = vadd.f32 %v17738_v50, %v17675_v20  ;;  %v22017_v11 = vpop.f32.mrb[97].mxu1 }
 0xb23   : > { %v17741_v27 = vpop.f32.mrb[98].mxu1 }
 0xb24   : > { %17744 = vst [vmem:[%s438_s23] sm:$0xf] %v17739_v12  ;;  %v22018_v7 = vpop.f32.mrb[99].mxu1 }
 0xb25 PF: > { %s23_s25 = sadd.s32 1, %s22550_s25  }
 0xb26   : > { %p20_p4 = scmp.ge.s32.totalorder %s23_s25, 4  }
 0xb28   :  { %22 = sbr.rel (!%p20_p4) target bundleno = 1 (0x1), region = 174 }

</bundles_post_ra>
